<compile_context>
chip_gen: v7x
topology: tpu7x:2x2x1
jax: 0.10.0
libtpu: 0.0.40
codegen_flags: <defaults>
</compile_context>

<pallas_src>
import jax
import jax.numpy as jnp
from jax import lax
from jax.experimental import pallas as pl
from jax.experimental.pallas import tpu as pltpu


# Static per-layer config: (stride, batchnorm-after-conv, leakyrelu-after-conv).
LAYER_CFGS = (
    (2, False, True),
    (2, True, True),
    (2, True, True),
    (2, True, True),
    (1, False, False),
)
BN_EPS = 1e-5
LEAKY_SLOPE = 0.2
VMEM_LIMIT_BYTES = 64 * 1024 * 1024      # >= scoped-VMEM defaults on v5e/v6e/v7x


def _round_up(v, m):
    return ((v + m - 1) // m) * m


# ---------------------------------------------------------------------------------
# Layer 0: tiny cin -> full im2col staged in XLA, one dense MXU matmul in Pallas.
# ---------------------------------------------------------------------------------
def _first_layer_conv(x, w, b):
    """Conv2d(4x4, stride 2, pad 1) on the raw small-cin image.
    Output: (n, hout, wout, coutp) bf16 with channels padded to a multiple of 128."""
    n, h, wdim, cin = x.shape
    cout = w.shape[0]
    coutp = _round_up(max(cout, 128), 128)
    hout = (h - 2) // 2 + 1
    wout = (wdim - 2) // 2 + 1
    m = hout * wout
    k = 16 * cin

    xp = jnp.pad(x, ((0, 0), (1, 1), (1, 1), (0, 0)))
    patches = jnp.concatenate(
        [xp[:, kh:kh + 2 * hout:2, kw:kw + 2 * wout:2, :]
         for kh in range(4) for kw in range(4)], axis=-1)          # (n,hout,wout,16*cin)
    patches = patches.reshape(n, m, k).astype(jnp.bfloat16)

    wk = jnp.transpose(w, (2, 3, 1, 0)).reshape(k, cout)           # (kh,kw,cin) K-major
    wk = jnp.pad(wk, ((0, 0), (0, coutp - cout))).astype(jnp.bfloat16)
    bk = jnp.pad(b, (0, coutp - cout)).reshape(1, coutp).astype(jnp.float32)

    tile_m = m
    if m > 1024:
        for cand in (1024, 512, 256, 128):
            if m % cand == 0:
                tile_m = cand
                break

    def kernel(p_ref, w_ref, b_ref, y_ref):
        d = jnp.dot(p_ref[0], w_ref[...], preferred_element_type=jnp.float32)
        y_ref[0] = (d + b_ref[...]).astype(y_ref.dtype)

    y = pl.pallas_call(
        kernel,
        out_shape=jax.ShapeDtypeStruct((n, m, coutp), jnp.bfloat16),
        grid_spec=pltpu.PrefetchScalarGridSpec(
            num_scalar_prefetch=0,
            grid=(n, m // tile_m),
            in_specs=[
                pl.BlockSpec((1, tile_m, k), lambda i, r: (i, r, 0)),
                pl.BlockSpec((k, coutp), lambda i, r: (0, 0)),       # resident weights
                pl.BlockSpec((1, coutp), lambda i, r: (0, 0)),
            ],
            out_specs=pl.BlockSpec((1, tile_m, coutp), lambda i, r: (i, r, 0)),
        ),
        compiler_params=pltpu.CompilerParams(
            dimension_semantics=("parallel", "parallel"),
            vmem_limit_bytes=VMEM_LIMIT_BYTES),
    )(patches, wk, bk)
    return y.reshape(n, hout, wout, coutp)


# ---------------------------------------------------------------------------------
# Layers 1..4: fused (BN-affine + LeakyReLU + conv [+ BN stats]) phase kernels.
# ---------------------------------------------------------------------------------
def _make_phase_kernel(n_shift, wh, m_rows, n_phases, cin,
                       leaky_in, has_affine, need_stats):
    shifts = [(sh, sw) for sh in range(n_shift) for sw in range(n_shift)]

    def kernel(*refs):
        if need_stats:
            (f_ref, w_ref, b_ref, s_ref, t_ref, bm_ref, cm_ref,
             y_ref, sum_ref, sq_ref, act_ref, lhs_ref, acc_ref) = refs
        else:
            (f_ref, w_ref, b_ref, s_ref, t_ref, bm_ref,
             y_ref, act_ref, lhs_ref, acc_ref) = refs

        ph = pl.program_id(1)

        # 1) previous layer's folded BatchNorm affine + LeakyReLU applied ONCE to the
        #    whole resident slab; padded border forced back to exact zero; bf16 cast.
        a = f_ref[0, 0].astype(jnp.float32)
        if has_affine:
            a = a * s_ref[...] + t_ref[...]
        if leaky_in:
            a = jnp.where(a >= 0, a, LEAKY_SLOPE * a)
        if has_affine:
            a = a * bm_ref[0]
        act_ref[...] = a.astype(jnp.bfloat16)

        # 2) gather the phase's taps into one (m_rows, taps*cin) LHS: the whole phase
        #    becomes a single full-K MXU matmul.
        for j, (sh, sw) in enumerate(shifts):
            start = sh * wh + sw                       # static offset
            lhs_ref[:, j * cin:(j + 1) * cin] = act_ref[start:start + m_rows, :]

        wp = w_ref[ph] if n_phases > 1 else w_ref[0]
        d = jnp.dot(lhs_ref[...], wp, preferred_element_type=jnp.float32)

        # 3) f32 accumulation across phases; first phase also folds in the bias.
        @pl.when(ph == 0)
        def _():
            acc_ref[...] = d + b_ref[...]

        @pl.when(ph != 0)
        def _():
            acc_ref[...] += d

        @pl.when(ph == n_phases - 1)
        def _finalize():
            y = acc_ref[...]
            y_ref[0] = y.astype(y_ref.dtype)
            if need_stats:
                yv = y * cm_ref[...]                   # drop junk (ow >= wout) columns
                sum_ref[0] = jnp.sum(yv, axis=0, keepdims=True)
                sq_ref[0] = jnp.sum(yv * yv, axis=0, keepdims=True)

    return kernel


def _phase_conv_layer(x, w, b, in_scale, in_shift, *, leaky_in, has_affine,
                      stride, need_stats, out_f32):
    """Conv2d(4x4, stride, pad=1) applied to transform(x), where
         transform(v) = [LeakyReLU_0.2]( v * in_scale + in_shift )   (per channel)
    is the previous layer's folded (BatchNorm +) activation, evaluated in-kernel.
    x: (n, h, w, cinp) bf16 activations with 128-padded channels."""
    n, h, wdim, cin = x.shape
    cout, cin_real = w.shape[0], w.shape[1]
    coutp = _round_up(max(cout, 128), 128)
    assert (h + 2) % stride == 0 and (wdim + 2) % stride == 0

    hout = (h + 2 - 4) // stride + 1
    wout = (wdim + 2 - 4) // stride + 1
    n_shift = 4 // stride
    taps = n_shift * n_shift
    n_phases = stride * stride
    hh = hout + n_shift - 1
    wh = wout + n_shift - 1
    flat = hh * wh + (n_shift - 1)
    m_rows = hout * wh
    k_phase = taps * cin

    # ---- XLA staging: stride-phase space-to-depth of the zero-padded bf16 input ----
    xp = jnp.pad(x, ((0, 0), (1, 1), (1, 1), (0, 0)))
    if stride == 2:
        phs = xp.reshape(n, hh, 2, wh, 2, cin).transpose(2, 4, 0, 1, 3, 5)
        phs = phs.reshape(n_phases, n, hh * wh, cin)
    else:
        phs = xp.reshape(1, n, hh * wh, cin)
    phs = jnp.pad(phs, ((0, 0), (0, 0), (0, n_shift - 1), (0, 0)))

    # Border mask: 1 interior / 0 on the zero-padded ring (+ tail rows); applied AFTER
    # the fused affine so the padding is exactly zero (no pad-value round trips).
    om = jnp.pad(jnp.ones((1, h, wdim, 1), jnp.float32),
                 ((0, 0), (1, 1), (1, 1), (0, 0)))
    if stride == 2:
        bm = om.reshape(1, hh, 2, wh, 2, 1).transpose(2, 4, 0, 1, 3, 5)
        bm = bm.reshape(n_phases, hh * wh, 1)
    else:
        bm = om.reshape(1, hh * wh, 1)
    bm = jnp.pad(bm, ((0, 0), (0, n_shift - 1), (0, 0)))

    # Valid-column mask for the BN statistics epilogue.
    cm = (jnp.arange(m_rows) % wh < wout).astype(jnp.float32).reshape(m_rows, 1)

    # Weights: (Cout, Cin, 4, 4) -> per-phase (taps*Cin, Coutp), tap order matching the
    # LHS gather; zero-padded on Cin (padded activation channels) and Cout (lane-dense).
    wt = jnp.transpose(w, (2, 3, 1, 0))
    wt = jnp.pad(wt, ((0, 0), (0, 0), (0, cin - cin_real), (0, coutp - cout)))
    w_phase = jnp.stack([
        jnp.concatenate([wt[sh * stride + p, sw * stride + q]
                         for sh in range(n_shift) for sw in range(n_shift)], axis=0)
        for p in range(stride) for q in range(stride)
    ]).astype(jnp.bfloat16)                               # (n_phases, taps*cin, coutp)

    b_p = jnp.pad(b, (0, coutp - cout)).reshape(1, coutp).astype(jnp.float32)
    s_in = in_scale.reshape(1, cin).astype(jnp.float32)
    t_in = in_shift.reshape(1, cin).astype(jnp.float32)

    kernel = _make_phase_kernel(n_shift, wh, m_rows, n_phases, cin,
                                leaky_in, has_affine, need_stats)

    y_dtype = jnp.float32 if out_f32 else jnp.bfloat16
    out_shapes = [jax.ShapeDtypeStruct((n, m_rows, coutp), y_dtype)]
    out_specs = [pl.BlockSpec((1, m_rows, coutp), lambda i, j: (i, 0, 0))]
    if need_stats:
        out_shapes += [jax.ShapeDtypeStruct((n, 1, coutp), jnp.float32)] * 2
        out_specs += [pl.BlockSpec((1, 1, coutp), lambda i, j: (i, 0, 0))] * 2

    in_specs = [
        pl.BlockSpec((1, 1, flat, cin), lambda i, j: (j, i, 0, 0)),        # phase slab
        pl.BlockSpec((n_phases, k_phase, coutp), lambda i, j: (0, 0, 0)),  # resident W
        pl.BlockSpec((1, coutp), lambda i, j: (0, 0)),                     # bias
        pl.BlockSpec((1, cin), lambda i, j: (0, 0)),                       # fused scale
        pl.BlockSpec((1, cin), lambda i, j: (0, 0)),                       # fused shift
        pl.BlockSpec((1, flat, 1), lambda i, j: (j, 0, 0)),                # border mask
    ]
    args = [phs, w_phase, b_p, s_in, t_in, bm]
    if need_stats:
        in_specs.append(pl.BlockSpec((m_rows, 1), lambda i, j: (0, 0)))    # column mask
        args.append(cm)

    results = pl.pallas_call(
        kernel,
        out_shape=tuple(out_shapes),
        grid_spec=pltpu.PrefetchScalarGridSpec(
            num_scalar_prefetch=0,
            grid=(n, n_phases),
            in_specs=in_specs,
            out_specs=tuple(out_specs),
            scratch_shapes=[
                pltpu.VMEM((flat, cin), jnp.bfloat16),          # activated slab
                pltpu.VMEM((m_rows, k_phase), jnp.bfloat16),    # K-concatenated LHS
                pltpu.VMEM((m_rows, coutp), jnp.float32),       # f32 accumulator
            ],
        ),
        compiler_params=pltpu.CompilerParams(
            dimension_semantics=("parallel", "arbitrary"),
            vmem_limit_bytes=VMEM_LIMIT_BYTES),
    )(*args)
    if not isinstance(results, (tuple, list)):
        results = (results,)

    # Drop spatial junk columns (fuses into the next layer's staging); KEEP the
    # 128-padded channel layout between layers.
    y = results[0].reshape(n, hout, wh, coutp)[:, :, :wout, :]
    if need_stats:
        ch_sum = jnp.sum(results[1][:, 0, :], axis=0)
        ch_sqsum = jnp.sum(results[2][:, 0, :], axis=0)
    else:
        ch_sum = ch_sqsum = None
    return y, ch_sum, ch_sqsum, n * hout * wout


def patchgan_discriminator(img_nchw, params):
    """Forward pass matching torch PatchGANDiscriminator (BatchNorm2d in training mode:
    batch statistics, gamma=1, beta=0, eps=1e-5)."""
    x = jnp.transpose(img_nchw, (0, 2, 3, 1)).astype(jnp.float32)     # NCHW -> NHWC

    # Layer 0: no preceding activation; dedicated im2col matmul kernel.
    w0, b0 = params[0]
    x = _first_layer_conv(x, w0, b0)                                  # bf16, 128-pad ch
    in_scale = jnp.ones((x.shape[-1],), jnp.float32)
    in_shift = jnp.zeros((x.shape[-1],), jnp.float32)
    has_affine = False                                                # static
    leaky_in = LAYER_CFGS[0][2]                                       # static

    for li in range(1, len(params)):
        w, b = params[li]
        stride, bn_after, leaky_after = LAYER_CFGS[li]
        is_last = li == len(params) - 1
        y, ch_sum, ch_sqsum, count = _phase_conv_layer(
            x, w, b, in_scale, in_shift,
            leaky_in=leaky_in, has_affine=has_affine, stride=stride,
            need_stats=bn_after, out_f32=is_last)
        coutp = y.shape[-1]
        if bn_after:
            # Fold train-mode BatchNorm into the affine that the NEXT kernel applies.
            mean = ch_sum / count
            var = jnp.maximum(ch_sqsum / count - mean * mean, 0.0)
            in_scale = 1.0 / jnp.sqrt(var + BN_EPS)
            in_shift = -mean * in_scale
            has_affine = True
        else:
            in_scale = jnp.ones((coutp,), jnp.float32)
            in_shift = jnp.zeros((coutp,), jnp.float32)
            has_affine = False
        leaky_in = leaky_after
        x = y

    cout_last = params[-1][0].shape[0]
    out = x[..., :cout_last]                         # strip channel padding
    return jnp.transpose(out, (0, 3, 1, 2)).astype(jnp.float32)      # NHWC -> NCHW


def init_params(key, input_channel=4):
    """Deterministic synthetic parameters with the PyTorch module's shapes."""
    dims = [(input_channel, 64), (64, 128), (128, 256), (256, 512), (512, 1)]
    params = []
    for i, (cin, cout) in enumerate(dims):
        kw_, kb_ = jax.random.split(jax.random.fold_in(key, i))
        w = jax.random.normal(kw_, (cout, cin, 4, 4), jnp.float32) * 0.05
        b = jax.random.normal(kb_, (cout,), jnp.float32) * 0.05
        params.append((w, b))
    return params


def reference_forward(img_nchw, params):
    # pure-JAX f32 reference (lax.conv) for a correctness sanity check
    x = img_nchw.astype(jnp.float32)
    for (w, b), (stride, bn, act) in zip(params, LAYER_CFGS):
        x = lax.conv_general_dilated(
            x, w, window_strides=(stride, stride), padding=((1, 1), (1, 1)),
            dimension_numbers=('NCHW', 'OIHW', 'NCHW'))
        x = x + b[None, :, None, None]
        if bn:
            mean = jnp.mean(x, axis=(0, 2, 3), keepdims=True)
            var = jnp.mean((x - mean) ** 2, axis=(0, 2, 3), keepdims=True)
            x = (x - mean) / jnp.sqrt(var + BN_EPS)
        if act:
            x = jnp.where(x >= 0, x, LEAKY_SLOPE * x)
    return x


if __name__ == "__main__":
    key = jax.random.PRNGKey(0)
    k_img, k_par = jax.random.split(key)
    # 32x32 is the smallest spatial size the 5-layer stride stack supports.
    img = jax.random.normal(k_img, (2, 4, 32, 32), jnp.float32)      # NCHW
    params = init_params(k_par, input_channel=4)

    out = jax.block_until_ready(jax.jit(patchgan_discriminator)(img, params))
    assert out.shape == (2, 1, 1, 1), out.shape

    ref = jax.block_until_ready(reference_forward(img, params))
    max_err = float(jnp.max(jnp.abs(out - ref)))
    # activations travel in bf16 between layers -> a few 1e-2 of absolute noise is
    # expected; real alignment bugs would be O(output scale) ~ 2+.
    assert max_err < 2e-1, f"mismatch vs reference: {max_err}"

    print("KERNEL_OK")
</pallas_src>

<mosaic_0001>
module attributes {stable_mosaic.version = 11 : i64} {
  func.func @kernel(%arg0: i32, %arg1: i32, %arg2: memref<1x256x64xbf16, #tpu.memory_space<vmem>>, %arg3: memref<64x128xbf16, #tpu.memory_space<vmem>>, %arg4: memref<1x128xf32, #tpu.memory_space<vmem>>, %arg5: memref<1x256x128xbf16, #tpu.memory_space<vmem>>) attributes {dimension_semantics = [#tpu.dimension_semantics<parallel>, #tpu.dimension_semantics<parallel>], iteration_bounds = array<i64: 2, 1>, scalar_prefetch = 0 : i64, scratch_operands = 0 : i64, tpu.core_type = #tpu.core_type<tc>, window_params = [{transform_indices = @transform_0, window_bounds = array<i64: 1, 256, 64>}, {pipeline_mode = #tpu.pipeline_mode<synchronous>, transform_indices = @transform_1, window_bounds = array<i64: 64, 128>}, {pipeline_mode = #tpu.pipeline_mode<synchronous>, transform_indices = @transform_2, window_bounds = array<i64: 1, 128>}, {transform_indices = @transform_3, window_bounds = array<i64: 1, 256, 128>}]} {
    %c0 = arith.constant 0 : index
    %c0_0 = arith.constant 0 : index
    %c0_1 = arith.constant 0 : index
    %0 = vector.load %arg2[%c0, %c0_0, %c0_1] : memref<1x256x64xbf16, #tpu.memory_space<vmem>>, vector<1x256x64xbf16>
    %1 = vector.shape_cast %0 : vector<1x256x64xbf16> to vector<256x64xbf16>
    %c0_2 = arith.constant 0 : index
    %c0_3 = arith.constant 0 : index
    %2 = vector.load %arg3[%c0_2, %c0_3] : memref<64x128xbf16, #tpu.memory_space<vmem>>, vector<64x128xbf16>
    %cst = arith.constant dense<0.000000e+00> : vector<256x128xf32>
    %3 = tpu.matmul %1, %2, %cst {dimension_numbers = #tpu.dot_dimension_numbers<[1], [0], [0], [1], [0, 0, 1, 1], [], []>} : vector<256x64xbf16>, vector<64x128xbf16>, vector<256x128xf32> -> vector<256x128xf32>
    %c0_4 = arith.constant 0 : index
    %c0_5 = arith.constant 0 : index
    %4 = vector.load %arg4[%c0_4, %c0_5] : memref<1x128xf32, #tpu.memory_space<vmem>>, vector<1x128xf32>
    %5 = vector.broadcast %4 : vector<1x128xf32> to vector<256x128xf32>
    %6 = arith.addf %3, %5 : vector<256x128xf32>
    %7 = arith.truncf %6 : vector<256x128xf32> to vector<256x128xbf16>
    %c0_6 = arith.constant 0 : index
    %c0_7 = arith.constant 0 : index
    %c0_8 = arith.constant 0 : index
    %8 = vector.load %arg5[%c0_6, %c0_7, %c0_8] : memref<1x256x128xbf16, #tpu.memory_space<vmem>>, vector<1x256x128xbf16>
    %9 = vector.shape_cast %8 : vector<1x256x128xbf16> to vector<256x128xbf16>
    %10 = vector.shape_cast %7 : vector<256x128xbf16> to vector<1x256x128xbf16>
    tpu.vector_store %arg5[%c0_6, %c0_7, %c0_8], %10 {strides = array<i32>} : memref<1x256x128xbf16, #tpu.memory_space<vmem>>, vector<1x256x128xbf16>,
    return
  }
  func.func @transform_0(%arg0: i32, %arg1: i32) -> (i32, i32, i32) {
    %c0_i32 = arith.constant 0 : i32
    %c0_i32_0 = arith.constant 0 : i32
    return %arg0, %arg1, %c0_i32 : i32, i32, i32
  }
  func.func @transform_1(%arg0: i32, %arg1: i32) -> (i32, i32) {
    %c0_i32 = arith.constant 0 : i32
    %c0_i32_0 = arith.constant 0 : i32
    %c0_i32_1 = arith.constant 0 : i32
    return %c0_i32, %c0_i32_0 : i32, i32
  }
  func.func @transform_2(%arg0: i32, %arg1: i32) -> (i32, i32) {
    %c0_i32 = arith.constant 0 : i32
    %c0_i32_0 = arith.constant 0 : i32
    %c0_i32_1 = arith.constant 0 : i32
    return %c0_i32, %c0_i32_0 : i32, i32
  }
  func.func @transform_3(%arg0: i32, %arg1: i32) -> (i32, i32, i32) {
    %c0_i32 = arith.constant 0 : i32
    %c0_i32_0 = arith.constant 0 : i32
    return %arg0, %arg1, %c0_i32 : i32, i32, i32
  }
}

module attributes {stable_mosaic.version = 11 : i64} {
  func.func @kernel(%arg0: i32, %arg1: i32, %arg2: memref<1x1x82x128xbf16, #tpu.memory_space<vmem>>, %arg3: memref<4x512x128xbf16, #tpu.memory_space<vmem>>, %arg4: memref<1x128xf32, #tpu.memory_space<vmem>>, %arg5: memref<1x128xf32, #tpu.memory_space<vmem>>, %arg6: memref<1x128xf32, #tpu.memory_space<vmem>>, %arg7: memref<1x82x1xf32, #tpu.memory_space<vmem>>, %arg8: memref<72x1xf32, #tpu.memory_space<vmem>>, %arg9: memref<1x72x128xbf16, #tpu.memory_space<vmem>>, %arg10: memref<1x1x128xf32, #tpu.memory_space<vmem>>, %arg11: memref<1x1x128xf32, #tpu.memory_space<vmem>>, %arg12: memref<82x128xbf16, #tpu.memory_space<vmem>>, %arg13: memref<72x512xbf16, #tpu.memory_space<vmem>>, %arg14: memref<72x128xf32, #tpu.memory_space<vmem>>) attributes {dimension_semantics = [#tpu.dimension_semantics<parallel>, #tpu.dimension_semantics<arbitrary>], iteration_bounds = array<i64: 2, 4>, scalar_prefetch = 0 : i64, scratch_operands = 3 : i64, tpu.core_type = #tpu.core_type<tc>, window_params = [{transform_indices = @transform_0, window_bounds = array<i64: 1, 1, 82, 128>}, {pipeline_mode = #tpu.pipeline_mode<synchronous>, transform_indices = @transform_1, window_bounds = array<i64: 4, 512, 128>}, {pipeline_mode = #tpu.pipeline_mode<synchronous>, transform_indices = @transform_2, window_bounds = array<i64: 1, 128>}, {pipeline_mode = #tpu.pipeline_mode<synchronous>, transform_indices = @transform_3, window_bounds = array<i64: 1, 128>}, {pipeline_mode = #tpu.pipeline_mode<synchronous>, transform_indices = @transform_4, window_bounds = array<i64: 1, 128>}, {transform_indices = @transform_5, window_bounds = array<i64: 1, 82, 1>}, {pipeline_mode = #tpu.pipeline_mode<synchronous>, transform_indices = @transform_6, window_bounds = array<i64: 72, 1>}, {transform_indices = @transform_7, window_bounds = array<i64: 1, 72, 128>}, {transform_indices = @transform_8, window_bounds = array<i64: 1, 1, 128>}, {transform_indices = @transform_9, window_bounds = array<i64: 1, 1, 128>}]} {
    %c0 = arith.constant 0 : index
    %c0_0 = arith.constant 0 : index
    %c0_1 = arith.constant 0 : index
    %c0_2 = arith.constant 0 : index
    %0 = vector.load %arg2[%c0, %c0_0, %c0_1, %c0_2] : memref<1x1x82x128xbf16, #tpu.memory_space<vmem>>, vector<1x1x82x128xbf16>
    %1 = vector.shape_cast %0 : vector<1x1x82x128xbf16> to vector<82x128xbf16>
    %2 = arith.extf %1 : vector<82x128xbf16> to vector<82x128xf32>
    %cst = arith.constant 0.000000e+00 : f32
    %3 = vector.broadcast %cst : f32 to vector<82x128xf32>
    %4 = arith.cmpf oge, %2, %3 : vector<82x128xf32>
    %cst_3 = arith.constant 2.000000e-01 : f32
    %5 = vector.broadcast %cst_3 : f32 to vector<82x128xf32>
    %6 = arith.mulf %5, %2 : vector<82x128xf32>
    %7 = arith.select %4, %2, %6 : vector<82x128xi1>, vector<82x128xf32>
    %8 = arith.truncf %7 : vector<82x128xf32> to vector<82x128xbf16>
    %c0_4 = arith.constant 0 : index
    %c0_5 = arith.constant 0 : index
    %9 = vector.load %arg12[%c0_4, %c0_5] : memref<82x128xbf16, #tpu.memory_space<vmem>>, vector<82x128xbf16>
    tpu.vector_store %arg12[%c0_4, %c0_5], %8 {strides = array<i32>} : memref<82x128xbf16, #tpu.memory_space<vmem>>, vector<82x128xbf16>,
    %c0_6 = arith.constant 0 : index
    %c0_7 = arith.constant 0 : index
    %10 = vector.load %arg12[%c0_6, %c0_7] : memref<82x128xbf16, #tpu.memory_space<vmem>>, vector<72x128xbf16>
    %c0_8 = arith.constant 0 : index
    %c0_9 = arith.constant 0 : index
    %11 = vector.load %arg13[%c0_8, %c0_9] : memref<72x512xbf16, #tpu.memory_space<vmem>>, vector<72x128xbf16>
    tpu.vector_store %arg13[%c0_8, %c0_9], %10 {strides = array<i32>} : memref<72x512xbf16, #tpu.memory_space<vmem>>, vector<72x128xbf16>,
    %c1 = arith.constant 1 : index
    %c0_10 = arith.constant 0 : index
    %12 = vector.load %arg12[%c1, %c0_10] : memref<82x128xbf16, #tpu.memory_space<vmem>>, vector<72x128xbf16>
    %c0_11 = arith.constant 0 : index
    %c128 = arith.constant 128 : index
    %13 = vector.load %arg13[%c0_11, %c128] : memref<72x512xbf16, #tpu.memory_space<vmem>>, vector<72x128xbf16>
    tpu.vector_store %arg13[%c0_11, %c128], %12 {strides = array<i32>} : memref<72x512xbf16, #tpu.memory_space<vmem>>, vector<72x128xbf16>,
    %c9 = arith.constant 9 : index
    %c0_12 = arith.constant 0 : index
    %14 = vector.load %arg12[%c9, %c0_12] : memref<82x128xbf16, #tpu.memory_space<vmem>>, vector<72x128xbf16>
    %c0_13 = arith.constant 0 : index
    %c256 = arith.constant 256 : index
    %15 = vector.load %arg13[%c0_13, %c256] : memref<72x512xbf16, #tpu.memory_space<vmem>>, vector<72x128xbf16>
    tpu.vector_store %arg13[%c0_13, %c256], %14 {strides = array<i32>} : memref<72x512xbf16, #tpu.memory_space<vmem>>, vector<72x128xbf16>,
    %c10 = arith.constant 10 : index
    %c0_14 = arith.constant 0 : index
    %16 = vector.load %arg12[%c10, %c0_14] : memref<82x128xbf16, #tpu.memory_space<vmem>>, vector<72x128xbf16>
    %c0_15 = arith.constant 0 : index
    %c384 = arith.constant 384 : index
    %17 = vector.load %arg13[%c0_15, %c384] : memref<72x512xbf16, #tpu.memory_space<vmem>>, vector<72x128xbf16>
    tpu.vector_store %arg13[%c0_15, %c384], %16 {strides = array<i32>} : memref<72x512xbf16, #tpu.memory_space<vmem>>, vector<72x128xbf16>,
    %18 = arith.index_cast %arg1 : i32 to index
    %c0_16 = arith.constant 0 : index
    %c0_17 = arith.constant 0 : index
    %19 = vector.load %arg3[%18, %c0_16, %c0_17] : memref<4x512x128xbf16, #tpu.memory_space<vmem>>, vector<1x512x128xbf16>
    %20 = vector.shape_cast %19 : vector<1x512x128xbf16> to vector<512x128xbf16>
    %c0_18 = arith.constant 0 : index
    %c0_19 = arith.constant 0 : index
    %21 = vector.load %arg13[%c0_18, %c0_19] : memref<72x512xbf16, #tpu.memory_space<vmem>>, vector<72x512xbf16>
    %cst_20 = arith.constant dense<0.000000e+00> : vector<72x128xf32>
    %22 = tpu.matmul %21, %20, %cst_20 {dimension_numbers = #tpu.dot_dimension_numbers<[1], [0], [0], [1], [0, 0, 1, 1], [], []>} : vector<72x512xbf16>, vector<512x128xbf16>, vector<72x128xf32> -> vector<72x128xf32>
    %c0_i32 = arith.constant 0 : i32
    %23 = arith.cmpi eq, %arg1, %c0_i32 : i32
    %24 = arith.extui %23 : i1 to i32
    %c0_i32_21 = arith.constant 0 : i32
    %25 = arith.cmpi ne, %24, %c0_i32_21 : i32
    scf.if %25 {
      %c0_25 = arith.constant 0 : index
      %c0_26 = arith.constant 0 : index
      %32 = vector.load %arg4[%c0_25, %c0_26] : memref<1x128xf32, #tpu.memory_space<vmem>>, vector<1x128xf32>
      %33 = vector.broadcast %32 : vector<1x128xf32> to vector<72x128xf32>
      %34 = arith.addf %22, %33 : vector<72x128xf32>
      %c0_27 = arith.constant 0 : index
      %c0_28 = arith.constant 0 : index
      %35 = vector.load %arg14[%c0_27, %c0_28] : memref<72x128xf32, #tpu.memory_space<vmem>>, vector<72x128xf32>
      tpu.vector_store %arg14[%c0_27, %c0_28], %34 {strides = array<i32>} : memref<72x128xf32, #tpu.memory_space<vmem>>, vector<72x128xf32>,
    } else {
    }
    %c0_i32_22 = arith.constant 0 : i32
    %26 = arith.cmpi ne, %arg1, %c0_i32_22 : i32
    %27 = arith.extui %26 : i1 to i32
    %c0_i32_23 = arith.constant 0 : i32
    %28 = arith.cmpi ne, %27, %c0_i32_23 : i32
    scf.if %28 {
      %c0_25 = arith.constant 0 : index
      %c0_26 = arith.constant 0 : index
      %32 = vector.load %arg14[%c0_25, %c0_26] : memref<72x128xf32, #tpu.memory_space<vmem>>, vector<72x128xf32>
      %33 = arith.addf %32, %22 : vector<72x128xf32>
      %c0_27 = arith.constant 0 : index
      %c0_28 = arith.constant 0 : index
      %34 = vector.load %arg14[%c0_27, %c0_28] : memref<72x128xf32, #tpu.memory_space<vmem>>, vector<72x128xf32>
      tpu.vector_store %arg14[%c0_27, %c0_28], %33 {strides = array<i32>} : memref<72x128xf32, #tpu.memory_space<vmem>>, vector<72x128xf32>,
    } else {
    }
    %c3_i32 = arith.constant 3 : i32
    %29 = arith.cmpi eq, %arg1, %c3_i32 : i32
    %30 = arith.extui %29 : i1 to i32
    %c0_i32_24 = arith.constant 0 : i32
    %31 = arith.cmpi ne, %30, %c0_i32_24 : i32
    scf.if %31 {
      %c0_25 = arith.constant 0 : index
      %c0_26 = arith.constant 0 : index
      %32 = vector.load %arg14[%c0_25, %c0_26] : memref<72x128xf32, #tpu.memory_space<vmem>>, vector<72x128xf32>
      %33 = arith.truncf %32 : vector<72x128xf32> to vector<72x128xbf16>
      %c0_27 = arith.constant 0 : index
      %c0_28 = arith.constant 0 : index
      %c0_29 = arith.constant 0 : index
      %34 = vector.load %arg9[%c0_27, %c0_28, %c0_29] : memref<1x72x128xbf16, #tpu.memory_space<vmem>>, vector<1x72x128xbf16>
      %35 = vector.shape_cast %34 : vector<1x72x128xbf16> to vector<72x128xbf16>
      %36 = vector.shape_cast %33 : vector<72x128xbf16> to vector<1x72x128xbf16>
      tpu.vector_store %arg9[%c0_27, %c0_28, %c0_29], %36 {strides = array<i32>} : memref<1x72x128xbf16, #tpu.memory_space<vmem>>, vector<1x72x128xbf16>,
      %c0_30 = arith.constant 0 : index
      %c0_31 = arith.constant 0 : index
      %37 = vector.load %arg8[%c0_30, %c0_31] : memref<72x1xf32, #tpu.memory_space<vmem>>, vector<72x1xf32>
      %38 = vector.broadcast %37 : vector<72x1xf32> to vector<72x128xf32>
      %39 = arith.mulf %32, %38 : vector<72x128xf32>
      %cst_32 = arith.constant dense<0.000000e+00> : vector<128xf32>
      %40 = vector.multi_reduction <add>, %39, %cst_32 [0] : vector<72x128xf32> to vector<128xf32>
      %41 = vector.shape_cast %40 : vector<128xf32> to vector<1x128xf32>
      %c0_33 = arith.constant 0 : index
      %c0_34 = arith.constant 0 : index
      %c0_35 = arith.constant 0 : index
      %42 = vector.load %arg10[%c0_33, %c0_34, %c0_35] : memref<1x1x128xf32, #tpu.memory_space<vmem>>, vector<1x1x128xf32>
      %43 = vector.shape_cast %42 : vector<1x1x128xf32> to vector<1x128xf32>
      %44 = vector.shape_cast %41 : vector<1x128xf32> to vector<1x1x128xf32>
      tpu.vector_store %arg10[%c0_33, %c0_34, %c0_35], %44 {strides = array<i32>} : memref<1x1x128xf32, #tpu.memory_space<vmem>>, vector<1x1x128xf32>,
      %45 = arith.mulf %39, %39 : vector<72x128xf32>
      %cst_36 = arith.constant dense<0.000000e+00> : vector<128xf32>
      %46 = vector.multi_reduction <add>, %45, %cst_36 [0] : vector<72x128xf32> to vector<128xf32>
      %47 = vector.shape_cast %46 : vector<128xf32> to vector<1x128xf32>
      %c0_37 = arith.constant 0 : index
      %c0_38 = arith.constant 0 : index
      %c0_39 = arith.constant 0 : index
      %48 = vector.load %arg11[%c0_37, %c0_38, %c0_39] : memref<1x1x128xf32, #tpu.memory_space<vmem>>, vector<1x1x128xf32>
      %49 = vector.shape_cast %48 : vector<1x1x128xf32> to vector<1x128xf32>
      %50 = vector.shape_cast %47 : vector<1x128xf32> to vector<1x1x128xf32>
      tpu.vector_store %arg11[%c0_37, %c0_38, %c0_39], %50 {strides = array<i32>} : memref<1x1x128xf32, #tpu.memory_space<vmem>>, vector<1x1x128xf32>,
    } else {
    }
    return
  }
  func.func @transform_0(%arg0: i32, %arg1: i32) -> (i32, i32, i32, i32) {
    %c0_i32 = arith.constant 0 : i32
    %c0_i32_0 = arith.constant 0 : i32
    %c0_i32_1 = arith.constant 0 : i32
    return %arg1, %arg0, %c0_i32, %c0_i32_0 : i32, i32, i32, i32
  }
  func.func @transform_1(%arg0: i32, %arg1: i32) -> (i32, i32, i32) {
    %c0_i32 = arith.constant 0 : i32
    %c0_i32_0 = arith.constant 0 : i32
    %c0_i32_1 = arith.constant 0 : i32
    %c0_i32_2 = arith.constant 0 : i32
    return %c0_i32, %c0_i32_0, %c0_i32_1 : i32, i32, i32
  }
  func.func @transform_2(%arg0: i32, %arg1: i32) -> (i32, i32) {
    %c0_i32 = arith.constant 0 : i32
    %c0_i32_0 = arith.constant 0 : i32
    %c0_i32_1 = arith.constant 0 : i32
    return %c0_i32, %c0_i32_0 : i32, i32
  }
  func.func @transform_3(%arg0: i32, %arg1: i32) -> (i32, i32) {
    %c0_i32 = arith.constant 0 : i32
    %c0_i32_0 = arith.constant 0 : i32
    %c0_i32_1 = arith.constant 0 : i32
    return %c0_i32, %c0_i32_0 : i32, i32
  }
  func.func @transform_4(%arg0: i32, %arg1: i32) -> (i32, i32) {
    %c0_i32 = arith.constant 0 : i32
    %c0_i32_0 = arith.constant 0 : i32
    %c0_i32_1 = arith.constant 0 : i32
    return %c0_i32, %c0_i32_0 : i32, i32
  }
  func.func @transform_5(%arg0: i32, %arg1: i32) -> (i32, i32, i32) {
    %c0_i32 = arith.constant 0 : i32
    %c0_i32_0 = arith.constant 0 : i32
    %c0_i32_1 = arith.constant 0 : i32
    return %arg1, %c0_i32, %c0_i32_0 : i32, i32, i32
  }
  func.func @transform_6(%arg0: i32, %arg1: i32) -> (i32, i32) {
    %c0_i32 = arith.constant 0 : i32
    %c0_i32_0 = arith.constant 0 : i32
    %c0_i32_1 = arith.constant 0 : i32
    return %c0_i32, %c0_i32_0 : i32, i32
  }
  func.func @transform_7(%arg0: i32, %arg1: i32) -> (i32, i32, i32) {
    %c0_i32 = arith.constant 0 : i32
    %c0_i32_0 = arith.constant 0 : i32
    %c0_i32_1 = arith.constant 0 : i32
    return %arg0, %c0_i32, %c0_i32_0 : i32, i32, i32
  }
  func.func @transform_8(%arg0: i32, %arg1: i32) -> (i32, i32, i32) {
    %c0_i32 = arith.constant 0 : i32
    %c0_i32_0 = arith.constant 0 : i32
    %c0_i32_1 = arith.constant 0 : i32
    return %arg0, %c0_i32, %c0_i32_0 : i32, i32, i32
  }
  func.func @transform_9(%arg0: i32, %arg1: i32) -> (i32, i32, i32) {
    %c0_i32 = arith.constant 0 : i32
    %c0_i32_0 = arith.constant 0 : i32
    %c0_i32_1 = arith.constant 0 : i32
    return %arg0, %c0_i32, %c0_i32_0 : i32, i32, i32
  }
}

module attributes {stable_mosaic.version = 11 : i64} {
  func.func @kernel(%arg0: i32, %arg1: i32, %arg2: memref<1x1x26x128xbf16, #tpu.memory_space<vmem>>, %arg3: memref<4x512x256xbf16, #tpu.memory_space<vmem>>, %arg4: memref<1x256xf32, #tpu.memory_space<vmem>>, %arg5: memref<1x128xf32, #tpu.memory_space<vmem>>, %arg6: memref<1x128xf32, #tpu.memory_space<vmem>>, %arg7: memref<1x26x1xf32, #tpu.memory_space<vmem>>, %arg8: memref<20x1xf32, #tpu.memory_space<vmem>>, %arg9: memref<1x20x256xbf16, #tpu.memory_space<vmem>>, %arg10: memref<1x1x256xf32, #tpu.memory_space<vmem>>, %arg11: memref<1x1x256xf32, #tpu.memory_space<vmem>>, %arg12: memref<26x128xbf16, #tpu.memory_space<vmem>>, %arg13: memref<20x512xbf16, #tpu.memory_space<vmem>>, %arg14: memref<20x256xf32, #tpu.memory_space<vmem>>) attributes {dimension_semantics = [#tpu.dimension_semantics<parallel>, #tpu.dimension_semantics<arbitrary>], iteration_bounds = array<i64: 2, 4>, scalar_prefetch = 0 : i64, scratch_operands = 3 : i64, tpu.core_type = #tpu.core_type<tc>, window_params = [{transform_indices = @transform_0, window_bounds = array<i64: 1, 1, 26, 128>}, {pipeline_mode = #tpu.pipeline_mode<synchronous>, transform_indices = @transform_1, window_bounds = array<i64: 4, 512, 256>}, {pipeline_mode = #tpu.pipeline_mode<synchronous>, transform_indices = @transform_2, window_bounds = array<i64: 1, 256>}, {pipeline_mode = #tpu.pipeline_mode<synchronous>, transform_indices = @transform_3, window_bounds = array<i64: 1, 128>}, {pipeline_mode = #tpu.pipeline_mode<synchronous>, transform_indices = @transform_4, window_bounds = array<i64: 1, 128>}, {transform_indices = @transform_5, window_bounds = array<i64: 1, 26, 1>}, {pipeline_mode = #tpu.pipeline_mode<synchronous>, transform_indices = @transform_6, window_bounds = array<i64: 20, 1>}, {transform_indices = @transform_7, window_bounds = array<i64: 1, 20, 256>}, {transform_indices = @transform_8, window_bounds = array<i64: 1, 1, 256>}, {transform_indices = @transform_9, window_bounds = array<i64: 1, 1, 256>}]} {
    %c0 = arith.constant 0 : index
    %c0_0 = arith.constant 0 : index
    %c0_1 = arith.constant 0 : index
    %c0_2 = arith.constant 0 : index
    %0 = vector.load %arg2[%c0, %c0_0, %c0_1, %c0_2] : memref<1x1x26x128xbf16, #tpu.memory_space<vmem>>, vector<1x1x26x128xbf16>
    %1 = vector.shape_cast %0 : vector<1x1x26x128xbf16> to vector<26x128xbf16>
    %2 = arith.extf %1 : vector<26x128xbf16> to vector<26x128xf32>
    %c0_3 = arith.constant 0 : index
    %c0_4 = arith.constant 0 : index
    %3 = vector.load %arg5[%c0_3, %c0_4] : memref<1x128xf32, #tpu.memory_space<vmem>>, vector<1x128xf32>
    %4 = vector.broadcast %3 : vector<1x128xf32> to vector<26x128xf32>
    %5 = arith.mulf %2, %4 : vector<26x128xf32>
    %c0_5 = arith.constant 0 : index
    %c0_6 = arith.constant 0 : index
    %6 = vector.load %arg6[%c0_5, %c0_6] : memref<1x128xf32, #tpu.memory_space<vmem>>, vector<1x128xf32>
    %7 = vector.broadcast %6 : vector<1x128xf32> to vector<26x128xf32>
    %8 = arith.addf %5, %7 : vector<26x128xf32>
    %cst = arith.constant 0.000000e+00 : f32
    %9 = vector.broadcast %cst : f32 to vector<26x128xf32>
    %10 = arith.cmpf oge, %8, %9 : vector<26x128xf32>
    %cst_7 = arith.constant 2.000000e-01 : f32
    %11 = vector.broadcast %cst_7 : f32 to vector<26x128xf32>
    %12 = arith.mulf %11, %8 : vector<26x128xf32>
    %13 = arith.select %10, %8, %12 : vector<26x128xi1>, vector<26x128xf32>
    %c0_8 = arith.constant 0 : index
    %c0_9 = arith.constant 0 : index
    %c0_10 = arith.constant 0 : index
    %14 = vector.load %arg7[%c0_8, %c0_9, %c0_10] : memref<1x26x1xf32, #tpu.memory_space<vmem>>, vector<1x26x1xf32>
    %15 = vector.shape_cast %14 : vector<1x26x1xf32> to vector<26x1xf32>
    %16 = vector.broadcast %15 : vector<26x1xf32> to vector<26x128xf32>
    %17 = arith.mulf %13, %16 : vector<26x128xf32>
    %18 = arith.truncf %17 : vector<26x128xf32> to vector<26x128xbf16>
    %c0_11 = arith.constant 0 : index
    %c0_12 = arith.constant 0 : index
    %19 = vector.load %arg12[%c0_11, %c0_12] : memref<26x128xbf16, #tpu.memory_space<vmem>>, vector<26x128xbf16>
    tpu.vector_store %arg12[%c0_11, %c0_12], %18 {strides = array<i32>} : memref<26x128xbf16, #tpu.memory_space<vmem>>, vector<26x128xbf16>,
    %c0_13 = arith.constant 0 : index
    %c0_14 = arith.constant 0 : index
    %20 = vector.load %arg12[%c0_13, %c0_14] : memref<26x128xbf16, #tpu.memory_space<vmem>>, vector<20x128xbf16>
    %c0_15 = arith.constant 0 : index
    %c0_16 = arith.constant 0 : index
    %21 = vector.load %arg13[%c0_15, %c0_16] : memref<20x512xbf16, #tpu.memory_space<vmem>>, vector<20x128xbf16>
    tpu.vector_store %arg13[%c0_15, %c0_16], %20 {strides = array<i32>} : memref<20x512xbf16, #tpu.memory_space<vmem>>, vector<20x128xbf16>,
    %c1 = arith.constant 1 : index
    %c0_17 = arith.constant 0 : index
    %22 = vector.load %arg12[%c1, %c0_17] : memref<26x128xbf16, #tpu.memory_space<vmem>>, vector<20x128xbf16>
    %c0_18 = arith.constant 0 : index
    %c128 = arith.constant 128 : index
    %23 = vector.load %arg13[%c0_18, %c128] : memref<20x512xbf16, #tpu.memory_space<vmem>>, vector<20x128xbf16>
    tpu.vector_store %arg13[%c0_18, %c128], %22 {strides = array<i32>} : memref<20x512xbf16, #tpu.memory_space<vmem>>, vector<20x128xbf16>,
    %c5 = arith.constant 5 : index
    %c0_19 = arith.constant 0 : index
    %24 = vector.load %arg12[%c5, %c0_19] : memref<26x128xbf16, #tpu.memory_space<vmem>>, vector<20x128xbf16>
    %c0_20 = arith.constant 0 : index
    %c256 = arith.constant 256 : index
    %25 = vector.load %arg13[%c0_20, %c256] : memref<20x512xbf16, #tpu.memory_space<vmem>>, vector<20x128xbf16>
    tpu.vector_store %arg13[%c0_20, %c256], %24 {strides = array<i32>} : memref<20x512xbf16, #tpu.memory_space<vmem>>, vector<20x128xbf16>,
    %c6 = arith.constant 6 : index
    %c0_21 = arith.constant 0 : index
    %26 = vector.load %arg12[%c6, %c0_21] : memref<26x128xbf16, #tpu.memory_space<vmem>>, vector<20x128xbf16>
    %c0_22 = arith.constant 0 : index
    %c384 = arith.constant 384 : index
    %27 = vector.load %arg13[%c0_22, %c384] : memref<20x512xbf16, #tpu.memory_space<vmem>>, vector<20x128xbf16>
    tpu.vector_store %arg13[%c0_22, %c384], %26 {strides = array<i32>} : memref<20x512xbf16, #tpu.memory_space<vmem>>, vector<20x128xbf16>,
    %28 = arith.index_cast %arg1 : i32 to index
    %c0_23 = arith.constant 0 : index
    %c0_24 = arith.constant 0 : index
    %29 = vector.load %arg3[%28, %c0_23, %c0_24] : memref<4x512x256xbf16, #tpu.memory_space<vmem>>, vector<1x512x256xbf16>
    %30 = vector.shape_cast %29 : vector<1x512x256xbf16> to vector<512x256xbf16>
    %c0_25 = arith.constant 0 : index
    %c0_26 = arith.constant 0 : index
    %31 = vector.load %arg13[%c0_25, %c0_26] : memref<20x512xbf16, #tpu.memory_space<vmem>>, vector<20x512xbf16>
    %cst_27 = arith.constant dense<0.000000e+00> : vector<20x256xf32>
    %32 = tpu.matmul %31, %30, %cst_27 {dimension_numbers = #tpu.dot_dimension_numbers<[1], [0], [0], [1], [0, 0, 1, 1], [], []>} : vector<20x512xbf16>, vector<512x256xbf16>, vector<20x256xf32> -> vector<20x256xf32>
    %c0_i32 = arith.constant 0 : i32
    %33 = arith.cmpi eq, %arg1, %c0_i32 : i32
    %34 = arith.extui %33 : i1 to i32
    %c0_i32_28 = arith.constant 0 : i32
    %35 = arith.cmpi ne, %34, %c0_i32_28 : i32
    scf.if %35 {
      %c0_32 = arith.constant 0 : index
      %c0_33 = arith.constant 0 : index
      %42 = vector.load %arg4[%c0_32, %c0_33] : memref<1x256xf32, #tpu.memory_space<vmem>>, vector<1x256xf32>
      %43 = vector.broadcast %42 : vector<1x256xf32> to vector<20x256xf32>
      %44 = arith.addf %32, %43 : vector<20x256xf32>
      %c0_34 = arith.constant 0 : index
      %c0_35 = arith.constant 0 : index
      %45 = vector.load %arg14[%c0_34, %c0_35] : memref<20x256xf32, #tpu.memory_space<vmem>>, vector<20x256xf32>
      tpu.vector_store %arg14[%c0_34, %c0_35], %44 {strides = array<i32>} : memref<20x256xf32, #tpu.memory_space<vmem>>, vector<20x256xf32>,
    } else {
    }
    %c0_i32_29 = arith.constant 0 : i32
    %36 = arith.cmpi ne, %arg1, %c0_i32_29 : i32
    %37 = arith.extui %36 : i1 to i32
    %c0_i32_30 = arith.constant 0 : i32
    %38 = arith.cmpi ne, %37, %c0_i32_30 : i32
    scf.if %38 {
      %c0_32 = arith.constant 0 : index
      %c0_33 = arith.constant 0 : index
      %42 = vector.load %arg14[%c0_32, %c0_33] : memref<20x256xf32, #tpu.memory_space<vmem>>, vector<20x256xf32>
      %43 = arith.addf %42, %32 : vector<20x256xf32>
      %c0_34 = arith.constant 0 : index
      %c0_35 = arith.constant 0 : index
      %44 = vector.load %arg14[%c0_34, %c0_35] : memref<20x256xf32, #tpu.memory_space<vmem>>, vector<20x256xf32>
      tpu.vector_store %arg14[%c0_34, %c0_35], %43 {strides = array<i32>} : memref<20x256xf32, #tpu.memory_space<vmem>>, vector<20x256xf32>,
    } else {
    }
    %c3_i32 = arith.constant 3 : i32
    %39 = arith.cmpi eq, %arg1, %c3_i32 : i32
    %40 = arith.extui %39 : i1 to i32
    %c0_i32_31 = arith.constant 0 : i32
    %41 = arith.cmpi ne, %40, %c0_i32_31 : i32
    scf.if %41 {
      %c0_32 = arith.constant 0 : index
      %c0_33 = arith.constant 0 : index
      %42 = vector.load %arg14[%c0_32, %c0_33] : memref<20x256xf32, #tpu.memory_space<vmem>>, vector<20x256xf32>
      %43 = arith.truncf %42 : vector<20x256xf32> to vector<20x256xbf16>
      %c0_34 = arith.constant 0 : index
      %c0_35 = arith.constant 0 : index
      %c0_36 = arith.constant 0 : index
      %44 = vector.load %arg9[%c0_34, %c0_35, %c0_36] : memref<1x20x256xbf16, #tpu.memory_space<vmem>>, vector<1x20x256xbf16>
      %45 = vector.shape_cast %44 : vector<1x20x256xbf16> to vector<20x256xbf16>
      %46 = vector.shape_cast %43 : vector<20x256xbf16> to vector<1x20x256xbf16>
      tpu.vector_store %arg9[%c0_34, %c0_35, %c0_36], %46 {strides = array<i32>} : memref<1x20x256xbf16, #tpu.memory_space<vmem>>, vector<1x20x256xbf16>,
      %c0_37 = arith.constant 0 : index
      %c0_38 = arith.constant 0 : index
      %47 = vector.load %arg8[%c0_37, %c0_38] : memref<20x1xf32, #tpu.memory_space<vmem>>, vector<20x1xf32>
      %48 = vector.broadcast %47 : vector<20x1xf32> to vector<20x256xf32>
      %49 = arith.mulf %42, %48 : vector<20x256xf32>
      %cst_39 = arith.constant dense<0.000000e+00> : vector<256xf32>
      %50 = vector.multi_reduction <add>, %49, %cst_39 [0] : vector<20x256xf32> to vector<256xf32>
      %51 = vector.shape_cast %50 : vector<256xf32> to vector<1x256xf32>
      %c0_40 = arith.constant 0 : index
      %c0_41 = arith.constant 0 : index
      %c0_42 = arith.constant 0 : index
      %52 = vector.load %arg10[%c0_40, %c0_41, %c0_42] : memref<1x1x256xf32, #tpu.memory_space<vmem>>, vector<1x1x256xf32>
      %53 = vector.shape_cast %52 : vector<1x1x256xf32> to vector<1x256xf32>
      %54 = vector.shape_cast %51 : vector<1x256xf32> to vector<1x1x256xf32>
      tpu.vector_store %arg10[%c0_40, %c0_41, %c0_42], %54 {strides = array<i32>} : memref<1x1x256xf32, #tpu.memory_space<vmem>>, vector<1x1x256xf32>,
      %55 = arith.mulf %49, %49 : vector<20x256xf32>
      %cst_43 = arith.constant dense<0.000000e+00> : vector<256xf32>
      %56 = vector.multi_reduction <add>, %55, %cst_43 [0] : vector<20x256xf32> to vector<256xf32>
      %57 = vector.shape_cast %56 : vector<256xf32> to vector<1x256xf32>
      %c0_44 = arith.constant 0 : index
      %c0_45 = arith.constant 0 : index
      %c0_46 = arith.constant 0 : index
      %58 = vector.load %arg11[%c0_44, %c0_45, %c0_46] : memref<1x1x256xf32, #tpu.memory_space<vmem>>, vector<1x1x256xf32>
      %59 = vector.shape_cast %58 : vector<1x1x256xf32> to vector<1x256xf32>
      %60 = vector.shape_cast %57 : vector<1x256xf32> to vector<1x1x256xf32>
      tpu.vector_store %arg11[%c0_44, %c0_45, %c0_46], %60 {strides = array<i32>} : memref<1x1x256xf32, #tpu.memory_space<vmem>>, vector<1x1x256xf32>,
    } else {
    }
    return
  }
  func.func @transform_0(%arg0: i32, %arg1: i32) -> (i32, i32, i32, i32) {
    %c0_i32 = arith.constant 0 : i32
    %c0_i32_0 = arith.constant 0 : i32
    %c0_i32_1 = arith.constant 0 : i32
    return %arg1, %arg0, %c0_i32, %c0_i32_0 : i32, i32, i32, i32
  }
  func.func @transform_1(%arg0: i32, %arg1: i32) -> (i32, i32, i32) {
    %c0_i32 = arith.constant 0 : i32
    %c0_i32_0 = arith.constant 0 : i32
    %c0_i32_1 = arith.constant 0 : i32
    %c0_i32_2 = arith.constant 0 : i32
    return %c0_i32, %c0_i32_0, %c0_i32_1 : i32, i32, i32
  }
  func.func @transform_2(%arg0: i32, %arg1: i32) -> (i32, i32) {
    %c0_i32 = arith.constant 0 : i32
    %c0_i32_0 = arith.constant 0 : i32
    %c0_i32_1 = arith.constant 0 : i32
    return %c0_i32, %c0_i32_0 : i32, i32
  }
  func.func @transform_3(%arg0: i32, %arg1: i32) -> (i32, i32) {
    %c0_i32 = arith.constant 0 : i32
    %c0_i32_0 = arith.constant 0 : i32
    %c0_i32_1 = arith.constant 0 : i32
    return %c0_i32, %c0_i32_0 : i32, i32
  }
  func.func @transform_4(%arg0: i32, %arg1: i32) -> (i32, i32) {
    %c0_i32 = arith.constant 0 : i32
    %c0_i32_0 = arith.constant 0 : i32
    %c0_i32_1 = arith.constant 0 : i32
    return %c0_i32, %c0_i32_0 : i32, i32
  }
  func.func @transform_5(%arg0: i32, %arg1: i32) -> (i32, i32, i32) {
    %c0_i32 = arith.constant 0 : i32
    %c0_i32_0 = arith.constant 0 : i32
    %c0_i32_1 = arith.constant 0 : i32
    return %arg1, %c0_i32, %c0_i32_0 : i32, i32, i32
  }
  func.func @transform_6(%arg0: i32, %arg1: i32) -> (i32, i32) {
    %c0_i32 = arith.constant 0 : i32
    %c0_i32_0 = arith.constant 0 : i32
    %c0_i32_1 = arith.constant 0 : i32
    return %c0_i32, %c0_i32_0 : i32, i32
  }
  func.func @transform_7(%arg0: i32, %arg1: i32) -> (i32, i32, i32) {
    %c0_i32 = arith.constant 0 : i32
    %c0_i32_0 = arith.constant 0 : i32
    %c0_i32_1 = arith.constant 0 : i32
    return %arg0, %c0_i32, %c0_i32_0 : i32, i32, i32
  }
  func.func @transform_8(%arg0: i32, %arg1: i32) -> (i32, i32, i32) {
    %c0_i32 = arith.constant 0 : i32
    %c0_i32_0 = arith.constant 0 : i32
    %c0_i32_1 = arith.constant 0 : i32
    return %arg0, %c0_i32, %c0_i32_0 : i32, i32, i32
  }
  func.func @transform_9(%arg0: i32, %arg1: i32) -> (i32, i32, i32) {
    %c0_i32 = arith.constant 0 : i32
    %c0_i32_0 = arith.constant 0 : i32
    %c0_i32_1 = arith.constant 0 : i32
    return %arg0, %c0_i32, %c0_i32_0 : i32, i32, i32
  }
}

module attributes {stable_mosaic.version = 11 : i64} {
  func.func @kernel(%arg0: i32, %arg1: i32, %arg2: memref<1x1x10x256xbf16, #tpu.memory_space<vmem>>, %arg3: memref<4x1024x512xbf16, #tpu.memory_space<vmem>>, %arg4: memref<1x512xf32, #tpu.memory_space<vmem>>, %arg5: memref<1x256xf32, #tpu.memory_space<vmem>>, %arg6: memref<1x256xf32, #tpu.memory_space<vmem>>, %arg7: memref<1x10x1xf32, #tpu.memory_space<vmem>>, %arg8: memref<6x1xf32, #tpu.memory_space<vmem>>, %arg9: memref<1x6x512xbf16, #tpu.memory_space<vmem>>, %arg10: memref<1x1x512xf32, #tpu.memory_space<vmem>>, %arg11: memref<1x1x512xf32, #tpu.memory_space<vmem>>, %arg12: memref<10x256xbf16, #tpu.memory_space<vmem>>, %arg13: memref<6x1024xbf16, #tpu.memory_space<vmem>>, %arg14: memref<6x512xf32, #tpu.memory_space<vmem>>) attributes {dimension_semantics = [#tpu.dimension_semantics<parallel>, #tpu.dimension_semantics<arbitrary>], iteration_bounds = array<i64: 2, 4>, scalar_prefetch = 0 : i64, scratch_operands = 3 : i64, tpu.core_type = #tpu.core_type<tc>, window_params = [{transform_indices = @transform_0, window_bounds = array<i64: 1, 1, 10, 256>}, {pipeline_mode = #tpu.pipeline_mode<synchronous>, transform_indices = @transform_1, window_bounds = array<i64: 4, 1024, 512>}, {pipeline_mode = #tpu.pipeline_mode<synchronous>, transform_indices = @transform_2, window_bounds = array<i64: 1, 512>}, {pipeline_mode = #tpu.pipeline_mode<synchronous>, transform_indices = @transform_3, window_bounds = array<i64: 1, 256>}, {pipeline_mode = #tpu.pipeline_mode<synchronous>, transform_indices = @transform_4, window_bounds = array<i64: 1, 256>}, {transform_indices = @transform_5, window_bounds = array<i64: 1, 10, 1>}, {pipeline_mode = #tpu.pipeline_mode<synchronous>, transform_indices = @transform_6, window_bounds = array<i64: 6, 1>}, {transform_indices = @transform_7, window_bounds = array<i64: 1, 6, 512>}, {transform_indices = @transform_8, window_bounds = array<i64: 1, 1, 512>}, {transform_indices = @transform_9, window_bounds = array<i64: 1, 1, 512>}]} {
    %c0 = arith.constant 0 : index
    %c0_0 = arith.constant 0 : index
    %c0_1 = arith.constant 0 : index
    %c0_2 = arith.constant 0 : index
    %0 = vector.load %arg2[%c0, %c0_0, %c0_1, %c0_2] : memref<1x1x10x256xbf16, #tpu.memory_space<vmem>>, vector<1x1x10x256xbf16>
    %1 = vector.shape_cast %0 : vector<1x1x10x256xbf16> to vector<10x256xbf16>
    %2 = arith.extf %1 : vector<10x256xbf16> to vector<10x256xf32>
    %c0_3 = arith.constant 0 : index
    %c0_4 = arith.constant 0 : index
    %3 = vector.load %arg5[%c0_3, %c0_4] : memref<1x256xf32, #tpu.memory_space<vmem>>, vector<1x256xf32>
    %4 = vector.broadcast %3 : vector<1x256xf32> to vector<10x256xf32>
    %5 = arith.mulf %2, %4 : vector<10x256xf32>
    %c0_5 = arith.constant 0 : index
    %c0_6 = arith.constant 0 : index
    %6 = vector.load %arg6[%c0_5, %c0_6] : memref<1x256xf32, #tpu.memory_space<vmem>>, vector<1x256xf32>
    %7 = vector.broadcast %6 : vector<1x256xf32> to vector<10x256xf32>
    %8 = arith.addf %5, %7 : vector<10x256xf32>
    %cst = arith.constant 0.000000e+00 : f32
    %9 = vector.broadcast %cst : f32 to vector<10x256xf32>
    %10 = arith.cmpf oge, %8, %9 : vector<10x256xf32>
    %cst_7 = arith.constant 2.000000e-01 : f32
    %11 = vector.broadcast %cst_7 : f32 to vector<10x256xf32>
    %12 = arith.mulf %11, %8 : vector<10x256xf32>
    %13 = arith.select %10, %8, %12 : vector<10x256xi1>, vector<10x256xf32>
    %c0_8 = arith.constant 0 : index
    %c0_9 = arith.constant 0 : index
    %c0_10 = arith.constant 0 : index
    %14 = vector.load %arg7[%c0_8, %c0_9, %c0_10] : memref<1x10x1xf32, #tpu.memory_space<vmem>>, vector<1x10x1xf32>
    %15 = vector.shape_cast %14 : vector<1x10x1xf32> to vector<10x1xf32>
    %16 = vector.broadcast %15 : vector<10x1xf32> to vector<10x256xf32>
    %17 = arith.mulf %13, %16 : vector<10x256xf32>
    %18 = arith.truncf %17 : vector<10x256xf32> to vector<10x256xbf16>
    %c0_11 = arith.constant 0 : index
    %c0_12 = arith.constant 0 : index
    %19 = vector.load %arg12[%c0_11, %c0_12] : memref<10x256xbf16, #tpu.memory_space<vmem>>, vector<10x256xbf16>
    tpu.vector_store %arg12[%c0_11, %c0_12], %18 {strides = array<i32>} : memref<10x256xbf16, #tpu.memory_space<vmem>>, vector<10x256xbf16>,
    %c0_13 = arith.constant 0 : index
    %c0_14 = arith.constant 0 : index
    %20 = vector.load %arg12[%c0_13, %c0_14] : memref<10x256xbf16, #tpu.memory_space<vmem>>, vector<6x256xbf16>
    %c0_15 = arith.constant 0 : index
    %c0_16 = arith.constant 0 : index
    %21 = vector.load %arg13[%c0_15, %c0_16] : memref<6x1024xbf16, #tpu.memory_space<vmem>>, vector<6x256xbf16>
    tpu.vector_store %arg13[%c0_15, %c0_16], %20 {strides = array<i32>} : memref<6x1024xbf16, #tpu.memory_space<vmem>>, vector<6x256xbf16>,
    %c1 = arith.constant 1 : index
    %c0_17 = arith.constant 0 : index
    %22 = vector.load %arg12[%c1, %c0_17] : memref<10x256xbf16, #tpu.memory_space<vmem>>, vector<6x256xbf16>
    %c0_18 = arith.constant 0 : index
    %c256 = arith.constant 256 : index
    %23 = vector.load %arg13[%c0_18, %c256] : memref<6x1024xbf16, #tpu.memory_space<vmem>>, vector<6x256xbf16>
    tpu.vector_store %arg13[%c0_18, %c256], %22 {strides = array<i32>} : memref<6x1024xbf16, #tpu.memory_space<vmem>>, vector<6x256xbf16>,
    %c3 = arith.constant 3 : index
    %c0_19 = arith.constant 0 : index
    %24 = vector.load %arg12[%c3, %c0_19] : memref<10x256xbf16, #tpu.memory_space<vmem>>, vector<6x256xbf16>
    %c0_20 = arith.constant 0 : index
    %c512 = arith.constant 512 : index
    %25 = vector.load %arg13[%c0_20, %c512] : memref<6x1024xbf16, #tpu.memory_space<vmem>>, vector<6x256xbf16>
    tpu.vector_store %arg13[%c0_20, %c512], %24 {strides = array<i32>} : memref<6x1024xbf16, #tpu.memory_space<vmem>>, vector<6x256xbf16>,
    %c4 = arith.constant 4 : index
    %c0_21 = arith.constant 0 : index
    %26 = vector.load %arg12[%c4, %c0_21] : memref<10x256xbf16, #tpu.memory_space<vmem>>, vector<6x256xbf16>
    %c0_22 = arith.constant 0 : index
    %c768 = arith.constant 768 : index
    %27 = vector.load %arg13[%c0_22, %c768] : memref<6x1024xbf16, #tpu.memory_space<vmem>>, vector<6x256xbf16>
    tpu.vector_store %arg13[%c0_22, %c768], %26 {strides = array<i32>} : memref<6x1024xbf16, #tpu.memory_space<vmem>>, vector<6x256xbf16>,
    %28 = arith.index_cast %arg1 : i32 to index
    %c0_23 = arith.constant 0 : index
    %c0_24 = arith.constant 0 : index
    %29 = vector.load %arg3[%28, %c0_23, %c0_24] : memref<4x1024x512xbf16, #tpu.memory_space<vmem>>, vector<1x1024x512xbf16>
    %30 = vector.shape_cast %29 : vector<1x1024x512xbf16> to vector<1024x512xbf16>
    %c0_25 = arith.constant 0 : index
    %c0_26 = arith.constant 0 : index
    %31 = vector.load %arg13[%c0_25, %c0_26] : memref<6x1024xbf16, #tpu.memory_space<vmem>>, vector<6x1024xbf16>
    %cst_27 = arith.constant dense<0.000000e+00> : vector<6x512xf32>
    %32 = tpu.matmul %31, %30, %cst_27 {dimension_numbers = #tpu.dot_dimension_numbers<[1], [0], [0], [1], [0, 0, 1, 1], [], []>} : vector<6x1024xbf16>, vector<1024x512xbf16>, vector<6x512xf32> -> vector<6x512xf32>
    %c0_i32 = arith.constant 0 : i32
    %33 = arith.cmpi eq, %arg1, %c0_i32 : i32
    %34 = arith.extui %33 : i1 to i32
    %c0_i32_28 = arith.constant 0 : i32
    %35 = arith.cmpi ne, %34, %c0_i32_28 : i32
    scf.if %35 {
      %c0_32 = arith.constant 0 : index
      %c0_33 = arith.constant 0 : index
      %42 = vector.load %arg4[%c0_32, %c0_33] : memref<1x512xf32, #tpu.memory_space<vmem>>, vector<1x512xf32>
      %43 = vector.broadcast %42 : vector<1x512xf32> to vector<6x512xf32>
      %44 = arith.addf %32, %43 : vector<6x512xf32>
      %c0_34 = arith.constant 0 : index
      %c0_35 = arith.constant 0 : index
      %45 = vector.load %arg14[%c0_34, %c0_35] : memref<6x512xf32, #tpu.memory_space<vmem>>, vector<6x512xf32>
      tpu.vector_store %arg14[%c0_34, %c0_35], %44 {strides = array<i32>} : memref<6x512xf32, #tpu.memory_space<vmem>>, vector<6x512xf32>,
    } else {
    }
    %c0_i32_29 = arith.constant 0 : i32
    %36 = arith.cmpi ne, %arg1, %c0_i32_29 : i32
    %37 = arith.extui %36 : i1 to i32
    %c0_i32_30 = arith.constant 0 : i32
    %38 = arith.cmpi ne, %37, %c0_i32_30 : i32
    scf.if %38 {
      %c0_32 = arith.constant 0 : index
      %c0_33 = arith.constant 0 : index
      %42 = vector.load %arg14[%c0_32, %c0_33] : memref<6x512xf32, #tpu.memory_space<vmem>>, vector<6x512xf32>
      %43 = arith.addf %42, %32 : vector<6x512xf32>
      %c0_34 = arith.constant 0 : index
      %c0_35 = arith.constant 0 : index
      %44 = vector.load %arg14[%c0_34, %c0_35] : memref<6x512xf32, #tpu.memory_space<vmem>>, vector<6x512xf32>
      tpu.vector_store %arg14[%c0_34, %c0_35], %43 {strides = array<i32>} : memref<6x512xf32, #tpu.memory_space<vmem>>, vector<6x512xf32>,
    } else {
    }
    %c3_i32 = arith.constant 3 : i32
    %39 = arith.cmpi eq, %arg1, %c3_i32 : i32
    %40 = arith.extui %39 : i1 to i32
    %c0_i32_31 = arith.constant 0 : i32
    %41 = arith.cmpi ne, %40, %c0_i32_31 : i32
    scf.if %41 {
      %c0_32 = arith.constant 0 : index
      %c0_33 = arith.constant 0 : index
      %42 = vector.load %arg14[%c0_32, %c0_33] : memref<6x512xf32, #tpu.memory_space<vmem>>, vector<6x512xf32>
      %43 = arith.truncf %42 : vector<6x512xf32> to vector<6x512xbf16>
      %c0_34 = arith.constant 0 : index
      %c0_35 = arith.constant 0 : index
      %c0_36 = arith.constant 0 : index
      %44 = vector.load %arg9[%c0_34, %c0_35, %c0_36] : memref<1x6x512xbf16, #tpu.memory_space<vmem>>, vector<1x6x512xbf16>
      %45 = vector.shape_cast %44 : vector<1x6x512xbf16> to vector<6x512xbf16>
      %46 = vector.shape_cast %43 : vector<6x512xbf16> to vector<1x6x512xbf16>
      tpu.vector_store %arg9[%c0_34, %c0_35, %c0_36], %46 {strides = array<i32>} : memref<1x6x512xbf16, #tpu.memory_space<vmem>>, vector<1x6x512xbf16>,
      %c0_37 = arith.constant 0 : index
      %c0_38 = arith.constant 0 : index
      %47 = vector.load %arg8[%c0_37, %c0_38] : memref<6x1xf32, #tpu.memory_space<vmem>>, vector<6x1xf32>
      %48 = vector.broadcast %47 : vector<6x1xf32> to vector<6x512xf32>
      %49 = arith.mulf %42, %48 : vector<6x512xf32>
      %cst_39 = arith.constant dense<0.000000e+00> : vector<512xf32>
      %50 = vector.multi_reduction <add>, %49, %cst_39 [0] : vector<6x512xf32> to vector<512xf32>
      %51 = vector.shape_cast %50 : vector<512xf32> to vector<1x512xf32>
      %c0_40 = arith.constant 0 : index
      %c0_41 = arith.constant 0 : index
      %c0_42 = arith.constant 0 : index
      %52 = vector.load %arg10[%c0_40, %c0_41, %c0_42] : memref<1x1x512xf32, #tpu.memory_space<vmem>>, vector<1x1x512xf32>
      %53 = vector.shape_cast %52 : vector<1x1x512xf32> to vector<1x512xf32>
      %54 = vector.shape_cast %51 : vector<1x512xf32> to vector<1x1x512xf32>
      tpu.vector_store %arg10[%c0_40, %c0_41, %c0_42], %54 {strides = array<i32>} : memref<1x1x512xf32, #tpu.memory_space<vmem>>, vector<1x1x512xf32>,
      %55 = arith.mulf %49, %49 : vector<6x512xf32>
      %cst_43 = arith.constant dense<0.000000e+00> : vector<512xf32>
      %56 = vector.multi_reduction <add>, %55, %cst_43 [0] : vector<6x512xf32> to vector<512xf32>
      %57 = vector.shape_cast %56 : vector<512xf32> to vector<1x512xf32>
      %c0_44 = arith.constant 0 : index
      %c0_45 = arith.constant 0 : index
      %c0_46 = arith.constant 0 : index
      %58 = vector.load %arg11[%c0_44, %c0_45, %c0_46] : memref<1x1x512xf32, #tpu.memory_space<vmem>>, vector<1x1x512xf32>
      %59 = vector.shape_cast %58 : vector<1x1x512xf32> to vector<1x512xf32>
      %60 = vector.shape_cast %57 : vector<1x512xf32> to vector<1x1x512xf32>
      tpu.vector_store %arg11[%c0_44, %c0_45, %c0_46], %60 {strides = array<i32>} : memref<1x1x512xf32, #tpu.memory_space<vmem>>, vector<1x1x512xf32>,
    } else {
    }
    return
  }
  func.func @transform_0(%arg0: i32, %arg1: i32) -> (i32, i32, i32, i32) {
    %c0_i32 = arith.constant 0 : i32
    %c0_i32_0 = arith.constant 0 : i32
    %c0_i32_1 = arith.constant 0 : i32
    return %arg1, %arg0, %c0_i32, %c0_i32_0 : i32, i32, i32, i32
  }
  func.func @transform_1(%arg0: i32, %arg1: i32) -> (i32, i32, i32) {
    %c0_i32 = arith.constant 0 : i32
    %c0_i32_0 = arith.constant 0 : i32
    %c0_i32_1 = arith.constant 0 : i32
    %c0_i32_2 = arith.constant 0 : i32
    return %c0_i32, %c0_i32_0, %c0_i32_1 : i32, i32, i32
  }
  func.func @transform_2(%arg0: i32, %arg1: i32) -> (i32, i32) {
    %c0_i32 = arith.constant 0 : i32
    %c0_i32_0 = arith.constant 0 : i32
    %c0_i32_1 = arith.constant 0 : i32
    return %c0_i32, %c0_i32_0 : i32, i32
  }
  func.func @transform_3(%arg0: i32, %arg1: i32) -> (i32, i32) {
    %c0_i32 = arith.constant 0 : i32
    %c0_i32_0 = arith.constant 0 : i32
    %c0_i32_1 = arith.constant 0 : i32
    return %c0_i32, %c0_i32_0 : i32, i32
  }
  func.func @transform_4(%arg0: i32, %arg1: i32) -> (i32, i32) {
    %c0_i32 = arith.constant 0 : i32
    %c0_i32_0 = arith.constant 0 : i32
    %c0_i32_1 = arith.constant 0 : i32
    return %c0_i32, %c0_i32_0 : i32, i32
  }
  func.func @transform_5(%arg0: i32, %arg1: i32) -> (i32, i32, i32) {
    %c0_i32 = arith.constant 0 : i32
    %c0_i32_0 = arith.constant 0 : i32
    %c0_i32_1 = arith.constant 0 : i32
    return %arg1, %c0_i32, %c0_i32_0 : i32, i32, i32
  }
  func.func @transform_6(%arg0: i32, %arg1: i32) -> (i32, i32) {
    %c0_i32 = arith.constant 0 : i32
    %c0_i32_0 = arith.constant 0 : i32
    %c0_i32_1 = arith.constant 0 : i32
    return %c0_i32, %c0_i32_0 : i32, i32
  }
  func.func @transform_7(%arg0: i32, %arg1: i32) -> (i32, i32, i32) {
    %c0_i32 = arith.constant 0 : i32
    %c0_i32_0 = arith.constant 0 : i32
    %c0_i32_1 = arith.constant 0 : i32
    return %arg0, %c0_i32, %c0_i32_0 : i32, i32, i32
  }
  func.func @transform_8(%arg0: i32, %arg1: i32) -> (i32, i32, i32) {
    %c0_i32 = arith.constant 0 : i32
    %c0_i32_0 = arith.constant 0 : i32
    %c0_i32_1 = arith.constant 0 : i32
    return %arg0, %c0_i32, %c0_i32_0 : i32, i32, i32
  }
  func.func @transform_9(%arg0: i32, %arg1: i32) -> (i32, i32, i32) {
    %c0_i32 = arith.constant 0 : i32
    %c0_i32_0 = arith.constant 0 : i32
    %c0_i32_1 = arith.constant 0 : i32
    return %arg0, %c0_i32, %c0_i32_0 : i32, i32, i32
  }
}

module attributes {stable_mosaic.version = 11 : i64} {
  func.func @kernel(%arg0: i32, %arg1: i32, %arg2: memref<1x1x19x512xbf16, #tpu.memory_space<vmem>>, %arg3: memref<1x8192x128xbf16, #tpu.memory_space<vmem>>, %arg4: memref<1x128xf32, #tpu.memory_space<vmem>>, %arg5: memref<1x512xf32, #tpu.memory_space<vmem>>, %arg6: memref<1x512xf32, #tpu.memory_space<vmem>>, %arg7: memref<1x19x1xf32, #tpu.memory_space<vmem>>, %arg8: memref<1x4x128xf32, #tpu.memory_space<vmem>>, %arg9: memref<19x512xbf16, #tpu.memory_space<vmem>>, %arg10: memref<4x8192xbf16, #tpu.memory_space<vmem>>, %arg11: memref<4x128xf32, #tpu.memory_space<vmem>>) attributes {dimension_semantics = [#tpu.dimension_semantics<parallel>, #tpu.dimension_semantics<arbitrary>], iteration_bounds = array<i64: 2, 1>, scalar_prefetch = 0 : i64, scratch_operands = 3 : i64, tpu.core_type = #tpu.core_type<tc>, window_params = [{transform_indices = @transform_0, window_bounds = array<i64: 1, 1, 19, 512>}, {pipeline_mode = #tpu.pipeline_mode<synchronous>, transform_indices = @transform_1, window_bounds = array<i64: 1, 8192, 128>}, {pipeline_mode = #tpu.pipeline_mode<synchronous>, transform_indices = @transform_2, window_bounds = array<i64: 1, 128>}, {pipeline_mode = #tpu.pipeline_mode<synchronous>, transform_indices = @transform_3, window_bounds = array<i64: 1, 512>}, {pipeline_mode = #tpu.pipeline_mode<synchronous>, transform_indices = @transform_4, window_bounds = array<i64: 1, 512>}, {transform_indices = @transform_5, window_bounds = array<i64: 1, 19, 1>}, {transform_indices = @transform_6, window_bounds = array<i64: 1, 4, 128>}]} {
    %c0 = arith.constant 0 : index
    %c0_0 = arith.constant 0 : index
    %c0_1 = arith.constant 0 : index
    %c0_2 = arith.constant 0 : index
    %0 = vector.load %arg2[%c0, %c0_0, %c0_1, %c0_2] : memref<1x1x19x512xbf16, #tpu.memory_space<vmem>>, vector<1x1x19x512xbf16>
    %1 = vector.shape_cast %0 : vector<1x1x19x512xbf16> to vector<19x512xbf16>
    %2 = arith.extf %1 : vector<19x512xbf16> to vector<19x512xf32>
    %c0_3 = arith.constant 0 : index
    %c0_4 = arith.constant 0 : index
    %3 = vector.load %arg5[%c0_3, %c0_4] : memref<1x512xf32, #tpu.memory_space<vmem>>, vector<1x512xf32>
    %4 = vector.broadcast %3 : vector<1x512xf32> to vector<19x512xf32>
    %5 = arith.mulf %2, %4 : vector<19x512xf32>
    %c0_5 = arith.constant 0 : index
    %c0_6 = arith.constant 0 : index
    %6 = vector.load %arg6[%c0_5, %c0_6] : memref<1x512xf32, #tpu.memory_space<vmem>>, vector<1x512xf32>
    %7 = vector.broadcast %6 : vector<1x512xf32> to vector<19x512xf32>
    %8 = arith.addf %5, %7 : vector<19x512xf32>
    %cst = arith.constant 0.000000e+00 : f32
    %9 = vector.broadcast %cst : f32 to vector<19x512xf32>
    %10 = arith.cmpf oge, %8, %9 : vector<19x512xf32>
    %cst_7 = arith.constant 2.000000e-01 : f32
    %11 = vector.broadcast %cst_7 : f32 to vector<19x512xf32>
    %12 = arith.mulf %11, %8 : vector<19x512xf32>
    %13 = arith.select %10, %8, %12 : vector<19x512xi1>, vector<19x512xf32>
    %c0_8 = arith.constant 0 : index
    %c0_9 = arith.constant 0 : index
    %c0_10 = arith.constant 0 : index
    %14 = vector.load %arg7[%c0_8, %c0_9, %c0_10] : memref<1x19x1xf32, #tpu.memory_space<vmem>>, vector<1x19x1xf32>
    %15 = vector.shape_cast %14 : vector<1x19x1xf32> to vector<19x1xf32>
    %16 = vector.broadcast %15 : vector<19x1xf32> to vector<19x512xf32>
    %17 = arith.mulf %13, %16 : vector<19x512xf32>
    %18 = arith.truncf %17 : vector<19x512xf32> to vector<19x512xbf16>
    %c0_11 = arith.constant 0 : index
    %c0_12 = arith.constant 0 : index
    %19 = vector.load %arg9[%c0_11, %c0_12] : memref<19x512xbf16, #tpu.memory_space<vmem>>, vector<19x512xbf16>
    tpu.vector_store %arg9[%c0_11, %c0_12], %18 {strides = array<i32>} : memref<19x512xbf16, #tpu.memory_space<vmem>>, vector<19x512xbf16>,
    %c0_13 = arith.constant 0 : index
    %c0_14 = arith.constant 0 : index
    %20 = vector.load %arg9[%c0_13, %c0_14] : memref<19x512xbf16, #tpu.memory_space<vmem>>, vector<4x512xbf16>
    %c0_15 = arith.constant 0 : index
    %c0_16 = arith.constant 0 : index
    %21 = vector.load %arg10[%c0_15, %c0_16] : memref<4x8192xbf16, #tpu.memory_space<vmem>>, vector<4x512xbf16>
    tpu.vector_store %arg10[%c0_15, %c0_16], %20 {strides = array<i32>} : memref<4x8192xbf16, #tpu.memory_space<vmem>>, vector<4x512xbf16>,
    %c1 = arith.constant 1 : index
    %c0_17 = arith.constant 0 : index
    %22 = vector.load %arg9[%c1, %c0_17] : memref<19x512xbf16, #tpu.memory_space<vmem>>, vector<4x512xbf16>
    %c0_18 = arith.constant 0 : index
    %c512 = arith.constant 512 : index
    %23 = vector.load %arg10[%c0_18, %c512] : memref<4x8192xbf16, #tpu.memory_space<vmem>>, vector<4x512xbf16>
    tpu.vector_store %arg10[%c0_18, %c512], %22 {strides = array<i32>} : memref<4x8192xbf16, #tpu.memory_space<vmem>>, vector<4x512xbf16>,
    %c2 = arith.constant 2 : index
    %c0_19 = arith.constant 0 : index
    %24 = vector.load %arg9[%c2, %c0_19] : memref<19x512xbf16, #tpu.memory_space<vmem>>, vector<4x512xbf16>
    %c0_20 = arith.constant 0 : index
    %c1024 = arith.constant 1024 : index
    %25 = vector.load %arg10[%c0_20, %c1024] : memref<4x8192xbf16, #tpu.memory_space<vmem>>, vector<4x512xbf16>
    tpu.vector_store %arg10[%c0_20, %c1024], %24 {strides = array<i32>} : memref<4x8192xbf16, #tpu.memory_space<vmem>>, vector<4x512xbf16>,
    %c3 = arith.constant 3 : index
    %c0_21 = arith.constant 0 : index
    %26 = vector.load %arg9[%c3, %c0_21] : memref<19x512xbf16, #tpu.memory_space<vmem>>, vector<4x512xbf16>
    %c0_22 = arith.constant 0 : index
    %c1536 = arith.constant 1536 : index
    %27 = vector.load %arg10[%c0_22, %c1536] : memref<4x8192xbf16, #tpu.memory_space<vmem>>, vector<4x512xbf16>
    tpu.vector_store %arg10[%c0_22, %c1536], %26 {strides = array<i32>} : memref<4x8192xbf16, #tpu.memory_space<vmem>>, vector<4x512xbf16>,
    %c4 = arith.constant 4 : index
    %c0_23 = arith.constant 0 : index
    %28 = vector.load %arg9[%c4, %c0_23] : memref<19x512xbf16, #tpu.memory_space<vmem>>, vector<4x512xbf16>
    %c0_24 = arith.constant 0 : index
    %c2048 = arith.constant 2048 : index
    %29 = vector.load %arg10[%c0_24, %c2048] : memref<4x8192xbf16, #tpu.memory_space<vmem>>, vector<4x512xbf16>
    tpu.vector_store %arg10[%c0_24, %c2048], %28 {strides = array<i32>} : memref<4x8192xbf16, #tpu.memory_space<vmem>>, vector<4x512xbf16>,
    %c5 = arith.constant 5 : index
    %c0_25 = arith.constant 0 : index
    %30 = vector.load %arg9[%c5, %c0_25] : memref<19x512xbf16, #tpu.memory_space<vmem>>, vector<4x512xbf16>
    %c0_26 = arith.constant 0 : index
    %c2560 = arith.constant 2560 : index
    %31 = vector.load %arg10[%c0_26, %c2560] : memref<4x8192xbf16, #tpu.memory_space<vmem>>, vector<4x512xbf16>
    tpu.vector_store %arg10[%c0_26, %c2560], %30 {strides = array<i32>} : memref<4x8192xbf16, #tpu.memory_space<vmem>>, vector<4x512xbf16>,
    %c6 = arith.constant 6 : index
    %c0_27 = arith.constant 0 : index
    %32 = vector.load %arg9[%c6, %c0_27] : memref<19x512xbf16, #tpu.memory_space<vmem>>, vector<4x512xbf16>
    %c0_28 = arith.constant 0 : index
    %c3072 = arith.constant 3072 : index
    %33 = vector.load %arg10[%c0_28, %c3072] : memref<4x8192xbf16, #tpu.memory_space<vmem>>, vector<4x512xbf16>
    tpu.vector_store %arg10[%c0_28, %c3072], %32 {strides = array<i32>} : memref<4x8192xbf16, #tpu.memory_space<vmem>>, vector<4x512xbf16>,
    %c7 = arith.constant 7 : index
    %c0_29 = arith.constant 0 : index
    %34 = vector.load %arg9[%c7, %c0_29] : memref<19x512xbf16, #tpu.memory_space<vmem>>, vector<4x512xbf16>
    %c0_30 = arith.constant 0 : index
    %c3584 = arith.constant 3584 : index
    %35 = vector.load %arg10[%c0_30, %c3584] : memref<4x8192xbf16, #tpu.memory_space<vmem>>, vector<4x512xbf16>
    tpu.vector_store %arg10[%c0_30, %c3584], %34 {strides = array<i32>} : memref<4x8192xbf16, #tpu.memory_space<vmem>>, vector<4x512xbf16>,
    %c8 = arith.constant 8 : index
    %c0_31 = arith.constant 0 : index
    %36 = vector.load %arg9[%c8, %c0_31] : memref<19x512xbf16, #tpu.memory_space<vmem>>, vector<4x512xbf16>
    %c0_32 = arith.constant 0 : index
    %c4096 = arith.constant 4096 : index
    %37 = vector.load %arg10[%c0_32, %c4096] : memref<4x8192xbf16, #tpu.memory_space<vmem>>, vector<4x512xbf16>
    tpu.vector_store %arg10[%c0_32, %c4096], %36 {strides = array<i32>} : memref<4x8192xbf16, #tpu.memory_space<vmem>>, vector<4x512xbf16>,
    %c9 = arith.constant 9 : index
    %c0_33 = arith.constant 0 : index
    %38 = vector.load %arg9[%c9, %c0_33] : memref<19x512xbf16, #tpu.memory_space<vmem>>, vector<4x512xbf16>
    %c0_34 = arith.constant 0 : index
    %c4608 = arith.constant 4608 : index
    %39 = vector.load %arg10[%c0_34, %c4608] : memref<4x8192xbf16, #tpu.memory_space<vmem>>, vector<4x512xbf16>
    tpu.vector_store %arg10[%c0_34, %c4608], %38 {strides = array<i32>} : memref<4x8192xbf16, #tpu.memory_space<vmem>>, vector<4x512xbf16>,
    %c10 = arith.constant 10 : index
    %c0_35 = arith.constant 0 : index
    %40 = vector.load %arg9[%c10, %c0_35] : memref<19x512xbf16, #tpu.memory_space<vmem>>, vector<4x512xbf16>
    %c0_36 = arith.constant 0 : index
    %c5120 = arith.constant 5120 : index
    %41 = vector.load %arg10[%c0_36, %c5120] : memref<4x8192xbf16, #tpu.memory_space<vmem>>, vector<4x512xbf16>
    tpu.vector_store %arg10[%c0_36, %c5120], %40 {strides = array<i32>} : memref<4x8192xbf16, #tpu.memory_space<vmem>>, vector<4x512xbf16>,
    %c11 = arith.constant 11 : index
    %c0_37 = arith.constant 0 : index
    %42 = vector.load %arg9[%c11, %c0_37] : memref<19x512xbf16, #tpu.memory_space<vmem>>, vector<4x512xbf16>
    %c0_38 = arith.constant 0 : index
    %c5632 = arith.constant 5632 : index
    %43 = vector.load %arg10[%c0_38, %c5632] : memref<4x8192xbf16, #tpu.memory_space<vmem>>, vector<4x512xbf16>
    tpu.vector_store %arg10[%c0_38, %c5632], %42 {strides = array<i32>} : memref<4x8192xbf16, #tpu.memory_space<vmem>>, vector<4x512xbf16>,
    %c12 = arith.constant 12 : index
    %c0_39 = arith.constant 0 : index
    %44 = vector.load %arg9[%c12, %c0_39] : memref<19x512xbf16, #tpu.memory_space<vmem>>, vector<4x512xbf16>
    %c0_40 = arith.constant 0 : index
    %c6144 = arith.constant 6144 : index
    %45 = vector.load %arg10[%c0_40, %c6144] : memref<4x8192xbf16, #tpu.memory_space<vmem>>, vector<4x512xbf16>
    tpu.vector_store %arg10[%c0_40, %c6144], %44 {strides = array<i32>} : memref<4x8192xbf16, #tpu.memory_space<vmem>>, vector<4x512xbf16>,
    %c13 = arith.constant 13 : index
    %c0_41 = arith.constant 0 : index
    %46 = vector.load %arg9[%c13, %c0_41] : memref<19x512xbf16, #tpu.memory_space<vmem>>, vector<4x512xbf16>
    %c0_42 = arith.constant 0 : index
    %c6656 = arith.constant 6656 : index
    %47 = vector.load %arg10[%c0_42, %c6656] : memref<4x8192xbf16, #tpu.memory_space<vmem>>, vector<4x512xbf16>
    tpu.vector_store %arg10[%c0_42, %c6656], %46 {strides = array<i32>} : memref<4x8192xbf16, #tpu.memory_space<vmem>>, vector<4x512xbf16>,
    %c14 = arith.constant 14 : index
    %c0_43 = arith.constant 0 : index
    %48 = vector.load %arg9[%c14, %c0_43] : memref<19x512xbf16, #tpu.memory_space<vmem>>, vector<4x512xbf16>
    %c0_44 = arith.constant 0 : index
    %c7168 = arith.constant 7168 : index
    %49 = vector.load %arg10[%c0_44, %c7168] : memref<4x8192xbf16, #tpu.memory_space<vmem>>, vector<4x512xbf16>
    tpu.vector_store %arg10[%c0_44, %c7168], %48 {strides = array<i32>} : memref<4x8192xbf16, #tpu.memory_space<vmem>>, vector<4x512xbf16>,
    %c15 = arith.constant 15 : index
    %c0_45 = arith.constant 0 : index
    %50 = vector.load %arg9[%c15, %c0_45] : memref<19x512xbf16, #tpu.memory_space<vmem>>, vector<4x512xbf16>
    %c0_46 = arith.constant 0 : index
    %c7680 = arith.constant 7680 : index
    %51 = vector.load %arg10[%c0_46, %c7680] : memref<4x8192xbf16, #tpu.memory_space<vmem>>, vector<4x512xbf16>
    tpu.vector_store %arg10[%c0_46, %c7680], %50 {strides = array<i32>} : memref<4x8192xbf16, #tpu.memory_space<vmem>>, vector<4x512xbf16>,
    %c0_47 = arith.constant 0 : index
    %c0_48 = arith.constant 0 : index
    %c0_49 = arith.constant 0 : index
    %52 = vector.load %arg3[%c0_47, %c0_48, %c0_49] : memref<1x8192x128xbf16, #tpu.memory_space<vmem>>, vector<1x8192x128xbf16>
    %53 = vector.shape_cast %52 : vector<1x8192x128xbf16> to vector<8192x128xbf16>
    %c0_50 = arith.constant 0 : index
    %c0_51 = arith.constant 0 : index
    %54 = vector.load %arg10[%c0_50, %c0_51] : memref<4x8192xbf16, #tpu.memory_space<vmem>>, vector<4x8192xbf16>
    %cst_52 = arith.constant dense<0.000000e+00> : vector<4x128xf32>
    %55 = tpu.matmul %54, %53, %cst_52 {dimension_numbers = #tpu.dot_dimension_numbers<[1], [0], [0], [1], [0, 0, 1, 1], [], []>} : vector<4x8192xbf16>, vector<8192x128xbf16>, vector<4x128xf32> -> vector<4x128xf32>
    %c0_i32 = arith.constant 0 : i32
    %56 = arith.cmpi eq, %arg1, %c0_i32 : i32
    %57 = arith.extui %56 : i1 to i32
    %c0_i32_53 = arith.constant 0 : i32
    %58 = arith.cmpi ne, %57, %c0_i32_53 : i32
    scf.if %58 {
      %c0_58 = arith.constant 0 : index
      %c0_59 = arith.constant 0 : index
      %65 = vector.load %arg4[%c0_58, %c0_59] : memref<1x128xf32, #tpu.memory_space<vmem>>, vector<1x128xf32>
      %66 = vector.broadcast %65 : vector<1x128xf32> to vector<4x128xf32>
      %67 = arith.addf %55, %66 : vector<4x128xf32>
      %c0_60 = arith.constant 0 : index
      %c0_61 = arith.constant 0 : index
      %68 = vector.load %arg11[%c0_60, %c0_61] : memref<4x128xf32, #tpu.memory_space<vmem>>, vector<4x128xf32>
      tpu.vector_store %arg11[%c0_60, %c0_61], %67 {strides = array<i32>} : memref<4x128xf32, #tpu.memory_space<vmem>>, vector<4x128xf32>,
    } else {
    }
    %c0_i32_54 = arith.constant 0 : i32
    %59 = arith.cmpi ne, %arg1, %c0_i32_54 : i32
    %60 = arith.extui %59 : i1 to i32
    %c0_i32_55 = arith.constant 0 : i32
    %61 = arith.cmpi ne, %60, %c0_i32_55 : i32
    scf.if %61 {
      %c0_58 = arith.constant 0 : index
      %c0_59 = arith.constant 0 : index
      %65 = vector.load %arg11[%c0_58, %c0_59] : memref<4x128xf32, #tpu.memory_space<vmem>>, vector<4x128xf32>
      %66 = arith.addf %65, %55 : vector<4x128xf32>
      %c0_60 = arith.constant 0 : index
      %c0_61 = arith.constant 0 : index
      %67 = vector.load %arg11[%c0_60, %c0_61] : memref<4x128xf32, #tpu.memory_space<vmem>>, vector<4x128xf32>
      tpu.vector_store %arg11[%c0_60, %c0_61], %66 {strides = array<i32>} : memref<4x128xf32, #tpu.memory_space<vmem>>, vector<4x128xf32>,
    } else {
    }
    %c0_i32_56 = arith.constant 0 : i32
    %62 = arith.cmpi eq, %arg1, %c0_i32_56 : i32
    %63 = arith.extui %62 : i1 to i32
    %c0_i32_57 = arith.constant 0 : i32
    %64 = arith.cmpi ne, %63, %c0_i32_57 : i32
    scf.if %64 {
      %c0_58 = arith.constant 0 : index
      %c0_59 = arith.constant 0 : index
      %65 = vector.load %arg11[%c0_58, %c0_59] : memref<4x128xf32, #tpu.memory_space<vmem>>, vector<4x128xf32>
      %c0_60 = arith.constant 0 : index
      %c0_61 = arith.constant 0 : index
      %c0_62 = arith.constant 0 : index
      %66 = vector.load %arg8[%c0_60, %c0_61, %c0_62] : memref<1x4x128xf32, #tpu.memory_space<vmem>>, vector<1x4x128xf32>
      %67 = vector.shape_cast %66 : vector<1x4x128xf32> to vector<4x128xf32>
      %68 = vector.shape_cast %65 : vector<4x128xf32> to vector<1x4x128xf32>
      tpu.vector_store %arg8[%c0_60, %c0_61, %c0_62], %68 {strides = array<i32>} : memref<1x4x128xf32, #tpu.memory_space<vmem>>, vector<1x4x128xf32>,
    } else {
    }
    return
  }
  func.func @transform_0(%arg0: i32, %arg1: i32) -> (i32, i32, i32, i32) {
    %c0_i32 = arith.constant 0 : i32
    %c0_i32_0 = arith.constant 0 : i32
    %c0_i32_1 = arith.constant 0 : i32
    return %arg1, %arg0, %c0_i32, %c0_i32_0 : i32, i32, i32, i32
  }
  func.func @transform_1(%arg0: i32, %arg1: i32) -> (i32, i32, i32) {
    %c0_i32 = arith.constant 0 : i32
    %c0_i32_0 = arith.constant 0 : i32
    %c0_i32_1 = arith.constant 0 : i32
    %c0_i32_2 = arith.constant 0 : i32
    return %c0_i32, %c0_i32_0, %c0_i32_1 : i32, i32, i32
  }
  func.func @transform_2(%arg0: i32, %arg1: i32) -> (i32, i32) {
    %c0_i32 = arith.constant 0 : i32
    %c0_i32_0 = arith.constant 0 : i32
    %c0_i32_1 = arith.constant 0 : i32
    return %c0_i32, %c0_i32_0 : i32, i32
  }
  func.func @transform_3(%arg0: i32, %arg1: i32) -> (i32, i32) {
    %c0_i32 = arith.constant 0 : i32
    %c0_i32_0 = arith.constant 0 : i32
    %c0_i32_1 = arith.constant 0 : i32
    return %c0_i32, %c0_i32_0 : i32, i32
  }
  func.func @transform_4(%arg0: i32, %arg1: i32) -> (i32, i32) {
    %c0_i32 = arith.constant 0 : i32
    %c0_i32_0 = arith.constant 0 : i32
    %c0_i32_1 = arith.constant 0 : i32
    return %c0_i32, %c0_i32_0 : i32, i32
  }
  func.func @transform_5(%arg0: i32, %arg1: i32) -> (i32, i32, i32) {
    %c0_i32 = arith.constant 0 : i32
    %c0_i32_0 = arith.constant 0 : i32
    %c0_i32_1 = arith.constant 0 : i32
    return %arg1, %c0_i32, %c0_i32_0 : i32, i32, i32
  }
  func.func @transform_6(%arg0: i32, %arg1: i32) -> (i32, i32, i32) {
    %c0_i32 = arith.constant 0 : i32
    %c0_i32_0 = arith.constant 0 : i32
    %c0_i32_1 = arith.constant 0 : i32
    return %arg0, %c0_i32, %c0_i32_0 : i32, i32, i32
  }
}

</mosaic_0001>

<bundles_post_ra>
// kernel: patchgan_discriminator.5
= control target key start
LH: loop header
LB: loop body
LE: loop exit
PB: predicated region body
PF: predicated region fallthrough
CT: control target
= control target key end

     0   :  { %8 = vsyncpa [#allocation3], 0  ;;  %s1827_s0 = inlined_call_operand.hbm [shape: bf16[2,256,64], index: 0, kind: input, shape index: {}]   ;;  %s1828_s1 = inlined_call_operand.hbm [shape: bf16[64,128], index: 1, kind: input, shape index: {}]   ;;  %s1829_s2 = inlined_call_operand.hbm [shape: f32[1,128], index: 2, kind: input, shape index: {}]   ;;  %s1830_s3 = inlined_call_operand.hbm [shape: bf16[2,256,128], index: 3, kind: output, shape index: {}]  }
   0x1   :  { %10 = vsyncpa [#allocation3 + $0x1], 0 }
   0x2   :  { %11 = vsyncpa [#allocation6], 0 }
   0x3   :  { %12 = vsyncpa [#allocation4], 0 }
   0x4   :  { %14 = vsyncpa [#allocation4 + $0x1], 0  ;;  %s1474_s12 = smov 0   ;;  %s1476_s13 = smov 0  }
   0x5   :  { %s1478_s14 = smov 0   ;;  %s1480_s15 = smov 0  }
   0x6   :  { %s1482_s16 = smov 0   ;;  %s1484_s17 = smov 0  }
   0x7 LB: > { %s880_s18 = sadd.s32 4294967295, %s1444_s17   ;;  %s881_s19 = sadd.s32 4294967294, %s1444_s17   ;;  %s1444_s17 = sphi %s1484_s17, %s20_s17   ;;  %s1440_s16 = sphi %s1482_s16, %s1852_s16   ;;  %s1436_s15 = sphi %s1480_s15, %s1851_s15   ;;  %s1432_s14 = sphi %s1478_s14, %s1850_s14   ;;  %s1428_s13 = sphi %s1476_s13, %s1849_s13   ;;  %s1424_s12 = sphi %s1474_s12, %s1848_s12  }
   0x8   : > { %p54_p0 = scmp.ne.s32.totalorder %s1428_s13, %s1424_s12  ;;  %p1508_p1 = scmp.eq.s32.totalorder %s880_s18, 0 }
   0x9   : > { %p1512_p2 = scmp.eq.s32.totalorder %s880_s18, 1  ;;  %p128_p3 = scmp.eq.s32.totalorder %s881_s19, 1 }
   0xa   : > { %s1835_s20 = scalar_select %p1508_p1, 1, 0 }
   0xb   : > { %p1518_p4 = por %p1508_p1, %p54_p0  ;;  %p882_p5 = scmp.ge.s32.totalorder %s1444_s17, 1 }
   0xc   : > { %p1523_p6 = por %p128_p3, %p54_p0  ;;  %p135_p7 = scmp.lt.s32.totalorder %s1444_s17, 3 }
   0xd   : > { %s1837_s22 = scalar_select %p1518_p4, 1, 0 }
   0xe   : > { %s1838_s23 = scalar_select %p1523_p6, 1, 0 }
   0xf   : > { %p1528_p8 = pnand %p882_p5, %p135_p7  ;;  %s1446_s25 = smov [#allocation5]  }
  0x10   : > { %s147_s26 = sshll.u32 %s1446_s25, 4  ;;  %s1447_s28 = smov [#allocation7]   ;;  %s1532_s26 = int_to_ptr.vmem [resolvable:$true] %s147_s26 }
  0x11   : > { %p1177_p9 = pneg %p1528_p8  ;;  %s161_s29 = sshll.u32 %s1447_s28, 4  ;;  %s1543_s29 = int_to_ptr.vmem [resolvable:$true] %s161_s29 }
  0x12   : > { %s1272_s5 = scalar_lea.hbm %s1828_s1, 512 }
  0x13   : > { %p1539_p11 = pnand %p1177_p9, %p1508_p1  ;;  %p1273_p12 = scmp.ne.s32.totalorder %s1828_s1, %s1272_s5 }
  0x14   : > { %p1279_p5 = scmp.lt.u32.totalorder %s1272_s5, %s1828_s1 }
  0x15   : > { %p1274_p13 = pneg %p1539_p11 }
  0x17   : > { %p1275_p0 = pnand %p1274_p13, %p1273_p12 }
  0x19   : > { %p1276_p3 = pneg %p1275_p0 }
  0x1b   : > { %p1281_p7 = pnand %p1279_p5, %p1276_p3 }
  0x1d   : > { %1284 = shalt.err (!%p1281_p7)
}
  0x1e   : > { %s1285_s10 = scalar_lea.vmem %s1532_s26, 512  ;;  %p1293_p1 = scmp.lt.s32.totalorder %s1532_s26, %s1532_s26 }
  0x1f   : > { %p1286_p9 = scmp.ne.s32.totalorder %s1532_s26, %s1285_s10  ;;  %p1294_p12 = scmp.lt.s32.totalorder %s1285_s10, %s1285_s10 }
  0x21   : > { %p1288_p10 = pnand %p1286_p9, %p1274_p13  ;;  %p1295_p0 = por %p1294_p12, %p1293_p1 }
  0x23   : > { %p1289_p6 = pneg %p1288_p10 }
  0x25   : > { %p1296_p4 = pnand %p1295_p0, %p1289_p6 }
  0x27   : > { %1299 = shalt.err (!%p1296_p4)
}
  0x28   : > { %s1448_s11 = smov 64   ;;  %s1449_s18 = smov 4  }
  0x29   : > { %1180 = dma.hbm_to_vmem [thread:$0]  (!%p1539_p11), %s1828_s1, 512, %s1532_s26, [#allocation6], %s1448_s11, %s1448_s11, %s1449_s18  }
  0x2a   : > { %s1300_s4 = scalar_lea.hbm %s1829_s2, 16 }
  0x2b   : > { %p1301_p1 = scmp.ne.s32.totalorder %s1829_s2, %s1300_s4  ;;  %p1307_p10 = scmp.lt.u32.totalorder %s1300_s4, %s1829_s2 }
  0x2d   : > { %p1303_p4 = pnand %p1301_p1, %p1274_p13 }
  0x2f   : > { %p1304_p6 = pneg %p1303_p4 }
  0x31   : > { %p1309_p3 = pnand %p1307_p10, %p1304_p6 }
  0x33   : > { %1312 = shalt.err (!%p1309_p3)
}
  0x34   : > { %s1313_s26 = scalar_lea.vmem %s1543_s29, 16  ;;  %s1320_s9 = scalar_lea.vmem %s1543_s29, 32 }
  0x35   : > { %p1314_p5 = scmp.ne.s32.totalorder %s1543_s29, %s1313_s26  ;;  %p1321_p12 = scmp.lt.s32.totalorder %s1543_s29, %s1543_s29 }
  0x36   : > { %p1322_p0 = scmp.lt.s32.totalorder %s1320_s9, %s1313_s26 }
  0x37   : > { %p1316_p7 = pnand %p1314_p5, %p1274_p13 }
  0x38   : > { %p1323_p1 = por %p1322_p0, %p1321_p12 }
  0x39   : > { %p1317_p9 = pneg %p1316_p7 }
  0x3b   : > { %p1324_p4 = pnand %p1323_p1, %p1317_p9 }
  0x3d   : > { %1327 = shalt.err (!%p1324_p4)
}
  0x3e   : > { %1183 = dma.hbm_to_vmem [thread:$0]  (!%p1539_p11), %s1829_s2, 16, %s1543_s29, [#allocation6]  }
  0x3f   : > { %s32_s25 = sadd.s32 1, %s1440_s16  ;;  %s41_s28 = sadd.s32 1, %s1432_s14 }
  0x40   : > { %p34_p13 = scmp.ge.s32.totalorder %s32_s25, 2  ;;  %p48_p6 = scmp.ne.s32.totalorder %s1432_s14, %s1428_s13 }
  0x41   : > { %p49_p10 = scmp.eq.s32.totalorder %s1444_s17, 0  ;;  %p1194_p3 = scmp.lt.s32.totalorder %s1444_s17, 2 }
  0x42   : > { %s1854_s25 = smov (%p34_p13, %s32_s25), 0  ;;  %p1611_p7 = por %p1512_p2, %p48_p6 }
  0x43   : > { %p50_p5 = por %p49_p10, %p48_p6  ;;  %s36_s30 = ssub.s32 %s1440_s16, %s1854_s25 }
  0x44   : > { %s1841_s27 = scalar_select %p1611_p7, 1, 0 }
  0x45   : > { %s172_s4 = sand.u32 1, %s1432_s14   ;;  %p39_p9 = scmp.eq.s32.totalorder %s36_s30, 0 }
  0x46   : > { %s886_s29 = sshll.u32 %s172_s4, 7  ;;  %s968_s5 = sshll.u32 %s1440_s16, 11 }
  0x47   : > { %s1620_s6 = scalar_select %p39_p9, %s1432_s14, %s41_s28  }
  0x48   : > { %s1625_s26 = scalar_lea.hbm %s1827_s0, %s968_s5  ;;  %s176_s21 = scalar_lea.vmem [#allocation2], %s886_s29 }
  0x49   : > { %s185_s9 = sshll.u32 %s176_s21, 4  ;;  %p1629_p2 = pnand %p1194_p3, %p50_p5  ;;  %s1633_s9 = int_to_ptr.vmem [resolvable:$true] %s185_s9 }
  0x4a   : > { %s1635_s19 = scalar_lea.sflag [#allocation3], %s172_s4  ;;  %s1328_s28 = scalar_lea.hbm %s1625_s26, 2048 }
  0x4b   : > { %p1329_p11 = scmp.ne.s32.totalorder %s1625_s26, %s1328_s28  ;;  %p1330_p12 = pneg %p1629_p2 }
  0x4c   : > { %s1333_s5 = scalar_lea.hbm %s1827_s0, 4096  ;;  %p1334_p4 = scmp.lt.u32.totalorder %s1625_s26, %s1827_s0 }
  0x4d   : > { %p1331_p0 = pnand %p1330_p12, %p1329_p11  ;;  %p1335_p13 = scmp.lt.u32.totalorder %s1333_s5, %s1328_s28 }
  0x4e   : > { %p1337_p10 = scmp.lt.u32.totalorder %s1328_s28, %s1625_s26 }
  0x4f   : > { %p1332_p1 = pneg %p1331_p0  ;;  %p1336_p6 = por %p1335_p13, %p1334_p4 }
  0x51   : > { %p1338_p3 = por %p1337_p10, %p1336_p6 }
  0x53   : > { %p1339_p5 = pnand %p1338_p3, %p1332_p1 }
  0x55   : > { %1342 = shalt.err (!%p1339_p5)
}
  0x56   : > { %s1343_s4 = scalar_lea.vmem %s1633_s9, 2048  ;;  %s1450_s21 = smov [#allocation2]  }
  0x57   : > { %p1344_p9 = scmp.ne.s32.totalorder %s1633_s9, %s1343_s4  ;;  %s1348_s30 = sshll.u32 %s1450_s21, 4  ;;  %s1349_s30 = int_to_ptr.vmem [resolvable:$false] %s1348_s30 }
  0x58   : > { %s1350_s29 = scalar_lea.vmem %s1349_s30, 4096  ;;  %p1351_p7 = scmp.lt.s32.totalorder %s1633_s9, %s1349_s30 }
  0x59   : > { %p1346_p11 = pnand %p1344_p9, %p1330_p12  ;;  %p1352_p4 = scmp.lt.s32.totalorder %s1350_s29, %s1343_s4 }
  0x5b   : > { %p1347_p0 = pneg %p1346_p11  ;;  %p1353_p13 = por %p1352_p4, %p1351_p7 }
  0x5d   : > { %p1354_p6 = pnand %p1353_p13, %p1347_p0 }
  0x5f   : > { %1357 = shalt.err (!%p1354_p6)
}
  0x60   : > { %1187 = dma.hbm_to_vmem [thread:$0]  (!%p1629_p2), %s1625_s26, 2048, %s1633_s9, %s1635_s19, %s1448_s11, %s1448_s11, %s1449_s18  }
  0x61   : > { %197 = sbr.rel (%p1528_p8) target bundleno = 383 (0x17f), region = 32  ;;  %s1669_s28 = sand.u32 (!%p1528_p8), 1, %s1428_s13  }
  0x62   : > { %s890_s5 = sshll.u32 (!%p1528_p8), %s1669_s28, 7  ;;  %s200_s7 = scalar_lea.sflag (!%p1528_p8), [#allocation3], %s1669_s28 }
  0x63   : > { %s1675_s10 = scalar_lea.vmem (!%p1528_p8), [#allocation2], %s890_s5  ;;  %p1843_p7 = scmp.ne.s32.totalorder (!%p1528_p8), %s1837_s22, 0 }
  0x68   : > { %1411 = dma.done.wait (%p1843_p7), %s200_s7, 2048  }
  0x69   : > { %1413 = vsyncadd (%p1843_p7), %s200_s7, 4294965248  ;;  %p1844_p2 = scmp.ne.s32.totalorder %s1835_s20, 0 }
  0x6b   : > { %1415 = dma.done.wait (%p1844_p2), [#allocation6], 528  }
  0x6c   : > { %1417 = vsyncadd (%p1844_p2), [#allocation6], 4294966768  ;;  %v1252_v0 = vld [vmem:[#allocation5] sm:$0xff]   ;;  %v1253_v1 = vld [vmem:[#allocation5 + $0x8] sm:$0xff]   ;;  %vm388_vm0 = vcmask 523264   ;;  %s1729_s20 = scalar_lea.vmem [#allocation8], %s890_s5 }
  0x6d   : > { %1117 = vmatprep.subr.bf16.mxu0 %v1252_v0  ;;  %1157 = vmatprep.subr.bf16.mxu1 %v1252_v0  ;;  %v1254_v2 = vld [vmem:[#allocation5 + $0x10] sm:$0xff]   ;;  %v1256_v3 = vld [vmem:[%s1675_s10] sm:$0xff]   ;;  %v1255_v5 = vld [vmem:[#allocation5 + $0x18] sm:$0xff]   ;;  %s1001_s22 = sshll.u32 %s1436_s15, 11  ;;  %s774_s24 = sshll.u32 %s1729_s20, 4  ;;  %s1774_s24 = int_to_ptr.vmem [resolvable:$true] %s774_s24 }
  0x6e   : > { %1118 = vmatpush3.bf16.msra.mxu0 %v1252_v0  ;;  %1161 = vmatpush3.bf16.msra.mxu1 %v1252_v0  ;;  %v1257_v4 = vld [vmem:[%s1675_s10 + $0x40] sm:$0xff]   ;;  %v1258_v6 = vld [vmem:[%s1675_s10 + $0x8] sm:$0xff]   ;;  %v1260_v8 = vld [vmem:[%s1675_s10 + $0x10] sm:$0xff]   ;;  %s1772_s18 = scalar_lea.hbm %s1830_s3, %s1001_s22  ;;  %s759_s26 = scalar_lea.sflag [#allocation4], %s1669_s28 }
  0x6f   : > { %1119 = vmatprep.subr.bf16.mxu0 %v1253_v1  ;;  %1158 = vmatprep.subr.bf16.mxu1 %v1253_v1  ;;  %v1259_v7 = vld [vmem:[%s1675_s10 + $0x48] sm:$0xff]   ;;  %v1261_v9 = vld [vmem:[%s1675_s10 + $0x50] sm:$0xff]   ;;  %v1262_v10 = vld [vmem:[%s1675_s10 + $0x18] sm:$0xff]   ;;  %s1358_s9 = scalar_lea.vmem %s1774_s24, 2048  ;;  %p1845_p12 = scmp.ne.s32.totalorder %s1841_s27, 0 }
  0x70   : > { %1125 = vmatprep.mubr.msk.bf16.mxu0 %vm388_vm0, %v1256_v3  ;;  %1141 = vmatprep.mubr.msk.bf16.mxu1 %vm388_vm0, %v1257_v4  ;;  %v1263_v11 = vld [vmem:[%s1675_s10 + $0x58] sm:$0xff]   ;;  %v1264_v12 = vld [vmem:[%s1675_s10 + $0x20] sm:$0xff]   ;;  %v1266_v14 = vld [vmem:[%s1675_s10 + $0x28] sm:$0xff]   ;;  %p1359_p8 = scmp.ne.s32.totalorder %s1774_s24, %s1358_s9  ;;  %s1451_s19 = smov [#allocation8]  }
  0x71   : > { %v1265_v13 = vld [vmem:[%s1675_s10 + $0x60] sm:$0xff]   ;;  %v1267_v15 = vld [vmem:[%s1675_s10 + $0x68] sm:$0xff]   ;;  %v1268_v16 = vld [vmem:[%s1675_s10 + $0x30] sm:$0xff]   ;;  %s1362_s8 = sshll.u32 %s1451_s19, 4  ;;  %s1363_s8 = int_to_ptr.vmem [resolvable:$false] %s1362_s8 }
  0x72   : > { %1120 = vmatpush3.bf16.msra.mxu0 %v1253_v1  ;;  %1162 = vmatpush3.bf16.msra.mxu1 %v1253_v1  ;;  %v1269_v17 = vld [vmem:[%s1675_s10 + $0x70] sm:$0xff]   ;;  %v1270_v18 = vld [vmem:[%s1675_s10 + $0x38] sm:$0xff]   ;;  %v1717_v21 = vld [vmem:[#allocation7] ss:$0 sm:$0xff]  ;;  %p1360_p1 = pnand %p1359_p8, %p1845_p12  ;;  %s1364_s4 = scalar_lea.vmem %s1363_s8, 4096 }
  0x73   : > { %1121 = vmatprep.subr.bf16.mxu0 %v1254_v2  ;;  %1159 = vmatprep.subr.bf16.mxu1 %v1254_v2  ;;  %v1271_v19 = vld [vmem:[%s1675_s10 + $0x78] sm:$0xff]   ;;  %p1365_p3 = scmp.lt.s32.totalorder %s1774_s24, %s1363_s8  ;;  %p1366_p5 = scmp.lt.s32.totalorder %s1364_s4, %s1358_s9 }
  0x74   : > { %p1361_p10 = pneg %p1360_p1 }
  0x75   : > { %p1367_p9 = por %p1366_p5, %p1365_p3 }
  0x76   : > { %1122 = vmatpush3.bf16.msra.mxu0 %v1254_v2  ;;  %1163 = vmatpush3.bf16.msra.mxu1 %v1254_v2 }
  0x77   : > { %1123 = vmatprep.subr.bf16.mxu0 %v1255_v5  ;;  %1160 = vmatprep.subr.bf16.mxu1 %v1255_v5  ;;  %p1368_p11 = pnand %p1367_p9, %p1361_p10 }
  0x7a   : > { %1124 = vmatpush3.bf16.msra.mxu0 %v1255_v5  ;;  %1164 = vmatpush3.bf16.msra.mxu1 %v1255_v5 }
  0x7d   : > { %1126 = vmatmul.mubr.msk.bf16.vlgmr.msra.gmra.mrb[0].mxu0 %vm388_vm0, %v1258_v6  ;;  %1142 = vmatmul.mubr.msk.bf16.vlgmr.msra.gmra.mrb[0].mxu1 %vm388_vm0, %v1259_v7 }
  0x7e   : > { %1129 = vmatprep.mubr.msk.bf16.mxu0 %vm388_vm0, %v1260_v8  ;;  %1145 = vmatprep.mubr.msk.bf16.mxu1 %vm388_vm0, %v1261_v9 }
  0x85   : > { %1130 = vmatmul.mubr.msk.bf16.gmra.mrb[4].mxu0 %vm388_vm0, %v1262_v10  ;;  %1146 = vmatmul.mubr.msk.bf16.gmra.mrb[4].mxu1 %vm388_vm0, %v1263_v11 }
  0x86   : > { %1133 = vmatprep.mubr.msk.bf16.mxu0 %vm388_vm0, %v1264_v12  ;;  %1149 = vmatprep.mubr.msk.bf16.mxu1 %vm388_vm0, %v1265_v13 }
  0x8d   : > { %1134 = vmatmul.mubr.msk.bf16.gmra.mrb[8].mxu0 %vm388_vm0, %v1266_v14  ;;  %1150 = vmatmul.mubr.msk.bf16.gmra.mrb[8].mxu1 %vm388_vm0, %v1267_v15 }
  0x8e   : > { %1137 = vmatprep.mubr.msk.bf16.mxu0 %vm388_vm0, %v1268_v16  ;;  %1153 = vmatprep.mubr.msk.bf16.mxu1 %vm388_vm0, %v1269_v17 }
  0x95   : > { %1138 = vmatmul.mubr.msk.bf16.gmra.mrb[12].mxu0 %vm388_vm0, %v1270_v18  ;;  %1154 = vmatmul.mubr.msk.bf16.gmra.mrb[12].mxu1 %vm388_vm0, %v1271_v19 }
 0x150   : > { %v1127_v20 = vpop.f32.mrb[0].mxu0  ;;  %v1143_v22 = vpop.f32.mrb[0].mxu1 }
 0x151   : > { %v471_v23 = vpop.f32.mrb[1].mxu0  ;;  %v535_v24 = vpop.f32.mrb[1].mxu1  ;;  %v480_v27 = vadd.f32 %v1127_v20, %v1717_v21  ;;  %v544_v28 = vadd.f32 %v1143_v22, %v1717_v21 }
 0x152   : > { %v1128_v25 = vpop.f32.mrb[2].mxu0  ;;  %v1144_v26 = vpop.f32.mrb[2].mxu1  ;;  %v472_v33 = vadd.f32 %v1717_v21, %v471_v23  ;;  %v536_v34 = vadd.f32 %v1717_v21, %v535_v24 }
 0x153   : > { %v483_v29 = vadd.f32 %v1128_v25, %v1717_v21  ;;  %v547_v30 = vadd.f32 %v1144_v26, %v1717_v21  ;;  %v474_v31 = vpop.f32.mrb[3].mxu0  ;;  %v538_v32 = vpop.f32.mrb[3].mxu1 }
 0x154   : > { %v475_v35 = vadd.f32 %v1717_v21, %v474_v31  ;;  %v539_v36 = vadd.f32 %v1717_v21, %v538_v32 }
 0x155   : > { %v1010_v37 = vpack.c.bf16 %v483_v29, %v480_v27  ;;  %v1050_v38 = vpack.c.bf16 %v547_v30, %v544_v28 }
 0x156   : > { %v1005_v39 = vpack.c.bf16 %v475_v35, %v472_v33  ;;  %v1045_v40 = vpack.c.bf16 %v539_v36, %v536_v34 }
 0x157   : > { %1082 = vst [vmem:[%s1729_s20 + $0x8] sm:$0xff] %v1010_v37   ;;  %1090 = vst [vmem:[%s1729_s20 + $0x48] sm:$0xff] %v1050_v38  }
 0x158   : > { %1006 = vst [vmem:[%s1729_s20] sm:$0xff] %v1005_v39   ;;  %1089 = vst [vmem:[%s1729_s20 + $0x40] sm:$0xff] %v1045_v40   ;;  %v1131_v41 = vpop.f32.mrb[4].mxu0  ;;  %v1147_v42 = vpop.f32.mrb[4].mxu1 }
 0x159   : > { %v487_v43 = vpop.f32.mrb[5].mxu0  ;;  %v551_v44 = vpop.f32.mrb[5].mxu1  ;;  %v496_v47 = vadd.f32 %v1131_v41, %v1717_v21  ;;  %v560_v48 = vadd.f32 %v1147_v42, %v1717_v21 }
 0x15a   : > { %v1132_v45 = vpop.f32.mrb[6].mxu0  ;;  %v1148_v46 = vpop.f32.mrb[6].mxu1  ;;  %v488_v53 = vadd.f32 %v1717_v21, %v487_v43  ;;  %v552_v54 = vadd.f32 %v1717_v21, %v551_v44 }
 0x15b   : > { %v499_v49 = vadd.f32 %v1132_v45, %v1717_v21  ;;  %v563_v50 = vadd.f32 %v1148_v46, %v1717_v21  ;;  %v490_v51 = vpop.f32.mrb[7].mxu0  ;;  %v554_v52 = vpop.f32.mrb[7].mxu1 }
 0x15c   : > { %v491_v55 = vadd.f32 %v1717_v21, %v490_v51  ;;  %v555_v56 = vadd.f32 %v1717_v21, %v554_v52 }
 0x15d   : > { %v1020_v57 = vpack.c.bf16 %v499_v49, %v496_v47  ;;  %v1060_v58 = vpack.c.bf16 %v563_v50, %v560_v48 }
 0x15e   : > { %v1015_v59 = vpack.c.bf16 %v491_v55, %v488_v53  ;;  %v1055_v60 = vpack.c.bf16 %v555_v56, %v552_v54 }
 0x15f   : > { %1084 = vst [vmem:[%s1729_s20 + $0x18] sm:$0xff] %v1020_v57   ;;  %1092 = vst [vmem:[%s1729_s20 + $0x58] sm:$0xff] %v1060_v58  }
 0x160   : > { %1083 = vst [vmem:[%s1729_s20 + $0x10] sm:$0xff] %v1015_v59   ;;  %1091 = vst [vmem:[%s1729_s20 + $0x50] sm:$0xff] %v1055_v60   ;;  %v1135_v61 = vpop.f32.mrb[8].mxu0  ;;  %v1151_v62 = vpop.f32.mrb[8].mxu1 }
 0x161   : > { %v503_v63 = vpop.f32.mrb[9].mxu0  ;;  %v567_v0 = vpop.f32.mrb[9].mxu1  ;;  %v512_v3 = vadd.f32 %v1135_v61, %v1717_v21  ;;  %v576_v4 = vadd.f32 %v1151_v62, %v1717_v21 }
 0x162   : > { %v1136_v1 = vpop.f32.mrb[10].mxu0  ;;  %v1152_v2 = vpop.f32.mrb[10].mxu1  ;;  %v504_v9 = vadd.f32 %v1717_v21, %v503_v63  ;;  %v568_v10 = vadd.f32 %v1717_v21, %v567_v0 }
 0x163   : > { %v515_v5 = vadd.f32 %v1136_v1, %v1717_v21  ;;  %v579_v6 = vadd.f32 %v1152_v2, %v1717_v21  ;;  %v506_v7 = vpop.f32.mrb[11].mxu0  ;;  %v570_v8 = vpop.f32.mrb[11].mxu1 }
 0x164   : > { %v507_v11 = vadd.f32 %v1717_v21, %v506_v7  ;;  %v571_v12 = vadd.f32 %v1717_v21, %v570_v8 }
 0x165   : > { %v1030_v13 = vpack.c.bf16 %v515_v5, %v512_v3  ;;  %v1070_v14 = vpack.c.bf16 %v579_v6, %v576_v4 }
 0x166   : > { %v1025_v15 = vpack.c.bf16 %v507_v11, %v504_v9  ;;  %v1065_v16 = vpack.c.bf16 %v571_v12, %v568_v10 }
 0x167   : > { %1086 = vst [vmem:[%s1729_s20 + $0x28] sm:$0xff] %v1030_v13   ;;  %1094 = vst [vmem:[%s1729_s20 + $0x68] sm:$0xff] %v1070_v14  }
 0x168   : > { %1085 = vst [vmem:[%s1729_s20 + $0x20] sm:$0xff] %v1025_v15   ;;  %1093 = vst [vmem:[%s1729_s20 + $0x60] sm:$0xff] %v1065_v16   ;;  %v1139_v17 = vpop.f32.mrb[12].mxu0  ;;  %v1155_v18 = vpop.f32.mrb[12].mxu1 }
 0x169   : > { %v519_v19 = vpop.f32.mrb[13].mxu0  ;;  %v583_v20 = vpop.f32.mrb[13].mxu1  ;;  %v528_v24 = vadd.f32 %v1139_v17, %v1717_v21  ;;  %v592_v25 = vadd.f32 %v1155_v18, %v1717_v21 }
 0x16a   : > { %v1140_v22 = vpop.f32.mrb[14].mxu0  ;;  %v1156_v23 = vpop.f32.mrb[14].mxu1  ;;  %v520_v30 = vadd.f32 %v1717_v21, %v519_v19  ;;  %v584_v31 = vadd.f32 %v1717_v21, %v583_v20 }
 0x16b   : > { %v531_v26 = vadd.f32 %v1140_v22, %v1717_v21  ;;  %v595_v27 = vadd.f32 %v1156_v23, %v1717_v21  ;;  %v522_v28 = vpop.f32.mrb[15].mxu0  ;;  %v586_v29 = vpop.f32.mrb[15].mxu1 }
 0x16c   : > { %v523_v32 = vadd.f32 %v1717_v21, %v522_v28  ;;  %v587_v33 = vadd.f32 %v1717_v21, %v586_v29 }
 0x16d   : > { %v1040_v34 = vpack.c.bf16 %v531_v26, %v528_v24  ;;  %v1080_v35 = vpack.c.bf16 %v595_v27, %v592_v25 }
 0x16e   : > { %v1035_v36 = vpack.c.bf16 %v523_v32, %v520_v30  ;;  %v1075_v37 = vpack.c.bf16 %v587_v33, %v584_v31 }
 0x16f   : > { %1088 = vst [vmem:[%s1729_s20 + $0x38] sm:$0xff] %v1040_v34   ;;  %1096 = vst [vmem:[%s1729_s20 + $0x78] sm:$0xff] %v1080_v35  }
 0x170   : > { %1087 = vst [vmem:[%s1729_s20 + $0x30] sm:$0xff] %v1035_v36   ;;  %1095 = vst [vmem:[%s1729_s20 + $0x70] sm:$0xff] %v1075_v37  }
 0x171   : > { %1371 = shalt.err (!%p1368_p11)
}
 0x172   : > { %s1372_s21 = scalar_lea.hbm %s1772_s18, 2048  ;;  %s1376_s5 = scalar_lea.hbm %s1830_s3, 4096 }
 0x173   : > { %p1373_p0 = scmp.ne.s32.totalorder %s1772_s18, %s1372_s21  ;;  %p1377_p6 = scmp.lt.u32.totalorder %s1772_s18, %s1830_s3 }
 0x174   : > { %p1378_p7 = scmp.lt.u32.totalorder %s1376_s5, %s1372_s21  ;;  %p1380_p8 = scmp.lt.u32.totalorder %s1372_s21, %s1772_s18 }
 0x175   : > { %p1374_p4 = pnand %p1373_p0, %p1845_p12 }
 0x176   : > { %p1379_p2 = por %p1378_p7, %p1377_p6 }
 0x177   : > { %p1375_p13 = pneg %p1374_p4 }
 0x178   : > { %p1381_p1 = por %p1380_p8, %p1379_p2 }
 0x17a   : > { %p1382_p10 = pnand %p1381_p1, %p1375_p13 }
 0x17c   : > { %1385 = shalt.err (!%p1382_p10)
}
 0x17d   : > { %s1452_s20 = smov 64   ;;  %s1453_s22 = smov 4  }
 0x17e   : > { %1175 = dma.vmem_to_hbm [thread:$0]  (%p1845_p12), %s1774_s24, 2048, %s1772_s18, %s759_s26, %s1452_s20, %s1452_s20, %s1453_s22  }
 0x17f PF: > { %s789_s15 = sand.u32 1, %s1424_s12   ;;  %p1846_p3 = scmp.ne.s32.totalorder %s1838_s23, 0 }
 0x180   : > { %p1847_p5 = scmp.ge.s32.totalorder %s1444_s17, 2  ;;  %s790_s11 = scalar_lea.sflag [#allocation4], %s789_s15 }
 0x182   : > { %p1189_p9 = pnand %p1847_p5, %p1846_p3 }
 0x184   : > { %1419 = dma.done.wait (!%p1189_p9), %s790_s11, 2048  }
 0x185   : > { %1421 = vsyncadd (!%p1189_p9), %s790_s11, 4294965248  ;;  %s20_s17 = sadd.s32 1, %s1444_s17   ;;  %s1848_s12 = smov %s1428_s13 }
 0x186   : > { %p17_p11 = scmp.ge.s32.totalorder %s20_s17, 4   ;;  %s1849_s13 = smov %s1432_s14 }
 0x187   : > { %s1850_s14 = smov %s1620_s6  ;;  %s1851_s15 = smov %s1440_s16 }
 0x188   : > { %s1852_s16 = smov %s1854_s25  ;;  %19 = sbr.rel (!%p17_p11) target bundleno = 7 (0x7), region = 85 }
 0x18f   :  { %795 = vsyncpa [#allocation3], 1 }
 0x190   :  { %797 = vsyncpa [#allocation3 + $0x1], 1 }
 0x191   :  { %798 = vsyncpa [#allocation6], 1 }
 0x192   :  { %799 = vsyncpa [#allocation4], 1 }
 0x193   :  { %801 = vsyncpa [#allocation4 + $0x1], 1 }

// kernel: patchgan_discriminator.6
= control target key start
LH: loop header
LB: loop body
LE: loop exit
PB: predicated region body
PF: predicated region fallthrough
CT: control target
= control target key end

     0   :  { %s3716_s0 = inlined_call_operand.hbm [shape: bf16[4,2,82,128], index: 0, kind: input, shape index: {}]   ;;  %s3717_s1 = inlined_call_operand.hbm [shape: bf16[4,512,128], index: 1, kind: input, shape index: {}]   ;;  %s3718_s2 = inlined_call_operand.hbm [shape: f32[1,128], index: 2, kind: input, shape index: {}]   ;;  %s3719_s3 = inlined_call_operand.hbm [shape: f32[1,128], index: 3, kind: input, shape index: {}]   ;;  %s3720_s4 = inlined_call_operand.hbm [shape: f32[1,128], index: 4, kind: input, shape index: {}]   ;;  %s3721_s5 = inlined_call_operand.hbm [shape: f32[4,82,1], index: 5, kind: input, shape index: {}]   ;;  %s3722_s6 = inlined_call_operand.hbm [shape: f32[72,1], index: 6, kind: input, shape index: {}]   ;;  %s3723_s7 = inlined_call_operand.hbm [shape: bf16[2,72,128], index: 7, kind: output, shape index: {0}]   ;;  %s3724_s8 = inlined_call_operand.hbm [shape: f32[2,1,128], index: 8, kind: output, shape index: {1}]   ;;  %s3725_s9 = inlined_call_operand.hbm [shape: f32[2,1,128], index: 9, kind: output, shape index: {2}]  }
   0x1   :  { %3755 = sst [smem:[#allocation37_spill]] %s3716_s0 }
   0x2   :  { %3756 = sst [smem:[#allocation38_spill]] %s3717_s1 }
   0x3   :  { %3757 = sst [smem:[#allocation39_spill]] %s3718_s2 }
   0x4   :  { %3758 = sst [smem:[#allocation40_spill]] %s3719_s3 }
   0x5   :  { %3759 = sst [smem:[#allocation41_spill]] %s3720_s4 }
   0x6   :  { %3760 = sst [smem:[#allocation42_spill]] %s3721_s5 }
   0x7   :  { %3761 = sst [smem:[#allocation43_spill]] %s3722_s6 }
   0x8   :  { %3762 = sst [smem:[#allocation44_spill]] %s3723_s7 }
   0x9   :  { %3763 = sst [smem:[#allocation45_spill]] %s3724_s8 }
   0xa   :  { %3764 = sst [smem:[#allocation46_spill]] %s3725_s9 }
   0xb   :  { %15 = vsyncpa [#allocation6], 0 }
   0xc   :  { %17 = vsyncpa [#allocation6 + $0x1], 0 }
   0xd   :  { %18 = vsyncpa [#allocation9], 0 }
   0xe   :  { %19 = vsyncpa [#allocation12], 0 }
   0xf   :  { %20 = vsyncpa [#allocation15], 0 }
  0x10   :  { %22 = vsyncpa [#allocation15 + $0x1], 0 }
  0x11   :  { %23 = vsyncpa [#allocation7], 0 }
  0x12   :  { %25 = vsyncpa [#allocation7 + $0x1], 0 }
  0x13   :  { %26 = vsyncpa [#allocation19], 0 }
  0x14   :  { %28 = vsyncpa [#allocation19 + $0x1], 0  ;;  %s2981_s30 = smov 0   ;;  %s2983_s10 = smov 0  }
  0x15   :  { %s2985_s11 = smov 0   ;;  %s2987_s12 = smov 0  }
  0x16   :  { %s2989_s13 = smov 0   ;;  %s2991_s14 = smov 0  }
  0x17   :  { %s2993_s15 = smov 0   ;;  %s2995_s16 = smov 0  }
  0x18   :  { %s2997_s17 = smov 0   ;;  %s2999_s18 = smov 0  }
  0x19   :  { %s3001_s19 = smov 0   ;;  %s3003_s20 = smov 0  }
  0x1a   :  { %s3005_s21 = smov 0   ;;  %s3007_s22 = smov 0  }
  0x1b LB: > { %3765 = sst [smem:[#allocation28_spill]] %s2872_s12  ;;  %s3052_s23 = sadd.s32 4294967295, %s2912_s22   ;;  %s2912_s22 = sphi %s3007_s22, %s34_s22   ;;  %s2908_s21 = sphi %s3005_s21, %s3833_s21   ;;  %s2904_s20 = sphi %s3003_s20, %s3843_s20   ;;  %s2900_s19 = sphi %s3001_s19, %s3831_s19   ;;  %s2896_s18 = sphi %s2999_s18, %s3842_s18   ;;  %s2892_s17 = sphi %s2997_s17, %s3841_s17   ;;  %s2888_s16 = sphi %s2995_s16, %s3840_s16   ;;  %s2884_s15 = sphi %s2993_s15, %s3839_s15   ;;  %s2880_s14 = sphi %s2991_s14, %s3838_s14   ;;  %s2876_s13 = sphi %s2989_s13, %s3830_s13   ;;  %s2872_s12 = sphi %s2987_s12, %s3829_s12   ;;  %s2868_s11 = sphi %s2985_s11, %s3837_s11   ;;  %s2864_s10 = sphi %s2983_s10, %s3836_s10   ;;  %s2860_s30 = sphi %s2981_s30, %s3835_s30  }
  0x1c   : > { %3766 = sst [smem:[#allocation29_spill]] %s2876_s13  ;;  %p1933_p0 = scmp.ge.s32.totalorder %s2912_s22, 1 }
  0x1d   : > { %3767 = sst [smem:[#allocation30_spill]] %s2880_s14  ;;  %p3738_p1 = scmp.eq.s32.totalorder %s3052_s23, 0 }
  0x1e   : > { %3768 = sst [smem:[#allocation31_spill]] %s2896_s18  ;;  %p288_p3 = scmp.lt.s32.totalorder %s2912_s22, 9 }
  0x1f   : > { %3769 = sst [smem:[#allocation32_spill]] %s2900_s19  ;;  %s2914_s25 = smov [#allocation8]  }
  0x20   : > { %3770 = sst [smem:[#allocation33_spill]] %s2908_s21  ;;  %p3058_p4 = pnand %p1933_p0, %p288_p3 }
  0x21   : > { %s300_s26 = sshll.u32 %s2914_s25, 4  ;;  %s2915_s28 = smov [#allocation11]   ;;  %s3062_s26 = int_to_ptr.vmem [resolvable:$true] %s300_s26 }
  0x22   : > { %s3771_s24 = scalar_select %p3058_p4, 1, 0 }
  0x23   : > { %p2259_p5 = pneg %p3058_p4  ;;  %s325_s29 = sshll.u32 %s2915_s28, 4  ;;  %s3072_s29 = int_to_ptr.vmem [resolvable:$true] %s325_s29 }
  0x24   : > { %3772 = sst [smem:[#allocation34_spill]] %s3771_s24  ;;  %s2916_s9 = smov [#allocation16]  }
  0x25   : > { %p3068_p6 = pnand %p2259_p5, %p3738_p1  ;;  %s346_s7 = sshll.u32 %s2916_s9, 4  ;;  %s3074_s7 = int_to_ptr.vmem [resolvable:$true] %s346_s7 }
  0x26   : > { %s3774_s1 = sld [smem:[#allocation38_spill]] }
  0x27   : > { %p3084_p8 = pneg %p3068_p6 }
  0x2c   : > { %s2490_s19 = scalar_lea.hbm %s3774_s1, 16384 }
  0x2d   : > { %p2491_p7 = scmp.ne.s32.totalorder %s3774_s1, %s2490_s19  ;;  %p2497_p11 = scmp.lt.u32.totalorder %s2490_s19, %s3774_s1 }
  0x2f   : > { %p2493_p9 = pnand %p3084_p8, %p2491_p7 }
  0x31   : > { %p2494_p10 = pneg %p2493_p9 }
  0x33   : > { %p2499_p12 = pnand %p2497_p11, %p2494_p10 }
  0x35   : > { %2502 = shalt.err (!%p2499_p12)
}
  0x36   : > { %s2503_s8 = scalar_lea.vmem %s3062_s26, 16384  ;;  %p2511_p5 = scmp.lt.s32.totalorder %s3062_s26, %s3062_s26 }
  0x37   : > { %p2504_p13 = scmp.ne.s32.totalorder %s3062_s26, %s2503_s8  ;;  %p2512_p2 = scmp.lt.s32.totalorder %s2503_s8, %s2503_s8 }
  0x39   : > { %p2506_p0 = pnand %p2504_p13, %p3084_p8  ;;  %p2513_p7 = por %p2512_p2, %p2511_p5 }
  0x3b   : > { %p2507_p3 = pneg %p2506_p0 }
  0x3d   : > { %p2514_p9 = pnand %p2513_p7, %p2507_p3 }
  0x3f   : > { %2517 = shalt.err (!%p2514_p9)
}
  0x40   : > { %s3736_s18 = smov 64   ;;  %s3737_s19 = smov 4  }
  0x41   : > { %2262 = dma.hbm_to_vmem [thread:$0]  (!%p3068_p6), %s3774_s1, 16384, %s3062_s26, [#allocation9], %s3736_s18, %s3736_s18, %s3737_s19  }
  0x42   : > { %s3776_s3 = sld [smem:[#allocation40_spill]] }
  0x48   : > { %s2518_s8 = scalar_lea.hbm %s3776_s3, 16 }
  0x49   : > { %p2519_p2 = scmp.ne.s32.totalorder %s3776_s3, %s2518_s8  ;;  %p2525_p12 = scmp.lt.u32.totalorder %s2518_s8, %s3776_s3 }
  0x4b   : > { %p2521_p10 = pnand %p2519_p2, %p3084_p8 }
  0x4d   : > { %p2522_p11 = pneg %p2521_p10 }
  0x4f   : > { %p2527_p13 = pnand %p2525_p12, %p2522_p11 }
  0x51   : > { %2530 = shalt.err (!%p2527_p13)
}
  0x52   : > { %s2531_s26 = scalar_lea.vmem %s3072_s29, 16  ;;  %s2538_s12 = scalar_lea.vmem %s3072_s29, 32 }
  0x53   : > { %p2532_p0 = scmp.ne.s32.totalorder %s3072_s29, %s2531_s26  ;;  %p2539_p7 = scmp.lt.s32.totalorder %s3072_s29, %s3072_s29 }
  0x54   : > { %p2540_p9 = scmp.lt.s32.totalorder %s2538_s12, %s2531_s26 }
  0x55   : > { %p2534_p3 = pnand %p2532_p0, %p3084_p8 }
  0x56   : > { %p2541_p2 = por %p2540_p9, %p2539_p7 }
  0x57   : > { %p2535_p5 = pneg %p2534_p3 }
  0x59   : > { %p2542_p10 = pnand %p2541_p2, %p2535_p5 }
  0x5b   : > { %2545 = shalt.err (!%p2542_p10)
}
  0x5c   : > { %2268 = dma.hbm_to_vmem [thread:$0]  (!%p3068_p6), %s3776_s3, 16, %s3072_s29, [#allocation12]  }
  0x5d   : > { %s3777_s6 = sld [smem:[#allocation43_spill]] }
  0x63   : > { %s2546_s25 = scalar_lea.hbm %s3777_s6, 1152 }
  0x64   : > { %p2547_p11 = scmp.ne.s32.totalorder %s3777_s6, %s2546_s25  ;;  %p2553_p0 = scmp.lt.u32.totalorder %s2546_s25, %s3777_s6 }
  0x66   : > { %p2549_p12 = pnand %p2547_p11, %p3084_p8 }
  0x68   : > { %p2550_p13 = pneg %p2549_p12 }
  0x6a   : > { %p2555_p3 = pnand %p2553_p0, %p2550_p13 }
  0x6c   : > { %2558 = shalt.err (!%p2555_p3)
}
  0x6d   : > { %s2559_s29 = scalar_lea.vmem %s3074_s7, 1152  ;;  %p2567_p2 = scmp.lt.s32.totalorder %s3074_s7, %s3074_s7 }
  0x6e   : > { %p2560_p5 = scmp.ne.s32.totalorder %s3074_s7, %s2559_s29  ;;  %p2568_p10 = scmp.lt.s32.totalorder %s2559_s29, %s2559_s29 }
  0x70   : > { %p2562_p7 = pnand %p2560_p5, %p3084_p8  ;;  %p2569_p11 = por %p2568_p10, %p2567_p2 }
  0x72   : > { %p2563_p9 = pneg %p2562_p7 }
  0x74   : > { %p2570_p12 = pnand %p2569_p11, %p2563_p9 }
  0x76   : > { %2573 = shalt.err (!%p2570_p12)
}
  0x77   : > { %s3740_s12 = smov 128   ;;  %s3741_s0 = smov 8  }
  0x78   : > { %2274 = dma.hbm_to_vmem [thread:$0]  (!%p3068_p6), %s3777_s6, 1152, %s3074_s7, [#allocation15], %s3740_s12, %s3740_s12, %s3741_s0  }
  0x79   : > { %s2921_s24 = smov [#allocation10]   ;;  %s2922_s9 = smov [#allocation13]  }
  0x7a   : > { %s314_s25 = sshll.u32 %s2921_s24, 4  ;;  %s336_s28 = sshll.u32 %s2922_s9, 4  ;;  %s315_s25 = int_to_ptr.vmem [resolvable:$true] %s314_s25  ;;  %s3158_s28 = int_to_ptr.vmem [resolvable:$true] %s336_s28 }
  0x7b   : > { %s3778_s2 = sld [smem:[#allocation39_spill]] }
  0x81   : > { %s2574_s29 = scalar_lea.hbm %s3778_s2, 16 }
  0x82   : > { %p2575_p13 = scmp.ne.s32.totalorder %s3778_s2, %s2574_s29  ;;  %p2581_p5 = scmp.lt.u32.totalorder %s2574_s29, %s3778_s2 }
  0x84   : > { %p2577_p0 = pnand %p2575_p13, %p3084_p8 }
  0x86   : > { %p2578_p3 = pneg %p2577_p0 }
  0x88   : > { %p2583_p7 = pnand %p2581_p5, %p2578_p3 }
  0x8a   : > { %2586 = shalt.err (!%p2583_p7)
}
  0x8b   : > { %s2587_s14 = scalar_lea.vmem %s315_s25, 16  ;;  %s2594_s24 = scalar_lea.vmem %s315_s25, 32 }
  0x8c   : > { %p2588_p9 = scmp.ne.s32.totalorder %s315_s25, %s2587_s14  ;;  %p2595_p11 = scmp.lt.s32.totalorder %s315_s25, %s315_s25 }
  0x8d   : > { %p2596_p12 = scmp.lt.s32.totalorder %s2594_s24, %s2587_s14 }
  0x8e   : > { %p2590_p2 = pnand %p2588_p9, %p3084_p8 }
  0x8f   : > { %p2597_p1 = por %p2596_p12, %p2595_p11 }
  0x90   : > { %p2591_p10 = pneg %p2590_p2 }
  0x92   : > { %p2598_p4 = pnand %p2597_p1, %p2591_p10 }
  0x94   : > { %2601 = shalt.err (!%p2598_p4)
}
  0x95   : > { %2265 = dma.hbm_to_vmem [thread:$0]  (!%p3068_p6), %s3778_s2, 16, %s315_s25, [#allocation9]  }
  0x96   : > { %s3779_s4 = sld [smem:[#allocation41_spill]] }
  0x9c   : > { %s2602_s26 = scalar_lea.hbm %s3779_s4, 16 }
  0x9d   : > { %p2603_p13 = scmp.ne.s32.totalorder %s3779_s4, %s2602_s26  ;;  %p2609_p1 = scmp.lt.u32.totalorder %s2602_s26, %s3779_s4 }
  0x9f   : > { %p2605_p0 = pnand %p2603_p13, %p3084_p8 }
  0xa1   : > { %p2606_p3 = pneg %p2605_p0 }
  0xa3   : > { %p2611_p4 = pnand %p2609_p1, %p2606_p3 }
  0xa5   : > { %2614 = shalt.err (!%p2611_p4)
}
  0xa6   : > { %s2615_s25 = scalar_lea.vmem %s3158_s28, 16  ;;  %s2622_s24 = scalar_lea.vmem %s3158_s28, 32 }
  0xa7   : > { %p2616_p5 = scmp.ne.s32.totalorder %s3158_s28, %s2615_s25  ;;  %p2623_p2 = scmp.lt.s32.totalorder %s3158_s28, %s3158_s28 }
  0xa8   : > { %p2624_p10 = scmp.lt.s32.totalorder %s2622_s24, %s2615_s25 }
  0xa9   : > { %p2618_p7 = pnand %p2616_p5, %p3084_p8 }
  0xaa   : > { %p2625_p11 = por %p2624_p10, %p2623_p2 }
  0xab   : > { %p2619_p9 = pneg %p2618_p7 }
  0xad   : > { %p2626_p12 = pnand %p2625_p11, %p2619_p9 }
  0xaf   : > { %2629 = shalt.err (!%p2626_p12)
}
  0xb0   : > { %2271 = dma.hbm_to_vmem [thread:$0]  (!%p3068_p6), %s3779_s4, 16, %s3158_s28, [#allocation12]  }
  0xb1   : > { %s3742_s5 = sadd.s32 4294967294, %s2912_s22   ;;  %s43_s27 = sadd.s32 1, %s2904_s20 }
  0xb2   : > { %p44_p8 = scmp.ge.s32.totalorder %s43_s27, 4  ;;  %s46_s9 = sadd.s32 1, %s2908_s21 }
  0xb3   : > { %s55_s8 = sadd.s32 1, %s2892_s17  ;;  %p62_p13 = scmp.ne.s32.totalorder %s2892_s17, %s2888_s16 }
  0xb4   : > { %s3845_s27 = smov (%p44_p8, %s43_s27), 0  ;;  %s3847_s9 = smov (!%p44_p8, %s46_s9), %s2908_s21 }
  0xb5   : > { %3780 = sst [smem:[#allocation35_spill]] %s3845_s27  ;;  %s3213_s26 = ssub.s32 %s2904_s20, %s3845_s27 }
  0xb6   : > { %p3745_p6 = scmp.eq.s32.totalorder %s2912_s22, 0  ;;  %p48_p0 = scmp.ge.s32.totalorder %s3847_s9, 2 }
  0xb7   : > { %p68_p3 = scmp.ne.s32.totalorder %s2888_s16, %s2884_s15  ;;  %p3783_p5 = scmp.eq.s32.totalorder %s3052_s23, 0 }
  0xb8   : > { %p3220_p1 = por %p3745_p6, %p62_p13  ;;  %s3849_s9 = smov (%p48_p0, %s3847_s9), 0 }
  0xb9   : > { %3782 = sst [smem:[#allocation36_spill]] %s3849_s9  ;;  %p3229_p7 = por %p3783_p5, %p68_p3 }
  0xba   : > { %s212_s13 = sadd.s32 1, %s2868_s11  ;;  %s51_s15 = ssub.s32 %s2908_s21, %s3849_s9 }
  0xbb   : > { %p222_p9 = scmp.ne.s32.totalorder %s2868_s11, %s2864_s10  ;;  %s52_s7 = sor.u32 %s51_s15, %s3213_s26 }
  0xbc   : > { %p210_p2 = scmp.eq.s32.totalorder %s51_s15, 0  ;;  %p53_p10 = scmp.eq.s32.totalorder %s52_s7, 0 }
  0xbd   : > { %p3785_p11 = scmp.eq.s32.totalorder %s3052_s23, 7  ;;  %p228_p8 = scmp.ne.s32.totalorder %s2864_s10, %s2860_s30 }
  0xbe   : > { %s3246_s25 = scalar_select %p210_p2, %s2868_s11, %s212_s13  }
  0xbf   : > { %p3241_p12 = por %p3785_p11, %p222_p9  ;;  %p229_p13 = scmp.eq.s32.totalorder %s3742_s5, 7 }
  0xc0   : > { %s3249_s24 = scalar_select %p53_p10, %s2892_s17, %s55_s8  }
  0xc1   : > { %s3786_s14 = scalar_select %p3241_p12, 1, 0 }
  0xc2   : > { %p3744_p0 = scmp.lt.s32.totalorder %s2912_s22, 8  ;;  %s360_s18 = sand.u32 1, %s2892_s17  }
  0xc3   : > { %p3257_p3 = por %p229_p13, %p228_p8  ;;  %s2221_s15 = smul.u32 44, %s360_s18 }
  0xc4   : > { %p3265_p5 = pnand %p3744_p0, %p3220_p1  ;;  %s2222_s8 = smul.u32 11, %s2908_s21 }
  0xc5   : > { %s3787_s19 = scalar_select %p3257_p3, 1, 0 }
  0xc6   : > { %s2223_s13 = smul.u32 22, %s2904_s20  ;;  %s364_s12 = scalar_lea.vmem [#allocation5], %s2221_s15 }
  0xc7   : > { %s373_s0 = sshll.u32 %s364_s12, 4  ;;  %s3789_s4 = sld [smem:[#allocation37_spill]]  ;;  %s3271_s0 = int_to_ptr.vmem [resolvable:$true] %s373_s0 }
  0xc8   : > { %s370_s5 = sadd.s32 %s2223_s13, %s2222_s8  ;;  %s3278_s28 = scalar_lea.sflag [#allocation6], %s360_s18 }
  0xc9   : > { %s1940_s1 = sshll.u32 %s370_s5, 6  ;;  %p2632_p9 = pneg %p3265_p5 }
  0xcd   : > { %s3276_s6 = scalar_lea.hbm %s3789_s4, %s1940_s1  ;;  %s2635_s2 = scalar_lea.hbm %s3789_s4, 5632 }
  0xce   : > { %s2630_s9 = scalar_lea.hbm %s3276_s6, 704  ;;  %p2636_p11 = scmp.lt.u32.totalorder %s3276_s6, %s3789_s4 }
  0xcf   : > { %p2631_p1 = scmp.ne.s32.totalorder %s3276_s6, %s2630_s9  ;;  %p2637_p8 = scmp.lt.u32.totalorder %s2635_s2, %s2630_s9 }
  0xd0   : > { %p2639_p0 = scmp.lt.u32.totalorder %s2630_s9, %s3276_s6 }
  0xd1   : > { %p2633_p2 = pnand %p2632_p9, %p2631_p1  ;;  %p2638_p13 = por %p2637_p8, %p2636_p11 }
  0xd3   : > { %p2634_p10 = pneg %p2633_p2  ;;  %p2640_p6 = por %p2639_p0, %p2638_p13 }
  0xd5   : > { %p2641_p4 = pnand %p2640_p6, %p2634_p10 }
  0xd7   : > { %2644 = shalt.err (!%p2641_p4)
}
  0xd8   : > { %s2645_s18 = scalar_lea.vmem %s3271_s0, 704  ;;  %s2923_s15 = smov [#allocation5]  }
  0xd9   : > { %p2646_p1 = scmp.ne.s32.totalorder %s3271_s0, %s2645_s18  ;;  %s2650_s8 = sshll.u32 %s2923_s15, 4  ;;  %s2651_s8 = int_to_ptr.vmem [resolvable:$false] %s2650_s8 }
  0xda   : > { %s2652_s13 = scalar_lea.vmem %s2651_s8, 1408  ;;  %p2653_p12 = scmp.lt.s32.totalorder %s3271_s0, %s2651_s8 }
  0xdb   : > { %p2648_p2 = pnand %p2646_p1, %p2632_p9  ;;  %p2654_p11 = scmp.lt.s32.totalorder %s2652_s13, %s2645_s18 }
  0xdd   : > { %p2649_p3 = pneg %p2648_p2  ;;  %p2655_p8 = por %p2654_p11, %p2653_p12 }
  0xdf   : > { %p2656_p0 = pnand %p2655_p8, %p2649_p3 }
  0xe1   : > { %2659 = shalt.err (!%p2656_p0)
}
  0xe2   : > { %s3790_s9 = smov 4   ;;  %s3791_s12 = smov 64  }
  0xe3   : > { %s3792_s5 = sld [smem:[#allocation30_spill]]  ;;  %s3793_s2 = sld [smem:[#allocation29_spill]] }
  0xe4   : > { %s3794_s1 = sld [smem:[#allocation28_spill]]  ;;  %p3795_p6 = scmp.eq.s32.totalorder %s3213_s26, 0 }
  0xe5   : > { %2278 = dma.hbm_to_vmem [thread:$0]  (!%p3265_p5), %s3276_s6, 704, %s3271_s0, %s3278_s28, %s3791_s12, %s3791_s12, %s3790_s9  }
  0xe6   : > { %s383_s18 = sand.u32 1, %s2912_s22   ;;  %p3796_p3 = scmp.eq.s32.totalorder %s2912_s22, 0 }
  0xe7   : > { %p3797_p10 = scmp.eq.s32.totalorder %s3052_s23, 0  ;;  %s2225_s4 = smul.u32 1408, %s2904_s20 }
  0xe8   : > { %p3799_p1 = scmp.lt.s32.totalorder %s2912_s22, 8  ;;  %s3801_s28 = sld [smem:[#allocation42_spill]] }
  0xe9   : > { %s165_s7 = sadd.s32 1, %s3792_s5  ;;  %p172_p4 = scmp.ne.s32.totalorder %s3792_s5, %s3793_s2 }
  0xea   : > { %s3313_s3 = scalar_select %p3795_p6, %s3792_s5, %s165_s7  }
  0xeb   : > { %p178_p12 = scmp.ne.s32.totalorder %s3793_s2, %s3794_s1  ;;  %s385_s15 = sand.u32 1, %s3792_s5  }
  0xec   : > { %p174_p9 = por %p172_p4, %p3796_p3  ;;  %s2224_s13 = smul.u32 88, %s385_s15 }
  0xed   : > { %p3325_p13 = por %p178_p12, %p3797_p10  ;;  %s3343_s2 = scalar_lea.sflag [#allocation15], %s383_s18 }
  0xee   : > { %p3332_p2 = pnand %p3799_p1, %p174_p9  ;;  %s3339_s9 = scalar_lea.hbm %s3801_s28, %s2225_s4 }
  0xef   : > { %s3798_s8 = scalar_select %p3325_p13, 1, 0 }
  0xf0   : > { %s387_s12 = scalar_lea.vmem [#allocation14], %s2224_s13  ;;  %s2660_s1 = scalar_lea.hbm %s3339_s9, 1408 }
  0xf1   : > { %s394_s5 = sshll.u32 %s387_s12, 4  ;;  %p2661_p5 = scmp.ne.s32.totalorder %s3339_s9, %s2660_s1  ;;  %s3341_s5 = int_to_ptr.vmem [resolvable:$true] %s394_s5 }
  0xf2   : > { %p2662_p11 = pneg %p3332_p2  ;;  %s2665_s15 = scalar_lea.hbm %s3801_s28, 5632 }
  0xf3   : > { %p2666_p6 = scmp.lt.u32.totalorder %s3339_s9, %s3801_s28  ;;  %p2667_p4 = scmp.lt.u32.totalorder %s2665_s15, %s2660_s1 }
  0xf4   : > { %p2663_p8 = pnand %p2662_p11, %p2661_p5  ;;  %p2669_p3 = scmp.lt.u32.totalorder %s2660_s1, %s3339_s9 }
  0xf5   : > { %p2668_p12 = por %p2667_p4, %p2666_p6 }
  0xf6   : > { %p2664_p0 = pneg %p2663_p8 }
  0xf7   : > { %p2670_p9 = por %p2669_p3, %p2668_p12 }
  0xf9   : > { %p2671_p10 = pnand %p2670_p9, %p2664_p0 }
  0xfb   : > { %2674 = shalt.err (!%p2671_p10)
}
  0xfc   : > { %s2675_s18 = scalar_lea.vmem %s3341_s5, 1408  ;;  %s2924_s13 = smov [#allocation14]  }
  0xfd   : > { %p2676_p1 = scmp.ne.s32.totalorder %s3341_s5, %s2675_s18  ;;  %s2680_s12 = sshll.u32 %s2924_s13, 4  ;;  %s2681_s12 = int_to_ptr.vmem [resolvable:$false] %s2680_s12 }
  0xfe   : > { %s2682_s4 = scalar_lea.vmem %s2681_s12, 2816  ;;  %p2683_p13 = scmp.lt.s32.totalorder %s3341_s5, %s2681_s12 }
  0xff   : > { %p2678_p5 = pnand %p2676_p1, %p2662_p11  ;;  %p2684_p6 = scmp.lt.s32.totalorder %s2682_s4, %s2675_s18 }
 0x101   : > { %p2679_p8 = pneg %p2678_p5  ;;  %p2685_p4 = por %p2684_p6, %p2683_p13 }
 0x103   : > { %p2686_p12 = pnand %p2685_p4, %p2679_p8 }
 0x105   : > { %2689 = shalt.err (!%p2686_p12)
}
 0x106   : > { %s3802_s1 = smov 8   ;;  %s3803_s7 = smov 128  }
 0x107   : > { %2281 = dma.hbm_to_vmem [thread:$0]  (!%p3332_p2), %s3339_s9, 1408, %s3341_s5, %s3343_s2, %s3803_s7, %s3803_s7, %s3802_s1  }
 0x108   : > { %s3804_s15 = sld [smem:[#allocation34_spill]] }
 0x10e   : > { %p3805_p11 = scmp.ne.s32.totalorder %s3804_s15, 0 }
 0x10f   : > { %s408_s0 = sand.u32 (!%p3805_p11), 1, %s2888_s16  }
 0x110   : > { %406 = sbr.rel (%p3805_p11) target bundleno = 867 (0x363), region = 48  ;;  %s409_s18 = scalar_lea.sflag (!%p3805_p11), [#allocation6], %s408_s0 }
 0x111   : > { %s2226_s26 = smul.u32 (!%p3805_p11), 44, %s408_s0 }
 0x113   : > { %s3377_s13 = scalar_lea.vmem (!%p3805_p11), [#allocation5], %s2226_s26 }
 0x117   : > { %2831 = dma.done.wait (%p3229_p7), %s409_s18, 704  }
 0x118   : > { %2833 = vsyncadd (%p3229_p7), %s409_s18, 4294966592  ;;  %p3806_p13 = scmp.eq.s32.totalorder %s3052_s23, 0 }
 0x11a   : > { %2835 = dma.done.wait (%p3806_p13), [#allocation9], 16400   ;;  %p3807_p2 = pmov %p3806_p13 }
 0x11c   : > { %2837 = vsyncadd (%p3807_p2), [#allocation9], 4294950896  ;;  %p3808_p0 = pmov %p3807_p2 }
 0x11e   : > { %2839 = dma.done.wait (%p3808_p0), [#allocation12], 32   ;;  %p3809_p3 = pmov %p3808_p0 }
 0x11f   : > { %s433_s6 = sand.u32 1, %s3052_s23   ;;  %p3810_p9 = scmp.ne.s32.totalorder %s3798_s8, 0 }
 0x120   : > { %2841 = vsyncadd (%p3809_p3), [#allocation12], 4294967264  ;;  %s434_s9 = scalar_lea.sflag [#allocation15], %s433_s6 }
 0x121   : > { %2843 = dma.done.wait (%p3810_p9), %s434_s9, 1408  }
 0x122   : > { %2845 = vsyncadd (%p3810_p9), %s434_s9, 4294965888  ;;  %p3811_p7 = pmov %p3808_p0 }
 0x123   : > { %p3812_p10 = pmov %p3808_p0 }
 0x124   : > { %2847 = dma.done.wait (%p3811_p7), [#allocation15], 1152  }
 0x125   : > { %2849 = vsyncadd (%p3812_p10), [#allocation15], 4294966144  ;;  %s3813_s29 = sld [smem:[#allocation31_spill]]  ;;  %s3403_s5 = sand.u32 1, %s2864_s10   ;;  %v2054_v32 = vld [vmem:[%s3377_s13] sm:$0xff]   ;;  %v2118_v33 = vld [vmem:[%s3377_s13 + $0x8] sm:$0xff]  }
 0x126   : > { %s2227_s12 = smul.u32 36, %s3403_s5  ;;  %v2119_v34 = vld [vmem:[%s3377_s13 + $0x10] sm:$0xff]   ;;  %v2055_v35 = vunpack.c.l.bf16 %v2054_v32  ;;  %v2056_v36 = vunpack.c.h.bf16 %v2054_v32  ;;  %v2059_v37 = vunpack.c.l.bf16 %v2118_v33  ;;  %v2060_v38 = vunpack.c.h.bf16 %v2118_v33  ;;  %v2120_v39 = vld [vmem:[%s3377_s13 + $0x18] sm:$0xff]   ;;  %v2121_v40 = vld [vmem:[%s3377_s13 + $0x20] sm:$0xff]   ;;  %s482_s1 = scalar_lea.vmem [#allocation18], %s3403_s5 }
 0x127   : > { %v2063_v41 = vunpack.c.l.bf16 %v2119_v34  ;;  %v2064_v42 = vunpack.c.h.bf16 %v2119_v34  ;;  %v2067_v43 = vunpack.c.l.bf16 %v2120_v39  ;;  %v2068_v44 = vunpack.c.h.bf16 %v2120_v39  ;;  %v500_v58 = vld [vmem:[%s3377_s13 + $0x28] sm:$0x1]  ;;  %s3749_s7 = scalar_lea.vmem [#allocation20], %s3403_s5 }
 0x128   : > { %vm512_vm0 = vcmp.ge.f32.partialorder %v2055_v35, 0.0  ;;  %vm513_vm1 = vcmp.ge.f32.partialorder %v2056_v36, 0.0  ;;  %vm514_vm2 = vcmp.ge.f32.partialorder %v2059_v37, 0.0  ;;  %vm515_vm3 = vcmp.ge.f32.partialorder %v2060_v38, 0.0  ;;  %s3542_s8 = scalar_lea.vmem [#allocation17], %s2227_s12 }
 0x129   : > { %v523_v45 = vmul.f32 0.2, %v2055_v35  ;;  %v524_v46 = vmul.f32 0.2, %v2056_v36  ;;  %v525_v47 = vmul.f32 0.2, %v2059_v37  ;;  %v2071_v48 = vunpack.c.l.bf16 %v2121_v40 }
 0x12a   : > { %v526_v49 = vmul.f32 0.2, %v2060_v38  ;;  %vm516_vm4 = vcmp.ge.f32.partialorder %v2063_v41, 0.0  ;;  %vm517_vm5 = vcmp.ge.f32.partialorder %v2064_v42, 0.0  ;;  %v527_v50 = vmul.f32 0.2, %v2063_v41 }
 0x12b   : > { %s2043_s2 = sshll.u32 %s3813_s29, 8  ;;  %v534_v51 = vsel %vm512_vm0, %v2055_v35, %v523_v45  ;;  %v535_v52 = vsel %vm513_vm1, %v2056_v36, %v524_v46  ;;  %v536_v53 = vsel %vm514_vm2, %v2059_v37, %v525_v47  ;;  %v528_v54 = vmul.f32 0.2, %v2064_v42  ;;  %p2014_p1 = scmp.ne.s32.totalorder %s3813_s29, 0 }
 0x12c   : > { %s3407_s4 = scalar_lea.vmem [#allocation8], %s2043_s2  ;;  %v537_v55 = vsel %vm515_vm3, %v2060_v38, %v526_v49  ;;  %v2076_v56 = vpack.c.bf16 %v535_v52, %v534_v51  ;;  %v538_v57 = vsel %vm516_vm4, %v2063_v41, %v527_v50  ;;  %vm518_vm6 = vcmp.ge.f32.partialorder %v2067_v43, 0.0 }
 0x12d   : > { %v2428_v0 = vld [vmem:[%s3407_s4 + $0x40] sm:$0xff]   ;;  %v2432_v4 = vld [vmem:[%s3407_s4 + $0x48] sm:$0xff]   ;;  %v2436_v8 = vld [vmem:[%s3407_s4 + $0x50] sm:$0xff]   ;;  %v2081_v59 = vpack.c.bf16 %v537_v55, %v536_v53  ;;  %v539_v60 = vsel %vm517_vm5, %v2064_v42, %v528_v54  ;;  %vm519_vm7 = vcmp.ge.f32.partialorder %v2068_v44, 0.0  ;;  %v529_v61 = vmul.f32 0.2, %v2067_v43 }
 0x12e   : > { %v2429_v1 = vld [vmem:[%s3407_s4 + $0xc0] sm:$0xff]   ;;  %2129 = vmatprep.subr.bf16.mxu0 %v2428_v0  ;;  %v2433_v5 = vld [vmem:[%s3407_s4 + $0xc8] sm:$0xff]   ;;  %v2437_v9 = vld [vmem:[%s3407_s4 + $0xd0] sm:$0xff]   ;;  %2077 = vst [vmem:[#allocation2] sm:$0xff] %v2076_v56   ;;  %v2086_v62 = vpack.c.bf16 %v539_v60, %v538_v57  ;;  %v530_v63 = vmul.f32 0.2, %v2068_v44  ;;  %v2072_v0 = vunpack.c.h.bf16 %v2121_v40 }
 0x12f   : > { %v2430_v2 = vld [vmem:[%s3407_s4] sm:$0xff]   ;;  %2175 = vmatprep.subr.bf16.mxu1 %v2429_v1  ;;  %v2434_v6 = vld [vmem:[%s3407_s4 + $0x8] sm:$0xff]   ;;  %v2438_v10 = vld [vmem:[%s3407_s4 + $0x10] sm:$0xff]   ;;  %vm520_vm8 = vcmp.ge.f32.partialorder %v2071_v48, 0.0  ;;  %2122 = vst [vmem:[#allocation2 + $0x8] sm:$0xff] %v2081_v59   ;;  %v540_v1 = vsel %vm518_vm6, %v2067_v43, %v529_v61  ;;  %vm886_vm13 = vcmask 1042432  }
 0x130   : > { %v2431_v3 = vld [vmem:[%s3407_s4 + $0x80] sm:$0xff]   ;;  %2130 = vmatpush3.bf16.msra.mxu0 %v2430_v2  ;;  %v2435_v7 = vld [vmem:[%s3407_s4 + $0x88] sm:$0xff]   ;;  %v2439_v11 = vld [vmem:[%s3407_s4 + $0x90] sm:$0xff]   ;;  %v531_v2 = vmul.f32 0.2, %v2071_v48  ;;  %2123 = vst [vmem:[#allocation2 + $0x10] sm:$0xff] %v2086_v62  }
 0x131   : > { %2176 = vmatpush3.bf16.msra.mxu1 %v2431_v3  ;;  %2131 = vmatprep.subr.bf16.mxu0 %v2432_v4  ;;  %v2440_v12 = vld [vmem:[%s3407_s4 + $0x58] sm:$0xff]   ;;  %v2444_v16 = vld [vmem:[%s3407_s4 + $0x60] sm:$0xff]   ;;  %v2448_v20 = vld [vmem:[%s3407_s4 + $0x68] sm:$0xff]   ;;  %v511_v3 = vunpack.c.l.bf16 %v500_v58  ;;  %v541_v4 = vsel %vm519_vm7, %v2068_v44, %v530_v63  ;;  %vm521_vm9 = vcmp.ge.f32.partialorder %v2072_v0, 0.0  ;;  %vm629_vm11 = vsmask.f32 3328 }
 0x132   : > { %2177 = vmatprep.subr.bf16.mxu1 %v2433_v5  ;;  %v2441_v13 = vld [vmem:[%s3407_s4 + $0xd8] sm:$0xff]   ;;  %v2445_v17 = vld [vmem:[%s3407_s4 + $0xe0] sm:$0xff]   ;;  %v2449_v21 = vld [vmem:[%s3407_s4 + $0xe8] sm:$0xff]   ;;  %v532_v5 = vmul.f32 0.2, %v2072_v0  ;;  %vm887_vm14 = vcmask 1046532  }
 0x133   : > { %v2442_v14 = vld [vmem:[%s3407_s4 + $0x18] sm:$0xff]   ;;  %v2446_v18 = vld [vmem:[%s3407_s4 + $0x20] sm:$0xff]   ;;  %v2450_v22 = vld [vmem:[%s3407_s4 + $0x28] sm:$0xff]   ;;  %vm522_vm10 = vcmp.ge.f32.partialorder %v511_v3, 0.0  ;;  %vm630_vm12 = vsmask.f32 7440 }
 0x134   : > { %2132 = vmatpush3.bf16.msra.mxu0 %v2434_v6  ;;  %v2443_v15 = vld [vmem:[%s3407_s4 + $0x98] sm:$0xff]   ;;  %v2447_v19 = vld [vmem:[%s3407_s4 + $0xa0] sm:$0xff]   ;;  %v2451_v23 = vld [vmem:[%s3407_s4 + $0xa8] sm:$0xff]   ;;  %v2091_v6 = vpack.c.bf16 %v541_v4, %v540_v1 }
 0x135   : > { %2178 = vmatpush3.bf16.msra.mxu1 %v2435_v7  ;;  %2133 = vmatprep.subr.bf16.mxu0 %v2436_v8  ;;  %v2452_v24 = vld [vmem:[%s3407_s4 + $0x70] sm:$0xff]   ;;  %v2456_v28 = vld [vmem:[%s3407_s4 + $0x78] sm:$0xff]   ;;  %v542_v7 = vsel %vm520_vm8, %v2071_v48, %v531_v2  ;;  %v533_v8 = vmul.f32 0.2, %v511_v3  ;;  %v866_v33 = vld [vmem:[#allocation2 + $0x4] sm:$0xe] }
 0x136   : > { %2179 = vmatprep.subr.bf16.mxu1 %v2437_v9  ;;  %v2453_v25 = vld [vmem:[%s3407_s4 + $0xf0] sm:$0xff]   ;;  %v2457_v29 = vld [vmem:[%s3407_s4 + $0xf8] sm:$0xff]   ;;  %v543_v9 = vsel %vm521_vm9, %v2072_v0, %v532_v5  ;;  %2124 = vst [vmem:[#allocation2 + $0x18] sm:$0xff] %v2091_v6   ;;  %v867_v38 = vld [vmem:[#allocation2 + $0x8] sm:$0xf]  ;;  %v1959_v60 = vrot.slane %v866_v33, 9 }
 0x137   : > { %v2454_v26 = vld [vmem:[%s3407_s4 + $0x30] sm:$0xff]   ;;  %v2458_v30 = vld [vmem:[%s3407_s4 + $0x38] sm:$0xff]   ;;  %vm3449_vm15 = vmor %vm629_vm11, %vm630_vm12  ;;  %v891_v63 = vrot.slane %v867_v38, 5 }
 0x138   : > { %2134 = vmatpush3.bf16.msra.mxu0 %v2438_v10  ;;  %v2455_v27 = vld [vmem:[%s3407_s4 + $0xb0] sm:$0xff]   ;;  %v2459_v31 = vld [vmem:[%s3407_s4 + $0xb8] sm:$0xff]   ;;  %v2096_v10 = vpack.c.bf16 %v543_v9, %v542_v7  ;;  %v868_v44 = vld [vmem:[#allocation2 + $0xc] sm:$0xf] }
 0x139   : > { %2180 = vmatpush3.bf16.msra.mxu1 %v2439_v11  ;;  %2135 = vmatprep.subr.bf16.mxu0 %v2440_v12  ;;  %v544_v11 = vsel %vm522_vm10, %v511_v3, %v533_v8  ;;  %v603_v45 = vld [vmem:[#allocation2 + $0x8] sm:$0xf]  ;;  %v604_v50 = vld [vmem:[#allocation2 + $0xc] sm:$0xf]  ;;  %vm3457_vm0 = vmor %vm886_vm13, %vm887_vm14  ;;  %v894_v0 = vrot.slane %v868_v44, 5  ;;  %v893_v9 = vrot.slane %v891_v63, 4 }
 0x13a   : > { %2181 = vmatprep.subr.bf16.mxu1 %v2441_v13  ;;  %v2042_v12 = vpack.c.bf16 %v544_v11, %v544_v11  ;;  %v601_v13 = vld [vmem:[#allocation2] sm:$0xf]  ;;  %2125 = vst [vmem:[#allocation2 + $0x20] sm:$0xff] %v2096_v10   ;;  %612 = vst [vmem:[#allocation3 + $0x20] sm:$0xf] %v603_v45  ;;  %v892_v8 = vsel %vm3457_vm0, %v1959_v60, %v891_v63 }
 0x13b   : > { %610 = vst [vmem:[#allocation3] sm:$0xf] %v601_v13  ;;  %613 = vst [vmem:[#allocation3 + $0x30] sm:$0xf] %v604_v50  ;;  %v622_v55 = vld [vmem:[#allocation2 + $0xc] sm:$0xf] }
 0x13c   : > { %2136 = vmatpush3.bf16.msra.mxu0 %v2442_v14  ;;  %v602_v14 = vld [vmem:[#allocation2 + $0x4] sm:$0xf]  ;;  %600 = vst [vmem:[#allocation2 + $0x28] sm:$0x1] %v2042_v12  ;;  %v623_v1 = vld [vmem:[#allocation2 + $0x10] sm:$0xf] }
 0x13d   : > { %2182 = vmatpush3.bf16.msra.mxu1 %v2443_v15  ;;  %2137 = vmatprep.subr.bf16.mxu0 %v2444_v16  ;;  %v619_v15 = vld [vmem:[#allocation2] sm:$0xf]  ;;  %611 = vst [vmem:[#allocation3 + $0x10] sm:$0xf] %v602_v14  ;;  %v620_v16 = vld [vmem:[#allocation2 + $0x4] sm:$0xf] }
 0x13e   : > { %2183 = vmatprep.subr.bf16.mxu1 %v2445_v17  ;;  %v621_v17 = vld [vmem:[#allocation2 + $0x8] sm:$0xf]  ;;  %v662_v4 = vshll.u32 %v622_v55, 16  ;;  %v666_v5 = vshrl.u32 %v622_v55, 16  ;;  %v747_v6 = vld [vmem:[#allocation2 + $0x10] sm:$0xf] }
 0x13f   : > { %v896_v10 = vrot.slane %v894_v0, 4  ;;  %v605_v11 = vld [vmem:[#allocation2 + $0x10] sm:$0xf]  ;;  %926 = vst [vmem:[#allocation3 + $0xc] sm:$0xf] %v892_v8 }
 0x140   : > { %2138 = vmatpush3.bf16.msra.mxu0 %v2446_v18  ;;  %v633_v18 = vshrl.u32 %v619_v15, 16  ;;  %v664_v14 = vrot.slane %v662_v4, 5  ;;  %614 = vst [vmem:[#allocation3 + $0x40] sm:$0xf] %v605_v11  ;;  %v3475_v33 = vld [vmem:[#allocation2 + $0x18] sm:$0xf] }
 0x141   : > { %2184 = vmatpush3.bf16.msra.mxu1 %v2447_v19  ;;  %2139 = vmatprep.subr.bf16.mxu0 %v2448_v20  ;;  %v636_v19 = vshll.u32 %v619_v15, 16  ;;  %v642_v20 = vshll.u32 %v620_v16, 16  ;;  %v668_v15 = vrot.slane %v666_v5, 4  ;;  %v692_v55 = vshll.u32 %v3475_v33, 16  ;;  %v871_v4 = vld [vmem:[#allocation2 + $0x18] sm:$0xf] }
 0x142   : > { %2185 = vmatprep.subr.bf16.mxu1 %v2449_v21  ;;  %v646_v21 = vshrl.u32 %v620_v16, 16  ;;  %v748_v16 = vld [vmem:[#allocation2 + $0x14] sm:$0xf] }
 0x144   : > { %2140 = vmatpush3.bf16.msra.mxu0 %v2450_v22  ;;  %v652_v22 = vshll.u32 %v621_v17, 16  ;;  %v2460_v38 = vld [vmem:[#allocation3] ss:$16 sps:$4 sm:$0xff]  }
 0x145   : > { %2186 = vmatpush3.bf16.msra.mxu1 %v2451_v23  ;;  %2141 = vmatprep.subr.bf16.mxu0 %v2452_v24  ;;  %v656_v23 = vshrl.u32 %v621_v17, 16  ;;  %v744_v24 = vld [vmem:[#allocation2 + $0x4] sm:$0xf]  ;;  %v606_v17 = vld [vmem:[#allocation2 + $0x14] sm:$0xf] }
 0x146   : > { %2187 = vmatprep.subr.bf16.mxu1 %v2453_v25  ;;  %v635_v25 = vrot.slane %v633_v18, 4  ;;  %v755_v35 = vshrl.u32 %v744_v24, 16  ;;  %v758_v36 = vshll.u32 %v744_v24, 16  ;;  %615 = vst [vmem:[#allocation3 + $0x50] sm:$0xf] %v606_v17 }
 0x147   : > { %v658_v32 = vrot.slane %v656_v23, 4  ;;  %v3471_v23 = vld [vmem:[#allocation2 + $0x14] sm:$0xf] }
 0x148   : > { %2142 = vmatpush3.bf16.msra.mxu0 %v2454_v26  ;;  %v638_v26 = vrot.slane %v636_v19, 5  ;;  %v757_v47 = vrot.slane %v755_v35, 4  ;;  %v760_v48 = vrot.slane %v758_v36, 5  ;;  %v895_v19 = vsel %vm3457_vm0, %v893_v9, %v894_v0  ;;  %v872_v9 = vld [vmem:[#allocation2 + $0x1c] sm:$0xf] }
 0x149   : > { %2188 = vmatpush3.bf16.msra.mxu1 %v2455_v27  ;;  %2143 = vmatprep.subr.bf16.mxu0 %v2456_v28  ;;  %v745_v27 = vld [vmem:[#allocation2 + $0x8] sm:$0xf]  ;;  %v746_v28 = vld [vmem:[#allocation2 + $0xc] sm:$0xf]  ;;  %927 = vst [vmem:[#allocation3 + $0x1c] sm:$0xf] %v895_v19 }
 0x14a   : > { %2189 = vmatprep.subr.bf16.mxu1 %v2457_v29  ;;  %v644_v29 = vrot.slane %v642_v20, 5  ;;  %v639_v34 = vor.u32 %v638_v26, %v635_v25  ;;  %v764_v37 = vshll.u32 %v745_v27, 16  ;;  %v768_v42 = vshrl.u32 %v745_v27, 16  ;;  %v3496_v19 = vld [vmem:[#allocation2 + $0x20] sm:$0xf] }
 0x14b   : > { %v774_v43 = vshll.u32 %v746_v28, 16  ;;  %v761_v57 = vor.u32 %v760_v48, %v757_v47  ;;  %v778_v58 = vshrl.u32 %v746_v28, 16  ;;  %v672_v20 = vshll.u32 %v623_v1, 16  ;;  %v624_v28 = vld [vmem:[#allocation2 + $0x14] sm:$0xf] }
 0x14c   : > { %2144 = vmatpush3.bf16.msra.mxu0 %v2458_v30  ;;  %v648_v30 = vrot.slane %v646_v21, 4  ;;  %v640_v46 = vrot.slane %v639_v34, 4  ;;  %v766_v49 = vrot.slane %v764_v37, 5  ;;  %v770_v53 = vrot.slane %v768_v42, 4  ;;  %v607_v47 = vld [vmem:[#allocation2 + $0x18] sm:$0xf] }
 0x14d   : > { %2190 = vmatpush3.bf16.msra.mxu1 %v2459_v31  ;;  %v654_v31 = vrot.slane %v652_v22, 5  ;;  %v776_v54 = vrot.slane %v774_v43, 5  ;;  %v762_v2 = vrot.slane %v761_v57, 4  ;;  %v780_v3 = vrot.slane %v778_v58, 4  ;;  %v869_v22 = vld [vmem:[#allocation2 + $0x10] sm:$0xf] }
 0x14e   : > { %v649_v40 = vor.u32 %v648_v30, %v644_v29  ;;  %v645_v56 = vsel %vm3449_vm15, %v640_v46, %v644_v29  ;;  %v771_v62 = vor.u32 %v770_v53, %v766_v49  ;;  %v676_v21 = vshrl.u32 %v623_v1, 16  ;;  %v749_v46 = vld [vmem:[#allocation2 + $0x18] sm:$0xf]  ;;  %v608_v48 = vld [vmem:[#allocation2 + $0x1c] sm:$0xf] }
 0x14f   : > { %v659_v41 = vor.u32 %v658_v32, %v654_v31  ;;  %735 = vst [vmem:[#allocation3 + $0x4] sm:$0xf] %v645_v56  ;;  %v767_v12 = vsel %vm3449_vm15, %v762_v2, %v766_v49  ;;  %v781_v13 = vor.u32 %v780_v3, %v776_v54  ;;  %v669_v26 = vor.u32 %v668_v15, %v664_v14  ;;  %v3484_v53 = vld [vmem:[#allocation2 + $0x1c] sm:$0xf] }
 0x150   : > { %v650_v51 = vrot.slane %v649_v40, 4  ;;  %v772_v7 = vrot.slane %v771_v62, 4  ;;  %857 = vst [vmem:[#allocation3 + $0x8] sm:$0xf] %v767_v12  ;;  %v784_v27 = vshll.u32 %v747_v6, 16  ;;  %v674_v29 = vrot.slane %v672_v20, 5 }
 0x151   : > { %v660_v52 = vrot.slane %v659_v41, 4  ;;  %v782_v24 = vrot.slane %v781_v13, 4  ;;  %v788_v30 = vshrl.u32 %v747_v6, 16  ;;  %v798_v32 = vshrl.u32 %v748_v16, 16  ;;  %616 = vst [vmem:[#allocation3 + $0x60] sm:$0xf] %v607_v47 }
 0x152   : > { %v655_v61 = vsel %vm3449_vm15, %v650_v51, %v654_v31  ;;  %v777_v18 = vsel %vm3449_vm15, %v772_v7, %v776_v54  ;;  %v794_v31 = vshll.u32 %v748_v16, 16  ;;  %v670_v34 = vrot.slane %v669_v26, 4  ;;  %617 = vst [vmem:[#allocation3 + $0x70] sm:$0xf] %v608_v48  ;;  %v2465_v60 = vld [vmem:[#allocation3 + $0xc] ss:$16 sps:$4 sm:$0xff]  }
 0x153   : > { %736 = vst [vmem:[#allocation3 + $0x14] sm:$0xf] %v655_v61  ;;  %858 = vst [vmem:[#allocation3 + $0x18] sm:$0xf] %v777_v18  ;;  %v665_v25 = vsel %vm3449_vm15, %v660_v52, %v664_v14  ;;  %v786_v35 = vrot.slane %v784_v27, 5  ;;  %v897_v36 = vrot.slane %v869_v22, 5  ;;  %1410 = vmatprep.mubr.bf16.mxu1 %v2465_v60 }
 0x154   : > { %737 = vst [vmem:[#allocation3 + $0x24] sm:$0xf] %v665_v25  ;;  %v900_v37 = vrot.slane %v3471_v23, 5  ;;  %v790_v41 = vrot.slane %v788_v30, 4  ;;  %v675_v42 = vsel %vm3449_vm15, %v670_v34, %v674_v29  ;;  %v796_v44 = vrot.slane %v794_v31, 5 }
 0x155   : > { %v787_v43 = vsel %vm3449_vm15, %v782_v24, %v786_v35  ;;  %v898_v45 = vsel %vm3457_vm0, %v896_v10, %v897_v36  ;;  %738 = vst [vmem:[#allocation3 + $0x34] sm:$0xf] %v675_v42  ;;  %v899_v50 = vrot.slane %v897_v36, 4  ;;  %v678_v51 = vrot.slane %v676_v21, 4  ;;  %v626_v14 = vld [vmem:[#allocation2 + $0x1c] sm:$0xf] }
 0x156   : > { %v791_v49 = vor.u32 %v790_v41, %v786_v35  ;;  %859 = vst [vmem:[#allocation3 + $0x28] sm:$0xf] %v787_v43  ;;  %928 = vst [vmem:[#allocation3 + $0x2c] sm:$0xf] %v898_v45  ;;  %v682_v52 = vshll.u32 %v624_v28, 16  ;;  %v686_v54 = vshrl.u32 %v624_v28, 16 }
 0x157   : > { %v696_v56 = vshrl.u32 %v3475_v33, 16  ;;  %v800_v57 = vrot.slane %v798_v32, 4  ;;  %v901_v62 = vsel %vm3457_vm0, %v899_v50, %v900_v37  ;;  %v679_v63 = vor.u32 %v678_v51, %v674_v29  ;;  %v2470_v23 = vld [vmem:[#allocation3 + $0x20] ss:$16 sps:$4 sm:$0xff]   ;;  %v751_v28 = vld [vmem:[#allocation2 + $0x20] sm:$0xf] }
 0x158   : > { %v792_v61 = vrot.slane %v791_v49, 4  ;;  %929 = vst [vmem:[#allocation3 + $0x3c] sm:$0xf] %v901_v62  ;;  %v684_v0 = vrot.slane %v682_v52, 5  ;;  %v688_v1 = vrot.slane %v686_v54, 4  ;;  %v694_v2 = vrot.slane %v692_v55, 5 }
 0x159   : > { %v801_v3 = vor.u32 %v800_v57, %v796_v44  ;;  %v680_v6 = vrot.slane %v679_v63, 4  ;;  %v804_v7 = vshll.u32 %v749_v46, 16  ;;  %v808_v8 = vshrl.u32 %v749_v46, 16  ;;  %v609_v33 = vld [vmem:[#allocation2 + $0x20] sm:$0xf] }
 0x15a   : > { %v2462_v40 = vld [vmem:[#allocation3 + $0x4] ss:$16 sps:$4 sm:$0xff]   ;;  %v2463_v58 = vld [vmem:[#allocation3 + $0x8] ss:$16 sps:$4 sm:$0xff]   ;;  %v797_v5 = vsel %vm3449_vm15, %v792_v61, %v796_v44  ;;  %v689_v10 = vor.u32 %v688_v1, %v684_v0  ;;  %v814_v12 = vshll.u32 %v3484_v53, 16  ;;  %v818_v13 = vshrl.u32 %v3484_v53, 16 }
 0x15b   : > { %1338 = vmatprep.mubr.bf16.mxu0 %v2462_v40  ;;  %1411 = vmatmul.mubr.bf16.vlgmr.msra.gmra.mrb[0].mxu1 %v2463_v58  ;;  %860 = vst [vmem:[#allocation3 + $0x38] sm:$0xf] %v797_v5  ;;  %v802_v11 = vrot.slane %v801_v3, 4  ;;  %v685_v15 = vsel %vm3449_vm15, %v680_v6, %v684_v0  ;;  %v806_v16 = vrot.slane %v804_v7, 5  ;;  %v810_v17 = vrot.slane %v808_v8, 4 }
 0x15c   : > { %1339 = vmatmul.mubr.bf16.vlgmr.msra.gmra.mrb[0].mxu0 %v2460_v38  ;;  %v902_v18 = vrot.slane %v900_v37, 4  ;;  %v2466_v20 = vld [vmem:[#allocation3 + $0x24] ss:$16 sps:$4 sm:$0xff]   ;;  %v690_v21 = vrot.slane %v689_v10, 4  ;;  %739 = vst [vmem:[#allocation3 + $0x44] sm:$0xf] %v685_v15 }
 0x15d   : > { %v816_v22 = vrot.slane %v814_v12, 5  ;;  %v807_v24 = vsel %vm3449_vm15, %v802_v11, %v806_v16  ;;  %v811_v25 = vor.u32 %v810_v17, %v806_v16  ;;  %v903_v26 = vrot.slane %v871_v4, 5  ;;  %1346 = vmatprep.mubr.bf16.mxu0 %v2466_v20  ;;  %v752_v38 = vld [vmem:[#allocation2 + $0x24] sm:$0xf]  ;;  %618 = vst [vmem:[#allocation3 + $0x80] sm:$0xf] %v609_v33 }
 0x15e   : > { %v906_v27 = vrot.slane %v872_v9, 5  ;;  %v695_v29 = vsel %vm3449_vm15, %v690_v21, %v694_v2  ;;  %861 = vst [vmem:[#allocation3 + $0x48] sm:$0xf] %v807_v24  ;;  %v698_v30 = vrot.slane %v696_v56, 4  ;;  %v702_v31 = vshll.u32 %v626_v14, 16 }
 0x15f   : > { %v706_v32 = vshrl.u32 %v626_v14, 16  ;;  %740 = vst [vmem:[#allocation3 + $0x54] sm:$0xf] %v695_v29  ;;  %v812_v34 = vrot.slane %v811_v25, 4  ;;  %v904_v35 = vsel %vm3457_vm0, %v902_v18, %v903_v26  ;;  %v905_v36 = vrot.slane %v903_v26, 4 }
 0x160   : > { %v712_v37 = vshll.u32 %v3496_v19, 16  ;;  %930 = vst [vmem:[#allocation3 + $0x4c] sm:$0xf] %v904_v35  ;;  %v699_v40 = vor.u32 %v698_v30, %v694_v2  ;;  %v704_v41 = vrot.slane %v702_v31, 5  ;;  %v716_v43 = vshrl.u32 %v3496_v19, 16 }
 0x161   : > { %v708_v42 = vrot.slane %v706_v32, 4  ;;  %v873_v44 = vld [vmem:[#allocation2 + $0x20] sm:$0xf]  ;;  %v2468_v45 = vld [vmem:[#allocation3 + $0x2c] ss:$16 sps:$4 sm:$0xff]   ;;  %v817_v47 = vsel %vm3449_vm15, %v812_v34, %v816_v22  ;;  %v907_v48 = vsel %vm3457_vm0, %v905_v36, %v906_v27  ;;  %v820_v52 = vrot.slane %v818_v13, 4 }
 0x162   : > { %v2471_v46 = vld [vmem:[#allocation3 + $0x28] ss:$16 sps:$4 sm:$0xff]   ;;  %v714_v49 = vrot.slane %v712_v37, 5  ;;  %862 = vst [vmem:[#allocation3 + $0x58] sm:$0xf] %v817_v47  ;;  %v700_v50 = vrot.slane %v699_v40, 4  ;;  %1418 = vmatprep.mubr.bf16.mxu1 %v2468_v45 }
 0x163   : > { %931 = vst [vmem:[#allocation3 + $0x5c] sm:$0xf] %v907_v48  ;;  %v709_v51 = vor.u32 %v708_v42, %v704_v41  ;;  %v824_v53 = vshll.u32 %v751_v28, 16  ;;  %v874_v54 = vld [vmem:[#allocation2 + $0x24] sm:$0xf]  ;;  %v828_v55 = vshrl.u32 %v751_v28, 16  ;;  %1419 = vmatmul.mubr.bf16.gmra.mrb[4].mxu1 %v2471_v46  ;;  %v821_v62 = vor.u32 %v820_v52, %v816_v22 }
 0x164   : > { %1347 = vmatmul.mubr.bf16.gmra.mrb[4].mxu0 %v2470_v23  ;;  %v834_v56 = vshll.u32 %v752_v38, 16  ;;  %v838_v57 = vshrl.u32 %v752_v38, 16  ;;  %v908_v58 = vrot.slane %v906_v27, 4  ;;  %v705_v60 = vsel %vm3449_vm15, %v700_v50, %v704_v41  ;;  %v628_v0 = vld [vmem:[#allocation2 + $0x24] sm:$0x1] }
 0x165   : > { %v710_v61 = vrot.slane %v709_v51, 4  ;;  %v826_v63 = vrot.slane %v824_v53, 5  ;;  %741 = vst [vmem:[#allocation3 + $0x64] sm:$0xf] %v705_v60  ;;  %v830_v1 = vrot.slane %v828_v55, 4  ;;  %v909_v3 = vrot.slane %v873_v44, 5 }
 0x166   : > { %v836_v2 = vrot.slane %v834_v56, 5  ;;  %v912_v4 = vrot.slane %v874_v54, 5  ;;  %v753_v5 = vld [vmem:[#allocation2 + $0x28] sm:$0x1]  ;;  %v2472_v6 = vld [vmem:[#allocation3 + $0x44] ss:$16 sps:$4 sm:$0xff]  }
 0x167   : > { %v2476_v7 = vld [vmem:[#allocation3 + $0x40] ss:$16 sps:$4 sm:$0xff]   ;;  %v715_v8 = vsel %vm3449_vm15, %v710_v61, %v714_v49  ;;  %v822_v9 = vrot.slane %v821_v62, 4  ;;  %v831_v10 = vor.u32 %v830_v1, %v826_v63  ;;  %v910_v11 = vsel %vm3457_vm0, %v908_v58, %v909_v3  ;;  %1354 = vmatprep.mubr.bf16.mxu0 %v2472_v6  ;;  %v875_v18 = vld [vmem:[#allocation2 + $0x28] sm:$0x1] }
 0x168   : > { %742 = vst [vmem:[#allocation3 + $0x74] sm:$0xf] %v715_v8  ;;  %v911_v12 = vrot.slane %v909_v3, 4  ;;  %v718_v13 = vrot.slane %v716_v43, 4  ;;  %932 = vst [vmem:[#allocation3 + $0x6c] sm:$0xf] %v910_v11 }
 0x169   : > { %v827_v14 = vsel %vm3449_vm15, %v822_v9, %v826_v63  ;;  %v722_v15 = vshll.u32 %v628_v0, 16  ;;  %v840_v16 = vrot.slane %v838_v57, 4  ;;  %v844_v17 = vshll.u32 %v753_v5, 16  ;;  %v2477_v20 = vld [vmem:[#allocation3 + $0x48] ss:$16 sps:$4 sm:$0xff]  }
 0x16a   : > { %v2474_v19 = vld [vmem:[#allocation3 + $0x4c] ss:$16 sps:$4 sm:$0xff]   ;;  %v832_v21 = vrot.slane %v831_v10, 4  ;;  %863 = vst [vmem:[#allocation3 + $0x68] sm:$0xf] %v827_v14  ;;  %v913_v22 = vsel %vm3457_vm0, %v911_v12, %v912_v4  ;;  %v719_v23 = vor.u32 %v718_v13, %v714_v49  ;;  %v914_v27 = vrot.slane %v912_v4, 4 }
 0x16b   : > { %933 = vst [vmem:[#allocation3 + $0x7c] sm:$0xf] %v913_v22  ;;  %v724_v24 = vrot.slane %v722_v15, 5  ;;  %v841_v25 = vor.u32 %v840_v16, %v836_v2  ;;  %v846_v26 = vrot.slane %v844_v17, 5  ;;  %1426 = vmatprep.mubr.bf16.mxu1 %v2474_v19  ;;  %v915_v30 = vrot.slane %v875_v18, 5 }
 0x16c   : > { %1355 = vmatmul.mubr.bf16.gmra.mrb[8].mxu0 %v2476_v7  ;;  %v837_v28 = vsel %vm3449_vm15, %v832_v21, %v836_v2  ;;  %v720_v29 = vrot.slane %v719_v23, 4  ;;  %1427 = vmatmul.mubr.bf16.gmra.mrb[8].mxu1 %v2477_v20  ;;  %v2482_v35 = vld [vmem:[#allocation3 + $0x60] ss:$16 sps:$4 sm:$0xff]  }
 0x16d   : > { %864 = vst [vmem:[#allocation3 + $0x78] sm:$0xf] %v837_v28  ;;  %v842_v31 = vrot.slane %v841_v25, 4  ;;  %v916_v33 = vsel %vm3457_vm0, %v914_v27, %v915_v30 }
 0x16e   : > { %v725_v32 = vsel %vm3449_vm15, %v720_v29, %v724_v24  ;;  %934 = vst [vmem:[#allocation3 + $0x8c] sm:$0xf] %v916_v33 }
 0x16f   : > { %v2478_v34 = vld [vmem:[#allocation3 + $0x64] ss:$16 sps:$4 sm:$0xff]   ;;  %743 = vst [vmem:[#allocation3 + $0x84] sm:$0xf] %v725_v32  ;;  %v847_v36 = vsel %vm3449_vm15, %v842_v31, %v846_v26 }
 0x170   : > { %865 = vst [vmem:[#allocation3 + $0x88] sm:$0xf] %v847_v36  ;;  %1362 = vmatprep.mubr.bf16.mxu0 %v2478_v34 }
 0x172   : > { %v2480_v37 = vld [vmem:[#allocation3 + $0x6c] ss:$16 sps:$4 sm:$0xff]  }
 0x173   : > { %1434 = vmatprep.mubr.bf16.mxu1 %v2480_v37 }
 0x174   : > { %1363 = vmatmul.mubr.bf16.gmra.mrb[12].mxu0 %v2482_v35  ;;  %v2483_v38 = vld [vmem:[#allocation3 + $0x68] ss:$16 sps:$4 sm:$0xff]  }
 0x175   : > { %1435 = vmatmul.mubr.bf16.gmra.mrb[12].mxu1 %v2483_v38 }
 0x176   : > { %v1018_v40 = vld [vmem:[#allocation3 + $0x80] sm:$0xff] }
 0x177   : > { %v1979_v41 = vcombine.high %v1018_v40, %v1018_v40  ;;  %v1019_v42 = vld [vmem:[#allocation3 + $0x88] sm:$0xff]  ;;  %v1978_v43 = vcombine.low %v1018_v40, %v1018_v40 }
 0x178   : > { %v1981_v59 = vcombine.high %v1019_v42, %v1019_v42  ;;  %v1980_v44 = vcombine.low %v1019_v42, %v1019_v42 }
 0x179   : > { %1370 = vmatprep.mubr.bf16.mxu0 %v1979_v41 }
 0x17a   : > { %1442 = vmatprep.mubr.bf16.mxu1 %v1981_v59 }
 0x17c   : > { %1371 = vmatmul.mubr.bf16.gmra.mrb[16].mxu0 %v1978_v43 }
 0x17d   : > { %1443 = vmatmul.mubr.bf16.gmra.mrb[16].mxu1 %v1980_v44 }
 0x22e   : > { %v2191_v49 = vpop.f32.mrb[0].mxu1 }
 0x22f   : > { %v2145_v39 = vpop.f32.mrb[0].mxu0  ;;  %v2192_v51 = vpop.f32.mrb[1].mxu1 }
 0x230   : > { %v2146_v45 = vpop.f32.mrb[1].mxu0  ;;  %v2193_v52 = vadd.f32 %v2192_v51, %v2191_v49  ;;  %v2194_v53 = vpop.f32.mrb[2].mxu1 }
 0x231   : > { %v2147_v46 = vadd.f32 %v2146_v45, %v2145_v39  ;;  %v2148_v47 = vpop.f32.mrb[2].mxu0  ;;  %v2195_v54 = vpop.f32.mrb[3].mxu1 }
 0x232   : > { %v2149_v48 = vpop.f32.mrb[3].mxu0  ;;  %v2196_v56 = vadd.f32 %v2195_v54, %v2194_v53 }
 0x233   : > { %v2150_v50 = vadd.f32 %v2149_v48, %v2148_v47  ;;  %v3528_v55 = vadd.f32 %v2193_v52, %v2147_v46  ;;  %v2015_v47 = vld [vmem:[#allocation10] ss:$0 sm:$0xff] (!%p2014_p1) }
 0x235   : > { %v3530_v58 = vadd.f32 %v2196_v56, %v2150_v50  ;;  %v1461_v48 = vadd.f32 (!%p2014_p1), %v2015_v47, %v3528_v55 }
 0x236   : > { %v2197_v1 = vpop.f32.mrb[4].mxu1 }
 0x237   : > { %v2151_v57 = vpop.f32.mrb[4].mxu0  ;;  %v2198_v2 = vpop.f32.mrb[5].mxu1  ;;  %v1462_v49 = vadd.f32 (!%p2014_p1), %v2015_v47, %v3530_v58  ;;  %1470 = vst [vmem:[#allocation4] sm:$0xff] (!%p2014_p1), %v1461_v48 }
 0x238   : > { %v2152_v60 = vpop.f32.mrb[5].mxu0  ;;  %v2199_v3 = vadd.f32 %v2198_v2, %v2197_v1  ;;  %v2200_v4 = vpop.f32.mrb[6].mxu1 }
 0x239   : > { %v2153_v61 = vadd.f32 %v2152_v60, %v2151_v57  ;;  %v2154_v62 = vpop.f32.mrb[6].mxu0  ;;  %v2201_v5 = vpop.f32.mrb[7].mxu1  ;;  %1471 = vst [vmem:[#allocation4 + $0x8] sm:$0xff] (!%p2014_p1), %v1462_v49 }
 0x23a   : > { %v2155_v63 = vpop.f32.mrb[7].mxu0  ;;  %v2202_v7 = vadd.f32 %v2201_v5, %v2200_v4 }
 0x23b   : > { %v2156_v0 = vadd.f32 %v2155_v63, %v2154_v62  ;;  %v3532_v6 = vadd.f32 %v2199_v3, %v2153_v61 }
 0x23d   : > { %v3534_v9 = vadd.f32 %v2202_v7, %v2156_v0  ;;  %v1463_v50 = vadd.f32 (!%p2014_p1), %v2015_v47, %v3532_v6 }
 0x23f   : > { %v2157_v8 = vpop.f32.mrb[8].mxu0  ;;  %v2203_v13 = vpop.f32.mrb[8].mxu1  ;;  %v1464_v51 = vadd.f32 (!%p2014_p1), %v2015_v47, %v3534_v9  ;;  %1472 = vst [vmem:[#allocation4 + $0x10] sm:$0xff] (!%p2014_p1), %v1463_v50 }
 0x240   : > { %v2158_v10 = vpop.f32.mrb[9].mxu0  ;;  %v2204_v15 = vpop.f32.mrb[9].mxu1 }
 0x241   : > { %v2159_v11 = vadd.f32 %v2158_v10, %v2157_v8  ;;  %v2160_v12 = vpop.f32.mrb[10].mxu0  ;;  %v2205_v17 = vadd.f32 %v2204_v15, %v2203_v13  ;;  %v2206_v18 = vpop.f32.mrb[10].mxu1  ;;  %1473 = vst [vmem:[#allocation4 + $0x18] sm:$0xff] (!%p2014_p1), %v1464_v51 }
 0x242   : > { %v2161_v14 = vpop.f32.mrb[11].mxu0  ;;  %v2207_v19 = vpop.f32.mrb[11].mxu1 }
 0x243   : > { %v2162_v16 = vadd.f32 %v2161_v14, %v2160_v12  ;;  %v3536_v20 = vadd.f32 %v2205_v17, %v2159_v11  ;;  %v2208_v21 = vadd.f32 %v2207_v19, %v2206_v18 }
 0x245   : > { %v3538_v23 = vadd.f32 %v2208_v21, %v2162_v16  ;;  %v1465_v52 = vadd.f32 (!%p2014_p1), %v2015_v47, %v3536_v20 }
 0x247   : > { %v2163_v22 = vpop.f32.mrb[12].mxu0  ;;  %v1466_v53 = vadd.f32 (!%p2014_p1), %v2015_v47, %v3538_v23  ;;  %1474 = vst [vmem:[#allocation4 + $0x20] sm:$0xff] (!%p2014_p1), %v1465_v52 }
 0x248   : > { %v2164_v24 = vpop.f32.mrb[13].mxu0  ;;  %v2209_v29 = vpop.f32.mrb[12].mxu1 }
 0x249   : > { %v2165_v25 = vadd.f32 %v2164_v24, %v2163_v22  ;;  %v2166_v26 = vpop.f32.mrb[14].mxu0  ;;  %v2210_v30 = vpop.f32.mrb[13].mxu1  ;;  %1475 = vst [vmem:[#allocation4 + $0x28] sm:$0xff] (!%p2014_p1), %v1466_v53 }
 0x24a   : > { %v2167_v27 = vpop.f32.mrb[15].mxu0  ;;  %v2211_v31 = vadd.f32 %v2210_v30, %v2209_v29  ;;  %v2212_v32 = vpop.f32.mrb[14].mxu1 }
 0x24b   : > { %v2168_v28 = vadd.f32 %v2167_v27, %v2166_v26  ;;  %v2213_v33 = vpop.f32.mrb[15].mxu1 }
 0x24c   : > { %v1437_v35 = vadd.f32 %v2211_v31, %v2165_v25  ;;  %v2214_v36 = vadd.f32 %v2213_v33, %v2212_v32 }
 0x24e   : > { %v1440_v41 = vadd.f32 %v2214_v36, %v2168_v28  ;;  %1453 = sbr.rel (%p2014_p1) target bundleno = 601 (0x259), region = 80  ;;  %v1467_v54 = vadd.f32 (!%p2014_p1), %v2015_v47, %v1437_v35 }
 0x24f   : > { %v2169_v34 = vpop.f32.mrb[16].mxu0 }
 0x250   : > { %v2170_v37 = vpop.f32.mrb[17].mxu0  ;;  %v2215_v43 = vpop.f32.mrb[16].mxu1  ;;  %v1468_v56 = vadd.f32 (!%p2014_p1), %v2015_v47, %v1440_v41  ;;  %1476 = vst [vmem:[#allocation4 + $0x30] sm:$0xff] (!%p2014_p1), %v1467_v54 }
 0x251   : > { %v2171_v38 = vadd.f32 %v2170_v37, %v2169_v34  ;;  %v2172_v40 = vpop.f32.mrb[18].mxu0  ;;  %v2216_v59 = vpop.f32.mrb[17].mxu1 }
 0x252   : > { %v2173_v42 = vpop.f32.mrb[19].mxu0  ;;  %v2217_v44 = vadd.f32 %v2216_v59, %v2215_v43  ;;  %v2218_v39 = vpop.f32.mrb[18].mxu1  ;;  %1477 = vst [vmem:[#allocation4 + $0x38] sm:$0xff] (!%p2014_p1), %v1468_v56 }
 0x253   : > { %v2219_v45 = vpop.f32.mrb[19].mxu1 }
 0x254   : > { %v1445_v46 = vadd.f32 %v2217_v44, %v2171_v38 }
 0x256   : > { %v1469_v57 = vadd.f32 %v2015_v47, %v1445_v46 }
 0x258   : > { %1478 = vst [vmem:[#allocation4 + $0x40] sm:$0xff] %v1469_v57 }
 0x259 PF: > { %s3818_s15 = sld [smem:[#allocation31_spill]] }
 0x25f   : > { %p2016_p5 = scmp.eq.s32.totalorder %s3818_s15, 0 }
 0x260   : > { %v1483_v60 = vld [vmem:[#allocation4] sm:$0xff] (!%p2016_p5)  ;;  %v1484_v61 = vld [vmem:[#allocation4 + $0x8] sm:$0xff] (!%p2016_p5)  ;;  %v1485_v62 = vld [vmem:[#allocation4 + $0x10] sm:$0xff] (!%p2016_p5) }
 0x261   : > { %1482 = sbr.rel (%p2016_p5) target bundleno = 616 (0x268), region = 84  ;;  %v1492_v63 = vadd.f32 (!%p2016_p5), %v1483_v60, %v3528_v55  ;;  %v1493_v0 = vadd.f32 (!%p2016_p5), %v1484_v61, %v3530_v58  ;;  %v1494_v1 = vadd.f32 (!%p2016_p5), %v1485_v62, %v3532_v6  ;;  %v1486_v2 = vld [vmem:[#allocation4 + $0x18] sm:$0xff] (!%p2016_p5)  ;;  %v1487_v3 = vld [vmem:[#allocation4 + $0x20] sm:$0xff] (!%p2016_p5)  ;;  %v1488_v4 = vld [vmem:[#allocation4 + $0x28] sm:$0xff] (!%p2016_p5) }
 0x262   : > { %v1495_v5 = vadd.f32 (!%p2016_p5), %v1486_v2, %v3534_v9  ;;  %v1496_v7 = vadd.f32 (!%p2016_p5), %v1487_v3, %v3536_v20  ;;  %v1497_v8 = vadd.f32 (!%p2016_p5), %v1488_v4, %v3538_v23  ;;  %v1489_v10 = vld [vmem:[#allocation4 + $0x30] sm:$0xff] (!%p2016_p5)  ;;  %v1490_v11 = vld [vmem:[#allocation4 + $0x38] sm:$0xff] (!%p2016_p5)  ;;  %v1491_v12 = vld [vmem:[#allocation4 + $0x40] sm:$0xff] (!%p2016_p5) }
 0x263   : > { %1501 = vst [vmem:[#allocation4] sm:$0xff] (!%p2016_p5), %v1492_v63  ;;  %1502 = vst [vmem:[#allocation4 + $0x8] sm:$0xff] (!%p2016_p5), %v1493_v0  ;;  %v1498_v55 = vadd.f32 (!%p2016_p5), %v1489_v10, %v1437_v35  ;;  %v1499_v13 = vadd.f32 (!%p2016_p5), %v1490_v11, %v1440_v41  ;;  %v1500_v58 = vadd.f32 (!%p2016_p5), %v1491_v12, %v1445_v46 }
 0x264   : > { %1503 = vst [vmem:[#allocation4 + $0x10] sm:$0xff] (!%p2016_p5), %v1494_v1  ;;  %1504 = vst [vmem:[#allocation4 + $0x18] sm:$0xff] (!%p2016_p5), %v1495_v5 }
 0x265   : > { %1505 = vst [vmem:[#allocation4 + $0x20] sm:$0xff] (!%p2016_p5), %v1496_v7  ;;  %1506 = vst [vmem:[#allocation4 + $0x28] sm:$0xff] (!%p2016_p5), %v1497_v8 }
 0x266   : > { %1507 = vst [vmem:[#allocation4 + $0x30] sm:$0xff] (!%p2016_p5), %v1498_v55  ;;  %1508 = vst [vmem:[#allocation4 + $0x38] sm:$0xff] (!%p2016_p5), %v1499_v13 }
 0x267   : > { %1509 = vst [vmem:[#allocation4 + $0x40] sm:$0xff] (!%p2016_p5), %v1500_v58 }
 0x268 PF: > { %s3819_s0 = sld [smem:[#allocation31_spill]] }
 0x26e   : > { %p2017_p8 = scmp.ne.s32.totalorder %s3819_s0, 3 }
 0x26f   : > { %v1571_v6 = vld [vmem:[#allocation16 + $0x10] sm:$0xff] (!%p2017_p8)  ;;  %v1569_v9 = vld [vmem:[#allocation16] sm:$0xff] (!%p2017_p8)  ;;  %v2925_v14 = vmov (!%p2017_p8), 0   ;;  %v1572_v15 = vld [vmem:[#allocation16 + $0x18] sm:$0xff] (!%p2017_p8) }
 0x270   : > { %1513 = sbr.rel (%p2017_p8) target bundleno = 790 (0x316), region = 88  ;;  %2489 = vset.pattern.permute.xlu1 (!%p2017_p8), %v2925_v14  ;;  %2488 = vset.pattern.permute.xlu0 (!%p2017_p8), %v2925_v14  ;;  %v1570_v16 = vld [vmem:[#allocation16 + $0x8] sm:$0xff] (!%p2017_p8)  ;;  %v1516_v17 = vld [vmem:[#allocation4 + $0x10] sm:$0xff] (!%p2017_p8)  ;;  %v1515_v23 = vld [vmem:[#allocation4 + $0x8] sm:$0xff] (!%p2017_p8) }
 0x271   : > { %1590 = vperm.xlu1 (!%p2017_p8), %2489, %v1571_v6   ;;  %1580 = vperm.xlu0 (!%p2017_p8), %2488, %v1569_v9   ;;  %v1517_v18 = vld [vmem:[#allocation4 + $0x18] sm:$0xff] (!%p2017_p8)  ;;  %v1514_v22 = vld [vmem:[#allocation4] sm:$0xff] (!%p2017_p8)  ;;  %v1576_v25 = vld [vmem:[#allocation16 + $0x38] sm:$0xff] (!%p2017_p8) }
 0x272   : > { %v1574_v19 = vld [vmem:[#allocation16 + $0x28] sm:$0xff] (!%p2017_p8)  ;;  %v2106_v20 = vpack.c.bf16 (!%p2017_p8), %v1517_v18, %v1516_v17  ;;  %v1573_v21 = vld [vmem:[#allocation16 + $0x20] sm:$0xff] (!%p2017_p8)  ;;  %v2101_v24 = vpack.c.bf16 (!%p2017_p8), %v1515_v23, %v1514_v22  ;;  %v1575_v26 = vld [vmem:[#allocation16 + $0x30] sm:$0xff] (!%p2017_p8) }
 0x273   : > { %v1519_v27 = vld [vmem:[#allocation4 + $0x28] sm:$0xff] (!%p2017_p8)  ;;  %v1518_v28 = vld [vmem:[#allocation4 + $0x20] sm:$0xff] (!%p2017_p8)  ;;  %v1577_v30 = vld [vmem:[#allocation16 + $0x40] sm:$0xff] (!%p2017_p8) }
 0x274   : > { %2126 = vst [vmem:[%s3542_s8 + $0x8] sm:$0xff] (!%p2017_p8), %v2106_v20   ;;  %2102 = vst [vmem:[%s3542_s8] sm:$0xff] (!%p2017_p8), %v2101_v24   ;;  %v2111_v29 = vpack.c.bf16 (!%p2017_p8), %v1519_v27, %v1518_v28  ;;  %v1521_v31 = vld [vmem:[#allocation4 + $0x38] sm:$0xff] (!%p2017_p8)  ;;  %v1520_v32 = vld [vmem:[#allocation4 + $0x30] sm:$0xff] (!%p2017_p8) }
 0x275   : > { %1595 = vperm.xlu1 (!%p2017_p8), %2489, %v1572_v15   ;;  %1585 = vperm.xlu0 (!%p2017_p8), %2488, %v1570_v16   ;;  %v2116_v33 = vpack.c.bf16 (!%p2017_p8), %v1521_v31, %v1520_v32  ;;  %v1522_v34 = vld [vmem:[#allocation4 + $0x40] sm:$0xff] (!%p2017_p8) }
 0x276   : > { %2127 = vst [vmem:[%s3542_s8 + $0x10] sm:$0xff] (!%p2017_p8), %v2111_v29   ;;  %v2052_v35 = vpack.c.bf16 (!%p2017_p8), %v1522_v34, %v1522_v34 }
 0x277   : > { %2128 = vst [vmem:[%s3542_s8 + $0x18] sm:$0xff] %v2116_v33  }
 0x278   : > { %1568 = vst [vmem:[%s3542_s8 + $0x20] sm:$0xf] %v2052_v35 }
 0x279   : > { %1605 = vperm.xlu1 %2489, %v1574_v19   ;;  %1600 = vperm.xlu0 %2488, %v1573_v21  }
 0x27d   : > { %1615 = vperm.xlu1 %2489, %v1576_v25   ;;  %1610 = vperm.xlu0 %2488, %v1575_v26  }
 0x281   : > { %1620 = vperm.xlu0 %2488, %v1577_v30  }
 0x2f0   : > { %v1591_v36 = vpop.permute.xlu1 %1590  ;;  %v1581_v37 = vpop.permute.xlu0 %1580 }
 0x2f1   : > { %v1623_v38 = vmul.f32 %v1581_v37, %v1514_v22  ;;  %v1625_v42 = vmul.f32 %v1591_v36, %v1516_v17 }
 0x2f3   : > { %v1647_v59 = vmul.f32 %v1623_v38, %v1623_v38  ;;  %v1649_v48 = vmul.f32 %v1625_v42, %v1625_v42 }
 0x2f4   : > { %v1596_v40 = vpop.permute.xlu1 %1595  ;;  %v1586_v41 = vpop.permute.xlu0 %1585 }
 0x2f5   : > { %v1624_v43 = vmul.f32 %v1586_v41, %v1515_v23  ;;  %v1626_v44 = vmul.f32 %v1596_v40, %v1517_v18 }
 0x2f7   : > { %v1632_v39 = vadd.f32 %v1624_v43, %v1623_v38  ;;  %v1648_v45 = vmul.f32 %v1624_v43, %v1624_v43  ;;  %v1650_v52 = vmul.f32 %v1626_v44, %v1626_v44 }
 0x2f8   : > { %v1606_v46 = vpop.permute.xlu1 %1605  ;;  %v1601_v47 = vpop.permute.xlu0 %1600 }
 0x2f9   : > { %v1633_v49 = vadd.f32 %v1632_v39, %v1625_v42  ;;  %v1656_v50 = vadd.f32 %v1648_v45, %v1647_v59  ;;  %v1627_v51 = vmul.f32 %v1601_v47, %v1518_v28  ;;  %v1628_v54 = vmul.f32 %v1606_v46, %v1519_v27 }
 0x2fb   : > { %v1657_v53 = vadd.f32 %v1656_v50, %v1649_v48  ;;  %v1634_v56 = vadd.f32 %v1633_v49, %v1626_v44  ;;  %v1651_v62 = vmul.f32 %v1627_v51, %v1627_v51  ;;  %v1652_v1 = vmul.f32 %v1628_v54, %v1628_v54 }
 0x2fc   : > { %v1616_v57 = vpop.permute.xlu1 %1615  ;;  %v1611_v60 = vpop.permute.xlu0 %1610 }
 0x2fd   : > { %v1635_v61 = vadd.f32 %v1634_v56, %v1627_v51  ;;  %v1658_v63 = vadd.f32 %v1657_v53, %v1650_v52  ;;  %v1629_v0 = vmul.f32 %v1611_v60, %v1520_v32  ;;  %v1630_v3 = vmul.f32 %v1616_v57, %v1521_v31 }
 0x2ff   : > { %v1659_v2 = vadd.f32 %v1658_v63, %v1651_v62  ;;  %v1636_v4 = vadd.f32 %v1635_v61, %v1628_v54  ;;  %v1653_v8 = vmul.f32 %v1629_v0, %v1629_v0  ;;  %v1654_v12 = vmul.f32 %v1630_v3, %v1630_v3 }
 0x300   : > { %v1621_v5 = vpop.permute.xlu0 %1620 }
 0x301   : > { %v1637_v7 = vadd.f32 %v1636_v4, %v1629_v0  ;;  %v1660_v10 = vadd.f32 %v1659_v2, %v1652_v1  ;;  %v1631_v11 = vmul.f32 %v1621_v5, %v1522_v34 }
 0x303   : > { %v1661_v55 = vadd.f32 %v1660_v10, %v1653_v8  ;;  %v1638_v13 = vadd.f32 %v1637_v7, %v1630_v3  ;;  %v1655_v6 = vmul.f32 %v1631_v11, %v1631_v11 }
 0x305   : > { %v1639_v58 = vadd.f32 %v1638_v13, %v1631_v11  ;;  %v1662_v9 = vadd.f32 %v1661_v55, %v1654_v12 }
 0x307   : > { %v1640_v14 = vrot.slane %v1639_v58, 4  ;;  %v1663_v15 = vadd.f32 %v1662_v9, %v1655_v6 }
 0x309   : > { %v1641_v16 = vadd.f32 %v1640_v14, %v1639_v58  ;;  %v1664_v17 = vrot.slane %v1663_v15, 4 }
 0x30b   : > { %v1642_v18 = vrot.slane %v1641_v16, 2  ;;  %v1665_v19 = vadd.f32 %v1664_v17, %v1663_v15 }
 0x30d   : > { %v1643_v20 = vadd.f32 %v1642_v18, %v1641_v16  ;;  %v1666_v21 = vrot.slane %v1665_v19, 2 }
 0x30f   : > { %v1644_v22 = vrot.slane %v1643_v20, 1  ;;  %v1667_v23 = vadd.f32 %v1666_v21, %v1665_v19 }
 0x311   : > { %v1645_v24 = vadd.f32 %v1644_v22, %v1643_v20  ;;  %v1668_v25 = vrot.slane %v1667_v23, 1 }
 0x313   : > { %1646 = vst [vmem:[%s482_s1] sm:$0x1] %v1645_v24  ;;  %v1669_v26 = vadd.f32 %v1668_v25, %v1667_v23 }
 0x315   : > { %1670 = vst [vmem:[%s3749_s7] sm:$0x1] %v1669_v26 }
 0x316 PF: > { %s3820_s26 = sld [smem:[#allocation32_spill]]  ;;  %s3821_s29 = sld [smem:[#allocation45_spill]] }
 0x317   : > { %s1709_s12 = sshll.u32 %s482_s1, 4  ;;  %s3582_s4 = scalar_lea.sflag [#allocation19], %s433_s6  ;;  %s1710_s12 = int_to_ptr.vmem [resolvable:$true] %s1709_s12 }
 0x318   : > { %s2690_s15 = scalar_lea.vmem %s1710_s12, 16  ;;  %p3822_p4 = scmp.ne.s32.totalorder %s3786_s14, 0 }
 0x319   : > { %p2691_p6 = scmp.ne.s32.totalorder %s1710_s12, %s2690_s15  ;;  %s2926_s0 = smov [#allocation18]  }
 0x31a   : > { %s2694_s7 = sshll.u32 %s2926_s0, 4  ;;  %s2695_s7 = int_to_ptr.vmem [resolvable:$false] %s2694_s7 }
 0x31b   : > { %p2692_p12 = pnand %p2691_p6, %p3822_p4  ;;  %s2696_s28 = scalar_lea.vmem %s2695_s7, 32 }
 0x31c   : > { %s2028_s18 = sshll.u32 %s3820_s26, 4  ;;  %p2697_p13 = scmp.lt.s32.totalorder %s1710_s12, %s2695_s7 }
 0x31d   : > { %s3576_s2 = scalar_lea.hbm %s3821_s29, %s2028_s18  ;;  %p2693_p11 = pneg %p2692_p12 }
 0x31e   : > { %p2698_p2 = scmp.lt.s32.totalorder %s2696_s28, %s2690_s15 }
 0x320   : > { %p2699_p0 = por %p2698_p2, %p2697_p13 }
 0x322   : > { %p2700_p3 = pnand %p2699_p0, %p2693_p11 }
 0x324   : > { %2703 = shalt.err (!%p2700_p3)
}
 0x325   : > { %s2704_s23 = scalar_lea.hbm %s3576_s2, 16  ;;  %s2708_s13 = scalar_lea.hbm %s3821_s29, 32 }
 0x326   : > { %p2705_p9 = scmp.ne.s32.totalorder %s3576_s2, %s2704_s23  ;;  %p2709_p1 = scmp.lt.u32.totalorder %s3576_s2, %s3821_s29 }
 0x327   : > { %p2710_p5 = scmp.lt.u32.totalorder %s2708_s13, %s2704_s23  ;;  %p2712_p6 = scmp.lt.u32.totalorder %s2704_s23, %s3576_s2 }
 0x328   : > { %p2706_p7 = pnand %p2705_p9, %p3822_p4 }
 0x329   : > { %p2711_p8 = por %p2710_p5, %p2709_p1 }
 0x32a   : > { %p2707_p10 = pneg %p2706_p7 }
 0x32b   : > { %p2713_p12 = por %p2712_p6, %p2711_p8 }
 0x32d   : > { %p2714_p11 = pnand %p2713_p12, %p2707_p10 }
 0x32f   : > { %2717 = shalt.err (!%p2714_p11)
}
 0x330   : > { %2254 = dma.vmem_to_hbm [thread:$0]  (%p3822_p4), %s1710_s12, 16, %s3576_s2, %s3582_s4  }
 0x331   : > { %s2228_s28 = smul.u32 576, %s3820_s26  ;;  %s1693_s15 = sshll.u32 %s3542_s8, 4  ;;  %s3604_s15 = int_to_ptr.vmem [resolvable:$true] %s1693_s15 }
 0x332   : > { %s3823_s1 = sld [smem:[#allocation44_spill]]  ;;  %s1672_s13 = scalar_lea.sflag [#allocation7], %s3403_s5 }
 0x333   : > { %s2718_s9 = scalar_lea.vmem %s3604_s15, 576  ;;  %s2927_s7 = smov [#allocation17]  }
 0x334   : > { %p2719_p13 = scmp.ne.s32.totalorder %s3604_s15, %s2718_s9  ;;  %s2722_s2 = sshll.u32 %s2927_s7, 4  ;;  %s2723_s2 = int_to_ptr.vmem [resolvable:$false] %s2722_s2 }
 0x335   : > { %s2724_s8 = scalar_lea.vmem %s2723_s2, 1152  ;;  %p2725_p3 = scmp.lt.s32.totalorder %s3604_s15, %s2723_s2 }
 0x336   : > { %p2720_p2 = pnand %p2719_p13, %p3822_p4  ;;  %p2726_p9 = scmp.lt.s32.totalorder %s2724_s8, %s2718_s9 }
 0x338   : > { %s3609_s23 = scalar_lea.hbm %s3823_s1, %s2228_s28  ;;  %p2721_p0 = pneg %p2720_p2 }
 0x339   : > { %p2727_p7 = por %p2726_p9, %p2725_p3 }
 0x33b   : > { %p2728_p10 = pnand %p2727_p7, %p2721_p0 }
 0x33d   : > { %2731 = shalt.err (!%p2728_p10)
}
 0x33e   : > { %s2732_s12 = scalar_lea.hbm %s3609_s23, 576  ;;  %s2736_s6 = scalar_lea.hbm %s3823_s1, 1152 }
 0x33f   : > { %p2733_p1 = scmp.ne.s32.totalorder %s3609_s23, %s2732_s12  ;;  %p2737_p6 = scmp.lt.u32.totalorder %s3609_s23, %s3823_s1 }
 0x340   : > { %p2738_p12 = scmp.lt.u32.totalorder %s2736_s6, %s2732_s12  ;;  %p2740_p13 = scmp.lt.u32.totalorder %s2732_s12, %s3609_s23 }
 0x341   : > { %p2734_p5 = pnand %p2733_p1, %p3822_p4 }
 0x342   : > { %p2739_p11 = por %p2738_p12, %p2737_p6 }
 0x343   : > { %p2735_p8 = pneg %p2734_p5 }
 0x344   : > { %p2741_p2 = por %p2740_p13, %p2739_p11 }
 0x346   : > { %p2742_p0 = pnand %p2741_p2, %p2735_p8 }
 0x348   : > { %2745 = shalt.err (!%p2742_p0)
}
 0x349   : > { %s2928_s9 = smov 64   ;;  %s2929_s8 = smov 4  }
 0x34a   : > { %2253 = dma.vmem_to_hbm [thread:$0]  (%p3822_p4), %s3604_s15, 576, %s3609_s23, %s1672_s13, %s2928_s9, %s2928_s9, %s2929_s8  }
 0x34b   : > { %s3824_s6 = sld [smem:[#allocation46_spill]]  ;;  %s3825_s7 = scalar_lea.vmem [#allocation20], %s3403_s5 }
 0x34c   : > { %s1722_s2 = sshll.u32 %s3825_s7, 4  ;;  %s2930_s29 = smov [#allocation20]   ;;  %s1723_s2 = int_to_ptr.vmem [resolvable:$true] %s1722_s2 }
 0x34d   : > { %s2746_s1 = scalar_lea.vmem %s1723_s2, 16  ;;  %s2750_s27 = sshll.u32 %s2930_s29, 4  ;;  %s2751_s27 = int_to_ptr.vmem [resolvable:$false] %s2750_s27 }
 0x34e   : > { %p2747_p3 = scmp.ne.s32.totalorder %s1723_s2, %s2746_s1  ;;  %s2752_s21 = scalar_lea.vmem %s2751_s27, 32 }
 0x34f   : > { %p2753_p10 = scmp.lt.s32.totalorder %s1723_s2, %s2751_s27  ;;  %p2754_p1 = scmp.lt.s32.totalorder %s2752_s21, %s2746_s1 }
 0x350   : > { %p2748_p9 = pnand %p2747_p3, %p3822_p4 }
 0x351   : > { %s3640_s12 = scalar_lea.hbm %s3824_s6, %s2028_s18  ;;  %p2755_p5 = por %p2754_p1, %p2753_p10 }
 0x352   : > { %p2749_p7 = pneg %p2748_p9 }
 0x354   : > { %p2756_p8 = pnand %p2755_p5, %p2749_p7 }
 0x356   : > { %2759 = shalt.err (!%p2756_p8)
}
 0x357   : > { %s2760_s5 = scalar_lea.hbm %s3640_s12, 16  ;;  %s2764_s29 = scalar_lea.hbm %s3824_s6, 32 }
 0x358   : > { %p2761_p6 = scmp.ne.s32.totalorder %s3640_s12, %s2760_s5  ;;  %p2765_p13 = scmp.lt.u32.totalorder %s3640_s12, %s3824_s6 }
 0x359   : > { %p2766_p2 = scmp.lt.u32.totalorder %s2764_s29, %s2760_s5  ;;  %p2768_p3 = scmp.lt.u32.totalorder %s2760_s5, %s3640_s12 }
 0x35a   : > { %p2762_p12 = pnand %p2761_p6, %p3822_p4 }
 0x35b   : > { %p2767_p0 = por %p2766_p2, %p2765_p13 }
 0x35c   : > { %p2763_p11 = pneg %p2762_p12 }
 0x35d   : > { %p2769_p9 = por %p2768_p3, %p2767_p0 }
 0x35f   : > { %p2770_p7 = pnand %p2769_p9, %p2763_p11 }
 0x361   : > { %2773 = shalt.err (!%p2770_p7)
}
 0x362   : > { %2255 = dma.vmem_to_hbm [thread:$0]  (%p3822_p4), %s1723_s2, 16, %s3640_s12, %s3582_s4  }
 0x363 PF: > { %p2303_p10 = scmp.ge.s32.totalorder %s2912_s22, 2  ;;  %s1734_s21 = sand.u32 1, %s2860_s30  }
 0x364   : > { %p3826_p1 = scmp.ne.s32.totalorder %s3787_s19, 0  ;;  %s1735_s1 = scalar_lea.sflag [#allocation7], %s1734_s21 }
 0x366   : > { %p2283_p5 = pnand %p2303_p10, %p3826_p1 }
 0x368   : > { %2851 = dma.done.wait (!%p2283_p5), %s1735_s1, 576  }
 0x369   : > { %2853 = vsyncadd (!%p2283_p5), %s1735_s1, 4294966720  ;;  %s3827_s23 = sadd.s32 4294967294, %s2912_s22  }
 0x36a   : > { %s1743_s13 = sand.u32 1, %s3827_s23  }
 0x36b   : > { %s1744_s9 = scalar_lea.sflag [#allocation19], %s1743_s13 }
 0x36c   : > { %2855 = dma.done.wait (!%p2283_p5), %s1744_s9, 32  }
 0x36d   : > { %2857 = vsyncadd (!%p2283_p5), %s1744_s9, 4294967264  ;;  %s34_s22 = sadd.s32 1, %s2912_s22   ;;  %s3829_s12 = sld [smem:[#allocation29_spill]] }
 0x36e   : > { %p3669_p4 = scmp.ge.s32.totalorder %s34_s22, 10   ;;  %s3830_s13 = sld [smem:[#allocation30_spill]] }
 0x36f   : > { %s3831_s19 = sld [smem:[#allocation33_spill]]  ;;  %s3832_s4 = sld [smem:[#allocation35_spill]] }
 0x370   : > { %s3833_s21 = sld [smem:[#allocation36_spill]]  ;;  %s3835_s30 = smov %s2864_s10 }
 0x371   : > { %s3836_s10 = smov %s2868_s11  ;;  %s3837_s11 = smov %s3246_s25 }
 0x372   : > { %s3838_s14 = smov %s3313_s3  ;;  %s3839_s15 = smov %s2888_s16 }
 0x373   : > { %s3840_s16 = smov %s2892_s17  ;;  %s3841_s17 = smov %s3249_s24 }
 0x374   : > { %s3842_s18 = smov %s2904_s20  ;;  %33 = sbr.rel (!%p3669_p4) target bundleno = 27 (0x1b), region = 171 }
 0x375   : > { %s3843_s20 = smov %s3832_s4 }
 0x37b   :  { %1756 = vsyncpa [#allocation6], 1 }
 0x37c   :  { %1758 = vsyncpa [#allocation6 + $0x1], 1 }
 0x37d   :  { %1759 = vsyncpa [#allocation9], 1 }
 0x37e   :  { %1760 = vsyncpa [#allocation12], 1 }
 0x37f   :  { %1761 = vsyncpa [#allocation15], 1 }
 0x380   :  { %1763 = vsyncpa [#allocation15 + $0x1], 1 }
 0x381   :  { %1764 = vsyncpa [#allocation7], 1 }
 0x382   :  { %1766 = vsyncpa [#allocation7 + $0x1], 1 }
 0x383   :  { %1767 = vsyncpa [#allocation19], 1 }
 0x384   :  { %1769 = vsyncpa [#allocation19 + $0x1], 1 }

// kernel: mul.56
= control target key start
LH: loop header
LB: loop body
LE: loop exit
PB: predicated region body
PF: predicated region fallthrough
CT: control target
= control target key end

     0   :  { %3 = vsyncpa [#allocation1], 0  ;;  %s98_s0 = inlined_call_operand.vmem [shape: f32[1,256], index: 0, kind: input, shape index: {}]   ;;  %s99_s1 = inlined_call_operand.vmem [shape: f32[1,256], index: 1, kind: input, shape index: {}]   ;;  %s100_s2 = inlined_call_operand.hbm [shape: f32[1,256], index: 2, kind: output, shape index: {}]  }
   0x1   :  { %v4_v0 = vld [vmem:[%s98_s0] sm:$0x1]  ;;  %v31_v3 = vld [vmem:[%s98_s0 + $0x1] sm:$0x1] }
   0x2   :  { %v5_v1 = vld [vmem:[%s99_s1] sm:$0x1]  ;;  %v32_v4 = vld [vmem:[%s99_s1 + $0x1] sm:$0x1]  ;;  %s58_s1 = smov [#allocation0]  }
   0x3   :  { %v8_v2 = vmul.f32 %v5_v1, %v4_v0  ;;  %v17_v5 = vmul.f32 %v32_v4, %v31_v3  ;;  %s25_s16 = sshll.u32 %s58_s1, 4  ;;  %s26_s16 = int_to_ptr.vmem [resolvable:$true] %s25_s16 }
   0x4   :  { %s34_s17 = scalar_lea.vmem %s26_s16, 32  ;;  %p39_p1 = scmp.lt.s32.totalorder %s26_s16, %s26_s16 }
   0x5   :  { %10 = vst [vmem:[#allocation0] sm:$0x1] %v8_v2  ;;  %20 = vst [vmem:[#allocation0 + $0x1] sm:$0x1] %v17_v5  ;;  %p35_p0 = scmp.ne.s32.totalorder %s26_s16, %s34_s17  ;;  %p40_p2 = scmp.lt.s32.totalorder %s34_s17, %s34_s17 }
   0x7   :  { %p41_p3 = por %p40_p2, %p39_p1 }
   0x9   :  { %p42_p4 = pnand %p41_p3, %p35_p0 }
   0xb   :  { %45 = shalt.err (!%p42_p4)
}
   0xc   :  { %s46_s20 = scalar_lea.hbm %s100_s2, 32 }
   0xd   :  { %p47_p5 = scmp.ne.s32.totalorder %s100_s2, %s46_s20  ;;  %p50_p6 = scmp.lt.u32.totalorder %s46_s20, %s100_s2 }
   0xf   :  { %p52_p7 = pnand %p50_p6, %p47_p5 }
  0x11   :  { %55 = shalt.err (!%p52_p7)
}
  0x12   :  { %28 = dma.vmem_to_hbm [thread:$0]  %s26_s16, 32, %s100_s2, [#allocation1]  }
  0x13   :  { %56 = dma.done.wait [#allocation1], 32  }
  0x14   :  { %57 = vsyncadd [#allocation1], 4294967264 }
  0x15   :  { %30 = vsyncpa [#allocation1], 1 }

// kernel: patchgan_discriminator.7
= control target key start
LH: loop header
LB: loop body
LE: loop exit
PB: predicated region body
PF: predicated region fallthrough
CT: control target
= control target key end

     0   :  { %s3352_s0 = inlined_call_operand.hbm [shape: bf16[4,2,26,128], index: 0, kind: input, shape index: {}]   ;;  %s3353_s1 = inlined_call_operand.hbm [shape: bf16[4,512,256], index: 1, kind: input, shape index: {}]   ;;  %s3354_s2 = inlined_call_operand.hbm [shape: f32[1,256], index: 2, kind: input, shape index: {}]   ;;  %s3355_s3 = inlined_call_operand.hbm [shape: f32[1,128], index: 3, kind: input, shape index: {}]   ;;  %s3356_s4 = inlined_call_operand.hbm [shape: f32[1,128], index: 4, kind: input, shape index: {}]   ;;  %s3357_s5 = inlined_call_operand.hbm [shape: f32[4,26,1], index: 5, kind: input, shape index: {}]   ;;  %s3358_s6 = inlined_call_operand.hbm [shape: f32[20,1], index: 6, kind: input, shape index: {}]   ;;  %s3359_s7 = inlined_call_operand.hbm [shape: bf16[2,20,256], index: 7, kind: output, shape index: {0}]   ;;  %s3360_s8 = inlined_call_operand.hbm [shape: f32[2,1,256], index: 8, kind: output, shape index: {1}]   ;;  %s3361_s9 = inlined_call_operand.hbm [shape: f32[2,1,256], index: 9, kind: output, shape index: {2}]  }
   0x1   :  { %3388 = sst [smem:[#allocation37_spill]] %s3352_s0 }
   0x2   :  { %3389 = sst [smem:[#allocation38_spill]] %s3353_s1 }
   0x3   :  { %3390 = sst [smem:[#allocation39_spill]] %s3354_s2 }
   0x4   :  { %3391 = sst [smem:[#allocation40_spill]] %s3355_s3 }
   0x5   :  { %3392 = sst [smem:[#allocation41_spill]] %s3356_s4 }
   0x6   :  { %3393 = sst [smem:[#allocation42_spill]] %s3357_s5 }
   0x7   :  { %3394 = sst [smem:[#allocation43_spill]] %s3358_s6 }
   0x8   :  { %3395 = sst [smem:[#allocation44_spill]] %s3359_s7 }
   0x9   :  { %3396 = sst [smem:[#allocation45_spill]] %s3360_s8 }
   0xa   :  { %3397 = sst [smem:[#allocation46_spill]] %s3361_s9 }
   0xb   :  { %15 = vsyncpa [#allocation6], 0 }
   0xc   :  { %17 = vsyncpa [#allocation6 + $0x1], 0 }
   0xd   :  { %18 = vsyncpa [#allocation9], 0 }
   0xe   :  { %19 = vsyncpa [#allocation12], 0 }
   0xf   :  { %20 = vsyncpa [#allocation15], 0 }
  0x10   :  { %22 = vsyncpa [#allocation15 + $0x1], 0 }
  0x11   :  { %23 = vsyncpa [#allocation7], 0 }
  0x12   :  { %25 = vsyncpa [#allocation7 + $0x1], 0 }
  0x13   :  { %26 = vsyncpa [#allocation19], 0 }
  0x14   :  { %28 = vsyncpa [#allocation19 + $0x1], 0  ;;  %s2649_s30 = smov 0   ;;  %s2651_s10 = smov 0  }
  0x15   :  { %s2653_s11 = smov 0   ;;  %s2655_s12 = smov 0  }
  0x16   :  { %s2657_s13 = smov 0   ;;  %s2659_s14 = smov 0  }
  0x17   :  { %s2661_s15 = smov 0   ;;  %s2663_s16 = smov 0  }
  0x18   :  { %s2665_s17 = smov 0   ;;  %s2667_s18 = smov 0  }
  0x19   :  { %s2669_s19 = smov 0   ;;  %s2671_s20 = smov 0  }
  0x1a   :  { %s2673_s21 = smov 0   ;;  %s2675_s22 = smov 0  }
  0x1b LB: > { %3398 = sst [smem:[#allocation28_spill]] %s2538_s12  ;;  %s2720_s23 = sadd.s32 4294967295, %s2578_s22   ;;  %s2578_s22 = sphi %s2675_s22, %s34_s22   ;;  %s2574_s21 = sphi %s2673_s21, %s3479_s21   ;;  %s2570_s20 = sphi %s2671_s20, %s3478_s20   ;;  %s2566_s19 = sphi %s2669_s19, %s3466_s19   ;;  %s2562_s18 = sphi %s2667_s18, %s3477_s18   ;;  %s2558_s17 = sphi %s2665_s17, %s3476_s17   ;;  %s2554_s16 = sphi %s2663_s16, %s3475_s16   ;;  %s2550_s15 = sphi %s2661_s15, %s3474_s15   ;;  %s2546_s14 = sphi %s2659_s14, %s3473_s14   ;;  %s2542_s13 = sphi %s2657_s13, %s3464_s13   ;;  %s2538_s12 = sphi %s2655_s12, %s3472_s12   ;;  %s2534_s11 = sphi %s2653_s11, %s3471_s11   ;;  %s2530_s10 = sphi %s2651_s10, %s3470_s10   ;;  %s2526_s30 = sphi %s2649_s30, %s3469_s30  }
  0x1c   : > { %3399 = sst [smem:[#allocation29_spill]] %s2542_s13  ;;  %p1697_p0 = scmp.ge.s32.totalorder %s2578_s22, 1 }
  0x1d   : > { %3400 = sst [smem:[#allocation30_spill]] %s2546_s14  ;;  %p3372_p1 = scmp.eq.s32.totalorder %s2720_s23, 0 }
  0x1e   : > { %3401 = sst [smem:[#allocation31_spill]] %s2562_s18  ;;  %p288_p3 = scmp.lt.s32.totalorder %s2578_s22, 9 }
  0x1f   : > { %3402 = sst [smem:[#allocation32_spill]] %s2566_s19  ;;  %s2580_s25 = smov [#allocation8]  }
  0x20   : > { %3403 = sst [smem:[#allocation33_spill]] %s2574_s21  ;;  %p2726_p4 = pnand %p1697_p0, %p288_p3 }
  0x21   : > { %s300_s26 = sshll.u32 %s2580_s25, 4  ;;  %s2581_s28 = smov [#allocation11]   ;;  %s2730_s26 = int_to_ptr.vmem [resolvable:$true] %s300_s26 }
  0x22   : > { %s3404_s24 = scalar_select %p2726_p4, 1, 0 }
  0x23   : > { %p1875_p5 = pneg %p2726_p4  ;;  %s325_s29 = sshll.u32 %s2581_s28, 4  ;;  %s2740_s29 = int_to_ptr.vmem [resolvable:$true] %s325_s29 }
  0x24   : > { %3405 = sst [smem:[#allocation34_spill]] %s3404_s24  ;;  %s2582_s9 = smov [#allocation16]  }
  0x25   : > { %p2736_p6 = pnand %p1875_p5, %p3372_p1  ;;  %s346_s7 = sshll.u32 %s2582_s9, 4  ;;  %s2742_s7 = int_to_ptr.vmem [resolvable:$true] %s346_s7 }
  0x26   : > { %s3407_s1 = sld [smem:[#allocation38_spill]] }
  0x27   : > { %p2752_p8 = pneg %p2736_p6 }
  0x2c   : > { %s2156_s19 = scalar_lea.hbm %s3407_s1, 32768 }
  0x2d   : > { %p2157_p7 = scmp.ne.s32.totalorder %s3407_s1, %s2156_s19  ;;  %p2163_p11 = scmp.lt.u32.totalorder %s2156_s19, %s3407_s1 }
  0x2f   : > { %p2159_p9 = pnand %p2752_p8, %p2157_p7 }
  0x31   : > { %p2160_p10 = pneg %p2159_p9 }
  0x33   : > { %p2165_p12 = pnand %p2163_p11, %p2160_p10 }
  0x35   : > { %2168 = shalt.err (!%p2165_p12)
}
  0x36   : > { %s2169_s8 = scalar_lea.vmem %s2730_s26, 32768  ;;  %p2177_p5 = scmp.lt.s32.totalorder %s2730_s26, %s2730_s26 }
  0x37   : > { %p2170_p13 = scmp.ne.s32.totalorder %s2730_s26, %s2169_s8  ;;  %p2178_p2 = scmp.lt.s32.totalorder %s2169_s8, %s2169_s8 }
  0x39   : > { %p2172_p0 = pnand %p2170_p13, %p2752_p8  ;;  %p2179_p7 = por %p2178_p2, %p2177_p5 }
  0x3b   : > { %p2173_p3 = pneg %p2172_p0 }
  0x3d   : > { %p2180_p9 = pnand %p2179_p7, %p2173_p3 }
  0x3f   : > { %2183 = shalt.err (!%p2180_p9)
}
  0x40   : > { %s3374_s18 = smov 128   ;;  %s3375_s19 = smov 8  }
  0x41   : > { %1878 = dma.hbm_to_vmem [thread:$0]  (!%p2736_p6), %s3407_s1, 32768, %s2730_s26, [#allocation9], %s3374_s18, %s3374_s18, %s3375_s19  }
  0x42   : > { %s3409_s3 = sld [smem:[#allocation40_spill]] }
  0x48   : > { %s2184_s8 = scalar_lea.hbm %s3409_s3, 16 }
  0x49   : > { %p2185_p2 = scmp.ne.s32.totalorder %s3409_s3, %s2184_s8  ;;  %p2191_p12 = scmp.lt.u32.totalorder %s2184_s8, %s3409_s3 }
  0x4b   : > { %p2187_p10 = pnand %p2185_p2, %p2752_p8 }
  0x4d   : > { %p2188_p11 = pneg %p2187_p10 }
  0x4f   : > { %p2193_p13 = pnand %p2191_p12, %p2188_p11 }
  0x51   : > { %2196 = shalt.err (!%p2193_p13)
}
  0x52   : > { %s2197_s26 = scalar_lea.vmem %s2740_s29, 16  ;;  %s2204_s12 = scalar_lea.vmem %s2740_s29, 32 }
  0x53   : > { %p2198_p0 = scmp.ne.s32.totalorder %s2740_s29, %s2197_s26  ;;  %p2205_p7 = scmp.lt.s32.totalorder %s2740_s29, %s2740_s29 }
  0x54   : > { %p2206_p9 = scmp.lt.s32.totalorder %s2204_s12, %s2197_s26 }
  0x55   : > { %p2200_p3 = pnand %p2198_p0, %p2752_p8 }
  0x56   : > { %p2207_p2 = por %p2206_p9, %p2205_p7 }
  0x57   : > { %p2201_p5 = pneg %p2200_p3 }
  0x59   : > { %p2208_p10 = pnand %p2207_p2, %p2201_p5 }
  0x5b   : > { %2211 = shalt.err (!%p2208_p10)
}
  0x5c   : > { %1884 = dma.hbm_to_vmem [thread:$0]  (!%p2736_p6), %s3409_s3, 16, %s2740_s29, [#allocation12]  }
  0x5d   : > { %s3410_s6 = sld [smem:[#allocation43_spill]] }
  0x63   : > { %s2212_s25 = scalar_lea.hbm %s3410_s6, 384 }
  0x64   : > { %p2213_p11 = scmp.ne.s32.totalorder %s3410_s6, %s2212_s25  ;;  %p2219_p0 = scmp.lt.u32.totalorder %s2212_s25, %s3410_s6 }
  0x66   : > { %p2215_p12 = pnand %p2213_p11, %p2752_p8 }
  0x68   : > { %p2216_p13 = pneg %p2215_p12 }
  0x6a   : > { %p2221_p3 = pnand %p2219_p0, %p2216_p13 }
  0x6c   : > { %2224 = shalt.err (!%p2221_p3)
}
  0x6d   : > { %s2225_s29 = scalar_lea.vmem %s2742_s7, 384  ;;  %p2233_p2 = scmp.lt.s32.totalorder %s2742_s7, %s2742_s7 }
  0x6e   : > { %p2226_p5 = scmp.ne.s32.totalorder %s2742_s7, %s2225_s29  ;;  %p2234_p10 = scmp.lt.s32.totalorder %s2225_s29, %s2225_s29 }
  0x70   : > { %p2228_p7 = pnand %p2226_p5, %p2752_p8  ;;  %p2235_p11 = por %p2234_p10, %p2233_p2 }
  0x72   : > { %p2229_p9 = pneg %p2228_p7 }
  0x74   : > { %p2236_p12 = pnand %p2235_p11, %p2229_p9 }
  0x76   : > { %2239 = shalt.err (!%p2236_p12)
}
  0x77   : > { %1890 = dma.hbm_to_vmem [thread:$0]  (!%p2736_p6), %s3410_s6, 384, %s2742_s7, [#allocation15], %s3374_s18, %s3374_s18, %s3375_s19  }
  0x78   : > { %s2585_s13 = smov [#allocation10]   ;;  %s2586_s24 = smov [#allocation13]  }
  0x79   : > { %s314_s14 = sshll.u32 %s2585_s13, 4  ;;  %s336_s25 = sshll.u32 %s2586_s24, 4  ;;  %s315_s14 = int_to_ptr.vmem [resolvable:$true] %s314_s14  ;;  %s2826_s25 = int_to_ptr.vmem [resolvable:$true] %s336_s25 }
  0x7a   : > { %s3411_s2 = sld [smem:[#allocation39_spill]] }
  0x80   : > { %s2240_s8 = scalar_lea.hbm %s3411_s2, 32 }
  0x81   : > { %p2241_p13 = scmp.ne.s32.totalorder %s3411_s2, %s2240_s8  ;;  %p2247_p5 = scmp.lt.u32.totalorder %s2240_s8, %s3411_s2 }
  0x83   : > { %p2243_p0 = pnand %p2241_p13, %p2752_p8 }
  0x85   : > { %p2244_p3 = pneg %p2243_p0 }
  0x87   : > { %p2249_p7 = pnand %p2247_p5, %p2244_p3 }
  0x89   : > { %2252 = shalt.err (!%p2249_p7)
}
  0x8a   : > { %s2253_s0 = scalar_lea.vmem %s315_s14, 32  ;;  %p2261_p11 = scmp.lt.s32.totalorder %s315_s14, %s315_s14 }
  0x8b   : > { %p2254_p9 = scmp.ne.s32.totalorder %s315_s14, %s2253_s0  ;;  %p2262_p12 = scmp.lt.s32.totalorder %s2253_s0, %s2253_s0 }
  0x8d   : > { %p2256_p2 = pnand %p2254_p9, %p2752_p8  ;;  %p2263_p1 = por %p2262_p12, %p2261_p11 }
  0x8f   : > { %p2257_p10 = pneg %p2256_p2 }
  0x91   : > { %p2264_p4 = pnand %p2263_p1, %p2257_p10 }
  0x93   : > { %2267 = shalt.err (!%p2264_p4)
}
  0x94   : > { %1881 = dma.hbm_to_vmem [thread:$0]  (!%p2736_p6), %s3411_s2, 32, %s315_s14, [#allocation9]  }
  0x95   : > { %s3412_s4 = sld [smem:[#allocation41_spill]] }
  0x9b   : > { %s2268_s8 = scalar_lea.hbm %s3412_s4, 16 }
  0x9c   : > { %p2269_p13 = scmp.ne.s32.totalorder %s3412_s4, %s2268_s8  ;;  %p2275_p1 = scmp.lt.u32.totalorder %s2268_s8, %s3412_s4 }
  0x9e   : > { %p2271_p0 = pnand %p2269_p13, %p2752_p8 }
  0xa0   : > { %p2272_p3 = pneg %p2271_p0 }
  0xa2   : > { %p2277_p4 = pnand %p2275_p1, %p2272_p3 }
  0xa4   : > { %2280 = shalt.err (!%p2277_p4)
}
  0xa5   : > { %s2281_s14 = scalar_lea.vmem %s2826_s25, 16  ;;  %s2288_s0 = scalar_lea.vmem %s2826_s25, 32 }
  0xa6   : > { %p2282_p5 = scmp.ne.s32.totalorder %s2826_s25, %s2281_s14  ;;  %p2289_p2 = scmp.lt.s32.totalorder %s2826_s25, %s2826_s25 }
  0xa7   : > { %p2290_p10 = scmp.lt.s32.totalorder %s2288_s0, %s2281_s14 }
  0xa8   : > { %p2284_p7 = pnand %p2282_p5, %p2752_p8 }
  0xa9   : > { %p2291_p11 = por %p2290_p10, %p2289_p2 }
  0xaa   : > { %p2285_p9 = pneg %p2284_p7 }
  0xac   : > { %p2292_p12 = pnand %p2291_p11, %p2285_p9 }
  0xae   : > { %2295 = shalt.err (!%p2292_p12)
}
  0xaf   : > { %1887 = dma.hbm_to_vmem [thread:$0]  (!%p2736_p6), %s3412_s4, 16, %s2826_s25, [#allocation12]  }
  0xb0   : > { %s3376_s5 = sadd.s32 4294967294, %s2578_s22   ;;  %s43_s27 = sadd.s32 1, %s2570_s20 }
  0xb1   : > { %p44_p8 = scmp.ge.s32.totalorder %s43_s27, 4  ;;  %s46_s9 = sadd.s32 1, %s2574_s21 }
  0xb2   : > { %s55_s28 = sadd.s32 1, %s2558_s17  ;;  %p62_p13 = scmp.ne.s32.totalorder %s2558_s17, %s2554_s16 }
  0xb3   : > { %s3481_s27 = smov (%p44_p8, %s43_s27), 0  ;;  %s3483_s9 = smov (!%p44_p8, %s46_s9), %s2574_s21 }
  0xb4   : > { %3413 = sst [smem:[#allocation35_spill]] %s3481_s27  ;;  %s2881_s8 = ssub.s32 %s2570_s20, %s3481_s27 }
  0xb5   : > { %p3378_p6 = scmp.eq.s32.totalorder %s2578_s22, 0  ;;  %p48_p0 = scmp.ge.s32.totalorder %s3483_s9, 2 }
  0xb6   : > { %p68_p3 = scmp.ne.s32.totalorder %s2554_s16, %s2550_s15  ;;  %p3416_p5 = scmp.eq.s32.totalorder %s2720_s23, 0 }
  0xb7   : > { %p2888_p1 = por %p3378_p6, %p62_p13  ;;  %s3485_s9 = smov (%p48_p0, %s3483_s9), 0 }
  0xb8   : > { %3415 = sst [smem:[#allocation36_spill]] %s3485_s9  ;;  %p2897_p7 = por %p3416_p5, %p68_p3 }
  0xb9   : > { %s212_s29 = sadd.s32 1, %s2534_s11  ;;  %s51_s15 = ssub.s32 %s2574_s21, %s3485_s9 }
  0xba   : > { %p222_p9 = scmp.ne.s32.totalorder %s2534_s11, %s2530_s10  ;;  %s52_s12 = sor.u32 %s51_s15, %s2881_s8 }
  0xbb   : > { %p210_p2 = scmp.eq.s32.totalorder %s51_s15, 0  ;;  %p53_p10 = scmp.eq.s32.totalorder %s52_s12, 0 }
  0xbc   : > { %p3418_p11 = scmp.eq.s32.totalorder %s2720_s23, 7  ;;  %p228_p8 = scmp.ne.s32.totalorder %s2530_s10, %s2526_s30 }
  0xbd   : > { %s2914_s14 = scalar_select %p210_p2, %s2534_s11, %s212_s29  }
  0xbe   : > { %p2909_p12 = por %p3418_p11, %p222_p9  ;;  %p229_p13 = scmp.eq.s32.totalorder %s3376_s5, 7 }
  0xbf   : > { %s2917_s0 = scalar_select %p53_p10, %s2558_s17, %s55_s28  }
  0xc0   : > { %s3419_s7 = scalar_select %p2909_p12, 1, 0 }
  0xc1   : > { %p3377_p0 = scmp.lt.s32.totalorder %s2578_s22, 8  ;;  %s360_s13 = sand.u32 1, %s2558_s17  }
  0xc2   : > { %p2925_p3 = por %p229_p13, %p228_p8  ;;  %s1704_s15 = sshll.u32 %s360_s13, 4 }
  0xc3   : > { %s1705_s12 = sshll.u32 %s2574_s21, 2  ;;  %s1706_s18 = sshll.u32 %s2570_s20, 3 }
  0xc4   : > { %s3420_s24 = scalar_select %p2925_p3, 1, 0 }
  0xc5   : > { %s370_s19 = sadd.s32 %s1706_s18, %s1705_s12  ;;  %s364_s1 = scalar_lea.vmem [#allocation5], %s1704_s15 }
  0xc6   : > { %s373_s29 = sshll.u32 %s364_s1, 4  ;;  %s1707_s2 = sshll.u32 %s370_s19, 6  ;;  %s2931_s29 = int_to_ptr.vmem [resolvable:$true] %s373_s29 }
  0xc7   : > { %s3421_s4 = sld [smem:[#allocation37_spill]]  ;;  %p2942_p5 = pnand %p3377_p0, %p2888_p1 }
  0xc8   : > { %s2946_s1 = scalar_lea.sflag [#allocation6], %s360_s13 }
  0xc9   : > { %p2298_p2 = pneg %p2942_p5 }
  0xcd   : > { %s2936_s6 = scalar_lea.hbm %s3421_s4, %s1707_s2  ;;  %s2301_s19 = scalar_lea.hbm %s3421_s4, 2048 }
  0xce   : > { %s2296_s18 = scalar_lea.hbm %s2936_s6, 256  ;;  %p2302_p1 = scmp.lt.u32.totalorder %s2936_s6, %s3421_s4 }
  0xcf   : > { %p2297_p9 = scmp.ne.s32.totalorder %s2936_s6, %s2296_s18  ;;  %p2303_p8 = scmp.lt.u32.totalorder %s2301_s19, %s2296_s18 }
  0xd0   : > { %p2305_p0 = scmp.lt.u32.totalorder %s2296_s18, %s2936_s6 }
  0xd1   : > { %p2299_p10 = pnand %p2298_p2, %p2297_p9  ;;  %p2304_p13 = por %p2303_p8, %p2302_p1 }
  0xd3   : > { %p2300_p11 = pneg %p2299_p10  ;;  %p2306_p6 = por %p2305_p0, %p2304_p13 }
  0xd5   : > { %p2307_p4 = pnand %p2306_p6, %p2300_p11 }
  0xd7   : > { %2310 = shalt.err (!%p2307_p4)
}
  0xd8   : > { %s2311_s13 = scalar_lea.vmem %s2931_s29, 256  ;;  %s2587_s12 = smov [#allocation5]  }
  0xd9   : > { %p2312_p9 = scmp.ne.s32.totalorder %s2931_s29, %s2311_s13  ;;  %s2316_s28 = sshll.u32 %s2587_s12, 4  ;;  %s2317_s28 = int_to_ptr.vmem [resolvable:$false] %s2316_s28 }
  0xda   : > { %s2318_s2 = scalar_lea.vmem %s2317_s28, 512  ;;  %p2319_p12 = scmp.lt.s32.totalorder %s2931_s29, %s2317_s28 }
  0xdb   : > { %p2314_p10 = pnand %p2312_p9, %p2298_p2  ;;  %p2320_p1 = scmp.lt.s32.totalorder %s2318_s2, %s2311_s13 }
  0xdd   : > { %p2315_p3 = pneg %p2314_p10  ;;  %p2321_p8 = por %p2320_p1, %p2319_p12 }
  0xdf   : > { %p2322_p0 = pnand %p2321_p8, %p2315_p3 }
  0xe1   : > { %2325 = shalt.err (!%p2322_p0)
}
  0xe2   : > { %s2588_s18 = smov 64   ;;  %s3423_s3 = sld [smem:[#allocation30_spill]] }
  0xe3   : > { %s3424_s19 = sld [smem:[#allocation29_spill]]  ;;  %s3425_s25 = sld [smem:[#allocation28_spill]] }
  0xe4   : > { %s2589_s15 = smov 4   ;;  %p3426_p6 = scmp.eq.s32.totalorder %s2881_s8, 0 }
  0xe5   : > { %1894 = dma.hbm_to_vmem [thread:$0]  (!%p2942_p5), %s2936_s6, 256, %s2931_s29, %s2946_s1, %s2588_s18, %s2588_s18, %s2589_s15  }
  0xe6   : > { %s383_s28 = sand.u32 1, %s2578_s22   ;;  %p3427_p3 = scmp.eq.s32.totalorder %s2578_s22, 0 }
  0xe7   : > { %p3428_p11 = scmp.eq.s32.totalorder %s2720_s23, 0  ;;  %s1817_s27 = sshll.u32 %s2570_s20, 9 }
  0xe8   : > { %s165_s13 = sadd.s32 1, %s3423_s3  ;;  %s385_s2 = sand.u32 1, %s3423_s3  }
  0xe9   : > { %s2978_s12 = scalar_select %p3426_p6, %s3423_s3, %s165_s13  }
  0xea   : > { %p172_p4 = scmp.ne.s32.totalorder %s3423_s3, %s3424_s19  ;;  %p178_p12 = scmp.ne.s32.totalorder %s3424_s19, %s3425_s25 }
  0xeb   : > { %s1708_s9 = sshll.u32 %s385_s2, 5  ;;  %s3430_s6 = sld [smem:[#allocation42_spill]] }
  0xec   : > { %p174_p2 = por %p172_p4, %p3427_p3  ;;  %p2990_p13 = por %p178_p12, %p3428_p11 }
  0xed   : > { %s387_s8 = scalar_lea.vmem [#allocation14], %s1708_s9  ;;  %p3431_p5 = scmp.lt.s32.totalorder %s2578_s22, 8 }
  0xee   : > { %s3429_s4 = scalar_select %p2990_p13, 1, 0 }
  0xef   : > { %s394_s1 = sshll.u32 %s387_s8, 4  ;;  %p3004_p9 = pnand %p3431_p5, %p174_p2  ;;  %s3000_s1 = int_to_ptr.vmem [resolvable:$true] %s394_s1 }
  0xf0   : > { %s3008_s3 = scalar_lea.sflag [#allocation15], %s383_s28 }
  0xf1   : > { %s2998_s29 = scalar_lea.hbm %s3430_s6, %s1817_s27  ;;  %p2328_p1 = pneg %p3004_p9 }
  0xf2   : > { %s2326_s21 = scalar_lea.hbm %s2998_s29, 512  ;;  %s2331_s19 = scalar_lea.hbm %s3430_s6, 2048 }
  0xf3   : > { %p2327_p10 = scmp.ne.s32.totalorder %s2998_s29, %s2326_s21  ;;  %p2332_p6 = scmp.lt.u32.totalorder %s2998_s29, %s3430_s6 }
  0xf4   : > { %p2333_p4 = scmp.lt.u32.totalorder %s2331_s19, %s2326_s21  ;;  %p2335_p3 = scmp.lt.u32.totalorder %s2326_s21, %s2998_s29 }
  0xf5   : > { %p2329_p8 = pnand %p2328_p1, %p2327_p10 }
  0xf6   : > { %p2334_p12 = por %p2333_p4, %p2332_p6 }
  0xf7   : > { %p2330_p0 = pneg %p2329_p8 }
  0xf8   : > { %p2336_p2 = por %p2335_p3, %p2334_p12 }
  0xfa   : > { %p2337_p11 = pnand %p2336_p2, %p2330_p0 }
  0xfc   : > { %2340 = shalt.err (!%p2337_p11)
}
  0xfd   : > { %s2341_s13 = scalar_lea.vmem %s3000_s1, 512  ;;  %s2590_s28 = smov [#allocation14]  }
  0xfe   : > { %p2342_p5 = scmp.ne.s32.totalorder %s3000_s1, %s2341_s13  ;;  %s2346_s2 = sshll.u32 %s2590_s28, 4  ;;  %s2347_s2 = int_to_ptr.vmem [resolvable:$false] %s2346_s2 }
  0xff   : > { %s2348_s5 = scalar_lea.vmem %s2347_s2, 1024  ;;  %p2349_p13 = scmp.lt.s32.totalorder %s3000_s1, %s2347_s2 }
 0x100   : > { %p2344_p10 = pnand %p2342_p5, %p2328_p1  ;;  %p2350_p6 = scmp.lt.s32.totalorder %s2348_s5, %s2341_s13 }
 0x102   : > { %p2345_p8 = pneg %p2344_p10  ;;  %p2351_p4 = por %p2350_p6, %p2349_p13 }
 0x104   : > { %p2352_p12 = pnand %p2351_p4, %p2345_p8 }
 0x106   : > { %2355 = shalt.err (!%p2352_p12)
}
 0x107   : > { %s3433_s8 = smov 8   ;;  %s3434_s21 = smov 128  }
 0x108   : > { %1897 = dma.hbm_to_vmem [thread:$0]  (!%p3004_p9), %s2998_s29, 512, %s3000_s1, %s3008_s3, %s3434_s21, %s3434_s21, %s3433_s8  }
 0x109   : > { %s3435_s27 = sld [smem:[#allocation34_spill]] }
 0x10f   : > { %p3436_p1 = scmp.ne.s32.totalorder %s3435_s27, 0 }
 0x110   : > { %s408_s9 = sand.u32 (!%p3436_p1), 1, %s2554_s16  }
 0x111   : > { %406 = sbr.rel (%p3436_p1) target bundleno = 956 (0x3bc), region = 48  ;;  %s1712_s19 = sshll.u32 (!%p3436_p1), %s408_s9, 4 }
 0x112   : > { %s409_s25 = scalar_lea.sflag (!%p3436_p1), [#allocation6], %s408_s9  ;;  %s3042_s15 = scalar_lea.vmem (!%p3436_p1), [#allocation5], %s1712_s19 }
 0x118   : > { %2497 = dma.done.wait (%p2897_p7), %s409_s25, 256  }
 0x119   : > { %2499 = vsyncadd (%p2897_p7), %s409_s25, 4294967040  ;;  %p3437_p13 = scmp.eq.s32.totalorder %s2720_s23, 0 }
 0x11b   : > { %2501 = dma.done.wait (%p3437_p13), [#allocation9], 32800   ;;  %p3438_p9 = pmov %p3437_p13 }
 0x11d   : > { %2503 = vsyncadd (%p3438_p9), [#allocation9], 4294934496  ;;  %p3439_p0 = pmov %p3438_p9 }
 0x11f   : > { %2505 = dma.done.wait (%p3439_p0), [#allocation12], 32   ;;  %p3440_p3 = pmov %p3439_p0 }
 0x120   : > { %s3441_s29 = sld [smem:[#allocation29_spill]]  ;;  %s433_s1 = sand.u32 1, %s2720_s23  }
 0x121   : > { %2507 = vsyncadd (%p3440_p3), [#allocation12], 4294967264  ;;  %s434_s3 = scalar_lea.sflag [#allocation15], %s433_s1  ;;  %p3442_p7 = scmp.ne.s32.totalorder %s3429_s4, 0 }
 0x126   : > { %s435_s18 = sand.u32 1, %s3441_s29  }
 0x127   : > { %s1717_s26 = sshll.u32 %s435_s18, 5 }
 0x128   : > { %s437_s13 = scalar_lea.vmem [#allocation14], %s1717_s26 }
 0x129   : > { %2509 = dma.done.wait (%p3442_p7), %s434_s3, 512  }
 0x12a   : > { %2511 = vsyncadd (%p3442_p7), %s434_s3, 4294966784  ;;  %p3443_p2 = pmov %p3439_p0 }
 0x12b   : > { %p3444_p11 = pmov %p3439_p0 }
 0x12c   : > { %2513 = dma.done.wait (%p3443_p2), [#allocation15], 384  }
 0x12d   : > { %2515 = vsyncadd (%p3444_p11), [#allocation15], 4294966912  ;;  %s3445_s28 = sld [smem:[#allocation31_spill]]  ;;  %s3069_s2 = sand.u32 1, %s2530_s10   ;;  %v2591_v0 = vmov 0   ;;  %v535_v1 = vld [vmem:[%s437_s13 + $0x10] sm:$0xff] }
 0x12e   : > { %2047 = vset.pattern.permute.xlu1 %v2591_v0  ;;  %2046 = vset.pattern.permute.xlu0 %v2591_v0  ;;  %s1843_s5 = smul.u32 24, %s3069_s2  ;;  %s1719_s8 = sshll.u32 %s3069_s2, 1  ;;  %v533_v2 = vld [vmem:[%s437_s13] sm:$0xff]  ;;  %v536_v3 = vld [vmem:[%s437_s13 + $0x18] sm:$0x3]  ;;  %v534_v4 = vld [vmem:[%s437_s13 + $0x8] sm:$0xff] }
 0x12f   : > { %549 = vperm.xlu1 %2047, %v535_v1   ;;  %539 = vperm.xlu0 %2046, %v533_v2   ;;  %vm590_vm4 = vsmask.f32 3328  ;;  %vm591_vm5 = vsmask.f32 7440  ;;  %vm632_vm6 = vsmask.f32 1280 }
 0x130   : > { %vm633_vm7 = vsmask.f32 5392  ;;  %vm683_vm8 = vcmask 1040384   ;;  %vm684_vm9 = vcmask 1044484   ;;  %vm3165_vm12 = vmor %vm590_vm4, %vm591_vm5  ;;  %s3190_s27 = scalar_lea.vmem [#allocation17], %s1843_s5  ;;  %s3194_s9 = scalar_lea.vmem [#allocation18], %s1719_s8 }
 0x131   : > { %vm3153_vm10 = vmor %vm683_vm8, %vm684_vm9  ;;  %s3198_s19 = scalar_lea.vmem [#allocation20], %s1719_s8 }
 0x132   : > { %vm3159_vm11 = vmor %vm632_vm6, %vm633_vm7 }
 0x133   : > { %s1822_s21 = sshll.u32 %s3445_s28, 9  ;;  %554 = vperm.xlu1 %2047, %v536_v3   ;;  %544 = vperm.xlu0 %2046, %v534_v4   ;;  %p1802_p5 = scmp.ne.s32.totalorder %s3445_s28, 0 }
 0x134   : > { %s3074_s4 = scalar_lea.vmem [#allocation8], %s1822_s21 }
 0x135   : > { %v2048_v5 = vld [vmem:[%s3074_s4 + $0x4] ss:$8 sps:$4 sm:$0xff]   ;;  %v2052_v7 = vld [vmem:[%s3074_s4] ss:$8 sps:$4 sm:$0xff]   ;;  %v2054_v9 = vld [vmem:[%s3074_s4 + $0x14] ss:$8 sps:$4 sm:$0xff]  }
 0x136   : > { %v2050_v6 = vld [vmem:[%s3074_s4 + $0x104] ss:$8 sps:$4 sm:$0xff]   ;;  %v2053_v8 = vld [vmem:[%s3074_s4 + $0x100] ss:$8 sps:$4 sm:$0xff]   ;;  %1129 = vmatprep.subr.bf16.mxu1 %v2048_v5  ;;  %v2056_v10 = vld [vmem:[%s3074_s4 + $0x114] ss:$8 sps:$4 sm:$0xff]  }
 0x137   : > { %1180 = vmatprep.subr.bf16.mxu0 %v2050_v6  ;;  %1130 = vmatpush1.bf16.msra.mxu1 %v2052_v7  ;;  %v2058_v11 = vld [vmem:[%s3074_s4 + $0x10] ss:$8 sps:$4 sm:$0xff]   ;;  %v2060_v13 = vld [vmem:[%s3074_s4 + $0x24] ss:$8 sps:$4 sm:$0xff]   ;;  %v2064_v15 = vld [vmem:[%s3074_s4 + $0x20] ss:$8 sps:$4 sm:$0xff]  }
 0x138   : > { %v2059_v12 = vld [vmem:[%s3074_s4 + $0x110] ss:$8 sps:$4 sm:$0xff]   ;;  %1181 = vmatpush1.bf16.msra.mxu0 %v2053_v8  ;;  %1131 = vmatprep.subr.bf16.mxu1 %v2054_v9  ;;  %v2062_v14 = vld [vmem:[%s3074_s4 + $0x124] ss:$8 sps:$4 sm:$0xff]   ;;  %v2065_v16 = vld [vmem:[%s3074_s4 + $0x120] ss:$8 sps:$4 sm:$0xff]  }
 0x139   : > { %1182 = vmatprep.subr.bf16.mxu0 %v2056_v10  ;;  %v2066_v17 = vld [vmem:[%s3074_s4 + $0x34] ss:$8 sps:$4 sm:$0xff]   ;;  %v2070_v19 = vld [vmem:[%s3074_s4 + $0x30] ss:$8 sps:$4 sm:$0xff]   ;;  %v2072_v21 = vld [vmem:[%s3074_s4 + $0x44] ss:$8 sps:$4 sm:$0xff]  }
 0x13a   : > { %v2068_v18 = vld [vmem:[%s3074_s4 + $0x134] ss:$8 sps:$4 sm:$0xff]   ;;  %v2071_v20 = vld [vmem:[%s3074_s4 + $0x130] ss:$8 sps:$4 sm:$0xff]   ;;  %v2074_v22 = vld [vmem:[%s3074_s4 + $0x144] ss:$8 sps:$4 sm:$0xff]  }
 0x13b   : > { %1132 = vmatpush1.bf16.msra.mxu1 %v2058_v11  ;;  %v2076_v23 = vld [vmem:[%s3074_s4 + $0x40] ss:$8 sps:$4 sm:$0xff]   ;;  %v2078_v25 = vld [vmem:[%s3074_s4 + $0x54] ss:$8 sps:$4 sm:$0xff]   ;;  %v2082_v27 = vld [vmem:[%s3074_s4 + $0x50] ss:$8 sps:$4 sm:$0xff]  }
 0x13c   : > { %1183 = vmatpush1.bf16.msra.mxu0 %v2059_v12  ;;  %1133 = vmatprep.subr.bf16.mxu1 %v2060_v13  ;;  %v2077_v24 = vld [vmem:[%s3074_s4 + $0x140] ss:$8 sps:$4 sm:$0xff]   ;;  %v2080_v26 = vld [vmem:[%s3074_s4 + $0x154] ss:$8 sps:$4 sm:$0xff]   ;;  %v2083_v28 = vld [vmem:[%s3074_s4 + $0x150] ss:$8 sps:$4 sm:$0xff]  }
 0x13d   : > { %1184 = vmatprep.subr.bf16.mxu0 %v2062_v14  ;;  %v2084_v29 = vld [vmem:[%s3074_s4 + $0x64] ss:$8 sps:$4 sm:$0xff]   ;;  %v2088_v31 = vld [vmem:[%s3074_s4 + $0x60] ss:$8 sps:$4 sm:$0xff]   ;;  %v2090_v33 = vld [vmem:[%s3074_s4 + $0x74] ss:$8 sps:$4 sm:$0xff]  }
 0x13e   : > { %v2086_v30 = vld [vmem:[%s3074_s4 + $0x164] ss:$8 sps:$4 sm:$0xff]   ;;  %v2089_v32 = vld [vmem:[%s3074_s4 + $0x160] ss:$8 sps:$4 sm:$0xff]   ;;  %v2092_v34 = vld [vmem:[%s3074_s4 + $0x174] ss:$8 sps:$4 sm:$0xff]  }
 0x13f   : > { %1134 = vmatpush1.bf16.msra.mxu1 %v2064_v15  ;;  %v2094_v35 = vld [vmem:[%s3074_s4 + $0x70] ss:$8 sps:$4 sm:$0xff]   ;;  %v2096_v37 = vld [vmem:[%s3074_s4 + $0x84] ss:$8 sps:$4 sm:$0xff]   ;;  %v2100_v39 = vld [vmem:[%s3074_s4 + $0x80] ss:$8 sps:$4 sm:$0xff]  }
 0x140   : > { %1185 = vmatpush1.bf16.msra.mxu0 %v2065_v16  ;;  %1135 = vmatprep.subr.bf16.mxu1 %v2066_v17  ;;  %v2095_v36 = vld [vmem:[%s3074_s4 + $0x170] ss:$8 sps:$4 sm:$0xff]   ;;  %v2098_v38 = vld [vmem:[%s3074_s4 + $0x184] ss:$8 sps:$4 sm:$0xff]   ;;  %v2101_v40 = vld [vmem:[%s3074_s4 + $0x180] ss:$8 sps:$4 sm:$0xff]  }
 0x141   : > { %1186 = vmatprep.subr.bf16.mxu0 %v2068_v18  ;;  %v2102_v41 = vld [vmem:[%s3074_s4 + $0x94] ss:$8 sps:$4 sm:$0xff]   ;;  %v2106_v43 = vld [vmem:[%s3074_s4 + $0x90] ss:$8 sps:$4 sm:$0xff]   ;;  %v2108_v45 = vld [vmem:[%s3074_s4 + $0xa4] ss:$8 sps:$4 sm:$0xff]  }
 0x142   : > { %v2104_v42 = vld [vmem:[%s3074_s4 + $0x194] ss:$8 sps:$4 sm:$0xff]   ;;  %v2107_v44 = vld [vmem:[%s3074_s4 + $0x190] ss:$8 sps:$4 sm:$0xff]   ;;  %v2110_v46 = vld [vmem:[%s3074_s4 + $0x1a4] ss:$8 sps:$4 sm:$0xff]  }
 0x143   : > { %1136 = vmatpush1.bf16.msra.mxu1 %v2070_v19  ;;  %v2112_v47 = vld [vmem:[%s3074_s4 + $0xa0] ss:$8 sps:$4 sm:$0xff]   ;;  %v2114_v49 = vld [vmem:[%s3074_s4 + $0xb4] ss:$8 sps:$4 sm:$0xff]   ;;  %v2118_v51 = vld [vmem:[%s3074_s4 + $0xb0] ss:$8 sps:$4 sm:$0xff]  }
 0x144   : > { %1187 = vmatpush1.bf16.msra.mxu0 %v2071_v20  ;;  %1137 = vmatprep.subr.bf16.mxu1 %v2072_v21  ;;  %v2113_v48 = vld [vmem:[%s3074_s4 + $0x1a0] ss:$8 sps:$4 sm:$0xff]   ;;  %v2116_v50 = vld [vmem:[%s3074_s4 + $0x1b4] ss:$8 sps:$4 sm:$0xff]   ;;  %v2119_v52 = vld [vmem:[%s3074_s4 + $0x1b0] ss:$8 sps:$4 sm:$0xff]  }
 0x145   : > { %1188 = vmatprep.subr.bf16.mxu0 %v2074_v22  ;;  %v2120_v53 = vld [vmem:[%s3074_s4 + $0xc4] ss:$8 sps:$4 sm:$0xff]   ;;  %v2124_v55 = vld [vmem:[%s3074_s4 + $0xc0] ss:$8 sps:$4 sm:$0xff]   ;;  %v2126_v57 = vld [vmem:[%s3074_s4 + $0xd4] ss:$8 sps:$4 sm:$0xff]  }
 0x146   : > { %v2122_v54 = vld [vmem:[%s3074_s4 + $0x1c4] ss:$8 sps:$4 sm:$0xff]   ;;  %v2125_v56 = vld [vmem:[%s3074_s4 + $0x1c0] ss:$8 sps:$4 sm:$0xff]   ;;  %v2128_v58 = vld [vmem:[%s3074_s4 + $0x1d4] ss:$8 sps:$4 sm:$0xff]  }
 0x147   : > { %1138 = vmatpush1.bf16.msra.mxu1 %v2076_v23  ;;  %v2130_v59 = vld [vmem:[%s3074_s4 + $0xd0] ss:$8 sps:$4 sm:$0xff]   ;;  %v2132_v61 = vld [vmem:[%s3074_s4 + $0xe4] ss:$8 sps:$4 sm:$0xff]   ;;  %v2136_v63 = vld [vmem:[%s3074_s4 + $0xe0] ss:$8 sps:$4 sm:$0xff]  }
 0x148   : > { %1189 = vmatpush1.bf16.msra.mxu0 %v2077_v24  ;;  %1139 = vmatprep.subr.bf16.mxu1 %v2078_v25  ;;  %v2131_v60 = vld [vmem:[%s3074_s4 + $0x1d0] ss:$8 sps:$4 sm:$0xff]   ;;  %v2134_v62 = vld [vmem:[%s3074_s4 + $0x1e4] ss:$8 sps:$4 sm:$0xff]   ;;  %v2137_v0 = vld [vmem:[%s3074_s4 + $0x1e0] ss:$8 sps:$4 sm:$0xff]  }
 0x149   : > { %1190 = vmatprep.subr.bf16.mxu0 %v2080_v26  ;;  %v2138_v1 = vld [vmem:[%s3074_s4 + $0xf4] ss:$8 sps:$4 sm:$0xff]   ;;  %v2142_v3 = vld [vmem:[%s3074_s4 + $0xf0] ss:$8 sps:$4 sm:$0xff]  }
 0x14a   : > { %v2140_v2 = vld [vmem:[%s3074_s4 + $0x1f4] ss:$8 sps:$4 sm:$0xff]   ;;  %v2143_v4 = vld [vmem:[%s3074_s4 + $0x1f0] ss:$8 sps:$4 sm:$0xff]  }
 0x14b   : > { %1140 = vmatpush1.bf16.msra.mxu1 %v2082_v27  ;;  %v493_v5 = vld [vmem:[%s3042_s15 + $0x8] sm:$0xf]  ;;  %v1721_v7 = vld [vmem:[#allocation11] ss:$0 sm:$0xff]  ;;  %v494_v9 = vld [vmem:[%s3042_s15 + $0xc] sm:$0x1] }
 0x14c   : > { %1191 = vmatpush1.bf16.msra.mxu0 %v2083_v28  ;;  %1141 = vmatprep.subr.bf16.mxu1 %v2084_v29  ;;  %v497_v6 = vunpack.c.l.bf16 %v493_v5  ;;  %v1829_v8 = vld [vmem:[%s3042_s15] sm:$0xff]   ;;  %v498_v12 = vunpack.c.l.bf16 %v494_v9 }
 0x14d   : > { %1192 = vmatprep.subr.bf16.mxu0 %v2086_v30  ;;  %v1830_v11 = vunpack.c.l.bf16 %v1829_v8  ;;  %v1831_v13 = vunpack.c.h.bf16 %v1829_v8  ;;  %v1722_v14 = vld [vmem:[#allocation13] ss:$0 sm:$0xff] }
 0x14e   : > { %v508_v10 = vmul.f32 %v1721_v7, %v497_v6  ;;  %v509_v17 = vmul.f32 %v1721_v7, %v498_v12 }
 0x14f   : > { %1142 = vmatpush1.bf16.msra.mxu1 %v2088_v31  ;;  %v506_v16 = vmul.f32 %v1830_v11, %v1721_v7  ;;  %v507_v18 = vmul.f32 %v1831_v13, %v1721_v7 }
 0x150   : > { %1193 = vmatpush1.bf16.msra.mxu0 %v2089_v32  ;;  %1143 = vmatprep.subr.bf16.mxu1 %v2090_v33  ;;  %v519_v15 = vadd.f32 %v1722_v14, %v508_v10  ;;  %v520_v21 = vadd.f32 %v1722_v14, %v509_v17 }
 0x151   : > { %1194 = vmatprep.subr.bf16.mxu0 %v2092_v34  ;;  %v517_v20 = vadd.f32 %v1722_v14, %v506_v16  ;;  %v518_v22 = vadd.f32 %v1722_v14, %v507_v18 }
 0x152   : > { %v527_v19 = vmul.f32 0.2, %v519_v15  ;;  %vm523_vm0 = vcmp.ge.f32.partialorder %v519_v15, 0.0  ;;  %v528_v25 = vmul.f32 0.2, %v520_v21  ;;  %vm524_vm2 = vcmp.ge.f32.partialorder %v520_v21, 0.0 }
 0x153   : > { %1144 = vmatpush1.bf16.msra.mxu1 %v2094_v35  ;;  %v525_v24 = vmul.f32 0.2, %v517_v20  ;;  %v526_v26 = vmul.f32 0.2, %v518_v22  ;;  %vm521_vm1 = vcmp.ge.f32.partialorder %v517_v20, 0.0  ;;  %vm522_vm3 = vcmp.ge.f32.partialorder %v518_v22, 0.0 }
 0x154   : > { %1195 = vmatpush1.bf16.msra.mxu0 %v2095_v36  ;;  %1145 = vmatprep.subr.bf16.mxu1 %v2096_v37  ;;  %v531_v23 = vsel %vm523_vm0, %v519_v15, %v527_v19  ;;  %v532_v31 = vsel %vm524_vm2, %v520_v21, %v528_v25 }
 0x155   : > { %1196 = vmatprep.subr.bf16.mxu0 %v2098_v38  ;;  %v529_v30 = vsel %vm521_vm1, %v517_v20, %v525_v24  ;;  %v530_v32 = vsel %vm522_vm3, %v518_v22, %v526_v26 }
 0x157   : > { %1146 = vmatpush1.bf16.msra.mxu1 %v2100_v39 }
 0x158   : > { %1197 = vmatpush1.bf16.msra.mxu0 %v2101_v40  ;;  %1147 = vmatprep.subr.bf16.mxu1 %v2102_v41 }
 0x159   : > { %1198 = vmatprep.subr.bf16.mxu0 %v2104_v42 }
 0x15b   : > { %1148 = vmatpush1.bf16.msra.mxu1 %v2106_v43 }
 0x15c   : > { %1199 = vmatpush1.bf16.msra.mxu0 %v2107_v44  ;;  %1149 = vmatprep.subr.bf16.mxu1 %v2108_v45 }
 0x15d   : > { %1200 = vmatprep.subr.bf16.mxu0 %v2110_v46 }
 0x15f   : > { %1150 = vmatpush1.bf16.msra.mxu1 %v2112_v47 }
 0x160   : > { %1201 = vmatpush1.bf16.msra.mxu0 %v2113_v48  ;;  %1151 = vmatprep.subr.bf16.mxu1 %v2114_v49 }
 0x161   : > { %1202 = vmatprep.subr.bf16.mxu0 %v2116_v50 }
 0x163   : > { %1152 = vmatpush1.bf16.msra.mxu1 %v2118_v51 }
 0x164   : > { %1203 = vmatpush1.bf16.msra.mxu0 %v2119_v52  ;;  %1153 = vmatprep.subr.bf16.mxu1 %v2120_v53 }
 0x165   : > { %1204 = vmatprep.subr.bf16.mxu0 %v2122_v54 }
 0x167   : > { %1154 = vmatpush1.bf16.msra.mxu1 %v2124_v55 }
 0x168   : > { %1205 = vmatpush1.bf16.msra.mxu0 %v2125_v56  ;;  %1155 = vmatprep.subr.bf16.mxu1 %v2126_v57 }
 0x169   : > { %1206 = vmatprep.subr.bf16.mxu0 %v2128_v58 }
 0x16b   : > { %1156 = vmatpush1.bf16.msra.mxu1 %v2130_v59 }
 0x16c   : > { %1207 = vmatpush1.bf16.msra.mxu0 %v2131_v60  ;;  %1157 = vmatprep.subr.bf16.mxu1 %v2132_v61 }
 0x16d   : > { %1208 = vmatprep.subr.bf16.mxu0 %v2134_v62 }
 0x16f   : > { %1158 = vmatpush1.bf16.msra.mxu1 %v2136_v63 }
 0x170   : > { %1209 = vmatpush1.bf16.msra.mxu0 %v2137_v0  ;;  %1159 = vmatprep.subr.bf16.mxu1 %v2138_v1 }
 0x171   : > { %1210 = vmatprep.subr.bf16.mxu0 %v2140_v2 }
 0x173   : > { %1160 = vmatpush1.bf16.msra.mxu1 %v2142_v3 }
 0x174   : > { %1211 = vmatpush1.bf16.msra.mxu0 %v2143_v4 }
 0x1ae   : > { %v550_v27 = vpop.permute.xlu1 %549  ;;  %v540_v28 = vpop.permute.xlu0 %539 }
 0x1af   : > { %v559_v29 = vmul.f32 %v550_v27, %v531_v23  ;;  %v557_v36 = vmul.f32 %v540_v28, %v529_v30 }
 0x1b1   : > { %v1820_v33 = vpack.c.bf16 %v559_v29, %v559_v29 }
 0x1b2   : > { %v555_v34 = vpop.permute.xlu1 %554  ;;  %v545_v35 = vpop.permute.xlu0 %544 }
 0x1b3   : > { %579 = vst [vmem:[#allocation2 + $0x8] sm:$0xf] %v1820_v33  ;;  %v560_v37 = vmul.f32 %v555_v34, %v532_v31  ;;  %v558_v38 = vmul.f32 %v545_v35, %v530_v32 }
 0x1b5   : > { %v1821_v39 = vpack.c.bf16 %v560_v37, %v560_v37  ;;  %v1835_v40 = vpack.c.bf16 %v558_v38, %v557_v36 }
 0x1b7   : > { %580 = vst [vmem:[#allocation2 + $0xc] sm:$0x1] %v1821_v39  ;;  %1836 = vst [vmem:[#allocation2] sm:$0xff] %v1835_v40  }
 0x1ba   : > { %v583_v41 = vld [vmem:[#allocation2 + $0x8] sm:$0x3] }
 0x1bb   : > { %v589_v42 = vld [vmem:[#allocation2 + $0x8] sm:$0x7]  ;;  %586 = vst [vmem:[#allocation3 + $0x20] sm:$0x3] %v583_v41 }
 0x1bc   : > { %v630_v43 = vld [vmem:[#allocation2 + $0x8] sm:$0xf]  ;;  %v613_v44 = vshll.u32 %v589_v42, 16  ;;  %v617_v45 = vshrl.u32 %v589_v42, 16 }
 0x1bd   : > { %v655_v46 = vshrl.u32 %v630_v43, 16  ;;  %v658_v47 = vshll.u32 %v630_v43, 16  ;;  %v3143_v48 = vld [vmem:[#allocation2 + $0x8] sm:$0xf] }
 0x1be   : > { %v691_v49 = vrot.slane %v3143_v48, 7  ;;  %v3146_v50 = vrot.slane %v613_v44, 5  ;;  %v619_v51 = vrot.slane %v617_v45, 4  ;;  %v631_v55 = vld [vmem:[#allocation2 + $0xc] sm:$0x1] }
 0x1bf   : > { %v657_v52 = vrot.slane %v655_v46, 6  ;;  %v660_v53 = vrot.slane %v658_v47, 7  ;;  %v678_v56 = vld [vmem:[#allocation2 + $0xc] sm:$0x1]  ;;  %v665_v58 = vshll.u32 %v631_v55, 16 }
 0x1c0   : > { %v693_v54 = vrot.slane %v691_v49, 4  ;;  %v620_v57 = vor.u32 %v619_v51, %v3146_v50  ;;  %v694_v59 = vrot.slane %v678_v56, 7  ;;  %v587_v60 = vld [vmem:[#allocation2] sm:$0xf]  ;;  %v588_v61 = vld [vmem:[#allocation2 + $0x4] sm:$0xf] }
 0x1c1   : > { %v661_v62 = vor.u32 %v660_v53, %v657_v52  ;;  %v594_v63 = vshrl.u32 %v587_v60, 16  ;;  %v597_v0 = vshll.u32 %v587_v60, 16  ;;  %v603_v1 = vshll.u32 %v588_v61, 16  ;;  %v628_v3 = vld [vmem:[#allocation2] sm:$0xc] }
 0x1c2   : > { %v607_v2 = vshrl.u32 %v588_v61, 16  ;;  %v667_v4 = vrot.slane %v665_v58, 7  ;;  %v629_v5 = vld [vmem:[#allocation2 + $0x4] sm:$0xf]  ;;  %v636_v6 = vshrl.u32 %v628_v3, 16  ;;  %v639_v7 = vshll.u32 %v628_v3, 16 }
 0x1c3   : > { %v663_v8 = vrot.slane %v661_v62, 4  ;;  %v596_v9 = vrot.slane %v594_v63, 4  ;;  %v599_v10 = vrot.slane %v597_v0, 5  ;;  %v605_v11 = vrot.slane %v603_v1, 5  ;;  %v675_v13 = vld [vmem:[#allocation2] sm:$0x8] }
 0x1c4   : > { %v609_v12 = vrot.slane %v607_v2, 4  ;;  %v638_v14 = vrot.slane %v636_v6, 6  ;;  %v641_v15 = vrot.slane %v639_v7, 7  ;;  %v645_v16 = vshrl.u32 %v629_v5, 16  ;;  %v676_v18 = vld [vmem:[#allocation2 + $0x4] sm:$0xf] }
 0x1c5   : > { %v648_v17 = vshll.u32 %v629_v5, 16  ;;  %v1727_v20 = vrot.slane %v675_v13, 11  ;;  %v688_v21 = vrot.slane %v676_v18, 7  ;;  %v581_v22 = vld [vmem:[#allocation2] sm:$0xf]  ;;  %v600_v24 = vor.u32 %v599_v10, %v596_v9 }
 0x1c6   : > { %v582_v23 = vld [vmem:[#allocation2 + $0x4] sm:$0xf]  ;;  %v610_v25 = vor.u32 %v609_v12, %v605_v11  ;;  %v647_v27 = vrot.slane %v645_v16, 6  ;;  %584 = vst [vmem:[#allocation3] sm:$0xf] %v581_v22  ;;  %v642_v30 = vor.u32 %v641_v15, %v638_v14  ;;  %v621_v31 = vrot.slane %v620_v57, 4 }
 0x1c7   : > { %v650_v28 = vrot.slane %v648_v17, 7  ;;  %585 = vst [vmem:[#allocation3 + $0x10] sm:$0xf] %v582_v23  ;;  %v601_v32 = vrot.slane %v600_v24, 4  ;;  %v689_v34 = vsel %vm3153_vm10, %v1727_v20, %v688_v21  ;;  %v690_v35 = vrot.slane %v688_v21, 4 }
 0x1c8   : > { %v611_v33 = vrot.slane %v610_v25, 4  ;;  %v643_v36 = vrot.slane %v642_v30, 4  ;;  %699 = vst [vmem:[#allocation3 + $0xc] sm:$0xf] %v689_v34  ;;  %627 = vst [vmem:[#allocation3 + $0x24] sm:$0x3] %v621_v31  ;;  %v668_v38 = vsel %vm3159_vm11, %v663_v8, %v667_v4  ;;  %v695_v39 = vsel %vm3153_vm10, %v693_v54, %v694_v59 }
 0x1c9   : > { %v651_v37 = vor.u32 %v650_v28, %v647_v27  ;;  %v606_v40 = vsel %vm3165_vm12, %v601_v32, %v605_v11  ;;  %v692_v42 = vsel %vm3153_vm10, %v690_v35, %v691_v49  ;;  %674 = vst [vmem:[#allocation3 + $0x28] sm:$0x3] %v668_v38  ;;  %701 = vst [vmem:[#allocation3 + $0x2c] sm:$0x3] %v695_v39  ;;  %v1237_v14 = vlaneseq (!%p1802_p5)  ;;  %v1235_v16 = vld [vmem:[#allocation10] sm:$0x3] (!%p1802_p5) }
 0x1ca   : > { %v616_v41 = vsel %vm3165_vm12, %v611_v33, %v3146_v50  ;;  %625 = vst [vmem:[#allocation3 + $0x4] sm:$0xf] %v606_v40  ;;  %700 = vst [vmem:[#allocation3 + $0x1c] sm:$0xf] %v692_v42 }
 0x1cb   : > { %626 = vst [vmem:[#allocation3 + $0x14] sm:$0xf] %v616_v41  ;;  %v652_v43 = vsel %vm3159_vm11, %v643_v36, %v651_v37  ;;  %v653_v44 = vrot.slane %v651_v37, 4  ;;  %v1238_v15 = vshrl.u32 (!%p1802_p5), %v1237_v14, 7 }
 0x1cc   : > { %672 = vst [vmem:[#allocation3 + $0x8] sm:$0xf] %v652_v43 }
 0x1cd   : > { %v662_v45 = vsel %vm3159_vm11, %v653_v44, %v661_v62  ;;  %v1239_v17 = vsub.s32 (!%p1802_p5), 0, %v1238_v15  ;;  %v1243_v18 = vsub.s32 (!%p1802_p5), 1, %v1238_v15 }
 0x1ce   : > { %673 = vst [vmem:[#allocation3 + $0x18] sm:$0xf] %v662_v45  ;;  %v2144_v47 = vld [vmem:[#allocation3] ss:$16 sps:$4 sm:$0xff]  }
 0x1cf   : > { %v773_v46 = vld [vmem:[#allocation3 + $0x20] sm:$0x33]  ;;  %v1240_v19 = vrot.slane (!%p1802_p5), %v1235_v16, %v1239_v17  ;;  %v1244_v20 = vrot.slane (!%p1802_p5), %v1235_v16, %v1243_v18 }
 0x1d0   : > { %v774_v50 = vld [vmem:[#allocation3 + $0x28] sm:$0x33]  ;;  %v1735_v52 = vcombine.high %v773_v46, %v773_v46  ;;  %v1734_v54 = vcombine.low %v773_v46, %v773_v46 }
 0x1d1   : > { %v2149_v51 = vld [vmem:[#allocation3 + $0xc] ss:$16 sps:$4 sm:$0xff]   ;;  %v1737_v53 = vcombine.high %v774_v50, %v774_v50  ;;  %v1736_v55 = vcombine.low %v774_v50, %v774_v50 }
 0x1d2   : > { %v2146_v48 = vld [vmem:[#allocation3 + $0x4] ss:$16 sps:$4 sm:$0xff]   ;;  %1212 = vmatprep.mubr.bf16.mxu0 %v2149_v51 }
 0x1d3   : > { %1161 = vmatprep.mubr.bf16.mxu1 %v2146_v48 }
 0x1d4   : > { %1162 = vmatmul.mubr.bf16.vlgmr.msra.gmra.mrb[0].mxu1 %v2144_v47 }
 0x1d5   : > { %v2147_v49 = vld [vmem:[#allocation3 + $0x8] ss:$16 sps:$4 sm:$0xff]   ;;  %1171 = vmatprep.mubr.bf16.mxu1 %v1735_v52 }
 0x1d6   : > { %1213 = vmatmul.mubr.bf16.vlgmr.msra.gmra.mrb[0].mxu0 %v2147_v49 }
 0x1d7   : > { %1222 = vmatprep.mubr.bf16.mxu0 %v1737_v53 }
 0x1dc   : > { %1172 = vmatmul.mubr.bf16.gmra.mrb[4].mxu1 %v1734_v54 }
 0x1de   : > { %1223 = vmatmul.mubr.bf16.gmra.mrb[4].mxu0 %v1736_v55 }
 0x2a7   : > { %v1163_v56 = vpop.f32.mrb[0].mxu1 }
 0x2a8   : > { %v1165_v57 = vpop.f32.mrb[1].mxu1 }
 0x2a9   : > { %v1214_v58 = vpop.f32.mrb[0].mxu0  ;;  %v1167_v59 = vpop.f32.mrb[2].mxu1 }
 0x2aa   : > { %v1215_v60 = vadd.f32 %v1214_v58, %v1163_v56  ;;  %v1216_v61 = vpop.f32.mrb[1].mxu0  ;;  %v1169_v62 = vpop.f32.mrb[3].mxu1 }
 0x2ab   : > { %v1217_v63 = vadd.f32 %v1216_v61, %v1165_v57  ;;  %v1218_v0 = vpop.f32.mrb[2].mxu0 }
 0x2ac   : > { %v1219_v1 = vadd.f32 %v1218_v0, %v1167_v59  ;;  %v1220_v2 = vpop.f32.mrb[3].mxu0  ;;  %v1247_v21 = vadd.f32 (!%p1802_p5), %v1240_v19, %v1215_v60 }
 0x2ad   : > { %v1221_v3 = vadd.f32 %v1220_v2, %v1169_v62  ;;  %v1248_v22 = vadd.f32 (!%p1802_p5), %v1244_v20, %v1217_v63 }
 0x2ae   : > { %1234 = sbr.rel (%p1802_p5) target bundleno = 696 (0x2b8), region = 80  ;;  %v1249_v23 = vadd.f32 (!%p1802_p5), %v1240_v19, %v1219_v1  ;;  %1253 = vst [vmem:[#allocation4] sm:$0xff] (!%p1802_p5), %v1247_v21 }
 0x2af   : > { %v1173_v4 = vpop.f32.mrb[4].mxu1  ;;  %v1250_v24 = vadd.f32 (!%p1802_p5), %v1244_v20, %v1221_v3  ;;  %1254 = vst [vmem:[#allocation4 + $0x8] sm:$0xff] (!%p1802_p5), %v1248_v22 }
 0x2b0   : > { %v1175_v5 = vpop.f32.mrb[5].mxu1  ;;  %1255 = vst [vmem:[#allocation4 + $0x10] sm:$0xff] (!%p1802_p5), %v1249_v23 }
 0x2b1   : > { %v1224_v6 = vpop.f32.mrb[4].mxu0  ;;  %v1177_v7 = vpop.f32.mrb[6].mxu1  ;;  %1256 = vst [vmem:[#allocation4 + $0x18] sm:$0xff] (!%p1802_p5), %v1250_v24 }
 0x2b2   : > { %v1225_v8 = vadd.f32 %v1224_v6, %v1173_v4  ;;  %v1226_v9 = vpop.f32.mrb[5].mxu0  ;;  %v1178_v10 = vpop.f32.mrb[7].mxu1 }
 0x2b3   : > { %v1227_v11 = vadd.f32 %v1226_v9, %v1175_v5  ;;  %v1228_v12 = vpop.f32.mrb[6].mxu0 }
 0x2b4   : > { %v1229_v13 = vpop.f32.mrb[7].mxu0  ;;  %v1251_v25 = vadd.f32 (!%p1802_p5), %v1240_v19, %v1225_v8 }
 0x2b5   : > { %v1252_v26 = vadd.f32 %v1244_v20, %v1227_v11 }
 0x2b6   : > { %1257 = vst [vmem:[#allocation4 + $0x20] sm:$0xf] %v1251_v25 }
 0x2b7   : > { %1258 = vst [vmem:[#allocation4 + $0x28] sm:$0xf] %v1252_v26 }
 0x2b8 PF: > { %s3452_s25 = sld [smem:[#allocation31_spill]] }
 0x2be   : > { %p1803_p10 = scmp.eq.s32.totalorder %s3452_s25, 0 }
 0x2bf   : > { %v1263_v27 = vld [vmem:[#allocation4] sm:$0xff] (!%p1803_p10)  ;;  %v1264_v28 = vld [vmem:[#allocation4 + $0x8] sm:$0xff] (!%p1803_p10)  ;;  %v1265_v29 = vld [vmem:[#allocation4 + $0x10] sm:$0xff] (!%p1803_p10) }
 0x2c0   : > { %1262 = sbr.rel (%p1803_p10) target bundleno = 711 (0x2c7), region = 84  ;;  %v1269_v30 = vadd.f32 (!%p1803_p10), %v1263_v27, %v1215_v60  ;;  %v1270_v31 = vadd.f32 (!%p1803_p10), %v1264_v28, %v1217_v63  ;;  %v1271_v32 = vadd.f32 (!%p1803_p10), %v1265_v29, %v1219_v1  ;;  %v1266_v33 = vld [vmem:[#allocation4 + $0x18] sm:$0xff] (!%p1803_p10)  ;;  %v1267_v34 = vld [vmem:[#allocation4 + $0x20] sm:$0xf] (!%p1803_p10)  ;;  %v1268_v35 = vld [vmem:[#allocation4 + $0x28] sm:$0xf] (!%p1803_p10) }
 0x2c1   : > { %v1272_v36 = vadd.f32 (!%p1803_p10), %v1266_v33, %v1221_v3  ;;  %v1273_v37 = vadd.f32 (!%p1803_p10), %v1267_v34, %v1225_v8  ;;  %v1274_v38 = vadd.f32 (!%p1803_p10), %v1268_v35, %v1227_v11 }
 0x2c2   : > { %1275 = vst [vmem:[#allocation4] sm:$0xff] (!%p1803_p10), %v1269_v30  ;;  %1276 = vst [vmem:[#allocation4 + $0x8] sm:$0xff] (!%p1803_p10), %v1270_v31 }
 0x2c3   : > { %1277 = vst [vmem:[#allocation4 + $0x10] sm:$0xff] (!%p1803_p10), %v1271_v32  ;;  %1278 = vst [vmem:[#allocation4 + $0x18] sm:$0xff] (!%p1803_p10), %v1272_v36 }
 0x2c4   : > { %1279 = vst [vmem:[#allocation4 + $0x20] sm:$0xf] (!%p1803_p10), %v1273_v37  ;;  %1280 = vst [vmem:[#allocation4 + $0x28] sm:$0xf] (!%p1803_p10), %v1274_v38 }
 0x2c7 PF: > { %s3453_s15 = sld [smem:[#allocation31_spill]] }
 0x2cd   : > { %p1804_p8 = scmp.ne.s32.totalorder %s3453_s15, 3 }
 0x2ce   : > { %v1314_v39 = vld [vmem:[#allocation16] sm:$0xff] (!%p1804_p8)  ;;  %v1316_v40 = vld [vmem:[#allocation16 + $0x10] sm:$0xf] (!%p1804_p8)  ;;  %v2592_v41 = vmov (!%p1804_p8), 0   ;;  %v1315_v45 = vld [vmem:[#allocation16 + $0x8] sm:$0xff] (!%p1804_p8)  ;;  %vm1339_vm13 = vcmask (!%p1804_p8), 1043456   ;;  %v1363_v19 = vlaneseq (!%p1804_p8) }
 0x2cf   : > { %1284 = sbr.rel (%p1804_p8) target bundleno = 879 (0x36f), region = 88  ;;  %2154 = vset.pattern.permute.xlu0 (!%p1804_p8), %v2592_v41  ;;  %2155 = vset.pattern.permute.xlu1 (!%p1804_p8), %v2592_v41  ;;  %v1285_v42 = vld [vmem:[#allocation4] sm:$0xff] (!%p1804_p8)  ;;  %v1286_v43 = vld [vmem:[#allocation4 + $0x8] sm:$0xff] (!%p1804_p8)  ;;  %v1287_v46 = vld [vmem:[#allocation4 + $0x10] sm:$0xff] (!%p1804_p8)  ;;  %v2593_v17 = vmov (!%p1804_p8), 1966171168  }
 0x2d0   : > { %1319 = vperm.xlu0 (!%p1804_p8), %2154, %v1314_v39   ;;  %1329 = vperm.xlu1 (!%p1804_p8), %2155, %v1316_v40   ;;  %v1823_v44 = vpack.c.bf16 (!%p1804_p8), %v1286_v43, %v1285_v42  ;;  %v1288_v47 = vld [vmem:[#allocation4 + $0x18] sm:$0xff] (!%p1804_p8)  ;;  %v1289_v50 = vld [vmem:[#allocation4 + $0x20] sm:$0xf] (!%p1804_p8)  ;;  %v1290_v49 = vld [vmem:[#allocation4 + $0x28] sm:$0xf] (!%p1804_p8)  ;;  %v1361_v18 = vunpack.c.l.s4 (!%p1804_p8), %v2593_v17  ;;  %v1364_v29 = vshrl.u32 (!%p1804_p8), %v1363_v19, 7 }
 0x2d1   : > { %v1824_v48 = vpack.c.bf16 (!%p1804_p8), %v1288_v47, %v1287_v46  ;;  %v1825_v51 = vpack.c.bf16 (!%p1804_p8), %v1290_v49, %v1289_v50  ;;  %vm1377_vm14 = vcmp.lt.s32.totalorder (!%p1804_p8), %v1363_v19, 256 }
 0x2d2   : > { %1311 = vst [vmem:[%s3190_s27] sm:$0xff] (!%p1804_p8), %v1823_v44  ;;  %v1362_v28 = vunpack.c.0.s8 (!%p1804_p8), %v1361_v18 }
 0x2d3   : > { %1312 = vst [vmem:[%s3190_s27 + $0x8] sm:$0xff] (!%p1804_p8), %v1824_v48  ;;  %1313 = vst [vmem:[%s3190_s27 + $0x10] sm:$0x33] (!%p1804_p8), %v1825_v51 }
 0x2d4   : > { %1324 = vperm.xlu0 (!%p1804_p8), %2154, %v1315_v45   ;;  %v1365_v38 = vsub.s32 (!%p1804_p8), %v1362_v28, %v1364_v29 }
 0x34f   : > { %v1320_v52 = vpop.permute.xlu0 %1319  ;;  %v1330_v53 = vpop.permute.xlu1 %1329 }
 0x350   : > { %v1336_v54 = vmul.f32 %v1330_v53, %v1289_v50  ;;  %v1337_v55 = vmul.f32 %v1330_v53, %v1290_v49  ;;  %v1332_v56 = vmul.f32 %v1320_v52, %v1285_v42  ;;  %v1333_v57 = vmul.f32 %v1320_v52, %v1286_v43 }
 0x352   : > { %v1384_v59 = vmul.f32 %v1336_v54, %v1336_v54  ;;  %v1385_v60 = vmul.f32 %v1337_v55, %v1337_v55  ;;  %v1380_v63 = vmul.f32 %v1332_v56, %v1332_v56  ;;  %v1381_v0 = vmul.f32 %v1333_v57, %v1333_v57 }
 0x353   : > { %v1325_v58 = vpop.permute.xlu0 %1324  ;;  %v1340_v1 = vsel %vm1339_vm13, %v1336_v54, 0.0  ;;  %v1349_v2 = vsel %vm1339_vm13, %v1337_v55, 0.0 }
 0x354   : > { %v1334_v61 = vmul.f32 %v1325_v58, %v1287_v46  ;;  %v1335_v62 = vmul.f32 %v1325_v58, %v1288_v47  ;;  %v1387_v7 = vsel %vm1339_vm13, %v1384_v59, 0.0  ;;  %v1396_v8 = vsel %vm1339_vm13, %v1385_v60, 0.0 }
 0x356   : > { %v1338_v3 = vadd.f32 %v1334_v61, %v1332_v56  ;;  %v1348_v4 = vadd.f32 %v1335_v62, %v1333_v57  ;;  %v1382_v5 = vmul.f32 %v1334_v61, %v1334_v61  ;;  %v1383_v6 = vmul.f32 %v1335_v62, %v1335_v62 }
 0x358   : > { %v1386_v9 = vadd.f32 %v1382_v5, %v1380_v63  ;;  %v1395_v10 = vadd.f32 %v1383_v6, %v1381_v0  ;;  %v1341_v11 = vadd.f32 %v1340_v1, %v1338_v3  ;;  %v1350_v12 = vadd.f32 %v1349_v2, %v1348_v4 }
 0x35a   : > { %v1342_v13 = vrot.slane %v1341_v11, 4  ;;  %v1351_v14 = vrot.slane %v1350_v12, 4  ;;  %v1388_v15 = vadd.f32 %v1387_v7, %v1386_v9  ;;  %v1397_v16 = vadd.f32 %v1396_v8, %v1395_v10 }
 0x35c   : > { %v1343_v20 = vadd.f32 %v1342_v13, %v1341_v11  ;;  %v1352_v21 = vadd.f32 %v1351_v14, %v1350_v12  ;;  %v1389_v22 = vrot.slane %v1388_v15, 4  ;;  %v1398_v23 = vrot.slane %v1397_v16, 4 }
 0x35e   : > { %v1344_v24 = vrot.slane %v1343_v20, 2  ;;  %v1353_v25 = vrot.slane %v1352_v21, 2  ;;  %v1390_v26 = vadd.f32 %v1389_v22, %v1388_v15  ;;  %v1399_v27 = vadd.f32 %v1398_v23, %v1397_v16 }
 0x360   : > { %v1345_v30 = vadd.f32 %v1344_v24, %v1343_v20  ;;  %v1354_v31 = vadd.f32 %v1353_v25, %v1352_v21  ;;  %v1391_v32 = vrot.slane %v1390_v26, 2  ;;  %v1400_v33 = vrot.slane %v1399_v27, 2 }
 0x362   : > { %v1346_v34 = vrot.slane %v1345_v30, 1  ;;  %v1355_v35 = vrot.slane %v1354_v31, 1  ;;  %v1392_v36 = vadd.f32 %v1391_v32, %v1390_v26  ;;  %v1401_v37 = vadd.f32 %v1400_v33, %v1399_v27 }
 0x364   : > { %v1347_v39 = vadd.f32 %v1346_v34, %v1345_v30  ;;  %v1356_v40 = vadd.f32 %v1355_v35, %v1354_v31  ;;  %v1393_v41 = vrot.slane %v1392_v36, 1  ;;  %v1402_v42 = vrot.slane %v1401_v37, 1 }
 0x366   : > { %v1359_v43 = vcombine.low %v1347_v39, %v1356_v40  ;;  %v1394_v44 = vadd.f32 %v1393_v41, %v1392_v36  ;;  %v1403_v45 = vadd.f32 %v1402_v42, %v1401_v37 }
 0x368   : > { %v1366_v46 = vrot.slane %v1359_v43, %v1365_v38  ;;  %v1406_v47 = vcombine.low %v1394_v44, %v1403_v45 }
 0x36a   : > { %v1373_v48 = vrot.slane %v1366_v46, %v1365_v38  ;;  %v1413_v50 = vrot.slane %v1406_v47, %v1365_v38 }
 0x36c   : > { %1379 = vst.msk [vmem:[%s3194_s9] sm:$0x3] %vm1377_vm14, %v1373_v48  ;;  %v1420_v49 = vrot.slane %v1413_v50, %v1365_v38 }
 0x36e   : > { %1422 = vst.msk [vmem:[%s3198_s19] sm:$0x3] %vm1377_vm14, %v1420_v49 }
 0x36f PF: > { %s3454_s29 = sld [smem:[#allocation32_spill]]  ;;  %s3455_s13 = sld [smem:[#allocation45_spill]] }
 0x370   : > { %s1464_s8 = sshll.u32 %s3194_s9, 4  ;;  %s3219_s21 = scalar_lea.sflag [#allocation19], %s433_s1  ;;  %s1465_s8 = int_to_ptr.vmem [resolvable:$true] %s1464_s8 }
 0x371   : > { %s2356_s4 = scalar_lea.vmem %s1465_s8, 32  ;;  %p3457_p4 = scmp.ne.s32.totalorder %s3419_s7, 0 }
 0x372   : > { %p2357_p6 = scmp.ne.s32.totalorder %s1465_s8, %s2356_s4  ;;  %s2594_s25 = smov [#allocation18]  }
 0x373   : > { %s2360_s15 = sshll.u32 %s2594_s25, 4  ;;  %s2361_s15 = int_to_ptr.vmem [resolvable:$false] %s2360_s15 }
 0x374   : > { %p2358_p12 = pnand %p2357_p6, %p3457_p4  ;;  %s2362_s6 = scalar_lea.vmem %s2361_s15, 64 }
 0x375   : > { %s1826_s18 = sshll.u32 %s3454_s29, 5  ;;  %s3456_s28 = smov %s3455_s13 }
 0x376   : > { %s3214_s5 = scalar_lea.hbm %s3455_s13, %s1826_s18  ;;  %p2359_p1 = pneg %p2358_p12 }
 0x377   : > { %p2363_p13 = scmp.lt.s32.totalorder %s1465_s8, %s2361_s15  ;;  %p2364_p9 = scmp.lt.s32.totalorder %s2362_s6, %s2356_s4 }
 0x379   : > { %p2365_p0 = por %p2364_p9, %p2363_p13 }
 0x37b   : > { %p2366_p3 = pnand %p2365_p0, %p2359_p1 }
 0x37d   : > { %2369 = shalt.err (!%p2366_p3)
}
 0x37e   : > { %s2370_s23 = scalar_lea.hbm %s3214_s5, 32  ;;  %s2374_s26 = scalar_lea.hbm %s3456_s28, 64 }
 0x37f   : > { %p2371_p7 = scmp.ne.s32.totalorder %s3214_s5, %s2370_s23  ;;  %p2375_p5 = scmp.lt.u32.totalorder %s3214_s5, %s3456_s28 }
 0x380   : > { %p2376_p10 = scmp.lt.u32.totalorder %s2374_s26, %s2370_s23  ;;  %p2378_p6 = scmp.lt.u32.totalorder %s2370_s23, %s3214_s5 }
 0x381   : > { %p2372_p2 = pnand %p2371_p7, %p3457_p4 }
 0x382   : > { %p2377_p8 = por %p2376_p10, %p2375_p5 }
 0x383   : > { %p2373_p11 = pneg %p2372_p2 }
 0x384   : > { %p2379_p12 = por %p2378_p6, %p2377_p8 }
 0x386   : > { %p2380_p1 = pnand %p2379_p12, %p2373_p11 }
 0x388   : > { %2383 = shalt.err (!%p2380_p1)
}
 0x389   : > { %1870 = dma.vmem_to_hbm [thread:$0]  (%p3457_p4), %s1465_s8, 32, %s3214_s5, %s3219_s21  }
 0x38a   : > { %s1844_s6 = smul.u32 384, %s3454_s29  ;;  %s1447_s4 = sshll.u32 %s3190_s27, 4  ;;  %s3241_s4 = int_to_ptr.vmem [resolvable:$true] %s1447_s4 }
 0x38b   : > { %s3458_s1 = sld [smem:[#allocation44_spill]]  ;;  %s1424_s9 = scalar_lea.sflag [#allocation7], %s3069_s2 }
 0x38c   : > { %s2384_s26 = scalar_lea.vmem %s3241_s4, 384  ;;  %s2595_s3 = smov [#allocation17]  }
 0x38d   : > { %p2385_p13 = scmp.ne.s32.totalorder %s3241_s4, %s2384_s26  ;;  %s2388_s5 = sshll.u32 %s2595_s3, 4  ;;  %s2389_s5 = int_to_ptr.vmem [resolvable:$false] %s2388_s5 }
 0x38e   : > { %s2390_s27 = scalar_lea.vmem %s2389_s5, 768  ;;  %p2391_p3 = scmp.lt.s32.totalorder %s3241_s4, %s2389_s5 }
 0x38f   : > { %p2386_p9 = pnand %p2385_p13, %p3457_p4  ;;  %p2392_p7 = scmp.lt.s32.totalorder %s2390_s27, %s2384_s26 }
 0x391   : > { %s3246_s23 = scalar_lea.hbm %s3458_s1, %s1844_s6  ;;  %p2387_p0 = pneg %p2386_p9 }
 0x392   : > { %p2393_p2 = por %p2392_p7, %p2391_p3 }
 0x394   : > { %p2394_p11 = pnand %p2393_p2, %p2387_p0 }
 0x396   : > { %2397 = shalt.err (!%p2394_p11)
}
 0x397   : > { %s2398_s8 = scalar_lea.hbm %s3246_s23, 384  ;;  %s2402_s25 = scalar_lea.hbm %s3458_s1, 768 }
 0x398   : > { %p2399_p5 = scmp.ne.s32.totalorder %s3246_s23, %s2398_s8  ;;  %p2403_p6 = scmp.lt.u32.totalorder %s3246_s23, %s3458_s1 }
 0x399   : > { %p2404_p12 = scmp.lt.u32.totalorder %s2402_s25, %s2398_s8  ;;  %p2406_p13 = scmp.lt.u32.totalorder %s2398_s8, %s3246_s23 }
 0x39a   : > { %p2400_p10 = pnand %p2399_p5, %p3457_p4 }
 0x39b   : > { %p2405_p1 = por %p2404_p12, %p2403_p6 }
 0x39c   : > { %p2401_p8 = pneg %p2400_p10 }
 0x39d   : > { %p2407_p9 = por %p2406_p13, %p2405_p1 }
 0x39f   : > { %p2408_p0 = pnand %p2407_p9, %p2401_p8 }
 0x3a1   : > { %2411 = shalt.err (!%p2408_p0)
}
 0x3a2   : > { %s2596_s26 = smov 128   ;;  %s2597_s5 = smov 8  }
 0x3a3   : > { %1869 = dma.vmem_to_hbm [thread:$0]  (%p3457_p4), %s3241_s4, 384, %s3246_s23, %s1424_s9, %s2596_s26, %s2596_s26, %s2597_s5  }
 0x3a4   : > { %s3459_s6 = sld [smem:[#allocation46_spill]]  ;;  %s1478_s25 = sshll.u32 %s3198_s19, 4  ;;  %s1479_s25 = int_to_ptr.vmem [resolvable:$true] %s1478_s25 }
 0x3a5   : > { %s2412_s15 = scalar_lea.vmem %s1479_s25, 32  ;;  %s2598_s3 = smov [#allocation20]  }
 0x3a6   : > { %p2413_p3 = scmp.ne.s32.totalorder %s1479_s25, %s2412_s15  ;;  %s2416_s1 = sshll.u32 %s2598_s3, 4  ;;  %s2417_s1 = int_to_ptr.vmem [resolvable:$false] %s2416_s1 }
 0x3a7   : > { %s2418_s28 = scalar_lea.vmem %s2417_s1, 64  ;;  %p2419_p11 = scmp.lt.s32.totalorder %s1479_s25, %s2417_s1 }
 0x3a8   : > { %p2414_p7 = pnand %p2413_p3, %p3457_p4  ;;  %p2420_p5 = scmp.lt.s32.totalorder %s2418_s28, %s2412_s15 }
 0x3aa   : > { %s3277_s8 = scalar_lea.hbm %s3459_s6, %s1826_s18  ;;  %p2415_p2 = pneg %p2414_p7 }
 0x3ab   : > { %p2421_p10 = por %p2420_p5, %p2419_p11 }
 0x3ad   : > { %p2422_p8 = pnand %p2421_p10, %p2415_p2 }
 0x3af   : > { %2425 = shalt.err (!%p2422_p8)
}
 0x3b0   : > { %s2426_s2 = scalar_lea.hbm %s3277_s8, 32  ;;  %s2430_s18 = scalar_lea.hbm %s3459_s6, 64 }
 0x3b1   : > { %p2427_p6 = scmp.ne.s32.totalorder %s3277_s8, %s2426_s2  ;;  %p2431_p13 = scmp.lt.u32.totalorder %s3277_s8, %s3459_s6 }
 0x3b2   : > { %p2432_p9 = scmp.lt.u32.totalorder %s2430_s18, %s2426_s2  ;;  %p2434_p3 = scmp.lt.u32.totalorder %s2426_s2, %s3277_s8 }
 0x3b3   : > { %p2428_p12 = pnand %p2427_p6, %p3457_p4 }
 0x3b4   : > { %p2433_p0 = por %p2432_p9, %p2431_p13 }
 0x3b5   : > { %p2429_p1 = pneg %p2428_p12 }
 0x3b6   : > { %p2435_p7 = por %p2434_p3, %p2433_p0 }
 0x3b8   : > { %p2436_p2 = pnand %p2435_p7, %p2429_p1 }
 0x3ba   : > { %2439 = shalt.err (!%p2436_p2)
}
 0x3bb   : > { %1871 = dma.vmem_to_hbm [thread:$0]  (%p3457_p4), %s1479_s25, 32, %s3277_s8, %s3219_s21  }
 0x3bc PF: > { %p1919_p11 = scmp.ge.s32.totalorder %s2578_s22, 2  ;;  %s1490_s28 = sand.u32 1, %s2526_s30  }
 0x3bd   : > { %p3460_p5 = scmp.ne.s32.totalorder %s3420_s24, 0  ;;  %s1491_s23 = scalar_lea.sflag [#allocation7], %s1490_s28 }
 0x3bf   : > { %p1899_p10 = pnand %p1919_p11, %p3460_p5 }
 0x3c1   : > { %2517 = dma.done.wait (!%p1899_p10), %s1491_s23, 384  }
 0x3c2   : > { %2519 = vsyncadd (!%p1899_p10), %s1491_s23, 4294966912  ;;  %s3461_s9 = sadd.s32 4294967294, %s2578_s22  }
 0x3c3   : > { %s1499_s26 = sand.u32 1, %s3461_s9  }
 0x3c4   : > { %s1500_s5 = scalar_lea.sflag [#allocation19], %s1499_s26 }
 0x3c5   : > { %2521 = dma.done.wait (!%p1899_p10), %s1500_s5, 64  }
 0x3c6   : > { %2523 = vsyncadd (!%p1899_p10), %s1500_s5, 4294967232  ;;  %s34_s22 = sadd.s32 1, %s2578_s22   ;;  %s3463_s24 = sld [smem:[#allocation29_spill]] }
 0x3c7   : > { %p3305_p4 = scmp.ge.s32.totalorder %s34_s22, 10   ;;  %s3464_s13 = sld [smem:[#allocation30_spill]] }
 0x3c8   : > { %s3465_s21 = smov %s2978_s12  ;;  %s3466_s19 = sld [smem:[#allocation33_spill]] }
 0x3c9   : > { %s3467_s27 = sld [smem:[#allocation35_spill]]  ;;  %s3468_s8 = sld [smem:[#allocation36_spill]] }
 0x3ca   : > { %s3469_s30 = smov %s2530_s10  ;;  %s3470_s10 = smov %s2534_s11 }
 0x3cb   : > { %s3471_s11 = smov %s2914_s14  ;;  %s3473_s14 = smov %s3465_s21 }
 0x3cc   : > { %s3472_s12 = smov %s3463_s24  ;;  %s3474_s15 = smov %s2554_s16 }
 0x3cd   : > { %s3475_s16 = smov %s2558_s17  ;;  %s3476_s17 = smov %s2917_s0 }
 0x3ce   : > { %s3477_s18 = smov %s2570_s20  ;;  %33 = sbr.rel (!%p3305_p4) target bundleno = 27 (0x1b), region = 171 }
 0x3cf   : > { %s3478_s20 = smov %s3467_s27  ;;  %s3479_s21 = smov %s3468_s8 }
 0x3d5   :  { %1514 = vsyncpa [#allocation6], 1 }
 0x3d6   :  { %1516 = vsyncpa [#allocation6 + $0x1], 1 }
 0x3d7   :  { %1517 = vsyncpa [#allocation9], 1 }
 0x3d8   :  { %1518 = vsyncpa [#allocation12], 1 }
 0x3d9   :  { %1519 = vsyncpa [#allocation15], 1 }
 0x3da   :  { %1521 = vsyncpa [#allocation15 + $0x1], 1 }
 0x3db   :  { %1522 = vsyncpa [#allocation7], 1 }
 0x3dc   :  { %1524 = vsyncpa [#allocation7 + $0x1], 1 }
 0x3dd   :  { %1525 = vsyncpa [#allocation19], 1 }
 0x3de   :  { %1527 = vsyncpa [#allocation19 + $0x1], 1 }

// kernel: mul.59
= control target key start
LH: loop header
LB: loop body
LE: loop exit
PB: predicated region body
PF: predicated region fallthrough
CT: control target
= control target key end

     0   :  { %3 = vsyncpa [#allocation1], 0  ;;  %s134_s0 = inlined_call_operand.vmem [shape: f32[1,512], index: 0, kind: input, shape index: {}]   ;;  %s135_s1 = inlined_call_operand.vmem [shape: f32[1,512], index: 1, kind: input, shape index: {}]   ;;  %s136_s2 = inlined_call_operand.hbm [shape: f32[1,512], index: 2, kind: output, shape index: {}]  }
   0x1   :  { %v4_v0 = vld [vmem:[%s134_s0] sm:$0x1]  ;;  %v51_v3 = vld [vmem:[%s134_s0 + $0x1] sm:$0x1]  ;;  %v53_v5 = vld [vmem:[%s134_s0 + $0x2] sm:$0x1] }
   0x2   :  { %v5_v1 = vld [vmem:[%s135_s1] sm:$0x1]  ;;  %v52_v4 = vld [vmem:[%s135_s1 + $0x1] sm:$0x1]  ;;  %v54_v7 = vld [vmem:[%s135_s1 + $0x2] sm:$0x1] }
   0x3   :  { %v8_v2 = vmul.f32 %v5_v1, %v4_v0  ;;  %v17_v6 = vmul.f32 %v52_v4, %v51_v3  ;;  %v55_v8 = vld [vmem:[%s134_s0 + $0x3] sm:$0x1]  ;;  %v27_v10 = vmul.f32 %v54_v7, %v53_v5 }
   0x4   :  { %v56_v9 = vld [vmem:[%s135_s1 + $0x3] sm:$0x1]  ;;  %s82_s1 = smov [#allocation0]  }
   0x5   :  { %10 = vst [vmem:[#allocation0] sm:$0x1] %v8_v2  ;;  %v37_v11 = vmul.f32 %v56_v9, %v55_v8  ;;  %20 = vst [vmem:[#allocation0 + $0x1] sm:$0x1] %v17_v6  ;;  %s45_s24 = sshll.u32 %s82_s1, 4  ;;  %s46_s24 = int_to_ptr.vmem [resolvable:$true] %s45_s24 }
   0x6   :  { %30 = vst [vmem:[#allocation0 + $0x2] sm:$0x1] %v27_v10  ;;  %s58_s25 = scalar_lea.vmem %s46_s24, 64  ;;  %p63_p1 = scmp.lt.s32.totalorder %s46_s24, %s46_s24 }
   0x7   :  { %40 = vst [vmem:[#allocation0 + $0x3] sm:$0x1] %v37_v11  ;;  %p59_p0 = scmp.ne.s32.totalorder %s46_s24, %s58_s25  ;;  %p64_p2 = scmp.lt.s32.totalorder %s58_s25, %s58_s25 }
   0x9   :  { %p65_p3 = por %p64_p2, %p63_p1 }
   0xb   :  { %p66_p4 = pnand %p65_p3, %p59_p0 }
   0xd   :  { %69 = shalt.err (!%p66_p4)
}
   0xe   :  { %s70_s28 = scalar_lea.hbm %s136_s2, 64 }
   0xf   :  { %p71_p5 = scmp.ne.s32.totalorder %s136_s2, %s70_s28  ;;  %p74_p6 = scmp.lt.u32.totalorder %s70_s28, %s136_s2 }
  0x11   :  { %p76_p7 = pnand %p74_p6, %p71_p5 }
  0x13   :  { %79 = shalt.err (!%p76_p7)
}
  0x14   :  { %48 = dma.vmem_to_hbm [thread:$0]  %s46_s24, 64, %s136_s2, [#allocation1]  }
  0x15   :  { %80 = dma.done.wait [#allocation1], 64  }
  0x16   :  { %81 = vsyncadd [#allocation1], 4294967232 }
  0x17   :  { %50 = vsyncpa [#allocation1], 1 }

// kernel: patchgan_discriminator.8
= control target key start
LH: loop header
LB: loop body
LE: loop exit
PB: predicated region body
PF: predicated region fallthrough
CT: control target
= control target key end

     0   :  { %s5323_s0 = inlined_call_operand.hbm [shape: bf16[4,2,10,256], index: 0, kind: input, shape index: {}]   ;;  %s5324_s1 = inlined_call_operand.hbm [shape: bf16[4,1024,512], index: 1, kind: input, shape index: {}]   ;;  %s5325_s2 = inlined_call_operand.hbm [shape: f32[1,512], index: 2, kind: input, shape index: {}]   ;;  %s5326_s3 = inlined_call_operand.hbm [shape: f32[1,256], index: 3, kind: input, shape index: {}]   ;;  %s5327_s4 = inlined_call_operand.hbm [shape: f32[1,256], index: 4, kind: input, shape index: {}]   ;;  %s5328_s5 = inlined_call_operand.hbm [shape: f32[4,10,1], index: 5, kind: input, shape index: {}]   ;;  %s5329_s6 = inlined_call_operand.hbm [shape: f32[6,1], index: 6, kind: input, shape index: {}]   ;;  %s5330_s7 = inlined_call_operand.hbm [shape: bf16[2,6,512], index: 7, kind: output, shape index: {0}]   ;;  %s5331_s8 = inlined_call_operand.hbm [shape: f32[2,1,512], index: 8, kind: output, shape index: {1}]   ;;  %s5332_s9 = inlined_call_operand.hbm [shape: f32[2,1,512], index: 9, kind: output, shape index: {2}]  }
   0x1   :  { %5356 = sst [smem:[#allocation37_spill]] %s5323_s0 }
   0x2   :  { %5357 = sst [smem:[#allocation38_spill]] %s5324_s1 }
   0x3   :  { %5358 = sst [smem:[#allocation39_spill]] %s5325_s2 }
   0x4   :  { %5359 = sst [smem:[#allocation40_spill]] %s5326_s3 }
   0x5   :  { %5360 = sst [smem:[#allocation41_spill]] %s5327_s4 }
   0x6   :  { %5361 = sst [smem:[#allocation42_spill]] %s5328_s5 }
   0x7   :  { %5362 = sst [smem:[#allocation43_spill]] %s5329_s6 }
   0x8   :  { %5363 = sst [smem:[#allocation44_spill]] %s5330_s7 }
   0x9   :  { %5364 = sst [smem:[#allocation45_spill]] %s5331_s8 }
   0xa   :  { %5365 = sst [smem:[#allocation46_spill]] %s5332_s9 }
   0xb   :  { %15 = vsyncpa [#allocation6], 0 }
   0xc   :  { %17 = vsyncpa [#allocation6 + $0x1], 0 }
   0xd   :  { %18 = vsyncpa [#allocation9], 0 }
   0xe   :  { %19 = vsyncpa [#allocation12], 0 }
   0xf   :  { %20 = vsyncpa [#allocation15], 0 }
  0x10   :  { %22 = vsyncpa [#allocation15 + $0x1], 0 }
  0x11   :  { %23 = vsyncpa [#allocation7], 0 }
  0x12   :  { %25 = vsyncpa [#allocation7 + $0x1], 0 }
  0x13   :  { %26 = vsyncpa [#allocation19], 0 }
  0x14   :  { %28 = vsyncpa [#allocation19 + $0x1], 0  ;;  %s4426_s30 = smov 0   ;;  %s4428_s10 = smov 0  }
  0x15   :  { %s4430_s11 = smov 0   ;;  %s4432_s12 = smov 0  }
  0x16   :  { %s4434_s13 = smov 0   ;;  %s4436_s14 = smov 0  }
  0x17   :  { %s4438_s15 = smov 0   ;;  %s4440_s16 = smov 0  }
  0x18   :  { %s4442_s17 = smov 0   ;;  %s4444_s18 = smov 0  }
  0x19   :  { %s4446_s19 = smov 0   ;;  %s4448_s20 = smov 0  }
  0x1a   :  { %s4450_s21 = smov 0   ;;  %s4452_s22 = smov 0  }
  0x1b LB: > { %5366 = sst [smem:[#allocation28_spill]] %s4317_s12  ;;  %s4497_s23 = sadd.s32 4294967295, %s4357_s22   ;;  %s4357_s22 = sphi %s4452_s22, %s34_s22   ;;  %s4353_s21 = sphi %s4450_s21, %s5429_s21   ;;  %s4349_s20 = sphi %s4448_s20, %s5439_s20   ;;  %s4345_s19 = sphi %s4446_s19, %s5438_s19   ;;  %s4341_s18 = sphi %s4444_s18, %s5437_s18   ;;  %s4337_s17 = sphi %s4442_s17, %s5436_s17   ;;  %s4333_s16 = sphi %s4440_s16, %s5435_s16   ;;  %s4329_s15 = sphi %s4438_s15, %s5434_s15   ;;  %s4325_s14 = sphi %s4436_s14, %s4750_s14   ;;  %s4321_s13 = sphi %s4434_s13, %s5426_s13   ;;  %s4317_s12 = sphi %s4432_s12, %s5425_s12   ;;  %s4313_s11 = sphi %s4430_s11, %s5433_s11   ;;  %s4309_s10 = sphi %s4428_s10, %s5432_s10   ;;  %s4305_s30 = sphi %s4426_s30, %s5431_s30  }
  0x1c   : > { %5367 = sst [smem:[#allocation29_spill]] %s4321_s13  ;;  %p2999_p0 = scmp.ge.s32.totalorder %s4357_s22, 1 }
  0x1d   : > { %5368 = sst [smem:[#allocation30_spill]] %s4325_s14  ;;  %p5343_p1 = scmp.eq.s32.totalorder %s4497_s23, 0 }
  0x1e   : > { %5369 = sst [smem:[#allocation31_spill]] %s4341_s18  ;;  %p288_p3 = scmp.lt.s32.totalorder %s4357_s22, 9 }
  0x1f   : > { %5370 = sst [smem:[#allocation32_spill]] %s4345_s19  ;;  %s4359_s25 = smov [#allocation8]  }
  0x20   : > { %5371 = sst [smem:[#allocation33_spill]] %s4353_s21  ;;  %p4503_p4 = pnand %p2999_p0, %p288_p3 }
  0x21   : > { %s300_s26 = sshll.u32 %s4359_s25, 4  ;;  %s4360_s28 = smov [#allocation11]   ;;  %s4507_s26 = int_to_ptr.vmem [resolvable:$true] %s300_s26 }
  0x22   : > { %s5372_s24 = scalar_select %p4503_p4, 1, 0 }
  0x23   : > { %p3372_p5 = pneg %p4503_p4  ;;  %s325_s29 = sshll.u32 %s4360_s28, 4  ;;  %s4517_s29 = int_to_ptr.vmem [resolvable:$true] %s325_s29 }
  0x24   : > { %5373 = sst [smem:[#allocation34_spill]] %s5372_s24  ;;  %s4361_s9 = smov [#allocation16]  }
  0x25   : > { %p4513_p6 = pnand %p3372_p5, %p5343_p1  ;;  %s347_s7 = sshll.u32 %s4361_s9, 4  ;;  %s4519_s7 = int_to_ptr.vmem [resolvable:$true] %s347_s7 }
  0x26   : > { %s5375_s1 = sld [smem:[#allocation38_spill]] }
  0x27   : > { %p4529_p8 = pneg %p4513_p6 }
  0x2c   : > { %s3935_s19 = scalar_lea.hbm %s5375_s1, 131072 }
  0x2d   : > { %p3936_p7 = scmp.ne.s32.totalorder %s5375_s1, %s3935_s19  ;;  %p3942_p11 = scmp.lt.u32.totalorder %s3935_s19, %s5375_s1 }
  0x2f   : > { %p3938_p9 = pnand %p4529_p8, %p3936_p7 }
  0x31   : > { %p3939_p10 = pneg %p3938_p9 }
  0x33   : > { %p3944_p12 = pnand %p3942_p11, %p3939_p10 }
  0x35   : > { %3947 = shalt.err (!%p3944_p12)
}
  0x36   : > { %s3948_s8 = scalar_lea.vmem %s4507_s26, 131072  ;;  %p3956_p5 = scmp.lt.s32.totalorder %s4507_s26, %s4507_s26 }
  0x37   : > { %p3949_p13 = scmp.ne.s32.totalorder %s4507_s26, %s3948_s8  ;;  %p3957_p2 = scmp.lt.s32.totalorder %s3948_s8, %s3948_s8 }
  0x39   : > { %p3951_p0 = pnand %p3949_p13, %p4529_p8  ;;  %p3958_p7 = por %p3957_p2, %p3956_p5 }
  0x3b   : > { %p3952_p3 = pneg %p3951_p0 }
  0x3d   : > { %p3959_p9 = pnand %p3958_p7, %p3952_p3 }
  0x3f   : > { %3962 = shalt.err (!%p3959_p9)
}
  0x40   : > { %s4362_s18 = smov 256   ;;  %s4363_s19 = smov 16  }
  0x41   : > { %3375 = dma.hbm_to_vmem [thread:$0]  (!%p4513_p6), %s5375_s1, 131072, %s4507_s26, [#allocation9], %s4362_s18, %s4362_s18, %s4363_s19  }
  0x42   : > { %s5377_s3 = sld [smem:[#allocation40_spill]] }
  0x48   : > { %s3963_s12 = scalar_lea.hbm %s5377_s3, 32 }
  0x49   : > { %p3964_p2 = scmp.ne.s32.totalorder %s5377_s3, %s3963_s12  ;;  %p3970_p12 = scmp.lt.u32.totalorder %s3963_s12, %s5377_s3 }
  0x4b   : > { %p3966_p10 = pnand %p3964_p2, %p4529_p8 }
  0x4d   : > { %p3967_p11 = pneg %p3966_p10 }
  0x4f   : > { %p3972_p13 = pnand %p3970_p12, %p3967_p11 }
  0x51   : > { %3975 = shalt.err (!%p3972_p13)
}
  0x52   : > { %s3976_s26 = scalar_lea.vmem %s4517_s29, 32  ;;  %p3984_p7 = scmp.lt.s32.totalorder %s4517_s29, %s4517_s29 }
  0x53   : > { %p3977_p0 = scmp.ne.s32.totalorder %s4517_s29, %s3976_s26  ;;  %p3985_p9 = scmp.lt.s32.totalorder %s3976_s26, %s3976_s26 }
  0x55   : > { %p3979_p3 = pnand %p3977_p0, %p4529_p8  ;;  %p3986_p2 = por %p3985_p9, %p3984_p7 }
  0x57   : > { %p3980_p5 = pneg %p3979_p3 }
  0x59   : > { %p3987_p10 = pnand %p3986_p2, %p3980_p5 }
  0x5b   : > { %3990 = shalt.err (!%p3987_p10)
}
  0x5c   : > { %3381 = dma.hbm_to_vmem [thread:$0]  (!%p4513_p6), %s5377_s3, 32, %s4517_s29, [#allocation12]  }
  0x5d   : > { %s5378_s6 = sld [smem:[#allocation43_spill]] }
  0x63   : > { %s3991_s18 = scalar_lea.hbm %s5378_s6, 128 }
  0x64   : > { %p3992_p11 = scmp.ne.s32.totalorder %s5378_s6, %s3991_s18  ;;  %p3998_p0 = scmp.lt.u32.totalorder %s3991_s18, %s5378_s6 }
  0x66   : > { %p3994_p12 = pnand %p3992_p11, %p4529_p8 }
  0x68   : > { %p3995_p13 = pneg %p3994_p12 }
  0x6a   : > { %p4000_p3 = pnand %p3998_p0, %p3995_p13 }
  0x6c   : > { %4003 = shalt.err (!%p4000_p3)
}
  0x6d   : > { %s4004_s29 = scalar_lea.vmem %s4519_s7, 128  ;;  %p4012_p2 = scmp.lt.s32.totalorder %s4519_s7, %s4519_s7 }
  0x6e   : > { %p4005_p5 = scmp.ne.s32.totalorder %s4519_s7, %s4004_s29  ;;  %p4013_p10 = scmp.lt.s32.totalorder %s4004_s29, %s4004_s29 }
  0x70   : > { %p4007_p7 = pnand %p4005_p5, %p4529_p8  ;;  %p4014_p11 = por %p4013_p10, %p4012_p2 }
  0x72   : > { %p4008_p9 = pneg %p4007_p7 }
  0x74   : > { %p4015_p12 = pnand %p4014_p11, %p4008_p9 }
  0x76   : > { %4018 = shalt.err (!%p4015_p12)
}
  0x77   : > { %3387 = dma.hbm_to_vmem [thread:$0]  (!%p4513_p6), %s5378_s6, 128, %s4519_s7, [#allocation15]  }
  0x78   : > { %s4364_s26 = smov [#allocation10]   ;;  %s4365_s12 = smov [#allocation13]  }
  0x79   : > { %s314_s0 = sshll.u32 %s4364_s26, 4  ;;  %s336_s13 = sshll.u32 %s4365_s12, 4  ;;  %s315_s0 = int_to_ptr.vmem [resolvable:$true] %s314_s0  ;;  %s4596_s13 = int_to_ptr.vmem [resolvable:$true] %s336_s13 }
  0x7a   : > { %s5379_s2 = sld [smem:[#allocation39_spill]] }
  0x80   : > { %s4019_s19 = scalar_lea.hbm %s5379_s2, 64 }
  0x81   : > { %p4020_p13 = scmp.ne.s32.totalorder %s5379_s2, %s4019_s19  ;;  %p4026_p5 = scmp.lt.u32.totalorder %s4019_s19, %s5379_s2 }
  0x83   : > { %p4022_p0 = pnand %p4020_p13, %p4529_p8 }
  0x85   : > { %p4023_p3 = pneg %p4022_p0 }
  0x87   : > { %p4028_p7 = pnand %p4026_p5, %p4023_p3 }
  0x89   : > { %4031 = shalt.err (!%p4028_p7)
}
  0x8a   : > { %s4032_s29 = scalar_lea.vmem %s315_s0, 64  ;;  %p4040_p11 = scmp.lt.s32.totalorder %s315_s0, %s315_s0 }
  0x8b   : > { %p4033_p9 = scmp.ne.s32.totalorder %s315_s0, %s4032_s29  ;;  %p4041_p12 = scmp.lt.s32.totalorder %s4032_s29, %s4032_s29 }
  0x8d   : > { %p4035_p2 = pnand %p4033_p9, %p4529_p8  ;;  %p4042_p1 = por %p4041_p12, %p4040_p11 }
  0x8f   : > { %p4036_p10 = pneg %p4035_p2 }
  0x91   : > { %p4043_p4 = pnand %p4042_p1, %p4036_p10 }
  0x93   : > { %4046 = shalt.err (!%p4043_p4)
}
  0x94   : > { %3378 = dma.hbm_to_vmem [thread:$0]  (!%p4513_p6), %s5379_s2, 64, %s315_s0, [#allocation9]  }
  0x95   : > { %s5380_s4 = sld [smem:[#allocation41_spill]] }
  0x9b   : > { %s4047_s14 = scalar_lea.hbm %s5380_s4, 32 }
  0x9c   : > { %p4048_p13 = scmp.ne.s32.totalorder %s5380_s4, %s4047_s14  ;;  %p4054_p1 = scmp.lt.u32.totalorder %s4047_s14, %s5380_s4 }
  0x9e   : > { %p4050_p0 = pnand %p4048_p13, %p4529_p8 }
  0xa0   : > { %p4051_p3 = pneg %p4050_p0 }
  0xa2   : > { %p4056_p4 = pnand %p4054_p1, %p4051_p3 }
  0xa4   : > { %4059 = shalt.err (!%p4056_p4)
}
  0xa5   : > { %s4060_s0 = scalar_lea.vmem %s4596_s13, 32  ;;  %p4068_p2 = scmp.lt.s32.totalorder %s4596_s13, %s4596_s13 }
  0xa6   : > { %p4061_p5 = scmp.ne.s32.totalorder %s4596_s13, %s4060_s0  ;;  %p4069_p10 = scmp.lt.s32.totalorder %s4060_s0, %s4060_s0 }
  0xa8   : > { %p4063_p7 = pnand %p4061_p5, %p4529_p8  ;;  %p4070_p11 = por %p4069_p10, %p4068_p2 }
  0xaa   : > { %p4064_p9 = pneg %p4063_p7 }
  0xac   : > { %p4071_p12 = pnand %p4070_p11, %p4064_p9 }
  0xae   : > { %4074 = shalt.err (!%p4071_p12)
}
  0xaf   : > { %3384 = dma.hbm_to_vmem [thread:$0]  (!%p4513_p6), %s5380_s4, 32, %s4596_s13, [#allocation12]  }
  0xb0   : > { %s5345_s5 = sadd.s32 4294967294, %s4357_s22   ;;  %s43_s27 = sadd.s32 1, %s4349_s20 }
  0xb1   : > { %p44_p8 = scmp.ge.s32.totalorder %s43_s27, 4  ;;  %s46_s29 = sadd.s32 1, %s4353_s21 }
  0xb2   : > { %s55_s28 = sadd.s32 1, %s4337_s17  ;;  %p62_p13 = scmp.ne.s32.totalorder %s4337_s17, %s4333_s16 }
  0xb3   : > { %s5441_s27 = smov (%p44_p8, %s43_s27), 0  ;;  %s5443_s29 = smov (!%p44_p8, %s46_s29), %s4353_s21 }
  0xb4   : > { %5381 = sst [smem:[#allocation35_spill]] %s5441_s27  ;;  %s4650_s8 = ssub.s32 %s4349_s20, %s5441_s27 }
  0xb5   : > { %p5347_p6 = scmp.eq.s32.totalorder %s4357_s22, 0  ;;  %p48_p0 = scmp.ge.s32.totalorder %s5443_s29, 2 }
  0xb6   : > { %p68_p3 = scmp.ne.s32.totalorder %s4333_s16, %s4329_s15  ;;  %p5384_p5 = scmp.eq.s32.totalorder %s4497_s23, 0 }
  0xb7   : > { %p4657_p1 = por %p5347_p6, %p62_p13  ;;  %s5445_s29 = smov (%p48_p0, %s5443_s29), 0 }
  0xb8   : > { %5383 = sst [smem:[#allocation36_spill]] %s5445_s29  ;;  %p4666_p7 = por %p5384_p5, %p68_p3 }
  0xb9   : > { %s212_s12 = sadd.s32 1, %s4313_s11  ;;  %s51_s15 = ssub.s32 %s4353_s21, %s5445_s29 }
  0xba   : > { %p222_p9 = scmp.ne.s32.totalorder %s4313_s11, %s4309_s10  ;;  %s52_s14 = sor.u32 %s51_s15, %s4650_s8 }
  0xbb   : > { %p210_p2 = scmp.eq.s32.totalorder %s51_s15, 0  ;;  %p53_p10 = scmp.eq.s32.totalorder %s52_s14, 0 }
  0xbc   : > { %p5386_p11 = scmp.eq.s32.totalorder %s4497_s23, 7  ;;  %p228_p8 = scmp.ne.s32.totalorder %s4309_s10, %s4305_s30 }
  0xbd   : > { %s4683_s19 = scalar_select %p210_p2, %s4313_s11, %s212_s12  }
  0xbe   : > { %p4678_p12 = por %p5386_p11, %p222_p9  ;;  %p229_p13 = scmp.eq.s32.totalorder %s5345_s5, 7 }
  0xbf   : > { %s4686_s24 = scalar_select %p53_p10, %s4337_s17, %s55_s28  }
  0xc0   : > { %s5387_s18 = scalar_select %p4678_p12, 1, 0 }
  0xc1   : > { %p5346_p0 = scmp.lt.s32.totalorder %s4357_s22, 8  ;;  %s358_s25 = sand.u32 1, %s4337_s17  }
  0xc2   : > { %p4694_p3 = por %p229_p13, %p228_p8  ;;  %s3006_s9 = sshll.u32 %s358_s25, 4 }
  0xc3   : > { %s3007_s7 = sshll.u32 %s4353_s21, 2  ;;  %s3008_s15 = sshll.u32 %s4349_s20, 3 }
  0xc4   : > { %s5388_s0 = scalar_select %p4694_p3, 1, 0 }
  0xc5   : > { %s368_s14 = sadd.s32 %s3008_s15, %s3007_s7  ;;  %s362_s1 = scalar_lea.vmem [#allocation5], %s3006_s9 }
  0xc6   : > { %s371_s12 = sshll.u32 %s362_s1, 4  ;;  %s3009_s2 = sshll.u32 %s368_s14, 6  ;;  %s4700_s12 = int_to_ptr.vmem [resolvable:$true] %s371_s12 }
  0xc7   : > { %s5389_s4 = sld [smem:[#allocation37_spill]]  ;;  %p4711_p5 = pnand %p5346_p0, %p4657_p1 }
  0xc8   : > { %s4715_s1 = scalar_lea.sflag [#allocation6], %s358_s25 }
  0xc9   : > { %p4077_p2 = pneg %p4711_p5 }
  0xcd   : > { %s4705_s6 = scalar_lea.hbm %s5389_s4, %s3009_s2  ;;  %s4080_s13 = scalar_lea.hbm %s5389_s4, 2048 }
  0xce   : > { %s4075_s9 = scalar_lea.hbm %s4705_s6, 256  ;;  %p4081_p1 = scmp.lt.u32.totalorder %s4705_s6, %s5389_s4 }
  0xcf   : > { %p4076_p9 = scmp.ne.s32.totalorder %s4705_s6, %s4075_s9  ;;  %p4082_p8 = scmp.lt.u32.totalorder %s4080_s13, %s4075_s9 }
  0xd0   : > { %p4084_p0 = scmp.lt.u32.totalorder %s4075_s9, %s4705_s6 }
  0xd1   : > { %p4078_p10 = pnand %p4077_p2, %p4076_p9  ;;  %p4083_p13 = por %p4082_p8, %p4081_p1 }
  0xd3   : > { %p4079_p11 = pneg %p4078_p10  ;;  %p4085_p6 = por %p4084_p0, %p4083_p13 }
  0xd5   : > { %p4086_p4 = pnand %p4085_p6, %p4079_p11 }
  0xd7   : > { %4089 = shalt.err (!%p4086_p4)
}
  0xd8   : > { %s4090_s25 = scalar_lea.vmem %s4700_s12, 256  ;;  %s4366_s14 = smov [#allocation5]  }
  0xd9   : > { %p4091_p9 = scmp.ne.s32.totalorder %s4700_s12, %s4090_s25  ;;  %s4095_s28 = sshll.u32 %s4366_s14, 4  ;;  %s4096_s28 = int_to_ptr.vmem [resolvable:$false] %s4095_s28 }
  0xda   : > { %s4097_s2 = scalar_lea.vmem %s4096_s28, 512  ;;  %p4098_p12 = scmp.lt.s32.totalorder %s4700_s12, %s4096_s28 }
  0xdb   : > { %p4093_p10 = pnand %p4091_p9, %p4077_p2  ;;  %p4099_p1 = scmp.lt.s32.totalorder %s4097_s2, %s4090_s25 }
  0xdd   : > { %p4094_p3 = pneg %p4093_p10  ;;  %p4100_p8 = por %p4099_p1, %p4098_p12 }
  0xdf   : > { %p4101_p0 = pnand %p4100_p8, %p4094_p3 }
  0xe1   : > { %4104 = shalt.err (!%p4101_p0)
}
  0xe2   : > { %s4367_s9 = smov 128   ;;  %s5391_s3 = sld [smem:[#allocation30_spill]] }
  0xe3   : > { %s5392_s13 = sld [smem:[#allocation29_spill]]  ;;  %s5393_s7 = sld [smem:[#allocation28_spill]] }
  0xe4   : > { %s4368_s15 = smov 8   ;;  %p5394_p6 = scmp.eq.s32.totalorder %s4650_s8, 0 }
  0xe5   : > { %3391 = dma.hbm_to_vmem [thread:$0]  (!%p4711_p5), %s4705_s6, 256, %s4700_s12, %s4715_s1, %s4367_s9, %s4367_s9, %s4368_s15  }
  0xe6   : > { %s381_s28 = sand.u32 1, %s4357_s22   ;;  %p5395_p3 = scmp.eq.s32.totalorder %s4357_s22, 0 }
  0xe7   : > { %p5396_p11 = scmp.eq.s32.totalorder %s4497_s23, 0  ;;  %s3309_s29 = sshll.u32 %s4349_s20, 8 }
  0xe8   : > { %s165_s25 = sadd.s32 1, %s5391_s3  ;;  %s383_s2 = sand.u32 1, %s5391_s3  }
  0xe9   : > { %s4750_s14 = scalar_select %p5394_p6, %s5391_s3, %s165_s25  }
  0xea   : > { %p172_p4 = scmp.ne.s32.totalorder %s5391_s3, %s5392_s13  ;;  %p178_p12 = scmp.ne.s32.totalorder %s5392_s13, %s5393_s7 }
  0xeb   : > { %s3010_s5 = sshll.u32 %s383_s2, 4  ;;  %s5398_s6 = sld [smem:[#allocation42_spill]] }
  0xec   : > { %p174_p2 = por %p172_p4, %p5395_p3  ;;  %p4762_p13 = por %p178_p12, %p5396_p11 }
  0xed   : > { %s385_s8 = scalar_lea.vmem [#allocation14], %s3010_s5  ;;  %p5399_p5 = scmp.lt.s32.totalorder %s4357_s22, 8 }
  0xee   : > { %s5397_s4 = scalar_select %p4762_p13, 1, 0 }
  0xef   : > { %s392_s1 = sshll.u32 %s385_s8, 4  ;;  %p4776_p9 = pnand %p5399_p5, %p174_p2  ;;  %s4772_s1 = int_to_ptr.vmem [resolvable:$true] %s392_s1 }
  0xf0   : > { %s4780_s13 = scalar_lea.sflag [#allocation15], %s381_s28 }
  0xf1   : > { %s4770_s12 = scalar_lea.hbm %s5398_s6, %s3309_s29  ;;  %p4107_p1 = pneg %p4776_p9 }
  0xf2   : > { %s4105_s21 = scalar_lea.hbm %s4770_s12, 256  ;;  %s4110_s7 = scalar_lea.hbm %s5398_s6, 1024 }
  0xf3   : > { %p4106_p10 = scmp.ne.s32.totalorder %s4770_s12, %s4105_s21  ;;  %p4111_p6 = scmp.lt.u32.totalorder %s4770_s12, %s5398_s6 }
  0xf4   : > { %p4112_p4 = scmp.lt.u32.totalorder %s4110_s7, %s4105_s21  ;;  %p4114_p3 = scmp.lt.u32.totalorder %s4105_s21, %s4770_s12 }
  0xf5   : > { %p4108_p8 = pnand %p4107_p1, %p4106_p10 }
  0xf6   : > { %p4113_p12 = por %p4112_p4, %p4111_p6 }
  0xf7   : > { %p4109_p0 = pneg %p4108_p8 }
  0xf8   : > { %p4115_p2 = por %p4114_p3, %p4113_p12 }
  0xfa   : > { %p4116_p11 = pnand %p4115_p2, %p4109_p0 }
  0xfc   : > { %4119 = shalt.err (!%p4116_p11)
}
  0xfd   : > { %s4120_s28 = scalar_lea.vmem %s4772_s1, 256  ;;  %s4369_s5 = smov [#allocation14]  }
  0xfe   : > { %p4121_p5 = scmp.ne.s32.totalorder %s4772_s1, %s4120_s28  ;;  %s4125_s8 = sshll.u32 %s4369_s5, 4  ;;  %s4126_s8 = int_to_ptr.vmem [resolvable:$false] %s4125_s8 }
  0xff   : > { %s4127_s27 = scalar_lea.vmem %s4126_s8, 512  ;;  %p4128_p13 = scmp.lt.s32.totalorder %s4772_s1, %s4126_s8 }
 0x100   : > { %p4123_p10 = pnand %p4121_p5, %p4107_p1  ;;  %p4129_p6 = scmp.lt.s32.totalorder %s4127_s27, %s4120_s28 }
 0x102   : > { %p4124_p8 = pneg %p4123_p10  ;;  %p4130_p4 = por %p4129_p6, %p4128_p13 }
 0x104   : > { %p4131_p12 = pnand %p4130_p4, %p4124_p8 }
 0x106   : > { %4134 = shalt.err (!%p4131_p12)
}
 0x107   : > { %3394 = dma.hbm_to_vmem [thread:$0]  (!%p4776_p9), %s4770_s12, 256, %s4772_s1, %s4780_s13, %s4367_s9, %s4367_s9, %s4368_s15  }
 0x108   : > { %s5401_s21 = sld [smem:[#allocation34_spill]] }
 0x10e   : > { %p5402_p1 = scmp.ne.s32.totalorder %s5401_s21, 0 }
 0x10f   : > { %s406_s29 = sand.u32 (!%p5402_p1), 1, %s4333_s16  }
 0x110   : > { %404 = sbr.rel (%p5402_p1) target bundleno = 1120 (0x460), region = 48  ;;  %s4814_s7 = sshll.u32 (!%p5402_p1), %s406_s29, 4 }
 0x111   : > { %s407_s25 = scalar_lea.sflag (!%p5402_p1), [#allocation6], %s406_s29  ;;  %s410_s2 = scalar_lea.vmem (!%p5402_p1), [#allocation5], %s4814_s7 }
 0x117   : > { %4276 = dma.done.wait (%p4666_p7), %s407_s25, 256  }
 0x118   : > { %4278 = vsyncadd (%p4666_p7), %s407_s25, 4294967040  ;;  %p5403_p13 = scmp.eq.s32.totalorder %s4497_s23, 0 }
 0x11a   : > { %4280 = dma.done.wait (%p5403_p13), [#allocation9], 131136   ;;  %p5404_p9 = pmov %p5403_p13 }
 0x11c   : > { %4282 = vsyncadd (%p5404_p9), [#allocation9], 4294836160  ;;  %p5405_p0 = pmov %p5404_p9 }
 0x11e   : > { %4284 = dma.done.wait (%p5405_p0), [#allocation12], 64   ;;  %p5406_p3 = pmov %p5405_p0 }
 0x11f   : > { %s5407_s9 = sld [smem:[#allocation29_spill]]  ;;  %s431_s15 = sand.u32 1, %s4497_s23  }
 0x120   : > { %4286 = vsyncadd (%p5406_p3), [#allocation12], 4294967232  ;;  %s432_s1 = scalar_lea.sflag [#allocation15], %s431_s15  ;;  %p5408_p7 = scmp.ne.s32.totalorder %s5397_s4, 0 }
 0x125   : > { %s433_s12 = sand.u32 1, %s5407_s9  }
 0x126   : > { %s3019_s26 = sshll.u32 %s433_s12, 4 }
 0x127   : > { %s435_s3 = scalar_lea.vmem [#allocation14], %s3019_s26 }
 0x128   : > { %4288 = dma.done.wait (%p5408_p7), %s432_s1, 256  }
 0x129   : > { %4290 = vsyncadd (%p5408_p7), %s432_s1, 4294967040  ;;  %p5409_p2 = pmov %p5405_p0 }
 0x12a   : > { %p5410_p11 = pmov %p5405_p0 }
 0x12b   : > { %4292 = dma.done.wait (%p5409_p2), [#allocation15], 128  }
 0x12c   : > { %4294 = vsyncadd (%p5410_p11), [#allocation15], 4294967168  ;;  %s5411_s13 = sld [smem:[#allocation31_spill]]  ;;  %s4842_s28 = sand.u32 1, %s4309_s10   ;;  %v4370_v0 = vmov 0   ;;  %v539_v1 = vld [vmem:[%s435_s3] sm:$0xff] }
 0x12d   : > { %3541 = vset.pattern.permute.xlu0 %v4370_v0  ;;  %s3021_s8 = sshll.u32 %s4842_s28, 4  ;;  %s3022_s27 = sshll.u32 %s4842_s28, 2  ;;  %v540_v2 = vld [vmem:[%s435_s3 + $0x8] sm:$0x3]  ;;  %vm608_vm4 = vcmask 1041408   ;;  %vm609_vm5 = vcmask 1045508  }
 0x12e   : > { %543 = vperm.xlu0 %3541, %v539_v1   ;;  %vm585_vm6 = vsmask.f32 2304  ;;  %vm586_vm7 = vsmask.f32 6416  ;;  %vm610_vm8 = vmor %vm608_vm4, %vm609_vm5  ;;  %s5148_s21 = scalar_lea.vmem [#allocation17], %s3021_s8  ;;  %s5152_s29 = scalar_lea.vmem [#allocation18], %s3022_s27 }
 0x12f   : > { %vm4932_vm9 = vmor %vm585_vm6, %vm586_vm7  ;;  %s5156_s7 = scalar_lea.vmem [#allocation20], %s3022_s27 }
 0x132   : > { %s3312_s5 = sshll.u32 %s5411_s13, 11  ;;  %548 = vperm.xlu0 %3541, %v540_v2   ;;  %p3293_p5 = scmp.ne.s32.totalorder %s5411_s13, 0 }
 0x133   : > { %s4847_s4 = scalar_lea.vmem [#allocation8], %s3312_s5 }
 0x134   : > { %v3542_v3 = vld [vmem:[%s4847_s4 + $0x4] ss:$16 sps:$4 sm:$0xff]   ;;  %v3544_v4 = vld [vmem:[%s4847_s4 + $0xc] ss:$16 sps:$4 sm:$0xff]   ;;  %v3546_v5 = vld [vmem:[%s4847_s4] ss:$16 sps:$4 sm:$0xff]  }
 0x135   : > { %2188 = vmatprep.subr.bf16.mxu0 %v3542_v3  ;;  %v3547_v6 = vld [vmem:[%s4847_s4 + $0x8] ss:$16 sps:$4 sm:$0xff]   ;;  %2352 = vmatprep.subr.bf16.mxu1 %v3544_v4  ;;  %v3548_v7 = vld [vmem:[%s4847_s4 + $0x24] ss:$16 sps:$4 sm:$0xff]   ;;  %v3550_v8 = vld [vmem:[%s4847_s4 + $0x2c] ss:$16 sps:$4 sm:$0xff]  }
 0x136   : > { %2189 = vmatpush1.bf16.msra.mxu0 %v3546_v5  ;;  %2353 = vmatpush1.bf16.msra.mxu1 %v3547_v6  ;;  %v3552_v9 = vld [vmem:[%s4847_s4 + $0x20] ss:$16 sps:$4 sm:$0xff]   ;;  %v3553_v10 = vld [vmem:[%s4847_s4 + $0x28] ss:$16 sps:$4 sm:$0xff]   ;;  %v3554_v11 = vld [vmem:[%s4847_s4 + $0x44] ss:$16 sps:$4 sm:$0xff]   ;;  %v497_v5 = vlaneseq }
 0x137   : > { %2190 = vmatprep.subr.bf16.mxu0 %v3548_v7  ;;  %2354 = vmatprep.subr.bf16.mxu1 %v3550_v8  ;;  %v3556_v12 = vld [vmem:[%s4847_s4 + $0x4c] ss:$16 sps:$4 sm:$0xff]   ;;  %v3558_v13 = vld [vmem:[%s4847_s4 + $0x40] ss:$16 sps:$4 sm:$0xff]   ;;  %v3559_v14 = vld [vmem:[%s4847_s4 + $0x48] ss:$16 sps:$4 sm:$0xff]  }
 0x138   : > { %v3560_v15 = vld [vmem:[%s4847_s4 + $0x64] ss:$16 sps:$4 sm:$0xff]   ;;  %v3562_v16 = vld [vmem:[%s4847_s4 + $0x6c] ss:$16 sps:$4 sm:$0xff]   ;;  %v3564_v17 = vld [vmem:[%s4847_s4 + $0x60] ss:$16 sps:$4 sm:$0xff]  }
 0x139   : > { %v3565_v18 = vld [vmem:[%s4847_s4 + $0x68] ss:$16 sps:$4 sm:$0xff]   ;;  %v3566_v19 = vld [vmem:[%s4847_s4 + $0x84] ss:$16 sps:$4 sm:$0xff]   ;;  %v3568_v20 = vld [vmem:[%s4847_s4 + $0x8c] ss:$16 sps:$4 sm:$0xff]  }
 0x13a   : > { %2191 = vmatpush1.bf16.msra.mxu0 %v3552_v9  ;;  %2355 = vmatpush1.bf16.msra.mxu1 %v3553_v10  ;;  %v3570_v21 = vld [vmem:[%s4847_s4 + $0x80] ss:$16 sps:$4 sm:$0xff]   ;;  %v3571_v22 = vld [vmem:[%s4847_s4 + $0x88] ss:$16 sps:$4 sm:$0xff]   ;;  %v3572_v23 = vld [vmem:[%s4847_s4 + $0xa4] ss:$16 sps:$4 sm:$0xff]  }
 0x13b   : > { %2192 = vmatprep.subr.bf16.mxu0 %v3554_v11  ;;  %2356 = vmatprep.subr.bf16.mxu1 %v3556_v12  ;;  %v3574_v24 = vld [vmem:[%s4847_s4 + $0xac] ss:$16 sps:$4 sm:$0xff]   ;;  %v3576_v25 = vld [vmem:[%s4847_s4 + $0xa0] ss:$16 sps:$4 sm:$0xff]   ;;  %v3577_v26 = vld [vmem:[%s4847_s4 + $0xa8] ss:$16 sps:$4 sm:$0xff]  }
 0x13c   : > { %v3578_v27 = vld [vmem:[%s4847_s4 + $0xc4] ss:$16 sps:$4 sm:$0xff]   ;;  %v3580_v28 = vld [vmem:[%s4847_s4 + $0xcc] ss:$16 sps:$4 sm:$0xff]   ;;  %v3582_v29 = vld [vmem:[%s4847_s4 + $0xc0] ss:$16 sps:$4 sm:$0xff]  }
 0x13d   : > { %v3583_v30 = vld [vmem:[%s4847_s4 + $0xc8] ss:$16 sps:$4 sm:$0xff]   ;;  %v3584_v31 = vld [vmem:[%s4847_s4 + $0xe4] ss:$16 sps:$4 sm:$0xff]   ;;  %v3586_v32 = vld [vmem:[%s4847_s4 + $0xec] ss:$16 sps:$4 sm:$0xff]  }
 0x13e   : > { %2193 = vmatpush1.bf16.msra.mxu0 %v3558_v13  ;;  %2357 = vmatpush1.bf16.msra.mxu1 %v3559_v14  ;;  %v3588_v33 = vld [vmem:[%s4847_s4 + $0xe0] ss:$16 sps:$4 sm:$0xff]   ;;  %v3589_v34 = vld [vmem:[%s4847_s4 + $0xe8] ss:$16 sps:$4 sm:$0xff]   ;;  %v3590_v35 = vld [vmem:[%s4847_s4 + $0x104] ss:$16 sps:$4 sm:$0xff]  }
 0x13f   : > { %2194 = vmatprep.subr.bf16.mxu0 %v3560_v15  ;;  %2358 = vmatprep.subr.bf16.mxu1 %v3562_v16  ;;  %v3592_v36 = vld [vmem:[%s4847_s4 + $0x10c] ss:$16 sps:$4 sm:$0xff]   ;;  %v3594_v37 = vld [vmem:[%s4847_s4 + $0x100] ss:$16 sps:$4 sm:$0xff]   ;;  %v3595_v38 = vld [vmem:[%s4847_s4 + $0x108] ss:$16 sps:$4 sm:$0xff]  }
 0x140   : > { %v3596_v39 = vld [vmem:[%s4847_s4 + $0x124] ss:$16 sps:$4 sm:$0xff]   ;;  %v3598_v40 = vld [vmem:[%s4847_s4 + $0x12c] ss:$16 sps:$4 sm:$0xff]   ;;  %v3600_v41 = vld [vmem:[%s4847_s4 + $0x120] ss:$16 sps:$4 sm:$0xff]  }
 0x141   : > { %v3601_v42 = vld [vmem:[%s4847_s4 + $0x128] ss:$16 sps:$4 sm:$0xff]   ;;  %v3602_v43 = vld [vmem:[%s4847_s4 + $0x144] ss:$16 sps:$4 sm:$0xff]   ;;  %v3604_v44 = vld [vmem:[%s4847_s4 + $0x14c] ss:$16 sps:$4 sm:$0xff]  }
 0x142   : > { %2195 = vmatpush1.bf16.msra.mxu0 %v3564_v17  ;;  %2359 = vmatpush1.bf16.msra.mxu1 %v3565_v18  ;;  %v3606_v45 = vld [vmem:[%s4847_s4 + $0x140] ss:$16 sps:$4 sm:$0xff]   ;;  %v3607_v46 = vld [vmem:[%s4847_s4 + $0x148] ss:$16 sps:$4 sm:$0xff]   ;;  %v3608_v47 = vld [vmem:[%s4847_s4 + $0x164] ss:$16 sps:$4 sm:$0xff]  }
 0x143   : > { %2196 = vmatprep.subr.bf16.mxu0 %v3566_v19  ;;  %2360 = vmatprep.subr.bf16.mxu1 %v3568_v20  ;;  %v3610_v48 = vld [vmem:[%s4847_s4 + $0x16c] ss:$16 sps:$4 sm:$0xff]   ;;  %v3612_v49 = vld [vmem:[%s4847_s4 + $0x160] ss:$16 sps:$4 sm:$0xff]   ;;  %v3613_v50 = vld [vmem:[%s4847_s4 + $0x168] ss:$16 sps:$4 sm:$0xff]  }
 0x144   : > { %v3614_v51 = vld [vmem:[%s4847_s4 + $0x184] ss:$16 sps:$4 sm:$0xff]   ;;  %v3616_v52 = vld [vmem:[%s4847_s4 + $0x18c] ss:$16 sps:$4 sm:$0xff]   ;;  %v3618_v53 = vld [vmem:[%s4847_s4 + $0x180] ss:$16 sps:$4 sm:$0xff]  }
 0x145   : > { %v3619_v54 = vld [vmem:[%s4847_s4 + $0x188] ss:$16 sps:$4 sm:$0xff]   ;;  %v3620_v55 = vld [vmem:[%s4847_s4 + $0x1a4] ss:$16 sps:$4 sm:$0xff]   ;;  %v3622_v56 = vld [vmem:[%s4847_s4 + $0x1ac] ss:$16 sps:$4 sm:$0xff]  }
 0x146   : > { %2197 = vmatpush1.bf16.msra.mxu0 %v3570_v21  ;;  %2361 = vmatpush1.bf16.msra.mxu1 %v3571_v22  ;;  %v3624_v57 = vld [vmem:[%s4847_s4 + $0x1a0] ss:$16 sps:$4 sm:$0xff]   ;;  %v3625_v58 = vld [vmem:[%s4847_s4 + $0x1a8] ss:$16 sps:$4 sm:$0xff]   ;;  %v3626_v59 = vld [vmem:[%s4847_s4 + $0x1c4] ss:$16 sps:$4 sm:$0xff]  }
 0x147   : > { %2198 = vmatprep.subr.bf16.mxu0 %v3572_v23  ;;  %2362 = vmatprep.subr.bf16.mxu1 %v3574_v24  ;;  %v3628_v60 = vld [vmem:[%s4847_s4 + $0x1cc] ss:$16 sps:$4 sm:$0xff]   ;;  %v3630_v61 = vld [vmem:[%s4847_s4 + $0x1c0] ss:$16 sps:$4 sm:$0xff]   ;;  %v3631_v62 = vld [vmem:[%s4847_s4 + $0x1c8] ss:$16 sps:$4 sm:$0xff]  }
 0x148   : > { %v3632_v63 = vld [vmem:[%s4847_s4 + $0x1e4] ss:$16 sps:$4 sm:$0xff]   ;;  %v3634_v0 = vld [vmem:[%s4847_s4 + $0x1ec] ss:$16 sps:$4 sm:$0xff]   ;;  %v3636_v1 = vld [vmem:[%s4847_s4 + $0x1e0] ss:$16 sps:$4 sm:$0xff]  }
 0x149   : > { %v3637_v2 = vld [vmem:[%s4847_s4 + $0x1e8] ss:$16 sps:$4 sm:$0xff]   ;;  %v3642_v3 = vld [vmem:[%s4847_s4 + $0x204] ss:$16 sps:$4 sm:$0xff]   ;;  %v3645_v4 = vld [vmem:[%s4847_s4 + $0x20c] ss:$16 sps:$4 sm:$0xff]  }
 0x14a   : > { %2199 = vmatpush1.bf16.msra.mxu0 %v3576_v25  ;;  %2363 = vmatpush1.bf16.msra.mxu1 %v3577_v26  ;;  %v4916_v6 = vshrl.u32 %v497_v5, 7  ;;  %v489_v9 = vld [vmem:[%s410_s2] sm:$0xff]  ;;  %v490_v16 = vld [vmem:[%s410_s2 + $0x8] sm:$0x11] }
 0x14b   : > { %2200 = vmatprep.subr.bf16.mxu0 %v3578_v27  ;;  %2364 = vmatprep.subr.bf16.mxu1 %v3580_v28  ;;  %v495_v10 = vld [vmem:[#allocation11] sm:$0x3]  ;;  %v491_v11 = vunpack.c.l.bf16 %v489_v9  ;;  %v492_v12 = vunpack.c.h.bf16 %v489_v9  ;;  %v511_v15 = vld [vmem:[#allocation13] sm:$0x3]  ;;  %v493_v21 = vunpack.c.l.bf16 %v490_v16  ;;  %v494_v22 = vunpack.c.h.bf16 %v490_v16 }
 0x14c   : > { %v4919_v7 = vsub.s32 0, %v4916_v6  ;;  %v4922_v8 = vsub.s32 1, %v4916_v6 }
 0x14e   : > { %2201 = vmatpush1.bf16.msra.mxu0 %v3582_v29  ;;  %2365 = vmatpush1.bf16.msra.mxu1 %v3583_v30  ;;  %v500_v13 = vrot.slane %v495_v10, %v4919_v7  ;;  %v504_v14 = vrot.slane %v495_v10, %v4922_v8  ;;  %v516_v17 = vrot.slane %v511_v15, %v4919_v7 }
 0x14f   : > { %2202 = vmatprep.subr.bf16.mxu0 %v3584_v31  ;;  %2366 = vmatprep.subr.bf16.mxu1 %v3586_v32  ;;  %v520_v18 = vrot.slane %v511_v15, %v4922_v8 }
 0x150   : > { %v507_v19 = vmul.f32 %v500_v13, %v491_v11  ;;  %v508_v20 = vmul.f32 %v504_v14, %v492_v12  ;;  %v509_v25 = vmul.f32 %v500_v13, %v493_v21  ;;  %v510_v26 = vmul.f32 %v504_v14, %v494_v22  ;;  %v3648_v11 = vld [vmem:[%s4847_s4 + $0x224] ss:$16 sps:$4 sm:$0xff]   ;;  %v3651_v12 = vld [vmem:[%s4847_s4 + $0x22c] ss:$16 sps:$4 sm:$0xff]   ;;  %v3652_v22 = vld [vmem:[%s4847_s4 + $0x240] ss:$16 sps:$4 sm:$0xff]  }
 0x152   : > { %2203 = vmatpush1.bf16.msra.mxu0 %v3588_v33  ;;  %2367 = vmatpush1.bf16.msra.mxu1 %v3589_v34  ;;  %v523_v23 = vadd.f32 %v516_v17, %v507_v19  ;;  %v524_v24 = vadd.f32 %v520_v18, %v508_v20  ;;  %v525_v29 = vadd.f32 %v516_v17, %v509_v25  ;;  %v3646_v17 = vld [vmem:[%s4847_s4 + $0x220] ss:$16 sps:$4 sm:$0xff]   ;;  %v3654_v19 = vld [vmem:[%s4847_s4 + $0x244] ss:$16 sps:$4 sm:$0xff]   ;;  %v3659_v20 = vld [vmem:[%s4847_s4 + $0x24c] ss:$16 sps:$4 sm:$0xff]  }
 0x153   : > { %2204 = vmatprep.subr.bf16.mxu0 %v3590_v35  ;;  %2368 = vmatprep.subr.bf16.mxu1 %v3592_v36  ;;  %v526_v30 = vadd.f32 %v520_v18, %v510_v26  ;;  %v3649_v18 = vld [vmem:[%s4847_s4 + $0x228] ss:$16 sps:$4 sm:$0xff]   ;;  %v3665_v25 = vld [vmem:[%s4847_s4 + $0x26c] ss:$16 sps:$4 sm:$0xff]   ;;  %v3660_v26 = vld [vmem:[%s4847_s4 + $0x260] ss:$16 sps:$4 sm:$0xff]  }
 0x154   : > { %v531_v27 = vmul.f32 0.2, %v523_v23  ;;  %v532_v28 = vmul.f32 0.2, %v524_v24  ;;  %vm527_vm0 = vcmp.ge.f32.partialorder %v523_v23, 0.0  ;;  %vm528_vm1 = vcmp.ge.f32.partialorder %v524_v24, 0.0 }
 0x155   : > { %v533_v33 = vmul.f32 0.2, %v525_v29  ;;  %v534_v34 = vmul.f32 0.2, %v526_v30  ;;  %vm529_vm2 = vcmp.ge.f32.partialorder %v525_v29, 0.0  ;;  %vm530_vm3 = vcmp.ge.f32.partialorder %v526_v30, 0.0 }
 0x156   : > { %2205 = vmatpush1.bf16.msra.mxu0 %v3594_v37  ;;  %2369 = vmatpush1.bf16.msra.mxu1 %v3595_v38  ;;  %v535_v31 = vsel %vm527_vm0, %v523_v23, %v531_v27  ;;  %v536_v32 = vsel %vm528_vm1, %v524_v24, %v532_v28  ;;  %v3657_v23 = vld [vmem:[%s4847_s4 + $0x248] ss:$16 sps:$4 sm:$0xff]   ;;  %v3662_v24 = vld [vmem:[%s4847_s4 + $0x264] ss:$16 sps:$4 sm:$0xff]  }
 0x157   : > { %2206 = vmatprep.subr.bf16.mxu0 %v3596_v39  ;;  %2370 = vmatprep.subr.bf16.mxu1 %v3598_v40  ;;  %v537_v38 = vsel %vm529_vm2, %v525_v29, %v533_v33  ;;  %v538_v39 = vsel %vm530_vm3, %v526_v30, %v534_v34  ;;  %v3663_v27 = vld [vmem:[%s4847_s4 + $0x268] ss:$16 sps:$4 sm:$0xff]   ;;  %v3668_v28 = vld [vmem:[%s4847_s4 + $0x284] ss:$16 sps:$4 sm:$0xff]   ;;  %v3671_v29 = vld [vmem:[%s4847_s4 + $0x28c] ss:$16 sps:$4 sm:$0xff]  }
 0x158   : > { %v3666_v30 = vld [vmem:[%s4847_s4 + $0x280] ss:$16 sps:$4 sm:$0xff]   ;;  %v3677_v33 = vld [vmem:[%s4847_s4 + $0x2ac] ss:$16 sps:$4 sm:$0xff]  }
 0x159   : > { %v3672_v34 = vld [vmem:[%s4847_s4 + $0x2a0] ss:$16 sps:$4 sm:$0xff]  }
 0x15a   : > { %2207 = vmatpush1.bf16.msra.mxu0 %v3600_v41  ;;  %2371 = vmatpush1.bf16.msra.mxu1 %v3601_v42 }
 0x15b   : > { %2208 = vmatprep.subr.bf16.mxu0 %v3602_v43  ;;  %2372 = vmatprep.subr.bf16.mxu1 %v3604_v44 }
 0x15e   : > { %2209 = vmatpush1.bf16.msra.mxu0 %v3606_v45  ;;  %2373 = vmatpush1.bf16.msra.mxu1 %v3607_v46 }
 0x15f   : > { %2210 = vmatprep.subr.bf16.mxu0 %v3608_v47  ;;  %2374 = vmatprep.subr.bf16.mxu1 %v3610_v48 }
 0x162   : > { %2211 = vmatpush1.bf16.msra.mxu0 %v3612_v49  ;;  %2375 = vmatpush1.bf16.msra.mxu1 %v3613_v50 }
 0x163   : > { %2212 = vmatprep.subr.bf16.mxu0 %v3614_v51  ;;  %2376 = vmatprep.subr.bf16.mxu1 %v3616_v52 }
 0x166   : > { %2213 = vmatpush1.bf16.msra.mxu0 %v3618_v53  ;;  %2377 = vmatpush1.bf16.msra.mxu1 %v3619_v54 }
 0x167   : > { %2214 = vmatprep.subr.bf16.mxu0 %v3620_v55  ;;  %2378 = vmatprep.subr.bf16.mxu1 %v3622_v56 }
 0x16a   : > { %2215 = vmatpush1.bf16.msra.mxu0 %v3624_v57  ;;  %2379 = vmatpush1.bf16.msra.mxu1 %v3625_v58 }
 0x16b   : > { %2216 = vmatprep.subr.bf16.mxu0 %v3626_v59  ;;  %2380 = vmatprep.subr.bf16.mxu1 %v3628_v60 }
 0x16e   : > { %2217 = vmatpush1.bf16.msra.mxu0 %v3630_v61  ;;  %2381 = vmatpush1.bf16.msra.mxu1 %v3631_v62 }
 0x16f   : > { %2218 = vmatprep.subr.bf16.mxu0 %v3632_v63  ;;  %2382 = vmatprep.subr.bf16.mxu1 %v3634_v0  ;;  %v3722_v0 = vld [vmem:[%s4847_s4 + $0x3a4] ss:$16 sps:$4 sm:$0xff]  }
 0x172   : > { %2219 = vmatpush1.bf16.msra.mxu0 %v3636_v1  ;;  %2383 = vmatpush1.bf16.msra.mxu1 %v3637_v2 }
 0x173   : > { %2229 = vmatprep.subr.bf16.mxu0 %v3642_v3  ;;  %2393 = vmatprep.subr.bf16.mxu1 %v3645_v4  ;;  %v3640_v3 = vld [vmem:[%s4847_s4 + $0x200] ss:$16 sps:$4 sm:$0xff]   ;;  %v3643_v4 = vld [vmem:[%s4847_s4 + $0x208] ss:$16 sps:$4 sm:$0xff]  }
 0x1ad   : > { %v544_v35 = vpop.permute.xlu0 %543 }
 0x1ae   : > { %v551_v36 = vmul.f32 %v544_v35, %v535_v31  ;;  %v552_v37 = vmul.f32 %v544_v35, %v536_v32  ;;  %v3669_v31 = vld [vmem:[%s4847_s4 + $0x288] ss:$16 sps:$4 sm:$0xff]   ;;  %v3674_v32 = vld [vmem:[%s4847_s4 + $0x2a4] ss:$16 sps:$4 sm:$0xff]  }
 0x1af   : > { %v3675_v35 = vld [vmem:[%s4847_s4 + $0x2a8] ss:$16 sps:$4 sm:$0xff]  }
 0x1b0   : > { %v3310_v40 = vpack.c.bf16 %v552_v37, %v551_v36  ;;  %v3680_v36 = vld [vmem:[%s4847_s4 + $0x2c4] ss:$16 sps:$4 sm:$0xff]   ;;  %v3683_v37 = vld [vmem:[%s4847_s4 + $0x2cc] ss:$16 sps:$4 sm:$0xff]  }
 0x1b1   : > { %v549_v41 = vpop.permute.xlu0 %548 }
 0x1b2   : > { %567 = vst [vmem:[#allocation2] sm:$0xff] %v3310_v40  ;;  %v573_v42 = vshrl.u32 %v3310_v40, 16  ;;  %v576_v43 = vshll.u32 %v3310_v40, 16  ;;  %v553_v44 = vmul.f32 %v549_v41, %v537_v38  ;;  %v554_v45 = vmul.f32 %v549_v41, %v538_v39  ;;  %v3678_v38 = vld [vmem:[%s4847_s4 + $0x2c0] ss:$16 sps:$4 sm:$0xff]  }
 0x1b3   : > { %v3681_v39 = vld [vmem:[%s4847_s4 + $0x2c8] ss:$16 sps:$4 sm:$0xff]   ;;  %v3686_v40 = vld [vmem:[%s4847_s4 + $0x2e4] ss:$16 sps:$4 sm:$0xff]   ;;  %v3689_v41 = vld [vmem:[%s4847_s4 + $0x2ec] ss:$16 sps:$4 sm:$0xff]  }
 0x1b4   : > { %v575_v46 = vrot.slane %v573_v42, 4  ;;  %v578_v47 = vrot.slane %v576_v43, 5  ;;  %v3311_v48 = vpack.c.bf16 %v554_v45, %v553_v44  ;;  %v3684_v42 = vld [vmem:[%s4847_s4 + $0x2e0] ss:$16 sps:$4 sm:$0xff]   ;;  %v3687_v43 = vld [vmem:[%s4847_s4 + $0x2e8] ss:$16 sps:$4 sm:$0xff]  }
 0x1b5   : > { %v3692_v44 = vld [vmem:[%s4847_s4 + $0x304] ss:$16 sps:$4 sm:$0xff]   ;;  %v3695_v45 = vld [vmem:[%s4847_s4 + $0x30c] ss:$16 sps:$4 sm:$0xff]  }
 0x1b6   : > { %568 = vst [vmem:[#allocation2 + $0x8] sm:$0x11] %v3311_v48  ;;  %v579_v49 = vor.u32 %v578_v47, %v575_v46  ;;  %v3690_v46 = vld [vmem:[%s4847_s4 + $0x300] ss:$16 sps:$4 sm:$0xff]   ;;  %v3693_v47 = vld [vmem:[%s4847_s4 + $0x308] ss:$16 sps:$4 sm:$0xff]  }
 0x1b7   : > { %v3698_v48 = vld [vmem:[%s4847_s4 + $0x324] ss:$16 sps:$4 sm:$0xff]  }
 0x1b8   : > { %v580_v50 = vrot.slane %v579_v49, 4  ;;  %v3701_v49 = vld [vmem:[%s4847_s4 + $0x32c] ss:$16 sps:$4 sm:$0xff]  }
 0x1b9   : > { %v583_v51 = vld [vmem:[#allocation2] sm:$0xee] }
 0x1ba   : > { %v569_v52 = vld [vmem:[#allocation2] sm:$0x77]  ;;  %v589_v53 = vshrl.u32 %v583_v51, 16  ;;  %v592_v54 = vshll.u32 %v583_v51, 16  ;;  %582 = vst [vmem:[#allocation3 + $0x8] sm:$0x77] %v580_v50 }
 0x1bb   : > { %570 = vst [vmem:[#allocation3] sm:$0x77] %v569_v52  ;;  %v604_v55 = vld [vmem:[#allocation2] sm:$0xcc]  ;;  %v3699_v51 = vld [vmem:[%s4847_s4 + $0x328] ss:$16 sps:$4 sm:$0xff]  }
 0x1bc   : > { %v591_v56 = vrot.slane %v589_v53, 5  ;;  %v594_v57 = vrot.slane %v592_v54, 6  ;;  %v3026_v61 = vrot.slane %v604_v55, 10  ;;  %v3696_v50 = vld [vmem:[%s4847_s4 + $0x320] ss:$16 sps:$4 sm:$0xff]  }
 0x1bd   : > { %v584_v58 = vld [vmem:[#allocation2 + $0x8] sm:$0x11]  ;;  %v3704_v52 = vld [vmem:[%s4847_s4 + $0x344] ss:$16 sps:$4 sm:$0xff]   ;;  %v3702_v54 = vld [vmem:[%s4847_s4 + $0x340] ss:$16 sps:$4 sm:$0xff]  }
 0x1be   : > { %v605_v59 = vld [vmem:[#allocation2 + $0x8] sm:$0x11]  ;;  %v595_v60 = vor.u32 %v594_v57, %v591_v56  ;;  %v598_v62 = vshll.u32 %v584_v58, 16  ;;  %v3710_v56 = vld [vmem:[%s4847_s4 + $0x364] ss:$16 sps:$4 sm:$0xff]  }
 0x1bf   : > { %v613_v63 = vrot.slane %v605_v59, 6  ;;  %v3707_v53 = vld [vmem:[%s4847_s4 + $0x34c] ss:$16 sps:$4 sm:$0xff]   ;;  %v3705_v55 = vld [vmem:[%s4847_s4 + $0x348] ss:$16 sps:$4 sm:$0xff]  }
 0x1c0   : > { %v596_v1 = vrot.slane %v595_v60, 4  ;;  %v600_v2 = vrot.slane %v598_v62, 6  ;;  %v3713_v57 = vld [vmem:[%s4847_s4 + $0x36c] ss:$16 sps:$4 sm:$0xff]   ;;  %v3708_v58 = vld [vmem:[%s4847_s4 + $0x360] ss:$16 sps:$4 sm:$0xff]  }
 0x1c1   : > { %v614_v9 = vsel %vm610_vm8, %v3026_v61, %v613_v63  ;;  %v4940_v13 = vld [vmem:[#allocation3 + $0x8] sm:$0x77]  ;;  %v3716_v60 = vld [vmem:[%s4847_s4 + $0x384] ss:$16 sps:$4 sm:$0xff]   ;;  %v3714_v62 = vld [vmem:[%s4847_s4 + $0x380] ss:$16 sps:$4 sm:$0xff]  }
 0x1c2   : > { %v876_v10 = vld [vmem:[#allocation3] sm:$0x77]  ;;  %616 = vst [vmem:[#allocation3 + $0x18] sm:$0x77] %v614_v9  ;;  %v601_v16 = vsel %vm4932_vm9, %v596_v1, %v600_v2  ;;  %v3032_v21 = vcombine.high %v4940_v13, %v4940_v13  ;;  %v3711_v59 = vld [vmem:[%s4847_s4 + $0x368] ss:$16 sps:$4 sm:$0xff]  }
 0x1c3   : > { %v3029_v14 = vcombine.low %v876_v10, %v876_v10  ;;  %v3030_v15 = vcombine.high %v876_v10, %v876_v10  ;;  %603 = vst [vmem:[#allocation3 + $0x10] sm:$0x77] %v601_v16  ;;  %v3719_v61 = vld [vmem:[%s4847_s4 + $0x38c] ss:$16 sps:$4 sm:$0xff]   ;;  %v3717_v63 = vld [vmem:[%s4847_s4 + $0x388] ss:$16 sps:$4 sm:$0xff]  }
 0x1c4   : > { %v3725_v1 = vld [vmem:[%s4847_s4 + $0x3ac] ss:$16 sps:$4 sm:$0xff]   ;;  %v3720_v2 = vld [vmem:[%s4847_s4 + $0x3a0] ss:$16 sps:$4 sm:$0xff]   ;;  %v3735_v16 = vld [vmem:[%s4847_s4 + $0x3e8] ss:$16 sps:$4 sm:$0xff]  }
 0x1c5   : > { %2220 = vmatprep.mubr.bf16.mxu0 %v3030_v15  ;;  %2384 = vmatprep.mubr.bf16.mxu1 %v3030_v15  ;;  %v3731_v9 = vld [vmem:[%s4847_s4 + $0x3cc] ss:$16 sps:$4 sm:$0xff]   ;;  %v3726_v10 = vld [vmem:[%s4847_s4 + $0x3c0] ss:$16 sps:$4 sm:$0xff]  }
 0x1c6   : > { %2221 = vmatmul.mubr.bf16.vlgmr.msra.gmra.mrb[0].mxu0 %v3029_v14  ;;  %2385 = vmatmul.mubr.bf16.vlgmr.msra.gmra.mrb[0].mxu1 %v3029_v14  ;;  %v3737_v14 = vld [vmem:[%s4847_s4 + $0x3ec] ss:$16 sps:$4 sm:$0xff]   ;;  %v3732_v15 = vld [vmem:[%s4847_s4 + $0x3e0] ss:$16 sps:$4 sm:$0xff]  }
 0x1c7   : > { %2230 = vmatpush1.bf16.msra.mxu0 %v3640_v3  ;;  %2394 = vmatpush1.bf16.msra.mxu1 %v3643_v4  ;;  %v3723_v3 = vld [vmem:[%s4847_s4 + $0x3a8] ss:$16 sps:$4 sm:$0xff]   ;;  %v3728_v4 = vld [vmem:[%s4847_s4 + $0x3c4] ss:$16 sps:$4 sm:$0xff]  }
 0x1c8   : > { %2231 = vmatprep.subr.bf16.mxu0 %v3648_v11  ;;  %2395 = vmatprep.subr.bf16.mxu1 %v3651_v12  ;;  %v3729_v11 = vld [vmem:[%s4847_s4 + $0x3c8] ss:$16 sps:$4 sm:$0xff]   ;;  %v3734_v12 = vld [vmem:[%s4847_s4 + $0x3e4] ss:$16 sps:$4 sm:$0xff]  }
 0x1c9   : > { %2261 = vmatprep.mubr.bf16.mxu0 %v3032_v21  ;;  %2425 = vmatprep.mubr.bf16.mxu1 %v3032_v21  ;;  %v3031_v21 = vcombine.low %v4940_v13, %v4940_v13  ;;  %v3749_v13 = vld [vmem:[%s4847_s4 + $0x428] ss:$16 sps:$4 sm:$0xff]  }
 0x1cb   : > { %2232 = vmatpush1.bf16.msra.mxu0 %v3646_v17  ;;  %2396 = vmatpush1.bf16.msra.mxu1 %v3649_v18  ;;  %v3740_v17 = vld [vmem:[%s4847_s4 + $0x404] ss:$16 sps:$4 sm:$0xff]   ;;  %v3743_v18 = vld [vmem:[%s4847_s4 + $0x40c] ss:$16 sps:$4 sm:$0xff]  }
 0x1cc   : > { %2233 = vmatprep.subr.bf16.mxu0 %v3654_v19  ;;  %2397 = vmatprep.subr.bf16.mxu1 %v3659_v20  ;;  %v5006_v19 = vld [vmem:[#allocation3 + $0x10] sm:$0x77] }
 0x1cd   : > { %v3738_v20 = vld [vmem:[%s4847_s4 + $0x400] ss:$16 sps:$4 sm:$0xff]  }
 0x1cf   : > { %2234 = vmatpush1.bf16.msra.mxu0 %v3652_v22  ;;  %2398 = vmatpush1.bf16.msra.mxu1 %v3657_v23  ;;  %v3741_v22 = vld [vmem:[%s4847_s4 + $0x408] ss:$16 sps:$4 sm:$0xff]   ;;  %v3034_v23 = vcombine.high %v5006_v19, %v5006_v19 }
 0x1d0   : > { %2235 = vmatprep.subr.bf16.mxu0 %v3662_v24  ;;  %2399 = vmatprep.subr.bf16.mxu1 %v3665_v25  ;;  %v3748_v24 = vld [vmem:[%s4847_s4 + $0x424] ss:$16 sps:$4 sm:$0xff]   ;;  %v3751_v25 = vld [vmem:[%s4847_s4 + $0x42c] ss:$16 sps:$4 sm:$0xff]  }
 0x1d3   : > { %2236 = vmatpush1.bf16.msra.mxu0 %v3660_v26  ;;  %2400 = vmatpush1.bf16.msra.mxu1 %v3663_v27  ;;  %v3746_v26 = vld [vmem:[%s4847_s4 + $0x420] ss:$16 sps:$4 sm:$0xff]   ;;  %v3754_v27 = vld [vmem:[%s4847_s4 + $0x444] ss:$16 sps:$4 sm:$0xff]  }
 0x1d4   : > { %2237 = vmatprep.subr.bf16.mxu0 %v3668_v28  ;;  %2401 = vmatprep.subr.bf16.mxu1 %v3671_v29  ;;  %v3757_v28 = vld [vmem:[%s4847_s4 + $0x44c] ss:$16 sps:$4 sm:$0xff]   ;;  %v3752_v29 = vld [vmem:[%s4847_s4 + $0x440] ss:$16 sps:$4 sm:$0xff]  }
 0x1d7   : > { %2238 = vmatpush1.bf16.msra.mxu0 %v3666_v30  ;;  %2402 = vmatpush1.bf16.msra.mxu1 %v3669_v31  ;;  %v3755_v30 = vld [vmem:[%s4847_s4 + $0x448] ss:$16 sps:$4 sm:$0xff]   ;;  %v3760_v31 = vld [vmem:[%s4847_s4 + $0x464] ss:$16 sps:$4 sm:$0xff]  }
 0x1d8   : > { %2239 = vmatprep.subr.bf16.mxu0 %v3674_v32  ;;  %2403 = vmatprep.subr.bf16.mxu1 %v3677_v33  ;;  %v3763_v32 = vld [vmem:[%s4847_s4 + $0x46c] ss:$16 sps:$4 sm:$0xff]   ;;  %v3758_v33 = vld [vmem:[%s4847_s4 + $0x460] ss:$16 sps:$4 sm:$0xff]  }
 0x1db   : > { %2240 = vmatpush1.bf16.msra.mxu0 %v3672_v34  ;;  %2404 = vmatpush1.bf16.msra.mxu1 %v3675_v35  ;;  %v3761_v34 = vld [vmem:[%s4847_s4 + $0x468] ss:$16 sps:$4 sm:$0xff]   ;;  %v3766_v35 = vld [vmem:[%s4847_s4 + $0x484] ss:$16 sps:$4 sm:$0xff]  }
 0x1dc   : > { %2241 = vmatprep.subr.bf16.mxu0 %v3680_v36  ;;  %2405 = vmatprep.subr.bf16.mxu1 %v3683_v37  ;;  %v3769_v36 = vld [vmem:[%s4847_s4 + $0x48c] ss:$16 sps:$4 sm:$0xff]   ;;  %v3764_v37 = vld [vmem:[%s4847_s4 + $0x480] ss:$16 sps:$4 sm:$0xff]  }
 0x1df   : > { %2242 = vmatpush1.bf16.msra.mxu0 %v3678_v38  ;;  %2406 = vmatpush1.bf16.msra.mxu1 %v3681_v39  ;;  %v3767_v38 = vld [vmem:[%s4847_s4 + $0x488] ss:$16 sps:$4 sm:$0xff]   ;;  %v3772_v39 = vld [vmem:[%s4847_s4 + $0x4a4] ss:$16 sps:$4 sm:$0xff]  }
 0x1e0   : > { %2243 = vmatprep.subr.bf16.mxu0 %v3686_v40  ;;  %2407 = vmatprep.subr.bf16.mxu1 %v3689_v41  ;;  %v3775_v40 = vld [vmem:[%s4847_s4 + $0x4ac] ss:$16 sps:$4 sm:$0xff]   ;;  %v3770_v41 = vld [vmem:[%s4847_s4 + $0x4a0] ss:$16 sps:$4 sm:$0xff]  }
 0x1e3   : > { %2244 = vmatpush1.bf16.msra.mxu0 %v3684_v42  ;;  %2408 = vmatpush1.bf16.msra.mxu1 %v3687_v43  ;;  %v3773_v42 = vld [vmem:[%s4847_s4 + $0x4a8] ss:$16 sps:$4 sm:$0xff]   ;;  %v3778_v43 = vld [vmem:[%s4847_s4 + $0x4c4] ss:$16 sps:$4 sm:$0xff]  }
 0x1e4   : > { %2245 = vmatprep.subr.bf16.mxu0 %v3692_v44  ;;  %2409 = vmatprep.subr.bf16.mxu1 %v3695_v45  ;;  %v3781_v44 = vld [vmem:[%s4847_s4 + $0x4cc] ss:$16 sps:$4 sm:$0xff]   ;;  %v3776_v45 = vld [vmem:[%s4847_s4 + $0x4c0] ss:$16 sps:$4 sm:$0xff]  }
 0x1e7   : > { %2246 = vmatpush1.bf16.msra.mxu0 %v3690_v46  ;;  %2410 = vmatpush1.bf16.msra.mxu1 %v3693_v47  ;;  %v3779_v46 = vld [vmem:[%s4847_s4 + $0x4c8] ss:$16 sps:$4 sm:$0xff]   ;;  %v3784_v47 = vld [vmem:[%s4847_s4 + $0x4e4] ss:$16 sps:$4 sm:$0xff]  }
 0x1e8   : > { %2247 = vmatprep.subr.bf16.mxu0 %v3698_v48  ;;  %2411 = vmatprep.subr.bf16.mxu1 %v3701_v49  ;;  %v3787_v48 = vld [vmem:[%s4847_s4 + $0x4ec] ss:$16 sps:$4 sm:$0xff]   ;;  %v3782_v49 = vld [vmem:[%s4847_s4 + $0x4e0] ss:$16 sps:$4 sm:$0xff]  }
 0x1eb   : > { %2248 = vmatpush1.bf16.msra.mxu0 %v3696_v50  ;;  %2412 = vmatpush1.bf16.msra.mxu1 %v3699_v51  ;;  %v3785_v50 = vld [vmem:[%s4847_s4 + $0x4e8] ss:$16 sps:$4 sm:$0xff]   ;;  %v3790_v51 = vld [vmem:[%s4847_s4 + $0x504] ss:$16 sps:$4 sm:$0xff]  }
 0x1ec   : > { %2249 = vmatprep.subr.bf16.mxu0 %v3704_v52  ;;  %2413 = vmatprep.subr.bf16.mxu1 %v3707_v53  ;;  %v3793_v52 = vld [vmem:[%s4847_s4 + $0x50c] ss:$16 sps:$4 sm:$0xff]   ;;  %v3788_v53 = vld [vmem:[%s4847_s4 + $0x500] ss:$16 sps:$4 sm:$0xff]  }
 0x1ef   : > { %2250 = vmatpush1.bf16.msra.mxu0 %v3702_v54  ;;  %2414 = vmatpush1.bf16.msra.mxu1 %v3705_v55  ;;  %v3791_v54 = vld [vmem:[%s4847_s4 + $0x508] ss:$16 sps:$4 sm:$0xff]   ;;  %v3796_v55 = vld [vmem:[%s4847_s4 + $0x524] ss:$16 sps:$4 sm:$0xff]  }
 0x1f0   : > { %2251 = vmatprep.subr.bf16.mxu0 %v3710_v56  ;;  %2415 = vmatprep.subr.bf16.mxu1 %v3713_v57  ;;  %v3799_v56 = vld [vmem:[%s4847_s4 + $0x52c] ss:$16 sps:$4 sm:$0xff]   ;;  %v3794_v57 = vld [vmem:[%s4847_s4 + $0x520] ss:$16 sps:$4 sm:$0xff]  }
 0x1f3   : > { %2252 = vmatpush1.bf16.msra.mxu0 %v3708_v58  ;;  %2416 = vmatpush1.bf16.msra.mxu1 %v3711_v59  ;;  %v3797_v58 = vld [vmem:[%s4847_s4 + $0x528] ss:$16 sps:$4 sm:$0xff]   ;;  %v3802_v59 = vld [vmem:[%s4847_s4 + $0x544] ss:$16 sps:$4 sm:$0xff]  }
 0x1f4   : > { %2253 = vmatprep.subr.bf16.mxu0 %v3716_v60  ;;  %2417 = vmatprep.subr.bf16.mxu1 %v3719_v61  ;;  %v3805_v60 = vld [vmem:[%s4847_s4 + $0x54c] ss:$16 sps:$4 sm:$0xff]   ;;  %v3800_v61 = vld [vmem:[%s4847_s4 + $0x540] ss:$16 sps:$4 sm:$0xff]  }
 0x1f7   : > { %2254 = vmatpush1.bf16.msra.mxu0 %v3714_v62  ;;  %2418 = vmatpush1.bf16.msra.mxu1 %v3717_v63  ;;  %v3803_v62 = vld [vmem:[%s4847_s4 + $0x548] ss:$16 sps:$4 sm:$0xff]   ;;  %v3808_v63 = vld [vmem:[%s4847_s4 + $0x564] ss:$16 sps:$4 sm:$0xff]  }
 0x1f8   : > { %2255 = vmatprep.subr.bf16.mxu0 %v3722_v0  ;;  %2419 = vmatprep.subr.bf16.mxu1 %v3725_v1  ;;  %v3811_v0 = vld [vmem:[%s4847_s4 + $0x56c] ss:$16 sps:$4 sm:$0xff]   ;;  %v3806_v1 = vld [vmem:[%s4847_s4 + $0x560] ss:$16 sps:$4 sm:$0xff]  }
 0x1fb   : > { %2256 = vmatpush1.bf16.msra.mxu0 %v3720_v2  ;;  %2420 = vmatpush1.bf16.msra.mxu1 %v3723_v3  ;;  %v3809_v2 = vld [vmem:[%s4847_s4 + $0x568] ss:$16 sps:$4 sm:$0xff]   ;;  %v3814_v3 = vld [vmem:[%s4847_s4 + $0x584] ss:$16 sps:$4 sm:$0xff]  }
 0x1fc   : > { %2257 = vmatprep.subr.bf16.mxu0 %v3728_v4  ;;  %2421 = vmatprep.subr.bf16.mxu1 %v3731_v9  ;;  %v3817_v4 = vld [vmem:[%s4847_s4 + $0x58c] ss:$16 sps:$4 sm:$0xff]   ;;  %v3812_v9 = vld [vmem:[%s4847_s4 + $0x580] ss:$16 sps:$4 sm:$0xff]  }
 0x1ff   : > { %2258 = vmatpush1.bf16.msra.mxu0 %v3726_v10  ;;  %2422 = vmatpush1.bf16.msra.mxu1 %v3729_v11  ;;  %v3815_v10 = vld [vmem:[%s4847_s4 + $0x588] ss:$16 sps:$4 sm:$0xff]   ;;  %v3820_v11 = vld [vmem:[%s4847_s4 + $0x5a4] ss:$16 sps:$4 sm:$0xff]  }
 0x200   : > { %2259 = vmatprep.subr.bf16.mxu0 %v3734_v12  ;;  %2423 = vmatprep.subr.bf16.mxu1 %v3737_v14  ;;  %v3823_v12 = vld [vmem:[%s4847_s4 + $0x5ac] ss:$16 sps:$4 sm:$0xff]   ;;  %v3818_v14 = vld [vmem:[%s4847_s4 + $0x5a0] ss:$16 sps:$4 sm:$0xff]  }
 0x203   : > { %2260 = vmatpush1.bf16.msra.mxu0 %v3732_v15  ;;  %2424 = vmatpush1.bf16.msra.mxu1 %v3735_v16  ;;  %v3821_v15 = vld [vmem:[%s4847_s4 + $0x5a8] ss:$16 sps:$4 sm:$0xff]   ;;  %v3826_v16 = vld [vmem:[%s4847_s4 + $0x5c4] ss:$16 sps:$4 sm:$0xff]  }
 0x204   : > { %2270 = vmatprep.subr.bf16.mxu0 %v3740_v17  ;;  %2434 = vmatprep.subr.bf16.mxu1 %v3743_v18  ;;  %v3829_v17 = vld [vmem:[%s4847_s4 + $0x5cc] ss:$16 sps:$4 sm:$0xff]   ;;  %v3824_v18 = vld [vmem:[%s4847_s4 + $0x5c0] ss:$16 sps:$4 sm:$0xff]  }
 0x206   : > { %2262 = vmatmul.mubr.bf16.vlgmr.msra.gmra.mrb[0].mxu0 %v3031_v21  ;;  %2426 = vmatmul.mubr.bf16.vlgmr.msra.gmra.mrb[0].mxu1 %v3031_v21  ;;  %v3832_v21 = vld [vmem:[%s4847_s4 + $0x5e4] ss:$16 sps:$4 sm:$0xff]  }
 0x207   : > { %2271 = vmatpush1.bf16.msra.mxu0 %v3738_v20  ;;  %2302 = vmatprep.mubr.bf16.mxu0 %v3034_v23  ;;  %v3827_v20 = vld [vmem:[%s4847_s4 + $0x5c8] ss:$16 sps:$4 sm:$0xff]  }
 0x208   : > { %2435 = vmatpush1.bf16.msra.mxu1 %v3741_v22  ;;  %2466 = vmatprep.mubr.bf16.mxu1 %v3034_v23  ;;  %v3835_v22 = vld [vmem:[%s4847_s4 + $0x5ec] ss:$16 sps:$4 sm:$0xff]   ;;  %v3830_v23 = vld [vmem:[%s4847_s4 + $0x5e0] ss:$16 sps:$4 sm:$0xff]  }
 0x209   : > { %2272 = vmatprep.subr.bf16.mxu0 %v3748_v24  ;;  %2436 = vmatprep.subr.bf16.mxu1 %v3751_v25  ;;  %v3833_v24 = vld [vmem:[%s4847_s4 + $0x5e8] ss:$16 sps:$4 sm:$0xff]   ;;  %v3838_v25 = vld [vmem:[%s4847_s4 + $0x604] ss:$16 sps:$4 sm:$0xff]  }
 0x20b   : > { %2273 = vmatpush1.bf16.msra.mxu0 %v3746_v26  ;;  %v3841_v26 = vld [vmem:[%s4847_s4 + $0x60c] ss:$16 sps:$4 sm:$0xff]  }
 0x20c   : > { %2437 = vmatpush1.bf16.msra.mxu1 %v3749_v13  ;;  %2274 = vmatprep.subr.bf16.mxu0 %v3754_v27  ;;  %v3836_v13 = vld [vmem:[%s4847_s4 + $0x600] ss:$16 sps:$4 sm:$0xff]   ;;  %v5077_v27 = vld [vmem:[#allocation3 + $0x18] sm:$0x77] }
 0x20d   : > { %2438 = vmatprep.subr.bf16.mxu1 %v3757_v28  ;;  %v3033_v28 = vcombine.low %v5006_v19, %v5006_v19  ;;  %v3847_v19 = vld [vmem:[%s4847_s4 + $0x628] ss:$16 sps:$4 sm:$0xff]  }
 0x20f   : > { %2275 = vmatpush1.bf16.msra.mxu0 %v3752_v29  ;;  %v3839_v29 = vld [vmem:[%s4847_s4 + $0x608] ss:$16 sps:$4 sm:$0xff]  }
 0x210   : > { %2439 = vmatpush1.bf16.msra.mxu1 %v3755_v30  ;;  %2276 = vmatprep.subr.bf16.mxu0 %v3760_v31  ;;  %v3846_v30 = vld [vmem:[%s4847_s4 + $0x624] ss:$16 sps:$4 sm:$0xff]   ;;  %v3036_v31 = vcombine.high %v5077_v27, %v5077_v27 }
 0x211   : > { %2440 = vmatprep.subr.bf16.mxu1 %v3763_v32  ;;  %v3849_v32 = vld [vmem:[%s4847_s4 + $0x62c] ss:$16 sps:$4 sm:$0xff]  }
 0x213   : > { %2277 = vmatpush1.bf16.msra.mxu0 %v3758_v33  ;;  %v3844_v33 = vld [vmem:[%s4847_s4 + $0x620] ss:$16 sps:$4 sm:$0xff]  }
 0x214   : > { %2441 = vmatpush1.bf16.msra.mxu1 %v3761_v34  ;;  %2278 = vmatprep.subr.bf16.mxu0 %v3766_v35  ;;  %v3852_v34 = vld [vmem:[%s4847_s4 + $0x644] ss:$16 sps:$4 sm:$0xff]   ;;  %v3855_v35 = vld [vmem:[%s4847_s4 + $0x64c] ss:$16 sps:$4 sm:$0xff]  }
 0x215   : > { %2442 = vmatprep.subr.bf16.mxu1 %v3769_v36  ;;  %v3850_v36 = vld [vmem:[%s4847_s4 + $0x640] ss:$16 sps:$4 sm:$0xff]  }
 0x217   : > { %2279 = vmatpush1.bf16.msra.mxu0 %v3764_v37  ;;  %v3853_v37 = vld [vmem:[%s4847_s4 + $0x648] ss:$16 sps:$4 sm:$0xff]  }
 0x218   : > { %2443 = vmatpush1.bf16.msra.mxu1 %v3767_v38  ;;  %2280 = vmatprep.subr.bf16.mxu0 %v3772_v39  ;;  %v3858_v38 = vld [vmem:[%s4847_s4 + $0x664] ss:$16 sps:$4 sm:$0xff]   ;;  %v3861_v39 = vld [vmem:[%s4847_s4 + $0x66c] ss:$16 sps:$4 sm:$0xff]  }
 0x219   : > { %2444 = vmatprep.subr.bf16.mxu1 %v3775_v40  ;;  %v3856_v40 = vld [vmem:[%s4847_s4 + $0x660] ss:$16 sps:$4 sm:$0xff]  }
 0x21b   : > { %2281 = vmatpush1.bf16.msra.mxu0 %v3770_v41  ;;  %v3859_v41 = vld [vmem:[%s4847_s4 + $0x668] ss:$16 sps:$4 sm:$0xff]  }
 0x21c   : > { %2445 = vmatpush1.bf16.msra.mxu1 %v3773_v42  ;;  %2282 = vmatprep.subr.bf16.mxu0 %v3778_v43  ;;  %v3864_v42 = vld [vmem:[%s4847_s4 + $0x684] ss:$16 sps:$4 sm:$0xff]   ;;  %v3867_v43 = vld [vmem:[%s4847_s4 + $0x68c] ss:$16 sps:$4 sm:$0xff]  }
 0x21d   : > { %2446 = vmatprep.subr.bf16.mxu1 %v3781_v44  ;;  %v3862_v44 = vld [vmem:[%s4847_s4 + $0x680] ss:$16 sps:$4 sm:$0xff]  }
 0x21f   : > { %2283 = vmatpush1.bf16.msra.mxu0 %v3776_v45  ;;  %v3865_v45 = vld [vmem:[%s4847_s4 + $0x688] ss:$16 sps:$4 sm:$0xff]  }
 0x220   : > { %2447 = vmatpush1.bf16.msra.mxu1 %v3779_v46  ;;  %2284 = vmatprep.subr.bf16.mxu0 %v3784_v47  ;;  %v3870_v46 = vld [vmem:[%s4847_s4 + $0x6a4] ss:$16 sps:$4 sm:$0xff]   ;;  %v3873_v47 = vld [vmem:[%s4847_s4 + $0x6ac] ss:$16 sps:$4 sm:$0xff]  }
 0x221   : > { %2448 = vmatprep.subr.bf16.mxu1 %v3787_v48  ;;  %v3868_v48 = vld [vmem:[%s4847_s4 + $0x6a0] ss:$16 sps:$4 sm:$0xff]  }
 0x223   : > { %2285 = vmatpush1.bf16.msra.mxu0 %v3782_v49  ;;  %v3871_v49 = vld [vmem:[%s4847_s4 + $0x6a8] ss:$16 sps:$4 sm:$0xff]  }
 0x224   : > { %2449 = vmatpush1.bf16.msra.mxu1 %v3785_v50  ;;  %2286 = vmatprep.subr.bf16.mxu0 %v3790_v51  ;;  %v3876_v50 = vld [vmem:[%s4847_s4 + $0x6c4] ss:$16 sps:$4 sm:$0xff]   ;;  %v3879_v51 = vld [vmem:[%s4847_s4 + $0x6cc] ss:$16 sps:$4 sm:$0xff]  }
 0x225   : > { %2450 = vmatprep.subr.bf16.mxu1 %v3793_v52  ;;  %v3874_v52 = vld [vmem:[%s4847_s4 + $0x6c0] ss:$16 sps:$4 sm:$0xff]  }
 0x227   : > { %2287 = vmatpush1.bf16.msra.mxu0 %v3788_v53  ;;  %v3877_v53 = vld [vmem:[%s4847_s4 + $0x6c8] ss:$16 sps:$4 sm:$0xff]  }
 0x228   : > { %2451 = vmatpush1.bf16.msra.mxu1 %v3791_v54  ;;  %2288 = vmatprep.subr.bf16.mxu0 %v3796_v55  ;;  %v3882_v54 = vld [vmem:[%s4847_s4 + $0x6e4] ss:$16 sps:$4 sm:$0xff]   ;;  %v3885_v55 = vld [vmem:[%s4847_s4 + $0x6ec] ss:$16 sps:$4 sm:$0xff]  }
 0x229   : > { %2452 = vmatprep.subr.bf16.mxu1 %v3799_v56  ;;  %v3880_v56 = vld [vmem:[%s4847_s4 + $0x6e0] ss:$16 sps:$4 sm:$0xff]  }
 0x22b   : > { %2289 = vmatpush1.bf16.msra.mxu0 %v3794_v57  ;;  %v3883_v57 = vld [vmem:[%s4847_s4 + $0x6e8] ss:$16 sps:$4 sm:$0xff]  }
 0x22c   : > { %2453 = vmatpush1.bf16.msra.mxu1 %v3797_v58  ;;  %2290 = vmatprep.subr.bf16.mxu0 %v3802_v59  ;;  %v3888_v58 = vld [vmem:[%s4847_s4 + $0x704] ss:$16 sps:$4 sm:$0xff]   ;;  %v3891_v59 = vld [vmem:[%s4847_s4 + $0x70c] ss:$16 sps:$4 sm:$0xff]  }
 0x22d   : > { %2454 = vmatprep.subr.bf16.mxu1 %v3805_v60  ;;  %v3886_v60 = vld [vmem:[%s4847_s4 + $0x700] ss:$16 sps:$4 sm:$0xff]  }
 0x22f   : > { %2291 = vmatpush1.bf16.msra.mxu0 %v3800_v61  ;;  %v3889_v61 = vld [vmem:[%s4847_s4 + $0x708] ss:$16 sps:$4 sm:$0xff]  }
 0x230   : > { %2455 = vmatpush1.bf16.msra.mxu1 %v3803_v62  ;;  %2292 = vmatprep.subr.bf16.mxu0 %v3808_v63  ;;  %v3894_v62 = vld [vmem:[%s4847_s4 + $0x724] ss:$16 sps:$4 sm:$0xff]   ;;  %v3897_v63 = vld [vmem:[%s4847_s4 + $0x72c] ss:$16 sps:$4 sm:$0xff]  }
 0x231   : > { %2456 = vmatprep.subr.bf16.mxu1 %v3811_v0  ;;  %v3892_v0 = vld [vmem:[%s4847_s4 + $0x720] ss:$16 sps:$4 sm:$0xff]  }
 0x233   : > { %2293 = vmatpush1.bf16.msra.mxu0 %v3806_v1  ;;  %v3895_v1 = vld [vmem:[%s4847_s4 + $0x728] ss:$16 sps:$4 sm:$0xff]  }
 0x234   : > { %2457 = vmatpush1.bf16.msra.mxu1 %v3809_v2  ;;  %2294 = vmatprep.subr.bf16.mxu0 %v3814_v3  ;;  %v3900_v2 = vld [vmem:[%s4847_s4 + $0x744] ss:$16 sps:$4 sm:$0xff]   ;;  %v3903_v3 = vld [vmem:[%s4847_s4 + $0x74c] ss:$16 sps:$4 sm:$0xff]  }
 0x235   : > { %2458 = vmatprep.subr.bf16.mxu1 %v3817_v4  ;;  %v3898_v4 = vld [vmem:[%s4847_s4 + $0x740] ss:$16 sps:$4 sm:$0xff]  }
 0x237   : > { %2295 = vmatpush1.bf16.msra.mxu0 %v3812_v9  ;;  %v3901_v9 = vld [vmem:[%s4847_s4 + $0x748] ss:$16 sps:$4 sm:$0xff]  }
 0x238   : > { %2459 = vmatpush1.bf16.msra.mxu1 %v3815_v10  ;;  %2296 = vmatprep.subr.bf16.mxu0 %v3820_v11  ;;  %v3906_v10 = vld [vmem:[%s4847_s4 + $0x764] ss:$16 sps:$4 sm:$0xff]   ;;  %v3909_v11 = vld [vmem:[%s4847_s4 + $0x76c] ss:$16 sps:$4 sm:$0xff]  }
 0x239   : > { %2460 = vmatprep.subr.bf16.mxu1 %v3823_v12  ;;  %v3904_v12 = vld [vmem:[%s4847_s4 + $0x760] ss:$16 sps:$4 sm:$0xff]  }
 0x23b   : > { %2297 = vmatpush1.bf16.msra.mxu0 %v3818_v14  ;;  %v3907_v14 = vld [vmem:[%s4847_s4 + $0x768] ss:$16 sps:$4 sm:$0xff]  }
 0x23c   : > { %2461 = vmatpush1.bf16.msra.mxu1 %v3821_v15  ;;  %2298 = vmatprep.subr.bf16.mxu0 %v3826_v16  ;;  %v3912_v15 = vld [vmem:[%s4847_s4 + $0x784] ss:$16 sps:$4 sm:$0xff]   ;;  %v3915_v16 = vld [vmem:[%s4847_s4 + $0x78c] ss:$16 sps:$4 sm:$0xff]  }
 0x23d   : > { %2462 = vmatprep.subr.bf16.mxu1 %v3829_v17  ;;  %v3910_v17 = vld [vmem:[%s4847_s4 + $0x780] ss:$16 sps:$4 sm:$0xff]  }
 0x23f   : > { %2299 = vmatpush1.bf16.msra.mxu0 %v3824_v18  ;;  %v3913_v18 = vld [vmem:[%s4847_s4 + $0x788] ss:$16 sps:$4 sm:$0xff]  }
 0x240   : > { %2463 = vmatpush1.bf16.msra.mxu1 %v3827_v20  ;;  %2300 = vmatprep.subr.bf16.mxu0 %v3832_v21  ;;  %v3918_v20 = vld [vmem:[%s4847_s4 + $0x7a4] ss:$16 sps:$4 sm:$0xff]   ;;  %v3921_v21 = vld [vmem:[%s4847_s4 + $0x7ac] ss:$16 sps:$4 sm:$0xff]  }
 0x241   : > { %2464 = vmatprep.subr.bf16.mxu1 %v3835_v22  ;;  %v3916_v22 = vld [vmem:[%s4847_s4 + $0x7a0] ss:$16 sps:$4 sm:$0xff]  }
 0x243   : > { %2301 = vmatpush1.bf16.msra.mxu0 %v3830_v23  ;;  %v3919_v23 = vld [vmem:[%s4847_s4 + $0x7a8] ss:$16 sps:$4 sm:$0xff]  }
 0x244   : > { %2465 = vmatpush1.bf16.msra.mxu1 %v3833_v24  ;;  %2311 = vmatprep.subr.bf16.mxu0 %v3838_v25  ;;  %v3924_v24 = vld [vmem:[%s4847_s4 + $0x7c4] ss:$16 sps:$4 sm:$0xff]   ;;  %v3927_v25 = vld [vmem:[%s4847_s4 + $0x7cc] ss:$16 sps:$4 sm:$0xff]  }
 0x245   : > { %2475 = vmatprep.subr.bf16.mxu1 %v3841_v26  ;;  %v3922_v26 = vld [vmem:[%s4847_s4 + $0x7c0] ss:$16 sps:$4 sm:$0xff]  }
 0x246   : > { %2303 = vmatmul.mubr.bf16.vlgmr.msra.gmra.mrb[0].mxu0 %v3033_v28 }
 0x247   : > { %2467 = vmatmul.mubr.bf16.vlgmr.msra.gmra.mrb[0].mxu1 %v3033_v28  ;;  %2312 = vmatpush1.bf16.msra.mxu0 %v3836_v13  ;;  %v3925_v13 = vld [vmem:[%s4847_s4 + $0x7c8] ss:$16 sps:$4 sm:$0xff]   ;;  %v3930_v28 = vld [vmem:[%s4847_s4 + $0x7e4] ss:$16 sps:$4 sm:$0xff]  }
 0x248   : > { %2343 = vmatprep.mubr.bf16.mxu0 %v3036_v31  ;;  %2476 = vmatpush1.bf16.msra.mxu1 %v3839_v29  ;;  %v3933_v29 = vld [vmem:[%s4847_s4 + $0x7ec] ss:$16 sps:$4 sm:$0xff]  }
 0x249   : > { %2507 = vmatprep.mubr.bf16.mxu1 %v3036_v31  ;;  %2313 = vmatprep.subr.bf16.mxu0 %v3846_v30  ;;  %v3928_v30 = vld [vmem:[%s4847_s4 + $0x7e0] ss:$16 sps:$4 sm:$0xff]   ;;  %v3931_v31 = vld [vmem:[%s4847_s4 + $0x7e8] ss:$16 sps:$4 sm:$0xff]  }
 0x24a   : > { %2477 = vmatprep.subr.bf16.mxu1 %v3849_v32  ;;  %v3035_v32 = vcombine.low %v5077_v27, %v5077_v27  ;;  %v2520_v27 = vld [vmem:[#allocation10] sm:$0xf] (!%p3293_p5) }
 0x24b   : > { %2314 = vmatpush1.bf16.msra.mxu0 %v3844_v33 }
 0x24c   : > { %2478 = vmatpush1.bf16.msra.mxu1 %v3847_v19  ;;  %2315 = vmatprep.subr.bf16.mxu0 %v3852_v34 }
 0x24d   : > { %2479 = vmatprep.subr.bf16.mxu1 %v3855_v35 }
 0x24f   : > { %2316 = vmatpush1.bf16.msra.mxu0 %v3850_v36 }
 0x250   : > { %2480 = vmatpush1.bf16.msra.mxu1 %v3853_v37  ;;  %2317 = vmatprep.subr.bf16.mxu0 %v3858_v38 }
 0x251   : > { %2481 = vmatprep.subr.bf16.mxu1 %v3861_v39 }
 0x253   : > { %2318 = vmatpush1.bf16.msra.mxu0 %v3856_v40  ;;  %v2532_v40 = vsub.s32 (!%p3293_p5), 2, %v4916_v6 }
 0x254   : > { %2482 = vmatpush1.bf16.msra.mxu1 %v3859_v41  ;;  %2319 = vmatprep.subr.bf16.mxu0 %v3864_v42  ;;  %v2536_v41 = vsub.s32 (!%p3293_p5), 3, %v4916_v6  ;;  %v2525_v42 = vrot.slane (!%p3293_p5), %v2520_v27, %v4919_v7 }
 0x255   : > { %2483 = vmatprep.subr.bf16.mxu1 %v3867_v43  ;;  %v2529_v43 = vrot.slane (!%p3293_p5), %v2520_v27, %v4922_v8 }
 0x257   : > { %2320 = vmatpush1.bf16.msra.mxu0 %v3862_v44  ;;  %v2533_v44 = vrot.slane (!%p3293_p5), %v2520_v27, %v2532_v40 }
 0x258   : > { %2484 = vmatpush1.bf16.msra.mxu1 %v3865_v45  ;;  %2321 = vmatprep.subr.bf16.mxu0 %v3870_v46  ;;  %v2537_v45 = vrot.slane (!%p3293_p5), %v2520_v27, %v2536_v41 }
 0x259   : > { %2485 = vmatprep.subr.bf16.mxu1 %v3873_v47 }
 0x25b   : > { %2322 = vmatpush1.bf16.msra.mxu0 %v3868_v48 }
 0x25c   : > { %2486 = vmatpush1.bf16.msra.mxu1 %v3871_v49  ;;  %2323 = vmatprep.subr.bf16.mxu0 %v3876_v50 }
 0x25d   : > { %2487 = vmatprep.subr.bf16.mxu1 %v3879_v51 }
 0x25f   : > { %2324 = vmatpush1.bf16.msra.mxu0 %v3874_v52 }
 0x260   : > { %2488 = vmatpush1.bf16.msra.mxu1 %v3877_v53  ;;  %2325 = vmatprep.subr.bf16.mxu0 %v3882_v54 }
 0x261   : > { %2489 = vmatprep.subr.bf16.mxu1 %v3885_v55 }
 0x263   : > { %2326 = vmatpush1.bf16.msra.mxu0 %v3880_v56 }
 0x264   : > { %2490 = vmatpush1.bf16.msra.mxu1 %v3883_v57  ;;  %2327 = vmatprep.subr.bf16.mxu0 %v3888_v58 }
 0x265   : > { %2491 = vmatprep.subr.bf16.mxu1 %v3891_v59 }
 0x267   : > { %2328 = vmatpush1.bf16.msra.mxu0 %v3886_v60 }
 0x268   : > { %2492 = vmatpush1.bf16.msra.mxu1 %v3889_v61  ;;  %2329 = vmatprep.subr.bf16.mxu0 %v3894_v62 }
 0x269   : > { %2493 = vmatprep.subr.bf16.mxu1 %v3897_v63 }
 0x26b   : > { %2330 = vmatpush1.bf16.msra.mxu0 %v3892_v0 }
 0x26c   : > { %2494 = vmatpush1.bf16.msra.mxu1 %v3895_v1  ;;  %2331 = vmatprep.subr.bf16.mxu0 %v3900_v2 }
 0x26d   : > { %2495 = vmatprep.subr.bf16.mxu1 %v3903_v3 }
 0x26f   : > { %2332 = vmatpush1.bf16.msra.mxu0 %v3898_v4 }
 0x270   : > { %2496 = vmatpush1.bf16.msra.mxu1 %v3901_v9  ;;  %2333 = vmatprep.subr.bf16.mxu0 %v3906_v10 }
 0x271   : > { %2497 = vmatprep.subr.bf16.mxu1 %v3909_v11 }
 0x273   : > { %2334 = vmatpush1.bf16.msra.mxu0 %v3904_v12 }
 0x274   : > { %2498 = vmatpush1.bf16.msra.mxu1 %v3907_v14  ;;  %2335 = vmatprep.subr.bf16.mxu0 %v3912_v15 }
 0x275   : > { %2499 = vmatprep.subr.bf16.mxu1 %v3915_v16 }
 0x277   : > { %2336 = vmatpush1.bf16.msra.mxu0 %v3910_v17 }
 0x278   : > { %2500 = vmatpush1.bf16.msra.mxu1 %v3913_v18  ;;  %2337 = vmatprep.subr.bf16.mxu0 %v3918_v20 }
 0x279   : > { %2501 = vmatprep.subr.bf16.mxu1 %v3921_v21 }
 0x27b   : > { %2338 = vmatpush1.bf16.msra.mxu0 %v3916_v22 }
 0x27c   : > { %2502 = vmatpush1.bf16.msra.mxu1 %v3919_v23  ;;  %2339 = vmatprep.subr.bf16.mxu0 %v3924_v24 }
 0x27d   : > { %2503 = vmatprep.subr.bf16.mxu1 %v3927_v25 }
 0x27f   : > { %2340 = vmatpush1.bf16.msra.mxu0 %v3922_v26 }
 0x280   : > { %2504 = vmatpush1.bf16.msra.mxu1 %v3925_v13  ;;  %2341 = vmatprep.subr.bf16.mxu0 %v3930_v28 }
 0x281   : > { %2505 = vmatprep.subr.bf16.mxu1 %v3933_v29 }
 0x283   : > { %2342 = vmatpush1.bf16.msra.mxu0 %v3928_v30 }
 0x284   : > { %2506 = vmatpush1.bf16.msra.mxu1 %v3931_v31 }
 0x286   : > { %2344 = vmatmul.mubr.bf16.vlgmr.msra.gmra.mrb[0].mxu0 %v3035_v32 }
 0x287   : > { %2508 = vmatmul.mubr.bf16.vlgmr.msra.gmra.mrb[0].mxu1 %v3035_v32 }
 0x357   : > { %2519 = sbr.rel (%p3293_p5) target bundleno = 863 (0x35f), region = 80 }
 0x359   : > { %v2345_v33 = vpop.f32.mrb[0].mxu0 }
 0x35a   : > { %v2509_v19 = vpop.f32.mrb[0].mxu1  ;;  %v2347_v34 = vpop.f32.mrb[1].mxu0  ;;  %v2542_v46 = vadd.f32 (!%p3293_p5), %v2525_v42, %v2345_v33 }
 0x35b   : > { %v2511_v35 = vpop.f32.mrb[1].mxu1  ;;  %v2349_v36 = vpop.f32.mrb[2].mxu0  ;;  %v2543_v47 = vadd.f32 (!%p3293_p5), %v2529_v43, %v2347_v34  ;;  %v2544_v48 = vadd.f32 (!%p3293_p5), %v2533_v44, %v2509_v19 }
 0x35c   : > { %v2513_v37 = vpop.f32.mrb[2].mxu1  ;;  %v2350_v38 = vpop.f32.mrb[3].mxu0  ;;  %v2545_v49 = vadd.f32 (!%p3293_p5), %v2537_v45, %v2511_v35  ;;  %2546 = vst [vmem:[#allocation4] sm:$0x3f] (!%p3293_p5), %v2542_v46 }
 0x35d   : > { %v2514_v39 = vpop.f32.mrb[3].mxu1  ;;  %2547 = vst [vmem:[#allocation4 + $0x8] sm:$0x3f] (!%p3293_p5), %v2543_v47  ;;  %2548 = vst [vmem:[#allocation4 + $0x10] sm:$0x3f] (!%p3293_p5), %v2544_v48 }
 0x35e   : > { %2549 = vst [vmem:[#allocation4 + $0x18] sm:$0x3f] %v2545_v49 }
 0x35f PF: > { %s5414_s25 = sld [smem:[#allocation31_spill]] }
 0x365   : > { %p3294_p10 = scmp.eq.s32.totalorder %s5414_s25, 0 }
 0x366   : > { %v2554_v50 = vld [vmem:[#allocation4] sm:$0x3f] (!%p3294_p10)  ;;  %v2555_v51 = vld [vmem:[#allocation4 + $0x8] sm:$0x3f] (!%p3294_p10)  ;;  %v2556_v52 = vld [vmem:[#allocation4 + $0x10] sm:$0x3f] (!%p3294_p10) }
 0x367   : > { %2553 = sbr.rel (%p3294_p10) target bundleno = 878 (0x36e), region = 84  ;;  %v2558_v7 = vadd.f32 (!%p3294_p10), %v2554_v50, %v2345_v33  ;;  %v2559_v53 = vadd.f32 (!%p3294_p10), %v2555_v51, %v2347_v34  ;;  %v2560_v8 = vadd.f32 (!%p3294_p10), %v2556_v52, %v2509_v19  ;;  %v2557_v54 = vld [vmem:[#allocation4 + $0x18] sm:$0x3f] (!%p3294_p10) }
 0x368   : > { %v2561_v55 = vadd.f32 (!%p3294_p10), %v2557_v54, %v2511_v35 }
 0x369   : > { %2562 = vst [vmem:[#allocation4] sm:$0x3f] (!%p3294_p10), %v2558_v7  ;;  %2563 = vst [vmem:[#allocation4 + $0x8] sm:$0x3f] (!%p3294_p10), %v2559_v53 }
 0x36a   : > { %2564 = vst [vmem:[#allocation4 + $0x10] sm:$0x3f] (!%p3294_p10), %v2560_v8  ;;  %2565 = vst [vmem:[#allocation4 + $0x18] sm:$0x3f] (!%p3294_p10), %v2561_v55 }
 0x36e PF: > { %s5415_s2 = sld [smem:[#allocation31_spill]] }
 0x374   : > { %p3295_p8 = scmp.ne.s32.totalorder %s5415_s2, 3 }
 0x375   : > { %v2592_v56 = vld [vmem:[#allocation16] sm:$0x3f] (!%p3295_p8)  ;;  %v4371_v57 = vmov (!%p3295_p8), 0   ;;  %v2570_v58 = vld [vmem:[#allocation4] sm:$0x3f] (!%p3295_p8)  ;;  %vm2602_vm10 = vcmask (!%p3295_p8), 1045504  }
 0x376   : > { %2569 = sbr.rel (%p3295_p8) target bundleno = 1044 (0x414), region = 88  ;;  %3934 = vset.pattern.permute.xlu0 (!%p3295_p8), %v4371_v57  ;;  %v2571_v59 = vld [vmem:[#allocation4 + $0x8] sm:$0x3f] (!%p3295_p8)  ;;  %v2572_v60 = vld [vmem:[#allocation4 + $0x10] sm:$0x3f] (!%p3295_p8)  ;;  %vm2662_vm11 = vcmp.lt.s32.totalorder (!%p3295_p8), %v497_v5, 512 }
 0x377   : > { %2595 = vperm.xlu0 (!%p3295_p8), %3934, %v2592_v56   ;;  %v2573_v61 = vld [vmem:[#allocation4 + $0x18] sm:$0x3f] (!%p3295_p8)  ;;  %v3313_v62 = vpack.c.bf16 (!%p3295_p8), %v2571_v59, %v2570_v58  ;;  %v4372_v0 = vmov (!%p3295_p8), 1966171168  }
 0x378   : > { %v3314_v63 = vpack.c.bf16 (!%p3295_p8), %v2573_v61, %v2572_v60  ;;  %v2638_v1 = vunpack.c.l.s4 (!%p3295_p8), %v4372_v0 }
 0x379   : > { %2590 = vst [vmem:[%s5148_s21] sm:$0x77] (!%p3295_p8), %v3313_v62 }
 0x37a   : > { %2591 = vst [vmem:[%s5148_s21 + $0x8] sm:$0x77] (!%p3295_p8), %v3314_v63  ;;  %v2639_v2 = vunpack.c.0.s8 (!%p3295_p8), %v2638_v1 }
 0x37c   : > { %v5168_v12 = vsub.s32 (!%p3295_p8), %v2639_v2, %v4916_v6 }
 0x3f6   : > { %v2596_v3 = vpop.permute.xlu0 %2595 }
 0x3f7   : > { %v2598_v4 = vmul.f32 %v2596_v3, %v2570_v58  ;;  %v2599_v9 = vmul.f32 %v2596_v3, %v2571_v59  ;;  %v2600_v10 = vmul.f32 %v2596_v3, %v2572_v60  ;;  %v2601_v11 = vmul.f32 %v2596_v3, %v2573_v61 }
 0x3f9   : > { %v2603_v14 = vsel %vm2602_vm10, %v2598_v4, 0.0  ;;  %v2610_v15 = vsel %vm2602_vm10, %v2599_v9, 0.0  ;;  %v2617_v16 = vsel %vm2602_vm10, %v2600_v10, 0.0  ;;  %v2624_v17 = vsel %vm2602_vm10, %v2601_v11, 0.0 }
 0x3fa   : > { %v2604_v18 = vrot.slane %v2603_v14, 4  ;;  %v2611_v20 = vrot.slane %v2610_v15, 4  ;;  %v2618_v21 = vrot.slane %v2617_v16, 4  ;;  %v2625_v22 = vrot.slane %v2624_v17, 4 }
 0x3fb   : > { %v2665_v23 = vmul.f32 %v2598_v4, %v2598_v4  ;;  %v2666_v24 = vmul.f32 %v2599_v9, %v2599_v9  ;;  %v2667_v25 = vmul.f32 %v2600_v10, %v2600_v10  ;;  %v2668_v26 = vmul.f32 %v2601_v11, %v2601_v11 }
 0x3fc   : > { %v2605_v13 = vadd.f32 %v2604_v18, %v2603_v14  ;;  %v2612_v28 = vadd.f32 %v2611_v20, %v2610_v15  ;;  %v2619_v6 = vadd.f32 %v2618_v21, %v2617_v16  ;;  %v2626_v29 = vadd.f32 %v2625_v22, %v2624_v17 }
 0x3fd   : > { %v2669_v30 = vsel %vm2602_vm10, %v2665_v23, 0.0  ;;  %v2676_v31 = vsel %vm2602_vm10, %v2666_v24, 0.0  ;;  %v2683_v32 = vsel %vm2602_vm10, %v2667_v25, 0.0  ;;  %v2690_v33 = vsel %vm2602_vm10, %v2668_v26, 0.0 }
 0x3fe   : > { %v2606_v19 = vrot.slane %v2605_v13, 2  ;;  %v2613_v34 = vrot.slane %v2612_v28, 2  ;;  %v2620_v35 = vrot.slane %v2619_v6, 2  ;;  %v2627_v36 = vrot.slane %v2626_v29, 2 }
 0x3ff   : > { %v2670_v37 = vrot.slane %v2669_v30, 4  ;;  %v2677_v38 = vrot.slane %v2676_v31, 4  ;;  %v2684_v39 = vrot.slane %v2683_v32, 4  ;;  %v2691_v27 = vrot.slane %v2690_v33, 4 }
 0x400   : > { %v2607_v40 = vadd.f32 %v2606_v19, %v2605_v13  ;;  %v2614_v41 = vadd.f32 %v2613_v34, %v2612_v28  ;;  %v2621_v42 = vadd.f32 %v2620_v35, %v2619_v6  ;;  %v2628_v43 = vadd.f32 %v2627_v36, %v2626_v29 }
 0x401   : > { %v2671_v44 = vadd.f32 %v2670_v37, %v2669_v30  ;;  %v2678_v45 = vadd.f32 %v2677_v38, %v2676_v31  ;;  %v2685_v46 = vadd.f32 %v2684_v39, %v2683_v32  ;;  %v2692_v47 = vadd.f32 %v2691_v27, %v2690_v33 }
 0x402   : > { %v2608_v48 = vrot.slane %v2607_v40, 1  ;;  %v2615_v49 = vrot.slane %v2614_v41, 1  ;;  %v2622_v50 = vrot.slane %v2621_v42, 1  ;;  %v2629_v51 = vrot.slane %v2628_v43, 1 }
 0x403   : > { %v2672_v52 = vrot.slane %v2671_v44, 2  ;;  %v2679_v7 = vrot.slane %v2678_v45, 2  ;;  %v2686_v53 = vrot.slane %v2685_v46, 2  ;;  %v2693_v8 = vrot.slane %v2692_v47, 2 }
 0x404   : > { %v2609_v54 = vadd.f32 %v2608_v48, %v2607_v40  ;;  %v2616_v55 = vadd.f32 %v2615_v49, %v2614_v41  ;;  %v2623_v56 = vadd.f32 %v2622_v50, %v2621_v42  ;;  %v2630_v57 = vadd.f32 %v2629_v51, %v2628_v43 }
 0x405   : > { %v2673_v58 = vadd.f32 %v2672_v52, %v2671_v44  ;;  %v2680_v59 = vadd.f32 %v2679_v7, %v2678_v45  ;;  %v2687_v60 = vadd.f32 %v2686_v53, %v2685_v46  ;;  %v2694_v61 = vadd.f32 %v2693_v8, %v2692_v47 }
 0x406   : > { %v2635_v62 = vcombine.low %v2609_v54, %v2616_v55  ;;  %v2636_v63 = vcombine.low %v2623_v56, %v2630_v57 }
 0x407   : > { %v2674_v0 = vrot.slane %v2673_v58, 1  ;;  %v2681_v1 = vrot.slane %v2680_v59, 1  ;;  %v2688_v2 = vrot.slane %v2687_v60, 1  ;;  %v2695_v3 = vrot.slane %v2694_v61, 1 }
 0x408   : > { %v2643_v4 = vrot.slane %v2635_v62, %v5168_v12  ;;  %v2650_v9 = vrot.slane %v2636_v63, %v5168_v12 }
 0x409   : > { %v2675_v10 = vadd.f32 %v2674_v0, %v2673_v58  ;;  %v2682_v11 = vadd.f32 %v2681_v1, %v2680_v59  ;;  %v2689_v14 = vadd.f32 %v2688_v2, %v2687_v60  ;;  %v2696_v15 = vadd.f32 %v2695_v3, %v2694_v61 }
 0x40a   : > { %v2651_v16 = vcombine.low %v2643_v4, %v2650_v9 }
 0x40b   : > { %v2701_v17 = vcombine.low %v2675_v10, %v2682_v11  ;;  %v2702_v18 = vcombine.low %v2689_v14, %v2696_v15 }
 0x40c   : > { %v2658_v20 = vrot.slane %v2651_v16, %v5168_v12 }
 0x40d   : > { %v2709_v21 = vrot.slane %v2701_v17, %v5168_v12  ;;  %v2716_v22 = vrot.slane %v2702_v18, %v5168_v12 }
 0x40e   : > { %2664 = vst.msk [vmem:[%s5152_s29] sm:$0xf] %vm2662_vm11, %v2658_v20 }
 0x40f   : > { %v2717_v23 = vcombine.low %v2709_v21, %v2716_v22 }
 0x411   : > { %v2724_v24 = vrot.slane %v2717_v23, %v5168_v12 }
 0x413   : > { %2726 = vst.msk [vmem:[%s5156_s7] sm:$0xf] %vm2662_vm11, %v2724_v24 }
 0x414 PF: > { %s5416_s9 = sld [smem:[#allocation32_spill]]  ;;  %s5417_s3 = sld [smem:[#allocation45_spill]] }
 0x415   : > { %s2766_s5 = sshll.u32 %s5152_s29, 4  ;;  %s5198_s8 = scalar_lea.sflag [#allocation19], %s431_s15  ;;  %s2767_s5 = int_to_ptr.vmem [resolvable:$true] %s2766_s5 }
 0x416   : > { %s4135_s27 = scalar_lea.vmem %s2767_s5, 64  ;;  %p5418_p4 = scmp.ne.s32.totalorder %s5387_s18, 0 }
 0x417   : > { %p4136_p6 = scmp.ne.s32.totalorder %s2767_s5, %s4135_s27  ;;  %s4373_s4 = smov [#allocation18]  }
 0x418   : > { %s4139_s25 = sshll.u32 %s4373_s4, 4  ;;  %s4140_s25 = int_to_ptr.vmem [resolvable:$false] %s4139_s25 }
 0x419   : > { %p4137_p12 = pnand %p4136_p6, %p5418_p4  ;;  %s4141_s2 = scalar_lea.vmem %s4140_s25, 128 }
 0x41a   : > { %s5354_s12 = sshll.u32 %s5416_s9, 6  ;;  %p4142_p13 = scmp.lt.s32.totalorder %s2767_s5, %s4140_s25 }
 0x41b   : > { %s5193_s13 = scalar_lea.hbm %s5417_s3, %s5354_s12  ;;  %p4138_p1 = pneg %p4137_p12 }
 0x41c   : > { %p4143_p9 = scmp.lt.s32.totalorder %s4141_s2, %s4135_s27 }
 0x41e   : > { %p4144_p0 = por %p4143_p9, %p4142_p13 }
 0x420   : > { %p4145_p3 = pnand %p4144_p0, %p4138_p1 }
 0x422   : > { %4148 = shalt.err (!%p4145_p3)
}
 0x423   : > { %s4149_s23 = scalar_lea.hbm %s5193_s13, 64  ;;  %s4153_s26 = scalar_lea.hbm %s5417_s3, 128 }
 0x424   : > { %p4150_p7 = scmp.ne.s32.totalorder %s5193_s13, %s4149_s23  ;;  %p4154_p5 = scmp.lt.u32.totalorder %s5193_s13, %s5417_s3 }
 0x425   : > { %p4155_p10 = scmp.lt.u32.totalorder %s4153_s26, %s4149_s23  ;;  %p4157_p6 = scmp.lt.u32.totalorder %s4149_s23, %s5193_s13 }
 0x426   : > { %p4151_p2 = pnand %p4150_p7, %p5418_p4 }
 0x427   : > { %p4156_p8 = por %p4155_p10, %p4154_p5 }
 0x428   : > { %p4152_p11 = pneg %p4151_p2 }
 0x429   : > { %p4158_p12 = por %p4157_p6, %p4156_p8 }
 0x42b   : > { %p4159_p1 = pnand %p4158_p12, %p4152_p11 }
 0x42d   : > { %4162 = shalt.err (!%p4159_p1)
}
 0x42e   : > { %3367 = dma.vmem_to_hbm [thread:$0]  (%p5418_p4), %s2767_s5, 64, %s5193_s13, %s5198_s8  }
 0x42f   : > { %s3315_s27 = sshll.u32 %s5416_s9, 8  ;;  %s2752_s25 = sshll.u32 %s5148_s21, 4  ;;  %s2753_s25 = int_to_ptr.vmem [resolvable:$true] %s2752_s25 }
 0x430   : > { %s5419_s29 = sld [smem:[#allocation44_spill]]  ;;  %s2728_s23 = scalar_lea.sflag [#allocation7], %s4842_s28 }
 0x431   : > { %s4163_s1 = scalar_lea.vmem %s2753_s25, 256  ;;  %s4374_s4 = smov [#allocation17]  }
 0x432   : > { %p4164_p13 = scmp.ne.s32.totalorder %s2753_s25, %s4163_s1  ;;  %s4167_s12 = sshll.u32 %s4374_s4, 4  ;;  %s4168_s12 = int_to_ptr.vmem [resolvable:$false] %s4167_s12 }
 0x433   : > { %s4169_s3 = scalar_lea.vmem %s4168_s12, 512  ;;  %p4170_p3 = scmp.lt.s32.totalorder %s2753_s25, %s4168_s12 }
 0x434   : > { %p4165_p9 = pnand %p4164_p13, %p5418_p4  ;;  %p4171_p7 = scmp.lt.s32.totalorder %s4169_s3, %s4163_s1 }
 0x436   : > { %s5223_s26 = scalar_lea.hbm %s5419_s29, %s3315_s27  ;;  %p4166_p0 = pneg %p4165_p9 }
 0x437   : > { %p4172_p2 = por %p4171_p7, %p4170_p3 }
 0x439   : > { %p4173_p11 = pnand %p4172_p2, %p4166_p0 }
 0x43b   : > { %4176 = shalt.err (!%p4173_p11)
}
 0x43c   : > { %s4177_s28 = scalar_lea.hbm %s5223_s26, 256  ;;  %s4181_s5 = scalar_lea.hbm %s5419_s29, 512 }
 0x43d   : > { %p4178_p5 = scmp.ne.s32.totalorder %s5223_s26, %s4177_s28  ;;  %p4182_p6 = scmp.lt.u32.totalorder %s5223_s26, %s5419_s29 }
 0x43e   : > { %p4183_p12 = scmp.lt.u32.totalorder %s4181_s5, %s4177_s28  ;;  %p4185_p13 = scmp.lt.u32.totalorder %s4177_s28, %s5223_s26 }
 0x43f   : > { %p4179_p10 = pnand %p4178_p5, %p5418_p4 }
 0x440   : > { %p4184_p1 = por %p4183_p12, %p4182_p6 }
 0x441   : > { %p4180_p8 = pneg %p4179_p10 }
 0x442   : > { %p4186_p9 = por %p4185_p13, %p4184_p1 }
 0x444   : > { %p4187_p0 = pnand %p4186_p9, %p4180_p8 }
 0x446   : > { %4190 = shalt.err (!%p4187_p0)
}
 0x447   : > { %3366 = dma.vmem_to_hbm [thread:$0]  (%p5418_p4), %s2753_s25, 256, %s5223_s26, %s2728_s23  }
 0x448   : > { %s5420_s3 = sshll.u32 %s5416_s9, 6  ;;  %s5421_s1 = sld [smem:[#allocation46_spill]] }
 0x449   : > { %s2780_s21 = sshll.u32 %s5156_s7, 4  ;;  %s4375_s28 = smov [#allocation20]   ;;  %s2781_s21 = int_to_ptr.vmem [resolvable:$true] %s2780_s21 }
 0x44a   : > { %s4191_s13 = scalar_lea.vmem %s2781_s21, 64  ;;  %s4195_s5 = sshll.u32 %s4375_s28, 4  ;;  %s4196_s5 = int_to_ptr.vmem [resolvable:$false] %s4195_s5 }
 0x44b   : > { %p4192_p3 = scmp.ne.s32.totalorder %s2781_s21, %s4191_s13  ;;  %s4197_s27 = scalar_lea.vmem %s4196_s5, 128 }
 0x44c   : > { %p4198_p11 = scmp.lt.s32.totalorder %s2781_s21, %s4196_s5  ;;  %p4199_p5 = scmp.lt.s32.totalorder %s4197_s27, %s4191_s13 }
 0x44d   : > { %p4193_p7 = pnand %p4192_p3, %p5418_p4 }
 0x44e   : > { %s5248_s4 = scalar_lea.hbm %s5421_s1, %s5420_s3  ;;  %p4200_p10 = por %p4199_p5, %p4198_p11 }
 0x44f   : > { %p4194_p2 = pneg %p4193_p7 }
 0x451   : > { %p4201_p8 = pnand %p4200_p10, %p4194_p2 }
 0x453   : > { %4204 = shalt.err (!%p4201_p8)
}
 0x454   : > { %s4205_s7 = scalar_lea.hbm %s5248_s4, 64  ;;  %s4209_s26 = scalar_lea.hbm %s5421_s1, 128 }
 0x455   : > { %p4206_p6 = scmp.ne.s32.totalorder %s5248_s4, %s4205_s7  ;;  %p4210_p13 = scmp.lt.u32.totalorder %s5248_s4, %s5421_s1 }
 0x456   : > { %p4211_p9 = scmp.lt.u32.totalorder %s4209_s26, %s4205_s7  ;;  %p4213_p3 = scmp.lt.u32.totalorder %s4205_s7, %s5248_s4 }
 0x457   : > { %p4207_p12 = pnand %p4206_p6, %p5418_p4 }
 0x458   : > { %p4212_p0 = por %p4211_p9, %p4210_p13 }
 0x459   : > { %p4208_p1 = pneg %p4207_p12 }
 0x45a   : > { %p4214_p7 = por %p4213_p3, %p4212_p0 }
 0x45c   : > { %p4215_p2 = pnand %p4214_p7, %p4208_p1 }
 0x45e   : > { %4218 = shalt.err (!%p4215_p2)
}
 0x45f   : > { %3368 = dma.vmem_to_hbm [thread:$0]  (%p5418_p4), %s2781_s21, 64, %s5248_s4, %s5198_s8  }
 0x460 PF: > { %p3416_p11 = scmp.ge.s32.totalorder %s4357_s22, 2  ;;  %s2792_s3 = sand.u32 1, %s4305_s30  }
 0x461   : > { %p5422_p5 = scmp.ne.s32.totalorder %s5388_s0, 0  ;;  %s2793_s2 = scalar_lea.sflag [#allocation7], %s2792_s3 }
 0x463   : > { %p3396_p10 = pnand %p3416_p11, %p5422_p5 }
 0x465   : > { %4296 = dma.done.wait (!%p3396_p10), %s2793_s2, 256  }
 0x466   : > { %4298 = vsyncadd (!%p3396_p10), %s2793_s2, 4294967040  ;;  %s5423_s15 = sadd.s32 4294967294, %s4357_s22  }
 0x467   : > { %s2801_s13 = sand.u32 1, %s5423_s15  }
 0x468   : > { %s2802_s28 = scalar_lea.sflag [#allocation19], %s2801_s13 }
 0x469   : > { %4300 = dma.done.wait (!%p3396_p10), %s2802_s28, 128  }
 0x46a   : > { %4302 = vsyncadd (!%p3396_p10), %s2802_s28, 4294967168  ;;  %s34_s22 = sadd.s32 1, %s4357_s22   ;;  %s5425_s12 = sld [smem:[#allocation29_spill]] }
 0x46b   : > { %p5276_p4 = scmp.ge.s32.totalorder %s34_s22, 10   ;;  %s5426_s13 = sld [smem:[#allocation30_spill]] }
 0x46c   : > { %s5427_s0 = sld [smem:[#allocation33_spill]]  ;;  %s5428_s8 = sld [smem:[#allocation35_spill]] }
 0x46d   : > { %s5429_s21 = sld [smem:[#allocation36_spill]]  ;;  %s5431_s30 = smov %s4309_s10 }
 0x46e   : > { %s5432_s10 = smov %s4313_s11  ;;  %s5433_s11 = smov %s4683_s19 }
 0x46f   : > { %s5434_s15 = smov %s4333_s16  ;;  %s5435_s16 = smov %s4337_s17 }
 0x470   : > { %s5436_s17 = smov %s4686_s24  ;;  %s5437_s18 = smov %s4349_s20 }
 0x471   :  { %33 = sbr.rel (!%p5276_p4) target bundleno = 27 (0x1b), region = 171 }
 0x472   : > { %s5438_s19 = smov %s5427_s0  ;;  %s5439_s20 = smov %s5428_s8 }
 0x478   :  { %2816 = vsyncpa [#allocation6], 1 }
 0x479   :  { %2818 = vsyncpa [#allocation6 + $0x1], 1 }
 0x47a   :  { %2819 = vsyncpa [#allocation9], 1 }
 0x47b   :  { %2820 = vsyncpa [#allocation12], 1 }
 0x47c   :  { %2821 = vsyncpa [#allocation15], 1 }
 0x47d   :  { %2823 = vsyncpa [#allocation15 + $0x1], 1 }
 0x47e   :  { %2824 = vsyncpa [#allocation7], 1 }
 0x47f   :  { %2826 = vsyncpa [#allocation7 + $0x1], 1 }
 0x480   :  { %2827 = vsyncpa [#allocation19], 1 }
 0x481   :  { %2829 = vsyncpa [#allocation19 + $0x1], 1 }

// kernel: patchgan_discriminator.9
= control target key start
LH: loop header
LB: loop body
LE: loop exit
PB: predicated region body
PF: predicated region fallthrough
CT: control target
= control target key end

     0   :  { %s9997_s0 = inlined_call_operand.hbm [shape: bf16[1,2,19,512], index: 0, kind: input, shape index: {}]   ;;  %s9998_s1 = inlined_call_operand.hbm [shape: bf16[1,8192,128], index: 1, kind: input, shape index: {}]   ;;  %s9999_s2 = inlined_call_operand.hbm [shape: f32[1,128], index: 2, kind: input, shape index: {}]   ;;  %s10000_s3 = inlined_call_operand.hbm [shape: f32[1,512], index: 3, kind: input, shape index: {}]   ;;  %s10001_s4 = inlined_call_operand.hbm [shape: f32[1,512], index: 4, kind: input, shape index: {}]   ;;  %s10002_s5 = inlined_call_operand.hbm [shape: f32[1,19,1], index: 5, kind: input, shape index: {}]   ;;  %s10003_s6 = inlined_call_operand.hbm [shape: f32[2,4,128], index: 6, kind: output, shape index: {}]  }
   0x1   :  { %10009 = sst [smem:[#allocation22_spill]] %s9998_s1 }
   0x2   :  { %10010 = sst [smem:[#allocation23_spill]] %s9999_s2 }
   0x3   :  { %11 = vsyncpa [#allocation6], 0 }
   0x4   :  { %13 = vsyncpa [#allocation6 + $0x1], 0 }
   0x5   :  { %14 = vsyncpa [#allocation9], 0 }
   0x6   :  { %15 = vsyncpa [#allocation12], 0 }
   0x7   :  { %16 = vsyncpa [#allocation15], 0 }
   0x8   :  { %17 = vsyncpa [#allocation7], 0 }
   0x9   :  { %19 = vsyncpa [#allocation7 + $0x1], 0  ;;  %s9345_s21 = smov 0   ;;  %s9347_s22 = smov 0  }
   0xa   :  { %s9349_s23 = smov 0   ;;  %s9351_s24 = smov 0  }
   0xb   :  { %s9353_s25 = smov 0   ;;  %s9355_s26 = smov 0  }
   0xc LB: > { %s10004_s27 = sadd.s32 4294967295, %s9293_s26   ;;  %p7087_p0 = scmp.ge.s32.totalorder %s9293_s26, 1  ;;  %s9293_s26 = sphi %s9355_s26, %s25_s26   ;;  %s9289_s25 = sphi %s9353_s25, %s10048_s25   ;;  %s9285_s24 = sphi %s9351_s24, %s10047_s24   ;;  %s9281_s23 = sphi %s9349_s23, %s10046_s23   ;;  %s9277_s22 = sphi %s9347_s22, %s10045_s22   ;;  %s9273_s21 = sphi %s9345_s21, %s10044_s21  }
   0xd   : > { %p9379_p1 = scmp.eq.s32.totalorder %s10004_s27, 0  ;;  %p206_p2 = scmp.lt.s32.totalorder %s9293_s26, 3 }
   0xe   : > { %s9295_s30 = smov [#allocation8]   ;;  %s9296_s9 = smov [#allocation11]  }
   0xf   : > { %s10011_s28 = scalar_select %p9379_p1, 1, 0 }
  0x10   : > { %p9384_p3 = pnand %p7087_p0, %p206_p2  ;;  %s218_s7 = sshll.u32 %s9295_s30, 4  ;;  %s9388_s7 = int_to_ptr.vmem [resolvable:$true] %s218_s7 }
  0x11   : > { %s243_s10 = sshll.u32 %s9296_s9, 4  ;;  %s9297_s11 = smov [#allocation10]   ;;  %s9399_s10 = int_to_ptr.vmem [resolvable:$true] %s243_s10 }
  0x12   : > { %s10012_s29 = scalar_select %p9384_p3, 1, 0 }
  0x13   : > { %p8418_p4 = pneg %p9384_p3  ;;  %s9401_s12 = sshll.u32 %s9297_s11, 4  ;;  %s233_s12 = int_to_ptr.vmem [resolvable:$true] %s9401_s12 }
  0x14   : > { %s10014_s1 = sld [smem:[#allocation22_spill]] }
  0x15   : > { %p9395_p6 = pnand %p8418_p4, %p9379_p1 }
  0x17   : > { %p9411_p8 = pneg %p9395_p6 }
  0x1a   : > { %s9029_s15 = scalar_lea.hbm %s10014_s1, 65536 }
  0x1b   : > { %p9030_p7 = scmp.ne.s32.totalorder %s10014_s1, %s9029_s15  ;;  %p9036_p11 = scmp.lt.u32.totalorder %s9029_s15, %s10014_s1 }
  0x1d   : > { %p9032_p9 = pnand %p9411_p8, %p9030_p7 }
  0x1f   : > { %p9033_p10 = pneg %p9032_p9 }
  0x21   : > { %p9038_p12 = pnand %p9036_p11, %p9033_p10 }
  0x23   : > { %9041 = shalt.err (!%p9038_p12)
}
  0x24   : > { %s9042_s30 = scalar_lea.vmem %s9388_s7, 65536  ;;  %p9050_p4 = scmp.lt.s32.totalorder %s9388_s7, %s9388_s7 }
  0x25   : > { %p9043_p13 = scmp.ne.s32.totalorder %s9388_s7, %s9042_s30  ;;  %p9051_p5 = scmp.lt.s32.totalorder %s9042_s30, %s9042_s30 }
  0x27   : > { %p9045_p0 = pnand %p9043_p13, %p9411_p8  ;;  %p9052_p7 = por %p9051_p5, %p9050_p4 }
  0x29   : > { %p9046_p2 = pneg %p9045_p0 }
  0x2b   : > { %p9053_p9 = pnand %p9052_p7, %p9046_p2 }
  0x2d   : > { %9056 = shalt.err (!%p9053_p9)
}
  0x2e   : > { %s9298_s9 = smov 64   ;;  %s9299_s11 = smov 4  }
  0x2f   : > { %8421 = dma.hbm_to_vmem [thread:$0]  (!%p9395_p6), %s10014_s1, 65536, %s9388_s7, [#allocation9], %s9298_s9, %s9298_s9, %s9299_s11  }
  0x30   : > { %s9057_s17 = scalar_lea.hbm %s10000_s3, 64 }
  0x31   : > { %p9058_p5 = scmp.ne.s32.totalorder %s10000_s3, %s9057_s17  ;;  %p9064_p12 = scmp.lt.u32.totalorder %s9057_s17, %s10000_s3 }
  0x33   : > { %p9060_p10 = pnand %p9058_p5, %p9411_p8 }
  0x35   : > { %p9061_p11 = pneg %p9060_p10 }
  0x37   : > { %p9066_p13 = pnand %p9064_p12, %p9061_p11 }
  0x39   : > { %9069 = shalt.err (!%p9066_p13)
}
  0x3a   : > { %s9070_s7 = scalar_lea.vmem %s9399_s10, 64  ;;  %p9078_p7 = scmp.lt.s32.totalorder %s9399_s10, %s9399_s10 }
  0x3b   : > { %p9071_p0 = scmp.ne.s32.totalorder %s9399_s10, %s9070_s7  ;;  %p9079_p9 = scmp.lt.s32.totalorder %s9070_s7, %s9070_s7 }
  0x3d   : > { %p9073_p2 = pnand %p9071_p0, %p9411_p8  ;;  %p9080_p5 = por %p9079_p9, %p9078_p7 }
  0x3f   : > { %p9074_p4 = pneg %p9073_p2 }
  0x41   : > { %p9081_p10 = pnand %p9080_p5, %p9074_p4 }
  0x43   : > { %9084 = shalt.err (!%p9081_p10)
}
  0x44   : > { %8427 = dma.hbm_to_vmem [thread:$0]  (!%p9395_p6), %s10000_s3, 64, %s9399_s10, [#allocation12]  }
  0x45   : > { %s10016_s2 = sld [smem:[#allocation23_spill]] }
  0x4b   : > { %s9085_s14 = scalar_lea.hbm %s10016_s2, 16 }
  0x4c   : > { %p9086_p11 = scmp.ne.s32.totalorder %s10016_s2, %s9085_s14  ;;  %p9092_p0 = scmp.lt.u32.totalorder %s9085_s14, %s10016_s2 }
  0x4e   : > { %p9088_p12 = pnand %p9086_p11, %p9411_p8 }
  0x50   : > { %p9089_p13 = pneg %p9088_p12 }
  0x52   : > { %p9094_p2 = pnand %p9092_p0, %p9089_p13 }
  0x54   : > { %9097 = shalt.err (!%p9094_p2)
}
  0x55   : > { %s9098_s20 = scalar_lea.vmem %s233_s12, 16  ;;  %s9105_s10 = scalar_lea.vmem %s233_s12, 32 }
  0x56   : > { %p9099_p4 = scmp.ne.s32.totalorder %s233_s12, %s9098_s20  ;;  %p9106_p5 = scmp.lt.s32.totalorder %s233_s12, %s233_s12 }
  0x57   : > { %p9107_p10 = scmp.lt.s32.totalorder %s9105_s10, %s9098_s20 }
  0x58   : > { %p9101_p7 = pnand %p9099_p4, %p9411_p8 }
  0x59   : > { %p9108_p3 = por %p9107_p10, %p9106_p5 }
  0x5a   : > { %p9102_p9 = pneg %p9101_p7 }
  0x5c   : > { %p9109_p1 = pnand %p9108_p3, %p9102_p9 }
  0x5e   : > { %9112 = shalt.err (!%p9109_p1)
}
  0x5f   : > { %8424 = dma.hbm_to_vmem [thread:$0]  (!%p9395_p6), %s10016_s2, 16, %s233_s12, [#allocation9]  }
  0x60   : > { %s9300_s27 = smov [#allocation13]   ;;  %s9301_s11 = smov [#allocation14]  }
  0x61   : > { %s254_s9 = sshll.u32 %s9300_s27, 4  ;;  %s267_s13 = sshll.u32 %s9301_s11, 4  ;;  %s255_s9 = int_to_ptr.vmem [resolvable:$true] %s254_s9  ;;  %s268_s13 = int_to_ptr.vmem [resolvable:$true] %s267_s13 }
  0x62   : > { %s9113_s16 = scalar_lea.hbm %s10001_s4, 64 }
  0x63   : > { %p9114_p1 = scmp.ne.s32.totalorder %s10001_s4, %s9113_s16  ;;  %p9120_p12 = scmp.lt.u32.totalorder %s9113_s16, %s10001_s4 }
  0x65   : > { %p9116_p3 = pnand %p9114_p1, %p9411_p8 }
  0x67   : > { %p9117_p11 = pneg %p9116_p3 }
  0x69   : > { %p9122_p13 = pnand %p9120_p12, %p9117_p11 }
  0x6b   : > { %9125 = shalt.err (!%p9122_p13)
}
  0x6c   : > { %s9126_s12 = scalar_lea.vmem %s255_s9, 64  ;;  %p9134_p7 = scmp.lt.s32.totalorder %s255_s9, %s255_s9 }
  0x6d   : > { %p9127_p0 = scmp.ne.s32.totalorder %s255_s9, %s9126_s12  ;;  %p9135_p9 = scmp.lt.s32.totalorder %s9126_s12, %s9126_s12 }
  0x6f   : > { %p9129_p2 = pnand %p9127_p0, %p9411_p8  ;;  %p9136_p5 = por %p9135_p9, %p9134_p7 }
  0x71   : > { %p9130_p4 = pneg %p9129_p2 }
  0x73   : > { %p9137_p10 = pnand %p9136_p5, %p9130_p4 }
  0x75   : > { %9140 = shalt.err (!%p9137_p10)
}
  0x76   : > { %8430 = dma.hbm_to_vmem [thread:$0]  (!%p9395_p6), %s10001_s4, 64, %s255_s9, [#allocation12]  }
  0x77   : > { %s9141_s14 = scalar_lea.hbm %s10002_s5, 384 }
  0x78   : > { %p9142_p1 = scmp.ne.s32.totalorder %s10002_s5, %s9141_s14  ;;  %p9148_p12 = scmp.lt.u32.totalorder %s9141_s14, %s10002_s5 }
  0x7a   : > { %p9144_p3 = pnand %p9142_p1, %p9411_p8 }
  0x7c   : > { %p9145_p11 = pneg %p9144_p3 }
  0x7e   : > { %p9150_p13 = pnand %p9148_p12, %p9145_p11 }
  0x80   : > { %9153 = shalt.err (!%p9150_p13)
}
  0x81   : > { %s9154_s20 = scalar_lea.vmem %s268_s13, 384  ;;  %p9162_p7 = scmp.lt.s32.totalorder %s268_s13, %s268_s13 }
  0x82   : > { %p9155_p0 = scmp.ne.s32.totalorder %s268_s13, %s9154_s20  ;;  %p9163_p9 = scmp.lt.s32.totalorder %s9154_s20, %s9154_s20 }
  0x84   : > { %p9157_p2 = pnand %p9155_p0, %p9411_p8  ;;  %p9164_p5 = por %p9163_p9, %p9162_p7 }
  0x86   : > { %p9158_p4 = pneg %p9157_p2 }
  0x88   : > { %p9165_p10 = pnand %p9164_p5, %p9158_p4 }
  0x8a   : > { %9168 = shalt.err (!%p9165_p10)
}
  0x8b   : > { %s9302_s9 = smov 128   ;;  %s9303_s18 = smov 8  }
  0x8c   : > { %8433 = dma.hbm_to_vmem [thread:$0]  (!%p9395_p6), %s10002_s5, 384, %s268_s13, [#allocation15], %s9302_s9, %s9302_s9, %s9303_s18  }
  0x8d   : > { %s7086_s30 = sadd.s32 4294967294, %s9293_s26   ;;  %s37_s7 = sadd.s32 1, %s9289_s25 }
  0x8e   : > { %s46_s27 = sadd.s32 1, %s9281_s23  ;;  %p39_p8 = scmp.ge.s32.totalorder %s37_s7, 2 }
  0x8f   : > { %p53_p1 = scmp.ne.s32.totalorder %s9281_s23, %s9277_s22  ;;  %p54_p3 = scmp.eq.s32.totalorder %s9293_s26, 0 }
  0x90   : > { %p59_p11 = scmp.ne.s32.totalorder %s9277_s22, %s9273_s21  ;;  %s10050_s7 = smov (%p39_p8, %s37_s7), 0 }
  0x91   : > { %p9520_p12 = por %p54_p3, %p53_p1  ;;  %p10018_p13 = scmp.ne.s32.totalorder %s10011_s28, 0 }
  0x92   : > { %s42_s11 = ssub.s32 %s9289_s25, %s10050_s7  ;;  %s10020_s14 = sadd.s32 4294967295, %s9293_s26  }
  0x93   : > { %p9526_p6 = por %p10018_p13, %p59_p11  ;;  %p193_p0 = scmp.eq.s32.totalorder %s10020_s14, 1 }
  0x94   : > { %p44_p2 = scmp.eq.s32.totalorder %s42_s11, 0  ;;  %p199_p4 = scmp.eq.s32.totalorder %s7086_s30, 1 }
  0x95   : > { %p9534_p7 = por %p193_p0, %p53_p1  ;;  %p8447_p9 = scmp.lt.s32.totalorder %s9293_s26, 2 }
  0x96   : > { %s9540_s16 = scalar_select %p44_p2, %s9281_s23, %s46_s27  }
  0x97   : > { %s10021_s15 = scalar_select %p9534_p7, 1, 0 }
  0x98   : > { %p9542_p5 = por %p199_p4, %p59_p11  ;;  %s281_s19 = sand.u32 1, %s9281_s23  }
  0x99   : > { %s8391_s20 = smul.u32 48, %s281_s19  ;;  %p9550_p10 = pnand %p8447_p9, %p9520_p12 }
  0x9a   : > { %s10022_s17 = scalar_select %p9542_p5, 1, 0 }
  0x9b   : > { %s8392_s9 = smul.u32 768, %s9289_s25  ;;  %s285_s27 = scalar_lea.vmem [#allocation5], %s8391_s20 }
  0x9c   : > { %s294_s11 = sshll.u32 %s285_s27, 4  ;;  %s9561_s8 = scalar_lea.sflag [#allocation6], %s281_s19  ;;  %s9559_s11 = int_to_ptr.vmem [resolvable:$true] %s294_s11 }
  0x9d   : > { %s9557_s30 = scalar_lea.hbm %s9997_s0, %s8392_s9  ;;  %p9171_p1 = pneg %p9550_p10 }
  0x9e   : > { %s9169_s14 = scalar_lea.hbm %s9557_s30, 768  ;;  %s9174_s12 = scalar_lea.hbm %s9997_s0, 1536 }
  0x9f   : > { %p9170_p8 = scmp.ne.s32.totalorder %s9557_s30, %s9169_s14  ;;  %p9175_p12 = scmp.lt.u32.totalorder %s9557_s30, %s9997_s0 }
  0xa0   : > { %p9176_p13 = scmp.lt.u32.totalorder %s9174_s12, %s9169_s14  ;;  %p9178_p2 = scmp.lt.u32.totalorder %s9169_s14, %s9557_s30 }
  0xa1   : > { %p9172_p3 = pnand %p9171_p1, %p9170_p8 }
  0xa2   : > { %p9177_p0 = por %p9176_p13, %p9175_p12 }
  0xa3   : > { %p9173_p11 = pneg %p9172_p3 }
  0xa4   : > { %p9179_p4 = por %p9178_p2, %p9177_p0 }
  0xa6   : > { %p9180_p9 = pnand %p9179_p4, %p9173_p11 }
  0xa8   : > { %9183 = shalt.err (!%p9180_p9)
}
  0xa9   : > { %s9184_s19 = scalar_lea.vmem %s9559_s11, 768  ;;  %s9304_s20 = smov [#allocation5]  }
  0xaa   : > { %p9185_p8 = scmp.ne.s32.totalorder %s9559_s11, %s9184_s19  ;;  %s9189_s27 = sshll.u32 %s9304_s20, 4  ;;  %s9190_s27 = int_to_ptr.vmem [resolvable:$false] %s9189_s27 }
  0xab   : > { %s9191_s1 = scalar_lea.vmem %s9190_s27, 1536  ;;  %p9192_p7 = scmp.lt.s32.totalorder %s9559_s11, %s9190_s27 }
  0xac   : > { %p9187_p3 = pnand %p9185_p8, %p9171_p1  ;;  %p9193_p12 = scmp.lt.s32.totalorder %s9191_s1, %s9184_s19 }
  0xae   : > { %p9188_p5 = pneg %p9187_p3  ;;  %p9194_p13 = por %p9193_p12, %p9192_p7 }
  0xb0   : > { %p9195_p0 = pnand %p9194_p13, %p9188_p5 }
  0xb2   : > { %9198 = shalt.err (!%p9195_p0)
}
  0xb3   : > { %s9305_s2 = smov 256   ;;  %s9306_s14 = smov 16  }
  0xb4   : > { %8437 = dma.hbm_to_vmem [thread:$0]  (!%p9550_p10), %s9557_s30, 768, %s9559_s11, %s9561_s8, %s9305_s2, %s9305_s2, %s9306_s14  }
  0xb5   : > { %p10024_p1 = scmp.ne.s32.totalorder %s10012_s29, 0 }
  0xb6   : > { %s9592_s9 = sand.u32 (!%p10024_p1), 1, %s9277_s22  }
  0xb7   : > { %306 = sbr.rel (%p10024_p1) target bundleno = 1071 (0x42f), region = 44  ;;  %s309_s12 = scalar_lea.sflag (!%p10024_p1), [#allocation6], %s9592_s9 }
  0xb8   : > { %s8393_s10 = smul.u32 (!%p10024_p1), 48, %s9592_s9 }
  0xba   : > { %s9596_s19 = scalar_lea.vmem (!%p10024_p1), [#allocation5], %s8393_s10 }
  0xbe   : > { %9252 = dma.done.wait (%p9526_p6), %s309_s12, 768  }
  0xbf   : > { %9254 = vsyncadd (%p9526_p6), %s309_s12, 4294966528  ;;  %p10025_p7 = scmp.ne.s32.totalorder %s10011_s28, 0 }
  0xc1   : > { %9256 = dma.done.wait (%p10025_p7), [#allocation9], 65552  }
  0xc2   : > { %9258 = vsyncadd (%p10025_p7), [#allocation9], 4294901744 }
  0xc3   : > { %9260 = dma.done.wait (%p10025_p7), [#allocation12], 128  }
  0xc4   : > { %9262 = vsyncadd (%p10025_p7), [#allocation12], 4294967168 }
  0xc5   : > { %9264 = dma.done.wait (%p10025_p7), [#allocation15], 384  }
  0xc6   : > { %9266 = vsyncadd (%p10025_p7), [#allocation15], 4294966912  ;;  %v9307_v0 = vmov 0   ;;  %v484_v1 = vld [vmem:[#allocation14] sm:$0xff]  ;;  %v486_v2 = vld [vmem:[#allocation14 + $0x10] sm:$0x7]  ;;  %v382_v38 = vlaneseq }
  0xc7   : > { %8515 = vset.pattern.permute.xlu0 %v9307_v0  ;;  %8516 = vset.pattern.permute.xlu1 %v9307_v0  ;;  %v485_v3 = vld [vmem:[#allocation14 + $0x8] sm:$0xff]  ;;  %v8517_v4 = vld [vmem:[#allocation8 + $0x40] sm:$0xff]   ;;  %v8521_v8 = vld [vmem:[#allocation8 + $0x48] sm:$0xff]   ;;  %vm558_vm4 = vcmask 1041408   ;;  %vm559_vm5 = vsmask.f32 1280 }
  0xc8   : > { %489 = vperm.xlu0 %8515, %v484_v1   ;;  %499 = vperm.xlu1 %8516, %v486_v2   ;;  %v8518_v5 = vld [vmem:[#allocation8 + $0xc0] sm:$0xff]   ;;  %v8522_v9 = vld [vmem:[#allocation8 + $0xc8] sm:$0xff]   ;;  %v8525_v12 = vld [vmem:[#allocation8 + $0x50] sm:$0xff]   ;;  %v9614_v39 = vshrl.u32 %v382_v38, 7  ;;  %vm562_vm11 = vsmask.f32 5376 }
  0xc9   : > { %7687 = vmatprep.subr.bf16.mxu0 %v8517_v4  ;;  %v8519_v6 = vld [vmem:[#allocation8] sm:$0xff]   ;;  %7709 = vmatprep.subr.bf16.mxu1 %v8518_v5  ;;  %v8523_v10 = vld [vmem:[#allocation8 + $0x8] sm:$0xff]   ;;  %v8526_v13 = vld [vmem:[#allocation8 + $0xd0] sm:$0xff]   ;;  %s7101_s28 = sshll.u32 %s9592_s9, 2  ;;  %s7674_s29 = sshll.u32 %s9285_s24, 6 }
  0xca   : > { %v8520_v7 = vld [vmem:[#allocation8 + $0x80] sm:$0xff]   ;;  %7688 = vmatpush3.bf16.msra.mxu0 %v8519_v6  ;;  %v8524_v11 = vld [vmem:[#allocation8 + $0x88] sm:$0xff]   ;;  %v8527_v14 = vld [vmem:[#allocation8 + $0x10] sm:$0xff]   ;;  %v384_v40 = vsub.s32 0, %v9614_v39  ;;  %v388_v41 = vsub.s32 1, %v9614_v39  ;;  %v392_v42 = vsub.s32 2, %v9614_v39  ;;  %s9948_s8 = scalar_lea.hbm %s10003_s6, %s7674_s29 }
  0xcb   : > { %7710 = vmatpush3.bf16.msra.mxu1 %v8520_v7  ;;  %7689 = vmatprep.subr.bf16.mxu0 %v8521_v8  ;;  %v8528_v15 = vld [vmem:[#allocation8 + $0x90] sm:$0xff]   ;;  %v8529_v16 = vld [vmem:[#allocation8 + $0x58] sm:$0xff]   ;;  %v8533_v20 = vld [vmem:[#allocation8 + $0x60] sm:$0xff]   ;;  %v396_v45 = vsub.s32 3, %v9614_v39  ;;  %s360_s13 = scalar_lea.vmem [#allocation16], %s7101_s28  ;;  %s6941_s20 = scalar_lea.sflag [#allocation7], %s9592_s9 }
  0xcc   : > { %494 = vperm.xlu0 %8515, %v485_v3   ;;  %7711 = vmatprep.subr.bf16.mxu1 %v8522_v9  ;;  %v8530_v17 = vld [vmem:[#allocation8 + $0xd8] sm:$0xff]   ;;  %v8534_v21 = vld [vmem:[#allocation8 + $0xe0] sm:$0xff]   ;;  %v8537_v24 = vld [vmem:[#allocation8 + $0x68] sm:$0xff]   ;;  %s6954_s18 = sshll.u32 %s360_s13, 4  ;;  %p10041_p5 = scmp.ne.s32.totalorder %s10021_s15, 0  ;;  %s9950_s18 = int_to_ptr.vmem [resolvable:$true] %s6954_s18 }
  0xcd   : > { %v8531_v18 = vld [vmem:[#allocation8 + $0x18] sm:$0xff]   ;;  %v8535_v22 = vld [vmem:[#allocation8 + $0x20] sm:$0xff]   ;;  %v8538_v25 = vld [vmem:[#allocation8 + $0xe8] sm:$0xff]   ;;  %s9199_s27 = scalar_lea.vmem %s9950_s18, 64  ;;  %s9309_s24 = smov [#allocation16]  }
  0xce   : > { %7690 = vmatpush3.bf16.msra.mxu0 %v8523_v10  ;;  %v8532_v19 = vld [vmem:[#allocation8 + $0x98] sm:$0xff]   ;;  %v8536_v23 = vld [vmem:[#allocation8 + $0xa0] sm:$0xff]   ;;  %v8539_v26 = vld [vmem:[#allocation8 + $0x28] sm:$0xff]   ;;  %p9200_p6 = scmp.ne.s32.totalorder %s9950_s18, %s9199_s27  ;;  %s9203_s1 = sshll.u32 %s9309_s24, 4  ;;  %s9204_s1 = int_to_ptr.vmem [resolvable:$false] %s9203_s1 }
  0xcf   : > { %7712 = vmatpush3.bf16.msra.mxu1 %v8524_v11  ;;  %7691 = vmatprep.subr.bf16.mxu0 %v8525_v12  ;;  %v8540_v27 = vld [vmem:[#allocation8 + $0xa8] sm:$0xff]   ;;  %v8541_v28 = vld [vmem:[#allocation8 + $0x70] sm:$0xff]   ;;  %v8545_v32 = vld [vmem:[#allocation8 + $0x78] sm:$0xff]   ;;  %s9205_s2 = scalar_lea.vmem %s9204_s1, 128  ;;  %p9206_p2 = scmp.lt.s32.totalorder %s9950_s18, %s9204_s1 }
  0xd0   : > { %7713 = vmatprep.subr.bf16.mxu1 %v8526_v13  ;;  %v8542_v29 = vld [vmem:[#allocation8 + $0xf0] sm:$0xff]   ;;  %v8546_v33 = vld [vmem:[#allocation8 + $0xf8] sm:$0xff]   ;;  %v8549_v36 = vld [vmem:[#allocation8 + $0x140] sm:$0xff]   ;;  %p9201_p10 = pnand %p9200_p6, %p10041_p5  ;;  %p9207_p4 = scmp.lt.s32.totalorder %s9205_s2, %s9199_s27 }
  0xd1   : > { %v8543_v30 = vld [vmem:[#allocation8 + $0x30] sm:$0xff]   ;;  %v8547_v34 = vld [vmem:[#allocation8 + $0x38] sm:$0xff]   ;;  %v8550_v37 = vld [vmem:[#allocation8 + $0x1c0] sm:$0xff]  }
  0xd2   : > { %7692 = vmatpush3.bf16.msra.mxu0 %v8527_v14  ;;  %v8544_v31 = vld [vmem:[#allocation8 + $0xb0] sm:$0xff]   ;;  %v8548_v35 = vld [vmem:[#allocation8 + $0xb8] sm:$0xff]   ;;  %v380_v44 = vld [vmem:[#allocation11] sm:$0xf]  ;;  %p9202_p11 = pneg %p9201_p10  ;;  %p9208_p9 = por %p9207_p4, %p9206_p2 }
  0xd3   : > { %7714 = vmatpush3.bf16.msra.mxu1 %v8528_v15  ;;  %7693 = vmatprep.subr.bf16.mxu0 %v8529_v16  ;;  %v362_v43 = vld [vmem:[%s9596_s19] sm:$0xff]  ;;  %v363_v46 = vld [vmem:[%s9596_s19 + $0x8] sm:$0xff]  ;;  %v385_v50 = vrot.slane %v380_v44, %v384_v40  ;;  %v389_v51 = vrot.slane %v380_v44, %v388_v41  ;;  %v393_v54 = vrot.slane %v380_v44, %v392_v42  ;;  %v364_v2 = vld [vmem:[%s9596_s19 + $0x10] sm:$0xff] }
  0xd4   : > { %7715 = vmatprep.subr.bf16.mxu1 %v8530_v17  ;;  %v366_v47 = vld [vmem:[%s9596_s19 + $0x20] sm:$0x33]  ;;  %v368_v48 = vunpack.c.l.bf16 %v362_v43  ;;  %v369_v49 = vunpack.c.h.bf16 %v362_v43  ;;  %v367_v52 = vld [vmem:[%s9596_s19 + $0x28] sm:$0x33]  ;;  %v370_v53 = vunpack.c.l.bf16 %v363_v46  ;;  %v371_v56 = vunpack.c.h.bf16 %v363_v46  ;;  %v365_v11 = vld [vmem:[%s9596_s19 + $0x18] sm:$0xff]  ;;  %p9209_p8 = pnand %p9208_p9, %p9202_p11 }
  0xd5   : > { %v414_v55 = vld [vmem:[#allocation13] sm:$0xf]  ;;  %v397_v57 = vrot.slane %v380_v44, %v396_v45  ;;  %v376_v58 = vunpack.c.l.bf16 %v366_v47  ;;  %v377_v59 = vunpack.c.h.bf16 %v366_v47  ;;  %v378_v60 = vunpack.c.l.bf16 %v367_v52  ;;  %vm9632_vm10 = vmand %vm558_vm4, %vm559_vm5 }
  0xd6   : > { %7694 = vmatpush3.bf16.msra.mxu0 %v8531_v18  ;;  %v379_v61 = vunpack.c.h.bf16 %v367_v52  ;;  %v402_v62 = vmul.f32 %v385_v50, %v368_v48  ;;  %v403_v63 = vmul.f32 %v389_v51, %v369_v49  ;;  %v419_v0 = vrot.slane %v414_v55, %v384_v40 }
  0xd7   : > { %7716 = vmatpush3.bf16.msra.mxu1 %v8532_v19  ;;  %7695 = vmatprep.subr.bf16.mxu0 %v8533_v20  ;;  %v423_v1 = vrot.slane %v414_v55, %v388_v41  ;;  %v404_v3 = vmul.f32 %v393_v54, %v370_v53  ;;  %v427_v4 = vrot.slane %v414_v55, %v392_v42  ;;  %v372_v12 = vunpack.c.l.bf16 %v364_v2 }
  0xd8   : > { %7717 = vmatprep.subr.bf16.mxu1 %v8534_v21  ;;  %v405_v5 = vmul.f32 %v397_v57, %v371_v56  ;;  %v431_v6 = vrot.slane %v414_v55, %v396_v45  ;;  %v410_v7 = vmul.f32 %v385_v50, %v376_v58  ;;  %v411_v8 = vmul.f32 %v389_v51, %v377_v59  ;;  %v8560_v55 = vld [vmem:[#allocation8 + $0x190] sm:$0xff]  }
  0xd9   : > { %v412_v9 = vmul.f32 %v393_v54, %v378_v60  ;;  %v413_v10 = vmul.f32 %v397_v57, %v379_v61  ;;  %v436_v13 = vadd.f32 %v419_v0, %v402_v62  ;;  %v437_v14 = vadd.f32 %v423_v1, %v403_v63 }
  0xda   : > { %7696 = vmatpush3.bf16.msra.mxu0 %v8535_v22  ;;  %v373_v15 = vunpack.c.h.bf16 %v364_v2  ;;  %v438_v16 = vadd.f32 %v427_v4, %v404_v3  ;;  %v439_v17 = vadd.f32 %v431_v6, %v405_v5  ;;  %v444_v18 = vadd.f32 %v419_v0, %v410_v7  ;;  %v568_v2 = vld [vmem:[#allocation2 + $0x28] sm:$0x33] }
  0xdb   : > { %7718 = vmatpush3.bf16.msra.mxu1 %v8536_v23  ;;  %7697 = vmatprep.subr.bf16.mxu0 %v8537_v24  ;;  %v445_v19 = vadd.f32 %v423_v1, %v411_v8  ;;  %v374_v20 = vunpack.c.l.bf16 %v365_v11  ;;  %v446_v21 = vadd.f32 %v427_v4, %v412_v9  ;;  %v447_v22 = vadd.f32 %v431_v6, %v413_v10 }
  0xdc   : > { %7719 = vmatprep.subr.bf16.mxu1 %v8538_v25  ;;  %v375_v23 = vunpack.c.h.bf16 %v365_v11  ;;  %v406_v24 = vmul.f32 %v385_v50, %v372_v12  ;;  %v460_v25 = vmul.f32 0.2, %v436_v13  ;;  %vm448_vm0 = vcmp.ge.f32.partialorder %v436_v13, 0.0 }
  0xdd   : > { %vm449_vm1 = vcmp.ge.f32.partialorder %v437_v14, 0.0  ;;  %vm450_vm2 = vcmp.ge.f32.partialorder %v438_v16, 0.0  ;;  %vm451_vm3 = vcmp.ge.f32.partialorder %v439_v17, 0.0  ;;  %vm456_vm6 = vcmp.ge.f32.partialorder %v444_v18, 0.0 }
  0xde   : > { %7698 = vmatpush3.bf16.msra.mxu0 %v8539_v26  ;;  %v461_v26 = vmul.f32 0.2, %v437_v14  ;;  %vm457_vm7 = vcmp.ge.f32.partialorder %v445_v19, 0.0  ;;  %vm458_vm8 = vcmp.ge.f32.partialorder %v446_v21, 0.0  ;;  %vm459_vm9 = vcmp.ge.f32.partialorder %v447_v22, 0.0 }
  0xdf   : > { %7720 = vmatpush3.bf16.msra.mxu1 %v8540_v27  ;;  %7699 = vmatprep.subr.bf16.mxu0 %v8541_v28  ;;  %v407_v27 = vmul.f32 %v389_v51, %v373_v15  ;;  %v462_v28 = vmul.f32 0.2, %v438_v16  ;;  %v472_v45 = vsel %vm448_vm0, %v436_v13, %v460_v25  ;;  %vm10028_vm0 = vcmask 1045508  }
  0xe0   : > { %7721 = vmatprep.subr.bf16.mxu1 %v8542_v29  ;;  %v463_v29 = vmul.f32 0.2, %v439_v17  ;;  %v473_v46 = vsel %vm449_vm1, %v437_v14, %v461_v26  ;;  %vm9642_vm1 = vmand %vm10028_vm0, %vm562_vm11  ;;  %v9308_v9 = vmov 1983009808   ;;  %vm687_vm0 = vsmask.f32 256 }
  0xe1   : > { %v474_v47 = vsel %vm450_vm2, %v438_v16, %v462_v28  ;;  %vm564_vm2 = vmor %vm9642_vm1, %vm9632_vm10  ;;  %v2229_v10 = vunpack.c.l.s4 %v9308_v9  ;;  %v8569_v9 = vld [vmem:[#allocation8 + $0x168] sm:$0xff]   ;;  %vm688_vm1 = vsmask.f32 2312 }
  0xe2   : > { %7700 = vmatpush3.bf16.msra.mxu0 %v8543_v30  ;;  %v408_v30 = vmul.f32 %v393_v54, %v374_v20  ;;  %v475_v48 = vsel %vm451_vm3, %v439_v17, %v463_v29  ;;  %vm612_vm3 = vsmask.f32 3336 }
  0xe3   : > { %7722 = vmatpush3.bf16.msra.mxu1 %v8544_v31  ;;  %7701 = vmatprep.subr.bf16.mxu0 %v8545_v32  ;;  %v468_v31 = vmul.f32 0.2, %v444_v18  ;;  %v409_v32 = vmul.f32 %v397_v57, %v375_v23  ;;  %vm613_vm4 = vmor %vm559_vm5, %vm612_vm3  ;;  %vm654_vm5 = vcmask 1040384  }
  0xe4   : > { %7723 = vmatprep.subr.bf16.mxu1 %v8546_v33  ;;  %v440_v33 = vadd.f32 %v419_v0, %v406_v24  ;;  %v442_v38 = vadd.f32 %v427_v4, %v408_v30  ;;  %vm689_vm3 = vmor %vm687_vm0, %vm688_vm1 }
  0xe5   : > { %v443_v40 = vadd.f32 %v431_v6, %v409_v32  ;;  %v480_v50 = vsel %vm456_vm6, %v444_v18, %v468_v31  ;;  %vm614_vm6 = vsmask.f32 5392 }
  0xe6   : > { %7702 = vmatpush3.bf16.msra.mxu0 %v8547_v34  ;;  %v469_v34 = vmul.f32 0.2, %v445_v19  ;;  %v464_v41 = vmul.f32 0.2, %v440_v33  ;;  %vm452_vm12 = vcmp.ge.f32.partialorder %v440_v33, 0.0  ;;  %vm454_vm14 = vcmp.ge.f32.partialorder %v442_v38, 0.0 }
  0xe7   : > { %7724 = vmatpush3.bf16.msra.mxu1 %v8548_v35  ;;  %7731 = vmatprep.subr.bf16.mxu0 %v8549_v36  ;;  %v441_v35 = vadd.f32 %v423_v1, %v407_v27  ;;  %v470_v36 = vmul.f32 0.2, %v446_v21  ;;  %v466_v43 = vmul.f32 0.2, %v442_v38  ;;  %v467_v44 = vmul.f32 0.2, %v443_v40 }
  0xe8   : > { %7753 = vmatprep.subr.bf16.mxu1 %v8550_v37  ;;  %v471_v37 = vmul.f32 0.2, %v447_v22  ;;  %vm455_vm15 = vcmp.ge.f32.partialorder %v443_v40, 0.0  ;;  %v481_v51 = vsel %vm457_vm7, %v445_v19, %v469_v34  ;;  %v476_v57 = vsel %vm452_vm12, %v440_v33, %v464_v41  ;;  %v565_v1 = vld [vmem:[#allocation2 + $0x20] sm:$0x33] }
  0xe9   : > { %vm453_vm13 = vcmp.ge.f32.partialorder %v441_v35, 0.0  ;;  %v465_v42 = vmul.f32 0.2, %v441_v35  ;;  %v482_v52 = vsel %vm458_vm8, %v446_v21, %v470_v36  ;;  %v478_v59 = vsel %vm454_vm14, %v442_v38, %v466_v43  ;;  %v8552_v36 = vld [vmem:[#allocation8 + $0x180] sm:$0xff]   ;;  %v8554_v41 = vld [vmem:[#allocation8 + $0x1c8] sm:$0xff]   ;;  %vm9660_vm8 = vmor %vm613_vm4, %vm614_vm6 }
  0xea   : > { %v483_v53 = vsel %vm459_vm9, %v447_v22, %v471_v37  ;;  %v479_v60 = vsel %vm455_vm15, %v443_v40, %v467_v44  ;;  %v2230_v22 = vunpack.c.0.s8 %v2229_v10  ;;  %v8553_v40 = vld [vmem:[#allocation8 + $0x148] sm:$0xff]   ;;  %vm616_vm7 = vsmask.f32 7448  ;;  %v8589_v43 = vld [vmem:[#allocation8 + $0x250] sm:$0xff]  }
  0xeb   : > { %v477_v58 = vsel %vm453_vm13, %v441_v35, %v465_v42  ;;  %vm655_vm9 = vcmask 1042434   ;;  %vm9667_vm10 = vmor %vm9660_vm8, %vm616_vm7  ;;  %vm657_vm12 = vcmask 1044484   ;;  %vm659_vm14 = vcmask 1046534  }
  0xec   : > { %v9655_v23 = vsub.s32 %v2230_v22, %v9614_v39  ;;  %v8551_v39 = vld [vmem:[#allocation8 + $0x100] sm:$0xff]   ;;  %vm9671_vm11 = vmor %vm654_vm5, %vm655_vm9  ;;  %v8577_v22 = vld [vmem:[#allocation8 + $0x178] sm:$0xff]   ;;  %vm692_vm4 = vsmask.f32 6424 }
  0xed   : > { %vm658_vm13 = vmor %vm9671_vm11, %vm657_vm12 }
  0xee   : > { %vm9689_vm15 = vmor %vm658_vm13, %vm659_vm14 }
 0x147   : > { %v490_v54 = vpop.permute.xlu0 %489  ;;  %v500_v56 = vpop.permute.xlu1 %499 }
 0x148   : > { %v502_v61 = vmul.f32 %v490_v54, %v472_v45  ;;  %v503_v62 = vmul.f32 %v490_v54, %v473_v46  ;;  %v504_v63 = vmul.f32 %v490_v54, %v474_v47  ;;  %v505_v0 = vmul.f32 %v490_v54, %v475_v48  ;;  %v8555_v46 = vld [vmem:[#allocation8 + $0x108] sm:$0xff]   ;;  %v8557_v48 = vld [vmem:[#allocation8 + $0x150] sm:$0xff]  }
 0x149   : > { %v510_v3 = vmul.f32 %v500_v56, %v480_v50  ;;  %v511_v4 = vmul.f32 %v500_v56, %v481_v51  ;;  %v512_v5 = vmul.f32 %v500_v56, %v482_v52  ;;  %v513_v6 = vmul.f32 %v500_v56, %v483_v53  ;;  %v8556_v47 = vld [vmem:[#allocation8 + $0x188] sm:$0xff]   ;;  %v8558_v50 = vld [vmem:[#allocation8 + $0x1d0] sm:$0xff]   ;;  %v8599_v56 = vld [vmem:[#allocation8 + $0x220] sm:$0xff]  }
 0x14a   : > { %v7677_v7 = vpack.c.bf16 %v503_v62, %v502_v61  ;;  %v7678_v8 = vpack.c.bf16 %v505_v0, %v504_v63  ;;  %v8559_v52 = vld [vmem:[#allocation8 + $0x110] sm:$0xff]   ;;  %v8562_v61 = vld [vmem:[#allocation8 + $0x1d8] sm:$0xff]  }
 0x14b   : > { %v7681_v11 = vpack.c.bf16 %v511_v4, %v510_v3  ;;  %v7682_v12 = vpack.c.bf16 %v513_v6, %v512_v5  ;;  %v495_v13 = vpop.permute.xlu0 %494  ;;  %v8563_v62 = vld [vmem:[#allocation8 + $0x118] sm:$0xff]   ;;  %v8565_v4 = vld [vmem:[#allocation8 + $0x160] sm:$0xff]  }
 0x14c   : > { %554 = vst [vmem:[#allocation2] sm:$0xff] %v7677_v7  ;;  %555 = vst [vmem:[#allocation2 + $0x8] sm:$0xff] %v7678_v8  ;;  %v506_v14 = vmul.f32 %v495_v13, %v476_v57  ;;  %v507_v15 = vmul.f32 %v495_v13, %v477_v58  ;;  %v508_v16 = vmul.f32 %v495_v13, %v478_v59  ;;  %v8561_v58 = vld [vmem:[#allocation8 + $0x158] sm:$0xff]   ;;  %v8566_v6 = vld [vmem:[#allocation8 + $0x1e0] sm:$0xff]  }
 0x14d   : > { %v509_v17 = vmul.f32 %v495_v13, %v479_v60  ;;  %v566_v18 = vsel %vm564_vm2, %v7681_v11, %v565_v1  ;;  %v569_v19 = vsel %vm564_vm2, %v7682_v12, %v568_v2  ;;  %v8564_v1 = vld [vmem:[#allocation8 + $0x198] sm:$0xff]   ;;  %v8567_v7 = vld [vmem:[#allocation8 + $0x120] sm:$0xff]   ;;  %v8570_v12 = vld [vmem:[#allocation8 + $0x1e8] sm:$0xff]   ;;  %vm690_vm2 = vsmask.f32 4368 }
 0x14e   : > { %567 = vst [vmem:[#allocation2 + $0x20] sm:$0x33] %v566_v18  ;;  %570 = vst [vmem:[#allocation2 + $0x28] sm:$0x33] %v569_v19  ;;  %v7679_v20 = vpack.c.bf16 %v507_v15, %v506_v14  ;;  %v8568_v8 = vld [vmem:[#allocation8 + $0x1a0] sm:$0xff]   ;;  %v8571_v13 = vld [vmem:[#allocation8 + $0x128] sm:$0xff]  }
 0x14f   : > { %v7680_v21 = vpack.c.bf16 %v509_v17, %v508_v16  ;;  %v8572_v14 = vld [vmem:[#allocation8 + $0x1a8] sm:$0xff]   ;;  %v8573_v15 = vld [vmem:[#allocation8 + $0x170] sm:$0xff]   ;;  %vm691_vm6 = vmor %vm689_vm3, %vm690_vm2 }
 0x150   : > { %556 = vst [vmem:[#allocation2 + $0x10] sm:$0xff] %v7679_v20  ;;  %v8574_v16 = vld [vmem:[#allocation8 + $0x1f0] sm:$0xff]   ;;  %vm9711_vm7 = vmor %vm691_vm6, %vm692_vm4  ;;  %v8967_v19 = vld [vmem:[#allocation8 + $0xe00] sm:$0xff]  }
 0x151   : > { %557 = vst [vmem:[#allocation2 + $0x18] sm:$0xff] %v7680_v21  ;;  %v8575_v20 = vld [vmem:[#allocation8 + $0x130] sm:$0xff]  }
 0x152   : > { %v8576_v21 = vld [vmem:[#allocation8 + $0x1b0] sm:$0xff]  }
 0x153   : > { %v7108_v24 = vld.sshfl [vmem:[#allocation2] sm:$0xf pattern:$0x76325410] }
 0x154   : > { %v7109_v25 = vld.sshfl [vmem:[#allocation2 + $0x8] sm:$0xf pattern:$0x76325410] }
 0x155   : > { %v589_v26 = vcombine.low %v7108_v24, %v7109_v25  ;;  %v7683_v27 = vcombine.low %v7109_v25, %v7109_v25  ;;  %v7110_v28 = vld.sshfl [vmem:[#allocation2] sm:$0x5f pattern:$0x76325410]  ;;  %v8578_v25 = vld [vmem:[#allocation8 + $0x1f8] sm:$0xff]  }
 0x156   : > { %v7111_v29 = vld.sshfl [vmem:[#allocation2 + $0x8] sm:$0x5f pattern:$0x76325410] }
 0x157   : > { %v2234_v30 = vrot.slane %v589_v26, %v9655_v23  ;;  %v2241_v31 = vrot.slane %v7683_v27, %v9655_v23  ;;  %v610_v32 = vcombine.low %v7110_v28, %v7111_v29  ;;  %v611_v33 = vcombine.high %v7110_v28, %v7111_v29  ;;  %v7112_v2 = vld.sshfl [vmem:[#allocation2] sm:$0x5a pattern:$0x76325410]  ;;  %v8579_v26 = vld [vmem:[#allocation8 + $0x138] sm:$0xff]   ;;  %v8581_v29 = vld [vmem:[#allocation8 + $0x240] sm:$0xff]  }
 0x158   : > { %v7113_v3 = vld.sshfl [vmem:[#allocation2 + $0x8] sm:$0x5a pattern:$0x76325410] }
 0x159   : > { %v2242_v34 = vcombine.high %v2234_v30, %v2234_v30  ;;  %v2243_v35 = vcombine.high %v2241_v31, %v2241_v31  ;;  %v619_v37 = vshrl.u32 %v610_v32, 16  ;;  %v622_v38 = vshll.u32 %v610_v32, 16  ;;  %v8580_v27 = vld [vmem:[#allocation8 + $0x1b8] sm:$0xff]   ;;  %v8583_v32 = vld [vmem:[#allocation8 + $0x200] sm:$0xff]  }
 0x15a   : > { %v628_v42 = vshll.u32 %v611_v33, 16  ;;  %v652_v10 = vcombine.low %v7112_v2, %v7113_v3  ;;  %v653_v11 = vcombine.high %v7112_v2, %v7113_v3  ;;  %v8605_v2 = vld [vmem:[#allocation8 + $0x270] sm:$0xff]  }
 0x15b   : > { %5667 = vmatprep.mubr.bf16.mxu0 %v2242_v34  ;;  %5707 = vmatprep.mubr.bf16.mxu1 %v2243_v35  ;;  %v621_v44 = vrot.slane %v619_v37, 6  ;;  %v624_v45 = vrot.slane %v622_v38, 7  ;;  %v8584_v34 = vld [vmem:[#allocation8 + $0x280] sm:$0xff]   ;;  %v8585_v35 = vld [vmem:[#allocation8 + $0x248] sm:$0xff]   ;;  %v8606_v3 = vld [vmem:[#allocation8 + $0x2f0] sm:$0xff]  }
 0x15c   : > { %5668 = vmatmul.mubr.bf16.vlgmr.msra.gmra.mrb[0].mxu0 %v2234_v30  ;;  %5708 = vmatmul.mubr.bf16.vlgmr.msra.gmra.mrb[0].mxu1 %v2241_v31  ;;  %v630_v54 = vrot.slane %v628_v42, 7  ;;  %v7114_v17 = vrot.slane %v652_v10, 9  ;;  %v663_v18 = vrot.slane %v653_v11, 7  ;;  %v8582_v30 = vld [vmem:[#allocation8 + $0x2c0] sm:$0xff]   ;;  %v8587_v38 = vld [vmem:[#allocation8 + $0x208] sm:$0xff]   ;;  %v8610_v11 = vld [vmem:[#allocation8 + $0x2f8] sm:$0xff]  }
 0x15d   : > { %7732 = vmatpush3.bf16.msra.mxu0 %v8551_v39  ;;  %7754 = vmatpush3.bf16.msra.mxu1 %v8552_v36  ;;  %v625_v49 = vor.u32 %v624_v45, %v621_v44  ;;  %v8586_v36 = vld [vmem:[#allocation8 + $0x2c8] sm:$0xff]   ;;  %v7116_v42 = vld.sshfl [vmem:[#allocation2 + $0x8] sm:$0xfa pattern:$0x76325410] }
 0x15e   : > { %7733 = vmatprep.subr.bf16.mxu0 %v8553_v40  ;;  %7755 = vmatprep.subr.bf16.mxu1 %v8554_v41  ;;  %v664_v24 = vsel %vm9689_vm15, %v7114_v17, %v663_v18  ;;  %v8588_v40 = vld [vmem:[#allocation8 + $0x288] sm:$0xff]   ;;  %v8590_v44 = vld [vmem:[#allocation8 + $0x2d0] sm:$0xff]   ;;  %v8615_v17 = vld [vmem:[#allocation8 + $0x300] sm:$0xff]  }
 0x15f   : > { %v626_v53 = vrot.slane %v625_v49, 2  ;;  %v2261_v28 = vcombine.high %v664_v24, %v664_v24  ;;  %v9696_v31 = vrot.slane %v664_v24, %v9655_v23  ;;  %v7115_v41 = vld.sshfl [vmem:[#allocation2] sm:$0xfa pattern:$0x76325410] }
 0x160   : > { %v8591_v45 = vld [vmem:[#allocation8 + $0x210] sm:$0xff]   ;;  %v686_v49 = vcombine.high %v7115_v41, %v7116_v42  ;;  %v8618_v24 = vld [vmem:[#allocation8 + $0x3c8] sm:$0xff]  }
 0x161   : > { %7734 = vmatpush3.bf16.msra.mxu0 %v8555_v46  ;;  %7756 = vmatpush3.bf16.msra.mxu1 %v8556_v47  ;;  %v631_v57 = vsel %vm9667_vm10, %v626_v53, %v630_v54  ;;  %v9699_v33 = vrot.slane %v2261_v28, %v9655_v23  ;;  %v2276_v39 = vcombine.high %v9696_v31, %v9696_v31  ;;  %v8592_v46 = vld [vmem:[#allocation8 + $0x290] sm:$0xff]   ;;  %v8593_v47 = vld [vmem:[#allocation8 + $0x258] sm:$0xff]   ;;  %v8597_v53 = vld [vmem:[#allocation8 + $0x260] sm:$0xff]  }
 0x162   : > { %7735 = vmatprep.subr.bf16.mxu0 %v8557_v48  ;;  %7757 = vmatprep.subr.bf16.mxu1 %v8558_v50  ;;  %v9678_v59 = vrot.slane %v631_v57, %v9655_v23  ;;  %v2244_v60 = vcombine.high %v631_v57, %v631_v57  ;;  %v8594_v48 = vld [vmem:[#allocation8 + $0x2d8] sm:$0xff]   ;;  %v8598_v54 = vld [vmem:[#allocation8 + $0x2e0] sm:$0xff]   ;;  %v8620_v28 = vld [vmem:[#allocation8 + $0x388] sm:$0xff]  }
 0x163   : > { %v2277_v37 = vcombine.high %v9699_v33, %v9699_v33  ;;  %v8595_v50 = vld [vmem:[#allocation8 + $0x218] sm:$0xff]   ;;  %v8600_v57 = vld [vmem:[#allocation8 + $0x2a0] sm:$0xff]  }
 0x164   : > { %v2259_v63 = vcombine.high %v9678_v59, %v9678_v59  ;;  %v9683_v0 = vrot.slane %v2244_v60, %v9655_v23  ;;  %v8602_v60 = vld [vmem:[#allocation8 + $0x2e8] sm:$0xff]  }
 0x165   : > { %7736 = vmatpush3.bf16.msra.mxu0 %v8559_v52  ;;  %7758 = vmatpush3.bf16.msra.mxu1 %v8560_v55  ;;  %v8596_v52 = vld [vmem:[#allocation8 + $0x298] sm:$0xff]   ;;  %v700_v55 = vshrl.u32 %v686_v49, 16 }
 0x166   : > { %5747 = vmatprep.mubr.bf16.mxu0 %v2259_v63  ;;  %v2260_v5 = vcombine.high %v9683_v0, %v9683_v0  ;;  %7737 = vmatprep.subr.bf16.mxu0 %v8561_v58  ;;  %v8601_v58 = vld [vmem:[#allocation8 + $0x268] sm:$0xff]  }
 0x167   : > { %7759 = vmatprep.subr.bf16.mxu1 %v8562_v61  ;;  %v702_v61 = vrot.slane %v700_v55, 7  ;;  %v8604_v63 = vld [vmem:[#allocation8 + $0x2a8] sm:$0xff]   ;;  %v8644_v55 = vld [vmem:[#allocation8 + $0x3b8] sm:$0xff]  }
 0x168   : > { %5787 = vmatprep.mubr.bf16.mxu1 %v2260_v5  ;;  %v8999_v5 = vld [vmem:[#allocation8 + $0xf00] sm:$0xff]  }
 0x169   : > { %7738 = vmatpush3.bf16.msra.mxu0 %v8563_v62  ;;  %7760 = vmatpush3.bf16.msra.mxu1 %v8564_v1  ;;  %v8603_v62 = vld [vmem:[#allocation8 + $0x228] sm:$0xff]   ;;  %v703_v1 = vshll.u32 %v686_v49, 16  ;;  %v7119_v49 = vld.sshfl [vmem:[#allocation2 + $0x8] sm:$0xf0 pattern:$0x76325410] }
 0x16a   : > { %7739 = vmatprep.subr.bf16.mxu0 %v8565_v4  ;;  %7761 = vmatprep.subr.bf16.mxu1 %v8566_v6  ;;  %v8607_v6 = vld [vmem:[#allocation8 + $0x230] sm:$0xff]  }
 0x16b   : > { %v705_v4 = vor.u32 %v703_v1, %v702_v61  ;;  %v8650_v1 = vld [vmem:[#allocation8 + $0x4c8] sm:$0xff]  }
 0x16d   : > { %7740 = vmatpush3.bf16.msra.mxu0 %v8567_v7  ;;  %7762 = vmatpush3.bf16.msra.mxu1 %v8568_v8  ;;  %v8608_v8 = vld [vmem:[#allocation8 + $0x2b0] sm:$0xff]  }
 0x16e   : > { %7741 = vmatprep.subr.bf16.mxu0 %v8569_v9  ;;  %7763 = vmatprep.subr.bf16.mxu1 %v8570_v12  ;;  %v8609_v9 = vld [vmem:[#allocation8 + $0x278] sm:$0xff]  }
 0x16f   : > { %v8611_v12 = vld [vmem:[#allocation8 + $0x238] sm:$0xff]  }
 0x171   : > { %7742 = vmatpush3.bf16.msra.mxu0 %v8571_v13  ;;  %7764 = vmatpush3.bf16.msra.mxu1 %v8572_v14  ;;  %v8612_v13 = vld [vmem:[#allocation8 + $0x2b8] sm:$0xff]  }
 0x172   : > { %7743 = vmatprep.subr.bf16.mxu0 %v8573_v15  ;;  %7765 = vmatprep.subr.bf16.mxu1 %v8574_v16  ;;  %v8613_v15 = vld [vmem:[#allocation8 + $0x340] sm:$0xff]  }
 0x173   : > { %v8614_v16 = vld [vmem:[#allocation8 + $0x3c0] sm:$0xff]  }
 0x175   : > { %7744 = vmatpush3.bf16.msra.mxu0 %v8575_v20  ;;  %7766 = vmatpush3.bf16.msra.mxu1 %v8576_v21  ;;  %v8616_v20 = vld [vmem:[#allocation8 + $0x380] sm:$0xff]  }
 0x176   : > { %7745 = vmatprep.subr.bf16.mxu0 %v8577_v22  ;;  %7767 = vmatprep.subr.bf16.mxu1 %v8578_v25  ;;  %v8617_v22 = vld [vmem:[#allocation8 + $0x348] sm:$0xff]  }
 0x179   : > { %7746 = vmatpush3.bf16.msra.mxu0 %v8579_v26  ;;  %7768 = vmatpush3.bf16.msra.mxu1 %v8580_v27  ;;  %v8619_v26 = vld [vmem:[#allocation8 + $0x308] sm:$0xff]  }
 0x17a   : > { %7775 = vmatprep.subr.bf16.mxu0 %v8581_v29  ;;  %7797 = vmatprep.subr.bf16.mxu1 %v8582_v30  ;;  %v8621_v29 = vld [vmem:[#allocation8 + $0x350] sm:$0xff]  }
 0x17b   : > { %v8622_v30 = vld [vmem:[#allocation8 + $0x3d0] sm:$0xff]  }
 0x17c   : > { %5748 = vmatmul.mubr.bf16.vlgmr.msra.gmra.mrb[4].mxu0 %v9678_v59  ;;  %5788 = vmatmul.mubr.bf16.vlgmr.msra.gmra.mrb[4].mxu1 %v9683_v0  ;;  %v685_v59 = vcombine.low %v7115_v41, %v7116_v42  ;;  %v8633_v41 = vld [vmem:[#allocation8 + $0x368] sm:$0xff]  }
 0x17d   : > { %7776 = vmatpush3.bf16.msra.mxu0 %v8583_v32  ;;  %5827 = vmatprep.mubr.bf16.mxu0 %v2276_v39  ;;  %v8624_v32 = vld [vmem:[#allocation8 + $0x390] sm:$0xff]   ;;  %v8628_v39 = vld [vmem:[#allocation8 + $0x398] sm:$0xff]   ;;  %v8634_v42 = vld [vmem:[#allocation8 + $0x3e8] sm:$0xff]  }
 0x17e   : > { %7798 = vmatpush3.bf16.msra.mxu1 %v8584_v34  ;;  %5867 = vmatprep.mubr.bf16.mxu1 %v2277_v37  ;;  %v695_v0 = vshrl.u32 %v685_v59, 16  ;;  %v8625_v34 = vld [vmem:[#allocation8 + $0x358] sm:$0xff]   ;;  %v8630_v37 = vld [vmem:[#allocation8 + $0x3e0] sm:$0xff]  }
 0x17f   : > { %7777 = vmatprep.subr.bf16.mxu0 %v8585_v35  ;;  %7799 = vmatprep.subr.bf16.mxu1 %v8586_v36  ;;  %v8626_v35 = vld [vmem:[#allocation8 + $0x3d8] sm:$0xff]   ;;  %v8629_v36 = vld [vmem:[#allocation8 + $0x360] sm:$0xff]  }
 0x180   : > { %v7117_v7 = vrot.slane %v695_v0, 9  ;;  %v8646_v59 = vld [vmem:[#allocation8 + $0x4c0] sm:$0xff]   ;;  %v8649_v0 = vld [vmem:[#allocation8 + $0x448] sm:$0xff]  }
 0x181   : > { %7778 = vmatpush3.bf16.msra.mxu0 %v8587_v38  ;;  %v8631_v38 = vld [vmem:[#allocation8 + $0x320] sm:$0xff]  }
 0x182   : > { %7800 = vmatpush3.bf16.msra.mxu1 %v8588_v40  ;;  %7779 = vmatprep.subr.bf16.mxu0 %v8589_v43  ;;  %v706_v10 = vsel %vm9711_vm7, %v7117_v7, %v705_v4  ;;  %v8632_v40 = vld [vmem:[#allocation8 + $0x3a0] sm:$0xff]   ;;  %v8635_v43 = vld [vmem:[#allocation8 + $0x328] sm:$0xff]   ;;  %v8653_v7 = vld [vmem:[#allocation8 + $0x450] sm:$0xff]  }
 0x183   : > { %7801 = vmatprep.subr.bf16.mxu1 %v8590_v44  ;;  %v2278_v14 = vcombine.high %v706_v10, %v706_v10  ;;  %v9718_v18 = vrot.slane %v706_v10, %v9655_v23  ;;  %v8636_v44 = vld [vmem:[#allocation8 + $0x3a8] sm:$0xff]   ;;  %v8655_v10 = vld [vmem:[#allocation8 + $0x410] sm:$0xff]  }
 0x184   : > { %v8652_v4 = vld [vmem:[#allocation8 + $0x488] sm:$0xff]  }
 0x185   : > { %7780 = vmatpush3.bf16.msra.mxu0 %v8591_v45  ;;  %v9721_v21 = vrot.slane %v2278_v14, %v9655_v23  ;;  %v2293_v25 = vcombine.high %v9718_v18, %v9718_v18  ;;  %v8637_v45 = vld [vmem:[#allocation8 + $0x370] sm:$0xff]  }
 0x186   : > { %7802 = vmatpush3.bf16.msra.mxu1 %v8592_v46  ;;  %7781 = vmatprep.subr.bf16.mxu0 %v8593_v47  ;;  %v8638_v46 = vld [vmem:[#allocation8 + $0x3f0] sm:$0xff]  }
 0x187   : > { %7803 = vmatprep.subr.bf16.mxu1 %v8594_v48  ;;  %v2294_v27 = vcombine.high %v9721_v21, %v9721_v21  ;;  %v8639_v47 = vld [vmem:[#allocation8 + $0x330] sm:$0xff]  }
 0x188   : > { %v7118_v48 = vld.sshfl [vmem:[#allocation2] sm:$0xf0 pattern:$0x76325410] }
 0x189   : > { %7782 = vmatpush3.bf16.msra.mxu0 %v8595_v50  ;;  %v8640_v50 = vld [vmem:[#allocation8 + $0x3b0] sm:$0xff]  }
 0x18a   : > { %7804 = vmatpush3.bf16.msra.mxu1 %v8596_v52  ;;  %7783 = vmatprep.subr.bf16.mxu0 %v8597_v53  ;;  %v8641_v52 = vld [vmem:[#allocation8 + $0x378] sm:$0xff]  }
 0x18b   : > { %7805 = vmatprep.subr.bf16.mxu1 %v8598_v54  ;;  %v8642_v53 = vld [vmem:[#allocation8 + $0x3f8] sm:$0xff]  }
 0x18c   : > { %v8643_v54 = vld [vmem:[#allocation8 + $0x338] sm:$0xff]  }
 0x18d   : > { %7784 = vmatpush3.bf16.msra.mxu0 %v8599_v56  ;;  %v727_v56 = vcombine.high %v7118_v48, %v7119_v49  ;;  %v8679_v48 = vld [vmem:[#allocation8 + $0x500] sm:$0xff]  }
 0x18e   : > { %7806 = vmatpush3.bf16.msra.mxu1 %v8600_v57  ;;  %7785 = vmatprep.subr.bf16.mxu0 %v8601_v58  ;;  %v8645_v57 = vld [vmem:[#allocation8 + $0x440] sm:$0xff]   ;;  %v7684_v58 = vcombine.high %v7119_v49, %v7119_v49 }
 0x18f   : > { %7807 = vmatprep.subr.bf16.mxu1 %v8602_v60  ;;  %v8647_v60 = vld [vmem:[#allocation8 + $0x400] sm:$0xff]   ;;  %v9730_v61 = vrot.slane %v727_v56, %v9655_v23 }
 0x191   : > { %7786 = vmatpush3.bf16.msra.mxu0 %v8603_v62  ;;  %v8648_v62 = vld [vmem:[#allocation8 + $0x480] sm:$0xff]  }
 0x192   : > { %7808 = vmatpush3.bf16.msra.mxu1 %v8604_v63  ;;  %7787 = vmatprep.subr.bf16.mxu0 %v8605_v2  ;;  %v9733_v63 = vrot.slane %v7684_v58, %v9655_v23  ;;  %v8651_v2 = vld [vmem:[#allocation8 + $0x408] sm:$0xff]  }
 0x193   : > { %7809 = vmatprep.subr.bf16.mxu1 %v8606_v3  ;;  %v2310_v3 = vcombine.high %v9730_v61, %v9730_v61  ;;  %v8684_v58 = vld [vmem:[#allocation8 + $0x588] sm:$0xff]  }
 0x195   : > { %7788 = vmatpush3.bf16.msra.mxu0 %v8607_v6  ;;  %v2311_v6 = vcombine.high %v9733_v63, %v9733_v63 }
 0x196   : > { %7810 = vmatpush3.bf16.msra.mxu1 %v8608_v8  ;;  %7789 = vmatprep.subr.bf16.mxu0 %v8609_v9  ;;  %v769_v8 = vshrl.u32 %v727_v56, 16  ;;  %v8654_v9 = vld [vmem:[#allocation8 + $0x4d0] sm:$0xff]  }
 0x197   : > { %7811 = vmatprep.subr.bf16.mxu1 %v8610_v11  ;;  %v8656_v11 = vld [vmem:[#allocation8 + $0x490] sm:$0xff]  }
 0x198   : > { %v771_v14 = vrot.slane %v769_v8, 6  ;;  %v8695_v8 = vld [vmem:[#allocation8 + $0x520] sm:$0xff]  }
 0x199   : > { %7790 = vmatpush3.bf16.msra.mxu0 %v8611_v12  ;;  %v772_v12 = vshll.u32 %v727_v56, 16  ;;  %v8683_v56 = vld [vmem:[#allocation8 + $0x508] sm:$0xff]  }
 0x19a   : > { %7812 = vmatpush3.bf16.msra.mxu1 %v8612_v13  ;;  %7819 = vmatprep.subr.bf16.mxu0 %v8613_v15  ;;  %v8657_v13 = vld [vmem:[#allocation8 + $0x458] sm:$0xff]  }
 0x19b   : > { %7841 = vmatprep.subr.bf16.mxu1 %v8614_v16  ;;  %v7122_v15 = vld.sshfl [vmem:[#allocation2 + $0x10] sm:$0x5 pattern:$0x76325410] }
 0x19c   : > { %5828 = vmatmul.mubr.bf16.vlgmr.msra.gmra.mrb[8].mxu0 %v9696_v31  ;;  %v8623_v31 = vld [vmem:[#allocation8 + $0x310] sm:$0xff]   ;;  %v8658_v16 = vld [vmem:[#allocation8 + $0x4d8] sm:$0xff]  }
 0x19d   : > { %5868 = vmatmul.mubr.bf16.vlgmr.msra.gmra.mrb[8].mxu1 %v9699_v33  ;;  %7820 = vmatpush3.bf16.msra.mxu0 %v8615_v17  ;;  %v8627_v33 = vld [vmem:[#allocation8 + $0x318] sm:$0xff]  }
 0x19e   : > { %5907 = vmatprep.mubr.bf16.mxu0 %v2293_v25  ;;  %7842 = vmatpush3.bf16.msra.mxu1 %v8616_v20  ;;  %v8659_v17 = vld [vmem:[#allocation8 + $0x418] sm:$0xff]  }
 0x19f   : > { %5947 = vmatprep.mubr.bf16.mxu1 %v2294_v27  ;;  %7821 = vmatprep.subr.bf16.mxu0 %v8617_v22  ;;  %v8660_v20 = vld [vmem:[#allocation8 + $0x498] sm:$0xff]   ;;  %v8661_v22 = vld [vmem:[#allocation8 + $0x460] sm:$0xff]  }
 0x1a0   : > { %7843 = vmatprep.subr.bf16.mxu1 %v8618_v24  ;;  %v8662_v24 = vld [vmem:[#allocation8 + $0x4e0] sm:$0xff]  }
 0x1a1   : > { %7822 = vmatpush3.bf16.msra.mxu0 %v8619_v26  ;;  %v8663_v26 = vld [vmem:[#allocation8 + $0x420] sm:$0xff]  }
 0x1a2   : > { %7844 = vmatpush3.bf16.msra.mxu1 %v8620_v28  ;;  %7823 = vmatprep.subr.bf16.mxu0 %v8621_v29  ;;  %v8664_v27 = vld [vmem:[#allocation8 + $0x4a0] sm:$0xff]   ;;  %v8665_v29 = vld [vmem:[#allocation8 + $0x468] sm:$0xff]  }
 0x1a3   : > { %7845 = vmatprep.subr.bf16.mxu1 %v8622_v30 }
 0x1a5   : > { %7824 = vmatpush3.bf16.msra.mxu0 %v8623_v31  ;;  %v8666_v31 = vld [vmem:[#allocation8 + $0x4e8] sm:$0xff]  }
 0x1a6   : > { %7846 = vmatpush3.bf16.msra.mxu1 %v8624_v32  ;;  %7825 = vmatprep.subr.bf16.mxu0 %v8625_v34  ;;  %v8667_v32 = vld [vmem:[#allocation8 + $0x428] sm:$0xff]  }
 0x1a7   : > { %7847 = vmatprep.subr.bf16.mxu1 %v8626_v35  ;;  %v8668_v34 = vld [vmem:[#allocation8 + $0x4a8] sm:$0xff]  }
 0x1a9   : > { %7826 = vmatpush3.bf16.msra.mxu0 %v8627_v33  ;;  %v8669_v33 = vld [vmem:[#allocation8 + $0x470] sm:$0xff]  }
 0x1aa   : > { %7848 = vmatpush3.bf16.msra.mxu1 %v8628_v39  ;;  %7827 = vmatprep.subr.bf16.mxu0 %v8629_v36  ;;  %v8670_v36 = vld [vmem:[#allocation8 + $0x4f0] sm:$0xff]  }
 0x1ab   : > { %7849 = vmatprep.subr.bf16.mxu1 %v8630_v37  ;;  %v8671_v37 = vld [vmem:[#allocation8 + $0x430] sm:$0xff]  }
 0x1ad   : > { %7828 = vmatpush3.bf16.msra.mxu0 %v8631_v38  ;;  %v8672_v38 = vld [vmem:[#allocation8 + $0x4b0] sm:$0xff]  }
 0x1ae   : > { %7850 = vmatpush3.bf16.msra.mxu1 %v8632_v40  ;;  %7829 = vmatprep.subr.bf16.mxu0 %v8633_v41  ;;  %v8673_v40 = vld [vmem:[#allocation8 + $0x478] sm:$0xff]  }
 0x1af   : > { %7851 = vmatprep.subr.bf16.mxu1 %v8634_v42  ;;  %v8674_v42 = vld [vmem:[#allocation8 + $0x4f8] sm:$0xff]  }
 0x1b1   : > { %7830 = vmatpush3.bf16.msra.mxu0 %v8635_v43  ;;  %v8675_v43 = vld [vmem:[#allocation8 + $0x438] sm:$0xff]  }
 0x1b2   : > { %7852 = vmatpush3.bf16.msra.mxu1 %v8636_v44  ;;  %7831 = vmatprep.subr.bf16.mxu0 %v8637_v45  ;;  %v8676_v44 = vld [vmem:[#allocation8 + $0x4b8] sm:$0xff]  }
 0x1b3   : > { %7853 = vmatprep.subr.bf16.mxu1 %v8638_v46  ;;  %v8677_v46 = vld [vmem:[#allocation8 + $0x540] sm:$0xff]  }
 0x1b5   : > { %7832 = vmatpush3.bf16.msra.mxu0 %v8639_v47  ;;  %v8678_v47 = vld [vmem:[#allocation8 + $0x5c0] sm:$0xff]  }
 0x1b6   : > { %7854 = vmatpush3.bf16.msra.mxu1 %v8640_v50  ;;  %7833 = vmatprep.subr.bf16.mxu0 %v8641_v52  ;;  %v8680_v50 = vld [vmem:[#allocation8 + $0x580] sm:$0xff]  }
 0x1b7   : > { %7855 = vmatprep.subr.bf16.mxu1 %v8642_v53  ;;  %v8681_v53 = vld [vmem:[#allocation8 + $0x548] sm:$0xff]  }
 0x1b9   : > { %7834 = vmatpush3.bf16.msra.mxu0 %v8643_v54  ;;  %v8682_v54 = vld [vmem:[#allocation8 + $0x5c8] sm:$0xff]  }
 0x1ba   : > { %7856 = vmatpush3.bf16.msra.mxu1 %v8644_v55  ;;  %7863 = vmatprep.subr.bf16.mxu0 %v8645_v57 }
 0x1bb   : > { %7885 = vmatprep.subr.bf16.mxu1 %v8646_v59  ;;  %v8685_v59 = vld [vmem:[#allocation8 + $0x550] sm:$0xff]  }
 0x1bc   : > { %5908 = vmatmul.mubr.bf16.vlgmr.msra.gmra.mrb[12].mxu0 %v9718_v18  ;;  %v7123_v18 = vld.sshfl [vmem:[#allocation2 + $0x18] sm:$0x5 pattern:$0x76325410] }
 0x1bd   : > { %5948 = vmatmul.mubr.bf16.vlgmr.msra.gmra.mrb[12].mxu1 %v9721_v21  ;;  %7864 = vmatpush3.bf16.msra.mxu0 %v8647_v60  ;;  %v774_v21 = vrot.slane %v772_v12, 7  ;;  %v9741_v25 = vcombine.low %v7122_v15, %v7123_v18  ;;  %v8686_v60 = vld [vmem:[#allocation8 + $0x5d0] sm:$0xff]   ;;  %v8699_v12 = vld [vmem:[#allocation8 + $0x528] sm:$0xff]  }
 0x1be   : > { %5987 = vmatprep.mubr.bf16.mxu0 %v2310_v3  ;;  %7886 = vmatpush3.bf16.msra.mxu1 %v8648_v62  ;;  %v8687_v62 = vld [vmem:[#allocation8 + $0x510] sm:$0xff]   ;;  %v8693_v3 = vld [vmem:[#allocation8 + $0x560] sm:$0xff]  }
 0x1bf   : > { %6027 = vmatprep.mubr.bf16.mxu1 %v2311_v6  ;;  %7865 = vmatprep.subr.bf16.mxu0 %v8649_v0  ;;  %v775_v28 = vor.u32 %v774_v21, %v771_v14  ;;  %v778_v30 = vshll.u32 %v9741_v25, 16  ;;  %v8689_v0 = vld [vmem:[#allocation8 + $0x558] sm:$0xff]   ;;  %v7124_v6 = vld.sshfl [vmem:[#allocation2] sm:$0xa0 pattern:$0x76325410] }
 0x1c0   : > { %7887 = vmatprep.subr.bf16.mxu1 %v8650_v1  ;;  %v8691_v1 = vld [vmem:[#allocation8 + $0x518] sm:$0xff]   ;;  %v8700_v14 = vld [vmem:[#allocation8 + $0x5a8] sm:$0xff]   ;;  %v8701_v15 = vld [vmem:[#allocation8 + $0x570] sm:$0xff]  }
 0x1c1   : > { %7866 = vmatpush3.bf16.msra.mxu0 %v8651_v2  ;;  %v776_v35 = vrot.slane %v775_v28, 2  ;;  %v780_v39 = vrot.slane %v778_v30, 7  ;;  %v8692_v2 = vld [vmem:[#allocation8 + $0x598] sm:$0xff]   ;;  %v8703_v18 = vld [vmem:[#allocation8 + $0x530] sm:$0xff]   ;;  %v8710_v30 = vld [vmem:[#allocation8 + $0x6c0] sm:$0xff]  }
 0x1c2   : > { %7888 = vmatpush3.bf16.msra.mxu1 %v8652_v4  ;;  %7867 = vmatprep.subr.bf16.mxu0 %v8653_v7  ;;  %v8694_v4 = vld [vmem:[#allocation8 + $0x5e0] sm:$0xff]   ;;  %v7125_v7 = vld.sshfl [vmem:[#allocation2 + $0x8] sm:$0xa0 pattern:$0x76325410] }
 0x1c3   : > { %7889 = vmatprep.subr.bf16.mxu1 %v8654_v9  ;;  %v781_v41 = vsel %vm9667_vm10, %v776_v35, %v780_v39  ;;  %v8696_v9 = vld [vmem:[#allocation8 + $0x5a0] sm:$0xff]   ;;  %v8704_v21 = vld [vmem:[#allocation8 + $0x5b0] sm:$0xff]   ;;  %v8708_v28 = vld [vmem:[#allocation8 + $0x5b8] sm:$0xff]  }
 0x1c4   : > { %v2312_v45 = vcombine.high %v781_v41, %v781_v41  ;;  %v9747_v49 = vrot.slane %v781_v41, %v9655_v23  ;;  %v8714_v39 = vld [vmem:[#allocation8 + $0x6c8] sm:$0xff]  }
 0x1c5   : > { %7868 = vmatpush3.bf16.msra.mxu0 %v8655_v10  ;;  %v8697_v10 = vld [vmem:[#allocation8 + $0x568] sm:$0xff]  }
 0x1c6   : > { %7890 = vmatpush3.bf16.msra.mxu1 %v8656_v11  ;;  %7869 = vmatprep.subr.bf16.mxu0 %v8657_v13  ;;  %v9750_v52 = vrot.slane %v2312_v45, %v9655_v23  ;;  %v2327_v55 = vcombine.high %v9747_v49, %v9747_v49  ;;  %v8698_v11 = vld [vmem:[#allocation8 + $0x5e8] sm:$0xff]   ;;  %v9758_v13 = vcombine.high %v7124_v6, %v7125_v7  ;;  %v8719_v45 = vld [vmem:[#allocation8 + $0x610] sm:$0xff]  }
 0x1c7   : > { %7891 = vmatprep.subr.bf16.mxu1 %v8658_v16  ;;  %v824_v16 = vrot.slane %v9741_v25, 7  ;;  %v8709_v25 = vld [vmem:[#allocation8 + $0x640] sm:$0xff]   ;;  %v8736_v7 = vld [vmem:[#allocation8 + $0x6b0] sm:$0xff]  }
 0x1c8   : > { %v2328_v57 = vcombine.high %v9750_v52, %v9750_v52 }
 0x1c9   : > { %7870 = vmatpush3.bf16.msra.mxu0 %v8659_v17  ;;  %v8702_v17 = vld [vmem:[#allocation8 + $0x5f0] sm:$0xff]  }
 0x1ca   : > { %7892 = vmatpush3.bf16.msra.mxu1 %v8660_v20  ;;  %7871 = vmatprep.subr.bf16.mxu0 %v8661_v22  ;;  %v7128_v20 = vrot.slane %v9758_v13, 9  ;;  %v8705_v22 = vld [vmem:[#allocation8 + $0x578] sm:$0xff]  }
 0x1cb   : > { %7893 = vmatprep.subr.bf16.mxu1 %v8662_v24 }
 0x1cc   : > { %v825_v24 = vsel %vm9689_vm15, %v7128_v20, %v824_v16  ;;  %v8743_v16 = vld [vmem:[#allocation8 + $0x700] sm:$0xff]  }
 0x1cd   : > { %7872 = vmatpush3.bf16.msra.mxu0 %v8663_v26  ;;  %v8706_v26 = vld [vmem:[#allocation8 + $0x5f8] sm:$0xff]  }
 0x1ce   : > { %7894 = vmatpush3.bf16.msra.mxu1 %v8664_v27  ;;  %7873 = vmatprep.subr.bf16.mxu0 %v8665_v29  ;;  %v8707_v27 = vld [vmem:[#allocation8 + $0x538] sm:$0xff]   ;;  %v2329_v29 = vcombine.high %v825_v24, %v825_v24 }
 0x1cf   : > { %7895 = vmatprep.subr.bf16.mxu1 %v8666_v31  ;;  %v8711_v31 = vld [vmem:[#allocation8 + $0x600] sm:$0xff]  }
 0x1d0   : > { %v9768_v35 = vrot.slane %v2329_v29, %v9655_v23  ;;  %v8749_v29 = vld [vmem:[#allocation8 + $0x750] sm:$0xff]  }
 0x1d1   : > { %7874 = vmatpush3.bf16.msra.mxu0 %v8667_v32  ;;  %v9765_v32 = vrot.slane %v825_v24, %v9655_v23 }
 0x1d2   : > { %7896 = vmatpush3.bf16.msra.mxu1 %v8668_v34  ;;  %7875 = vmatprep.subr.bf16.mxu0 %v8669_v33  ;;  %v8712_v34 = vld [vmem:[#allocation8 + $0x680] sm:$0xff]   ;;  %v8713_v33 = vld [vmem:[#allocation8 + $0x648] sm:$0xff]   ;;  %v2345_v41 = vcombine.high %v9768_v35, %v9768_v35 }
 0x1d3   : > { %7897 = vmatprep.subr.bf16.mxu1 %v8670_v36  ;;  %v7131_v36 = vld.sshfl [vmem:[#allocation2 + $0x10] sm:$0xf pattern:$0x76325410] }
 0x1d5   : > { %7876 = vmatpush3.bf16.msra.mxu0 %v8671_v37  ;;  %v9770_v37 = vld.sshfl [vmem:[#allocation2 + $0x18] sm:$0xf pattern:$0x76325410] }
 0x1d6   : > { %7898 = vmatpush3.bf16.msra.mxu1 %v8672_v38  ;;  %7877 = vmatprep.subr.bf16.mxu0 %v8673_v40  ;;  %v2344_v38 = vcombine.high %v9765_v32, %v9765_v32  ;;  %v8715_v40 = vld [vmem:[#allocation8 + $0x608] sm:$0xff]  }
 0x1d7   : > { %7899 = vmatprep.subr.bf16.mxu1 %v8674_v42  ;;  %v8716_v42 = vld [vmem:[#allocation8 + $0x688] sm:$0xff]  }
 0x1d9   : > { %7878 = vmatpush3.bf16.msra.mxu0 %v8675_v43  ;;  %v8717_v43 = vld [vmem:[#allocation8 + $0x650] sm:$0xff]  }
 0x1da   : > { %7900 = vmatpush3.bf16.msra.mxu1 %v8676_v44  ;;  %7907 = vmatprep.subr.bf16.mxu0 %v8677_v46  ;;  %v8718_v44 = vld [vmem:[#allocation8 + $0x6d0] sm:$0xff]   ;;  %v9779_v46 = vcombine.low %v7131_v36, %v9770_v37  ;;  %v8758_v36 = vld [vmem:[#allocation8 + $0x7e0] sm:$0xff]  }
 0x1db   : > { %7929 = vmatprep.subr.bf16.mxu1 %v8678_v47  ;;  %v8720_v47 = vld [vmem:[#allocation8 + $0x690] sm:$0xff]  }
 0x1dc   : > { %5988 = vmatmul.mubr.bf16.vlgmr.msra.gmra.mrb[16].mxu0 %v9730_v61  ;;  %v8688_v61 = vld [vmem:[#allocation8 + $0x590] sm:$0xff]  }
 0x1dd   : > { %6028 = vmatmul.mubr.bf16.vlgmr.msra.gmra.mrb[16].mxu1 %v9733_v63  ;;  %7908 = vmatpush3.bf16.msra.mxu0 %v8679_v48  ;;  %v8690_v63 = vld [vmem:[#allocation8 + $0x5d8] sm:$0xff]  }
 0x1de   : > { %6067 = vmatprep.mubr.bf16.mxu0 %v2327_v55  ;;  %7930 = vmatpush3.bf16.msra.mxu1 %v8680_v50  ;;  %v8721_v48 = vld [vmem:[#allocation8 + $0x658] sm:$0xff]   ;;  %v8726_v55 = vld [vmem:[#allocation8 + $0x6e0] sm:$0xff]  }
 0x1df   : > { %6107 = vmatprep.mubr.bf16.mxu1 %v2328_v57  ;;  %7909 = vmatprep.subr.bf16.mxu0 %v8681_v53  ;;  %v8723_v50 = vld [vmem:[#allocation8 + $0x618] sm:$0xff]   ;;  %v872_v53 = vshrl.u32 %v9779_v46, 16  ;;  %v8728_v57 = vld [vmem:[#allocation8 + $0x6a0] sm:$0xff]  }
 0x1e0   : > { %7931 = vmatprep.subr.bf16.mxu1 %v8682_v54  ;;  %v8725_v54 = vld [vmem:[#allocation8 + $0x660] sm:$0xff]  }
 0x1e1   : > { %7910 = vmatpush3.bf16.msra.mxu0 %v8683_v56  ;;  %v8727_v56 = vld [vmem:[#allocation8 + $0x620] sm:$0xff]  }
 0x1e2   : > { %7932 = vmatpush3.bf16.msra.mxu1 %v8684_v58  ;;  %7911 = vmatprep.subr.bf16.mxu0 %v8685_v59  ;;  %v8729_v58 = vld [vmem:[#allocation8 + $0x668] sm:$0xff]   ;;  %v874_v59 = vrot.slane %v872_v53, 7 }
 0x1e3   : > { %7933 = vmatprep.subr.bf16.mxu1 %v8686_v60  ;;  %v8730_v60 = vld [vmem:[#allocation8 + $0x6e8] sm:$0xff]  }
 0x1e5   : > { %7912 = vmatpush3.bf16.msra.mxu0 %v8687_v62  ;;  %v867_v62 = vshrl.u32 %v9758_v13, 16 }
 0x1e6   : > { %7934 = vmatpush3.bf16.msra.mxu1 %v8688_v61  ;;  %7913 = vmatprep.subr.bf16.mxu0 %v8689_v0  ;;  %v8731_v61 = vld [vmem:[#allocation8 + $0x628] sm:$0xff]   ;;  %v875_v0 = vshll.u32 %v9779_v46, 16 }
 0x1e7   : > { %7935 = vmatprep.subr.bf16.mxu1 %v8690_v63  ;;  %v8732_v63 = vld [vmem:[#allocation8 + $0x6a8] sm:$0xff]   ;;  %v7133_v6 = vrot.slane %v867_v62, 9 }
 0x1e9   : > { %7914 = vmatpush3.bf16.msra.mxu0 %v8691_v1  ;;  %v8733_v1 = vld [vmem:[#allocation8 + $0x670] sm:$0xff]  }
 0x1ea   : > { %7936 = vmatpush3.bf16.msra.mxu1 %v8692_v2  ;;  %7915 = vmatprep.subr.bf16.mxu0 %v8693_v3  ;;  %v877_v2 = vor.u32 %v875_v0, %v874_v59  ;;  %v8734_v3 = vld [vmem:[#allocation8 + $0x6f0] sm:$0xff]   ;;  %v8769_v59 = vld [vmem:[#allocation8 + $0x778] sm:$0xff]  }
 0x1eb   : > { %7937 = vmatprep.subr.bf16.mxu1 %v8694_v4  ;;  %v8735_v4 = vld [vmem:[#allocation8 + $0x630] sm:$0xff]  }
 0x1ed   : > { %7916 = vmatpush3.bf16.msra.mxu0 %v8695_v8  ;;  %v8737_v8 = vld [vmem:[#allocation8 + $0x678] sm:$0xff]  }
 0x1ee   : > { %7938 = vmatpush3.bf16.msra.mxu1 %v8696_v9  ;;  %7917 = vmatprep.subr.bf16.mxu0 %v8697_v10  ;;  %v878_v9 = vsel %vm9711_vm7, %v7133_v6, %v877_v2  ;;  %v8738_v10 = vld [vmem:[#allocation8 + $0x6f8] sm:$0xff]   ;;  %v8773_v2 = vld [vmem:[#allocation8 + $0x840] sm:$0xff]  }
 0x1ef   : > { %7939 = vmatprep.subr.bf16.mxu1 %v8698_v11  ;;  %v8739_v11 = vld [vmem:[#allocation8 + $0x638] sm:$0xff]   ;;  %v2346_v13 = vcombine.high %v878_v9, %v878_v9  ;;  %v8775_v6 = vld [vmem:[#allocation8 + $0x800] sm:$0xff]  }
 0x1f1   : > { %7918 = vmatpush3.bf16.msra.mxu0 %v8699_v12  ;;  %v8740_v12 = vld [vmem:[#allocation8 + $0x6b8] sm:$0xff]   ;;  %v9790_v20 = vrot.slane %v2346_v13, %v9655_v23  ;;  %v8779_v13 = vld [vmem:[#allocation8 + $0x808] sm:$0xff]  }
 0x1f2   : > { %7940 = vmatpush3.bf16.msra.mxu1 %v8700_v14  ;;  %7919 = vmatprep.subr.bf16.mxu0 %v8701_v15  ;;  %v8741_v14 = vld [vmem:[#allocation8 + $0x740] sm:$0xff]  }
 0x1f3   : > { %7941 = vmatprep.subr.bf16.mxu1 %v8702_v17  ;;  %v8742_v15 = vld [vmem:[#allocation8 + $0x7c0] sm:$0xff]   ;;  %v9787_v17 = vrot.slane %v878_v9, %v9655_v23 }
 0x1f5   : > { %7920 = vmatpush3.bf16.msra.mxu0 %v8703_v18  ;;  %v8744_v18 = vld [vmem:[#allocation8 + $0x780] sm:$0xff]   ;;  %v2361_v24 = vcombine.high %v9787_v17, %v9787_v17 }
 0x1f6   : > { %7942 = vmatpush3.bf16.msra.mxu1 %v8704_v21  ;;  %7921 = vmatprep.subr.bf16.mxu0 %v8705_v22  ;;  %v8745_v21 = vld [vmem:[#allocation8 + $0x748] sm:$0xff]  }
 0x1f7   : > { %7943 = vmatprep.subr.bf16.mxu1 %v8706_v26  ;;  %v8746_v22 = vld [vmem:[#allocation8 + $0x7c8] sm:$0xff]  }
 0x1f8   : > { %v8747_v26 = vld [vmem:[#allocation8 + $0x708] sm:$0xff]  }
 0x1f9   : > { %7922 = vmatpush3.bf16.msra.mxu0 %v8707_v27  ;;  %v2362_v27 = vcombine.high %v9790_v20, %v9790_v20 }
 0x1fa   : > { %7944 = vmatpush3.bf16.msra.mxu1 %v8708_v28  ;;  %7951 = vmatprep.subr.bf16.mxu0 %v8709_v25  ;;  %v8748_v28 = vld [vmem:[#allocation8 + $0x788] sm:$0xff]   ;;  %v8750_v25 = vld [vmem:[#allocation8 + $0x7d0] sm:$0xff]  }
 0x1fb   : > { %7973 = vmatprep.subr.bf16.mxu1 %v8710_v30  ;;  %v8751_v30 = vld [vmem:[#allocation8 + $0x710] sm:$0xff]  }
 0x1fc   : > { %6068 = vmatmul.mubr.bf16.vlgmr.msra.gmra.mrb[20].mxu0 %v9747_v49  ;;  %v8722_v49 = vld [vmem:[#allocation8 + $0x6d8] sm:$0xff]  }
 0x1fd   : > { %6108 = vmatmul.mubr.bf16.vlgmr.msra.gmra.mrb[20].mxu1 %v9750_v52  ;;  %7952 = vmatpush3.bf16.msra.mxu0 %v8711_v31  ;;  %v8724_v52 = vld [vmem:[#allocation8 + $0x698] sm:$0xff]   ;;  %v8752_v31 = vld [vmem:[#allocation8 + $0x790] sm:$0xff]  }
 0x1fe   : > { %6147 = vmatprep.mubr.bf16.mxu0 %v2344_v38  ;;  %7974 = vmatpush3.bf16.msra.mxu1 %v8712_v34  ;;  %v8754_v34 = vld [vmem:[#allocation8 + $0x7d8] sm:$0xff]   ;;  %v8759_v38 = vld [vmem:[#allocation8 + $0x720] sm:$0xff]  }
 0x1ff   : > { %6187 = vmatprep.mubr.bf16.mxu1 %v2345_v41  ;;  %7953 = vmatprep.subr.bf16.mxu0 %v8713_v33  ;;  %v8756_v33 = vld [vmem:[#allocation8 + $0x798] sm:$0xff]   ;;  %v8761_v41 = vld [vmem:[#allocation8 + $0x768] sm:$0xff]  }
 0x200   : > { %7975 = vmatprep.subr.bf16.mxu1 %v8714_v39  ;;  %v8757_v39 = vld [vmem:[#allocation8 + $0x760] sm:$0xff]  }
 0x201   : > { %7954 = vmatpush3.bf16.msra.mxu0 %v8715_v40  ;;  %v8760_v40 = vld [vmem:[#allocation8 + $0x7a0] sm:$0xff]  }
 0x202   : > { %7976 = vmatpush3.bf16.msra.mxu1 %v8716_v42  ;;  %7955 = vmatprep.subr.bf16.mxu0 %v8717_v43  ;;  %v8762_v42 = vld [vmem:[#allocation8 + $0x7e8] sm:$0xff]  }
 0x203   : > { %7977 = vmatprep.subr.bf16.mxu1 %v8718_v44  ;;  %v8763_v43 = vld [vmem:[#allocation8 + $0x728] sm:$0xff]  }
 0x204   : > { %v8764_v44 = vld [vmem:[#allocation8 + $0x7a8] sm:$0xff]  }
 0x205   : > { %7956 = vmatpush3.bf16.msra.mxu0 %v8719_v45  ;;  %v8765_v45 = vld [vmem:[#allocation8 + $0x770] sm:$0xff]  }
 0x206   : > { %7978 = vmatpush3.bf16.msra.mxu1 %v8720_v47  ;;  %7957 = vmatprep.subr.bf16.mxu0 %v8721_v48 }
 0x207   : > { %7979 = vmatprep.subr.bf16.mxu1 %v8722_v49  ;;  %v8766_v49 = vld [vmem:[#allocation8 + $0x7f0] sm:$0xff]  }
 0x209   : > { %7958 = vmatpush3.bf16.msra.mxu0 %v8723_v50  ;;  %v8767_v50 = vld [vmem:[#allocation8 + $0x730] sm:$0xff]  }
 0x20a   : > { %7980 = vmatpush3.bf16.msra.mxu1 %v8724_v52  ;;  %7959 = vmatprep.subr.bf16.mxu0 %v8725_v54  ;;  %v8768_v54 = vld [vmem:[#allocation8 + $0x7b0] sm:$0xff]  }
 0x20b   : > { %7981 = vmatprep.subr.bf16.mxu1 %v8726_v55 }
 0x20d   : > { %7960 = vmatpush3.bf16.msra.mxu0 %v8727_v56 }
 0x20e   : > { %7982 = vmatpush3.bf16.msra.mxu1 %v8728_v57  ;;  %7961 = vmatprep.subr.bf16.mxu0 %v8729_v58 }
 0x20f   : > { %7983 = vmatprep.subr.bf16.mxu1 %v8730_v60  ;;  %v8770_v60 = vld [vmem:[#allocation8 + $0x7f8] sm:$0xff]  }
 0x211   : > { %7962 = vmatpush3.bf16.msra.mxu0 %v8731_v61 }
 0x212   : > { %7984 = vmatpush3.bf16.msra.mxu1 %v8732_v63  ;;  %7963 = vmatprep.subr.bf16.mxu0 %v8733_v1  ;;  %v8771_v63 = vld [vmem:[#allocation8 + $0x738] sm:$0xff]  }
 0x213   : > { %7985 = vmatprep.subr.bf16.mxu1 %v8734_v3  ;;  %v8772_v1 = vld [vmem:[#allocation8 + $0x7b8] sm:$0xff]   ;;  %v7685_v3 = vcombine.low %v9770_v37, %v9770_v37  ;;  %v8778_v37 = vld [vmem:[#allocation8 + $0x8c8] sm:$0xff]  }
 0x215   : > { %7964 = vmatpush3.bf16.msra.mxu0 %v8735_v4  ;;  %v8774_v4 = vld [vmem:[#allocation8 + $0x8c0] sm:$0xff]   ;;  %v9807_v9 = vrot.slane %v7685_v3, %v9655_v23 }
 0x216   : > { %7986 = vmatpush3.bf16.msra.mxu1 %v8736_v7  ;;  %7965 = vmatprep.subr.bf16.mxu0 %v8737_v8  ;;  %v9804_v7 = vrot.slane %v9779_v46, %v9655_v23  ;;  %v8776_v8 = vld [vmem:[#allocation8 + $0x880] sm:$0xff]   ;;  %v8780_v46 = vld [vmem:[#allocation8 + $0x888] sm:$0xff]  }
 0x217   : > { %7987 = vmatprep.subr.bf16.mxu1 %v8738_v10  ;;  %v8777_v10 = vld [vmem:[#allocation8 + $0x848] sm:$0xff]  }
 0x219   : > { %7966 = vmatpush3.bf16.msra.mxu0 %v8739_v11  ;;  %v7136_v11 = vld.sshfl [vmem:[#allocation2 + $0x10] sm:$0x5f pattern:$0x76325410] }
 0x21a   : > { %7988 = vmatpush3.bf16.msra.mxu1 %v8740_v12  ;;  %7995 = vmatprep.subr.bf16.mxu0 %v8741_v14  ;;  %v7137_v12 = vld.sshfl [vmem:[#allocation2 + $0x18] sm:$0x5f pattern:$0x76325410]  ;;  %v2378_v14 = vcombine.high %v9804_v7, %v9804_v7 }
 0x21b   : > { %8017 = vmatprep.subr.bf16.mxu1 %v8742_v15  ;;  %v2379_v15 = vcombine.high %v9807_v9, %v9807_v9 }
 0x21c   : > { %6148 = vmatmul.mubr.bf16.vlgmr.msra.gmra.mrb[24].mxu0 %v9765_v32  ;;  %v8753_v32 = vld [vmem:[#allocation8 + $0x758] sm:$0xff]  }
 0x21d   : > { %6188 = vmatmul.mubr.bf16.vlgmr.msra.gmra.mrb[24].mxu1 %v9768_v35  ;;  %7996 = vmatpush3.bf16.msra.mxu0 %v8743_v16  ;;  %v8755_v35 = vld [vmem:[#allocation8 + $0x718] sm:$0xff]   ;;  %v8781_v16 = vld [vmem:[#allocation8 + $0x850] sm:$0xff]  }
 0x21e   : > { %6227 = vmatprep.mubr.bf16.mxu0 %v2361_v24  ;;  %8018 = vmatpush3.bf16.msra.mxu1 %v8744_v18  ;;  %v8782_v18 = vld [vmem:[#allocation8 + $0x8d0] sm:$0xff]   ;;  %v8785_v24 = vld [vmem:[#allocation8 + $0x858] sm:$0xff]  }
 0x21f   : > { %6267 = vmatprep.mubr.bf16.mxu1 %v2362_v27  ;;  %7997 = vmatprep.subr.bf16.mxu0 %v8745_v21  ;;  %v920_v21 = vcombine.low %v7136_v11, %v7137_v12  ;;  %v8786_v27 = vld [vmem:[#allocation8 + $0x8d8] sm:$0xff]  }
 0x220   : > { %8019 = vmatprep.subr.bf16.mxu1 %v8746_v22  ;;  %v8783_v22 = vld [vmem:[#allocation8 + $0x810] sm:$0xff]  }
 0x221   : > { %7998 = vmatpush3.bf16.msra.mxu0 %v8747_v26  ;;  %v923_v26 = vshrl.u32 %v920_v21, 16 }
 0x222   : > { %8020 = vmatpush3.bf16.msra.mxu1 %v8748_v28  ;;  %7999 = vmatprep.subr.bf16.mxu0 %v8749_v29  ;;  %v8787_v28 = vld [vmem:[#allocation8 + $0x818] sm:$0xff]  }
 0x223   : > { %8021 = vmatprep.subr.bf16.mxu1 %v8750_v25  ;;  %v8788_v29 = vld [vmem:[#allocation8 + $0x898] sm:$0xff]   ;;  %v8789_v25 = vld [vmem:[#allocation8 + $0x860] sm:$0xff]  }
 0x225   : > { %8000 = vmatpush3.bf16.msra.mxu0 %v8751_v30  ;;  %v925_v30 = vrot.slane %v923_v26, 6  ;;  %v8819_v26 = vld [vmem:[#allocation8 + $0x918] sm:$0xff]  }
 0x226   : > { %8022 = vmatpush3.bf16.msra.mxu1 %v8752_v31  ;;  %8001 = vmatprep.subr.bf16.mxu0 %v8753_v32  ;;  %v8790_v32 = vld [vmem:[#allocation8 + $0x8e0] sm:$0xff]  }
 0x227   : > { %8023 = vmatprep.subr.bf16.mxu1 %v8754_v34  ;;  %v921_v34 = vcombine.high %v7136_v11, %v7137_v12  ;;  %v8807_v11 = vld [vmem:[#allocation8 + $0x900] sm:$0xff]  }
 0x229   : > { %8002 = vmatpush3.bf16.msra.mxu0 %v8755_v35  ;;  %v8791_v35 = vld [vmem:[#allocation8 + $0x820] sm:$0xff]  }
 0x22a   : > { %8024 = vmatpush3.bf16.msra.mxu1 %v8756_v33  ;;  %8003 = vmatprep.subr.bf16.mxu0 %v8757_v39  ;;  %v8792_v33 = vld [vmem:[#allocation8 + $0x8a0] sm:$0xff]   ;;  %v8793_v39 = vld [vmem:[#allocation8 + $0x868] sm:$0xff]  }
 0x22b   : > { %8025 = vmatprep.subr.bf16.mxu1 %v8758_v36  ;;  %v8794_v36 = vld [vmem:[#allocation8 + $0x8e8] sm:$0xff]  }
 0x22d   : > { %8004 = vmatpush3.bf16.msra.mxu0 %v8759_v38 }
 0x22e   : > { %8026 = vmatpush3.bf16.msra.mxu1 %v8760_v40  ;;  %8005 = vmatprep.subr.bf16.mxu0 %v8761_v41  ;;  %v8795_v40 = vld [vmem:[#allocation8 + $0x828] sm:$0xff]   ;;  %v932_v41 = vshll.u32 %v921_v34, 16 }
 0x22f   : > { %v7703_v47 = vpop.f32.mrb[0].mxu0  ;;  %v7725_v48 = vpop.f32.mrb[0].mxu1  ;;  %8027 = vmatprep.subr.bf16.mxu1 %v8762_v42  ;;  %v8796_v42 = vld [vmem:[#allocation8 + $0x8a8] sm:$0xff]  }
 0x230   : > { %v7704_v52 = vpop.f32.mrb[1].mxu0  ;;  %v7726_v53 = vpop.f32.mrb[1].mxu1  ;;  %v8826_v34 = vld [vmem:[#allocation8 + $0x9e8] sm:$0xff]  }
 0x231   : > { %v7705_v55 = vadd.f32 %v7704_v52, %v7703_v47  ;;  %v7727_v56 = vadd.f32 %v7726_v53, %v7725_v48  ;;  %8006 = vmatpush3.bf16.msra.mxu0 %v8763_v43  ;;  %v7706_v57 = vpop.f32.mrb[2].mxu0  ;;  %v7728_v58 = vpop.f32.mrb[2].mxu1  ;;  %v8797_v43 = vld [vmem:[#allocation8 + $0x870] sm:$0xff]  }
 0x232   : > { %8028 = vmatpush3.bf16.msra.mxu1 %v8764_v44  ;;  %v7707_v62 = vpop.f32.mrb[3].mxu0  ;;  %v7729_v61 = vpop.f32.mrb[3].mxu1  ;;  %8007 = vmatprep.subr.bf16.mxu0 %v8765_v45  ;;  %v8798_v44 = vld [vmem:[#allocation8 + $0x8f0] sm:$0xff]  }
 0x233   : > { %v9798_v0 = vadd.f32 %v7727_v56, %v7705_v55  ;;  %8029 = vmatprep.subr.bf16.mxu1 %v8766_v49  ;;  %v8799_v49 = vld [vmem:[#allocation8 + $0x830] sm:$0xff]   ;;  %v8801_v62 = vld [vmem:[#allocation8 + $0x878] sm:$0xff]  }
 0x234   : > { %v8802_v61 = vld [vmem:[#allocation8 + $0x8f8] sm:$0xff]  }
 0x235   : > { %8008 = vmatpush3.bf16.msra.mxu0 %v8767_v50  ;;  %v934_v50 = vrot.slane %v932_v41, 7 }
 0x236   : > { %8030 = vmatpush3.bf16.msra.mxu1 %v8768_v54  ;;  %8009 = vmatprep.subr.bf16.mxu0 %v8769_v59  ;;  %v8800_v54 = vld [vmem:[#allocation8 + $0x8b0] sm:$0xff]  }
 0x237   : > { %8031 = vmatprep.subr.bf16.mxu1 %v8770_v60 }
 0x239   : > { %8010 = vmatpush3.bf16.msra.mxu0 %v8771_v63 }
 0x23a   : > { %8032 = vmatpush3.bf16.msra.mxu1 %v8772_v1  ;;  %8039 = vmatprep.subr.bf16.mxu0 %v8773_v2  ;;  %v8803_v2 = vld [vmem:[#allocation8 + $0x838] sm:$0xff]  }
 0x23b   : > { %8061 = vmatprep.subr.bf16.mxu1 %v8774_v4  ;;  %v8804_v4 = vld [vmem:[#allocation8 + $0x8b8] sm:$0xff]  }
 0x23c   : > { %6228 = vmatmul.mubr.bf16.vlgmr.msra.gmra.mrb[28].mxu0 %v9787_v17  ;;  %v8784_v17 = vld [vmem:[#allocation8 + $0x890] sm:$0xff]  }
 0x23d   : > { %6268 = vmatmul.mubr.bf16.vlgmr.msra.gmra.mrb[28].mxu1 %v9790_v20  ;;  %8040 = vmatpush3.bf16.msra.mxu0 %v8775_v6  ;;  %v926_v20 = vshll.u32 %v920_v21, 16  ;;  %v8813_v21 = vld [vmem:[#allocation8 + $0x950] sm:$0xff]  }
 0x23e   : > { %6307 = vmatprep.mubr.bf16.mxu0 %v2378_v14  ;;  %8062 = vmatpush3.bf16.msra.mxu1 %v8776_v8  ;;  %v8805_v8 = vld [vmem:[#allocation8 + $0x940] sm:$0xff]   ;;  %v8810_v14 = vld [vmem:[#allocation8 + $0x9c8] sm:$0xff]  }
 0x23f   : > { %6347 = vmatprep.mubr.bf16.mxu1 %v2379_v15  ;;  %8041 = vmatprep.subr.bf16.mxu0 %v8777_v10  ;;  %v928_v31 = vrot.slane %v926_v20, 7  ;;  %v8806_v10 = vld [vmem:[#allocation8 + $0x9c0] sm:$0xff]   ;;  %v8811_v15 = vld [vmem:[#allocation8 + $0x908] sm:$0xff]   ;;  %v8820_v20 = vld [vmem:[#allocation8 + $0x998] sm:$0xff]  }
 0x240   : > { %8063 = vmatprep.subr.bf16.mxu1 %v8778_v37  ;;  %v8808_v37 = vld [vmem:[#allocation8 + $0x980] sm:$0xff]  }
 0x241   : > { %8042 = vmatpush3.bf16.msra.mxu0 %v8779_v13  ;;  %v929_v38 = vor.u32 %v928_v31, %v925_v30  ;;  %v8809_v13 = vld [vmem:[#allocation8 + $0x948] sm:$0xff]   ;;  %v8823_v30 = vld [vmem:[#allocation8 + $0x920] sm:$0xff]  }
 0x242   : > { %8064 = vmatpush3.bf16.msra.mxu1 %v8780_v46  ;;  %8043 = vmatprep.subr.bf16.mxu0 %v8781_v16  ;;  %v8824_v31 = vld [vmem:[#allocation8 + $0x9a0] sm:$0xff]  }
 0x243   : > { %8065 = vmatprep.subr.bf16.mxu1 %v8782_v18  ;;  %v930_v45 = vrot.slane %v929_v38, 2  ;;  %v8812_v18 = vld [vmem:[#allocation8 + $0x988] sm:$0xff]   ;;  %v8829_v38 = vld [vmem:[#allocation8 + $0x970] sm:$0xff]  }
 0x245   : > { %8044 = vmatpush3.bf16.msra.mxu0 %v8783_v22  ;;  %v935_v63 = vsel %vm9667_vm10, %v930_v45, %v934_v50  ;;  %v8814_v22 = vld [vmem:[#allocation8 + $0x9d0] sm:$0xff]  }
 0x246   : > { %8066 = vmatpush3.bf16.msra.mxu1 %v8784_v17  ;;  %8045 = vmatprep.subr.bf16.mxu0 %v8785_v24  ;;  %v2380_v6 = vcombine.high %v935_v63, %v935_v63  ;;  %v9821_v12 = vrot.slane %v935_v63, %v9655_v23  ;;  %v8815_v17 = vld [vmem:[#allocation8 + $0x910] sm:$0xff]   ;;  %v8817_v24 = vld [vmem:[#allocation8 + $0x958] sm:$0xff]  }
 0x247   : > { %8067 = vmatprep.subr.bf16.mxu1 %v8786_v27  ;;  %v7138_v27 = vld.sshfl [vmem:[#allocation2 + $0x10] sm:$0x5a pattern:$0x76325410] }
 0x248   : > { %v2395_v46 = vcombine.high %v9821_v12, %v9821_v12  ;;  %v8836_v63 = vld [vmem:[#allocation8 + $0x9b8] sm:$0xff]  }
 0x249   : > { %8046 = vmatpush3.bf16.msra.mxu0 %v8787_v28  ;;  %v7139_v28 = vld.sshfl [vmem:[#allocation2 + $0x18] sm:$0x5a pattern:$0x76325410] }
 0x24a   : > { %8068 = vmatpush3.bf16.msra.mxu1 %v8788_v29  ;;  %8047 = vmatprep.subr.bf16.mxu0 %v8789_v25  ;;  %v8821_v29 = vld [vmem:[#allocation8 + $0x960] sm:$0xff]  }
 0x24b   : > { %8069 = vmatprep.subr.bf16.mxu1 %v8790_v32  ;;  %v8822_v25 = vld [vmem:[#allocation8 + $0x9e0] sm:$0xff]   ;;  %v8825_v32 = vld [vmem:[#allocation8 + $0x968] sm:$0xff]  }
 0x24d   : > { %8048 = vmatpush3.bf16.msra.mxu0 %v8791_v35  ;;  %v956_v35 = vcombine.low %v7138_v27, %v7139_v28 }
 0x24e   : > { %8070 = vmatpush3.bf16.msra.mxu1 %v8792_v33  ;;  %8049 = vmatprep.subr.bf16.mxu0 %v8793_v39  ;;  %v957_v33 = vcombine.high %v7138_v27, %v7139_v28  ;;  %v8827_v39 = vld [vmem:[#allocation8 + $0x928] sm:$0xff]   ;;  %v8854_v28 = vld [vmem:[#allocation8 + $0xae0] sm:$0xff]  }
 0x24f   : > { %v7747_v47 = vpop.f32.mrb[4].mxu0  ;;  %v7769_v48 = vpop.f32.mrb[4].mxu1  ;;  %8071 = vmatprep.subr.bf16.mxu1 %v8794_v36  ;;  %v8828_v36 = vld [vmem:[#allocation8 + $0x9a8] sm:$0xff]  }
 0x250   : > { %v7748_v52 = vpop.f32.mrb[5].mxu0  ;;  %v7770_v53 = vpop.f32.mrb[5].mxu1  ;;  %v960_v41 = vrot.slane %v957_v33, 7 }
 0x251   : > { %v7749_v55 = vadd.f32 %v7748_v52, %v7747_v47  ;;  %v7771_v56 = vadd.f32 %v7770_v53, %v7769_v48  ;;  %v7750_v57 = vpop.f32.mrb[6].mxu0  ;;  %v7772_v58 = vpop.f32.mrb[6].mxu1  ;;  %8050 = vmatpush3.bf16.msra.mxu0 %v8795_v40  ;;  %v7140_v40 = vrot.slane %v956_v35, 9  ;;  %v8831_v47 = vld [vmem:[#allocation8 + $0x930] sm:$0xff]   ;;  %v8859_v35 = vld [vmem:[#allocation8 + $0xa28] sm:$0xff]  }
 0x252   : > { %8072 = vmatpush3.bf16.msra.mxu1 %v8796_v42  ;;  %v7751_v59 = vpop.f32.mrb[7].mxu0  ;;  %v7773_v60 = vpop.f32.mrb[7].mxu1  ;;  %8051 = vmatprep.subr.bf16.mxu0 %v8797_v43  ;;  %v8830_v43 = vld [vmem:[#allocation8 + $0x9f0] sm:$0xff]   ;;  %v8834_v57 = vld [vmem:[#allocation8 + $0x9f8] sm:$0xff]  }
 0x253   : > { %v5750_v1 = vadd.f32 %v7749_v55, %v9798_v0  ;;  %8073 = vmatprep.subr.bf16.mxu1 %v8798_v44  ;;  %v9824_v0 = vrot.slane %v2380_v6, %v9655_v23  ;;  %v8832_v48 = vld [vmem:[#allocation8 + $0x9b0] sm:$0xff]   ;;  %v961_v58 = vsel %vm9689_vm15, %v7140_v40, %v960_v41  ;;  %v8839_v6 = vld [vmem:[#allocation8 + $0xa00] sm:$0xff]  }
 0x254   : > { %v8862_v40 = vld [vmem:[#allocation8 + $0xaf0] sm:$0xff]  }
 0x255   : > { %v9818_v3 = vadd.f32 %v7771_v56, %v5750_v1  ;;  %8052 = vmatpush3.bf16.msra.mxu0 %v8799_v49  ;;  %v2396_v16 = vcombine.high %v9824_v0, %v9824_v0  ;;  %v8833_v56 = vld [vmem:[#allocation8 + $0x978] sm:$0xff]   ;;  %v2397_v1 = vcombine.high %v961_v58, %v961_v58 }
 0x256   : > { %8074 = vmatpush3.bf16.msra.mxu1 %v8800_v54  ;;  %8053 = vmatprep.subr.bf16.mxu0 %v8801_v62  ;;  %v8835_v62 = vld [vmem:[#allocation8 + $0x938] sm:$0xff]  }
 0x257   : > { %8075 = vmatprep.subr.bf16.mxu1 %v8802_v61 }
 0x259   : > { %8054 = vmatpush3.bf16.msra.mxu0 %v8803_v2  ;;  %v8837_v2 = vld [vmem:[#allocation8 + $0xa40] sm:$0xff]  }
 0x25a   : > { %8076 = vmatpush3.bf16.msra.mxu1 %v8804_v4  ;;  %8083 = vmatprep.subr.bf16.mxu0 %v8805_v8  ;;  %v8838_v4 = vld [vmem:[#allocation8 + $0xac0] sm:$0xff]   ;;  %v9838_v8 = vrot.slane %v961_v58, %v9655_v23 }
 0x25b   : > { %8105 = vmatprep.subr.bf16.mxu1 %v8806_v10  ;;  %v8840_v10 = vld [vmem:[#allocation8 + $0xa80] sm:$0xff]  }
 0x25c   : > { %6308 = vmatmul.mubr.bf16.vlgmr.msra.gmra.mrb[32].mxu0 %v9804_v7  ;;  %v8816_v7 = vld [vmem:[#allocation8 + $0x990] sm:$0xff]  }
 0x25d   : > { %6348 = vmatmul.mubr.bf16.vlgmr.msra.gmra.mrb[32].mxu1 %v9807_v9  ;;  %8084 = vmatpush3.bf16.msra.mxu0 %v8807_v11  ;;  %v8818_v9 = vld [vmem:[#allocation8 + $0x9d8] sm:$0xff]   ;;  %v8841_v11 = vld [vmem:[#allocation8 + $0xa48] sm:$0xff]  }
 0x25e   : > { %6387 = vmatprep.mubr.bf16.mxu0 %v2395_v46  ;;  %8106 = vmatpush3.bf16.msra.mxu1 %v8808_v37  ;;  %v8842_v37 = vld [vmem:[#allocation8 + $0xac8] sm:$0xff]  }
 0x25f   : > { %6427 = vmatprep.mubr.bf16.mxu1 %v2396_v16  ;;  %8085 = vmatprep.subr.bf16.mxu0 %v8809_v13  ;;  %v2412_v13 = vcombine.high %v9838_v8, %v9838_v8  ;;  %v7141_v16 = vld.sshfl [vmem:[#allocation2 + $0x10] sm:$0xfa pattern:$0x76325410] }
 0x260   : > { %8107 = vmatprep.subr.bf16.mxu1 %v8810_v14  ;;  %v8843_v14 = vld [vmem:[#allocation8 + $0xa08] sm:$0xff]  }
 0x261   : > { %8086 = vmatpush3.bf16.msra.mxu0 %v8811_v15  ;;  %v8844_v15 = vld [vmem:[#allocation8 + $0xa88] sm:$0xff]  }
 0x262   : > { %8108 = vmatpush3.bf16.msra.mxu1 %v8812_v18  ;;  %8087 = vmatprep.subr.bf16.mxu0 %v8813_v21  ;;  %v7142_v18 = vld.sshfl [vmem:[#allocation2 + $0x18] sm:$0xfa pattern:$0x76325410]  ;;  %v8845_v21 = vld [vmem:[#allocation8 + $0xa50] sm:$0xff]  }
 0x263   : > { %8109 = vmatprep.subr.bf16.mxu1 %v8814_v22  ;;  %v8846_v22 = vld [vmem:[#allocation8 + $0xad0] sm:$0xff]  }
 0x265   : > { %8088 = vmatpush3.bf16.msra.mxu0 %v8815_v17  ;;  %v8848_v17 = vld [vmem:[#allocation8 + $0xa90] sm:$0xff]  }
 0x266   : > { %8110 = vmatpush3.bf16.msra.mxu1 %v8816_v7  ;;  %8089 = vmatprep.subr.bf16.mxu0 %v8817_v24  ;;  %v983_v7 = vcombine.high %v7141_v16, %v7142_v18  ;;  %v8850_v24 = vld [vmem:[#allocation8 + $0xad8] sm:$0xff]  }
 0x267   : > { %8111 = vmatprep.subr.bf16.mxu1 %v8818_v9  ;;  %v8851_v9 = vld [vmem:[#allocation8 + $0xa18] sm:$0xff]  }
 0x268   : > { %v990_v27 = vshrl.u32 %v983_v7, 16 }
 0x269   : > { %8090 = vmatpush3.bf16.msra.mxu0 %v8819_v26  ;;  %v8852_v26 = vld [vmem:[#allocation8 + $0xa98] sm:$0xff]  }
 0x26a   : > { %8112 = vmatpush3.bf16.msra.mxu1 %v8820_v20  ;;  %8091 = vmatprep.subr.bf16.mxu0 %v8821_v29  ;;  %v8853_v20 = vld [vmem:[#allocation8 + $0xa60] sm:$0xff]   ;;  %v982_v29 = vcombine.low %v7141_v16, %v7142_v18  ;;  %v8876_v18 = vld [vmem:[#allocation8 + $0xb88] sm:$0xff]  }
 0x26b   : > { %8113 = vmatprep.subr.bf16.mxu1 %v8822_v25  ;;  %v8855_v25 = vld [vmem:[#allocation8 + $0xa20] sm:$0xff]  }
 0x26c   : > { %v985_v33 = vshrl.u32 %v982_v29, 16  ;;  %v8891_v29 = vld [vmem:[#allocation8 + $0xb28] sm:$0xff]  }
 0x26d   : > { %8092 = vmatpush3.bf16.msra.mxu0 %v8823_v30  ;;  %v8856_v30 = vld [vmem:[#allocation8 + $0xaa0] sm:$0xff]  }
 0x26e   : > { %8114 = vmatpush3.bf16.msra.mxu1 %v8824_v31  ;;  %8093 = vmatprep.subr.bf16.mxu0 %v8825_v32  ;;  %v8857_v31 = vld [vmem:[#allocation8 + $0xa68] sm:$0xff]   ;;  %v992_v32 = vrot.slane %v990_v27, 7 }
 0x26f   : > { %v7791_v42 = vpop.f32.mrb[8].mxu0  ;;  %8115 = vmatprep.subr.bf16.mxu1 %v8826_v34  ;;  %v8858_v34 = vld [vmem:[#allocation8 + $0xae8] sm:$0xff]  }
 0x270   : > { %v7813_v44 = vpop.f32.mrb[8].mxu1  ;;  %v7792_v45 = vpop.f32.mrb[9].mxu0  ;;  %v8889_v27 = vld [vmem:[#allocation8 + $0xb68] sm:$0xff]  }
 0x271   : > { %v7793_v49 = vadd.f32 %v7792_v45, %v7791_v42  ;;  %v7814_v50 = vpop.f32.mrb[9].mxu1  ;;  %v7794_v52 = vpop.f32.mrb[10].mxu0  ;;  %8094 = vmatpush3.bf16.msra.mxu0 %v8827_v39  ;;  %v993_v39 = vshll.u32 %v983_v7, 16  ;;  %v8884_v7 = vld [vmem:[#allocation8 + $0xb98] sm:$0xff]  }
 0x272   : > { %v7815_v53 = vadd.f32 %v7814_v50, %v7813_v44  ;;  %v7816_v54 = vpop.f32.mrb[10].mxu1  ;;  %8116 = vmatpush3.bf16.msra.mxu1 %v8828_v36  ;;  %v7795_v55 = vpop.f32.mrb[11].mxu0  ;;  %8095 = vmatprep.subr.bf16.mxu0 %v8829_v38  ;;  %v8860_v36 = vld [vmem:[#allocation8 + $0xaa8] sm:$0xff]   ;;  %v8861_v38 = vld [vmem:[#allocation8 + $0xa70] sm:$0xff]  }
 0x273   : > { %v5830_v59 = vadd.f32 %v7793_v49, %v9818_v3  ;;  %v7817_v60 = vpop.f32.mrb[11].mxu1  ;;  %8117 = vmatprep.subr.bf16.mxu1 %v8830_v43  ;;  %v9841_v3 = vrot.slane %v2397_v1, %v9655_v23  ;;  %v995_v41 = vor.u32 %v993_v39, %v992_v32  ;;  %v8863_v43 = vld [vmem:[#allocation8 + $0xa30] sm:$0xff]   ;;  %v8868_v1 = vld [vmem:[#allocation8 + $0xab8] sm:$0xff]  }
 0x274   : > { %v8894_v32 = vld [vmem:[#allocation8 + $0xbf0] sm:$0xff]  }
 0x275   : > { %v9835_v61 = vadd.f32 %v7815_v53, %v5830_v59  ;;  %8096 = vmatpush3.bf16.msra.mxu0 %v8831_v47  ;;  %v2413_v46 = vcombine.high %v9841_v3, %v9841_v3  ;;  %v8864_v47 = vld [vmem:[#allocation8 + $0xab0] sm:$0xff]  }
 0x276   : > { %8118 = vmatpush3.bf16.msra.mxu1 %v8832_v48  ;;  %8097 = vmatprep.subr.bf16.mxu0 %v8833_v56  ;;  %v7143_v48 = vrot.slane %v985_v33, 9  ;;  %v8865_v56 = vld [vmem:[#allocation8 + $0xa78] sm:$0xff]   ;;  %v7145_v33 = vld.sshfl [vmem:[#allocation2 + $0x18] sm:$0xf0 pattern:$0x76325410] }
 0x277   : > { %8119 = vmatprep.subr.bf16.mxu1 %v8834_v57  ;;  %v8866_v57 = vld [vmem:[#allocation8 + $0xaf8] sm:$0xff]  }
 0x278   : > { %v996_v58 = vsel %vm9711_vm7, %v7143_v48, %v995_v41 }
 0x279   : > { %8098 = vmatpush3.bf16.msra.mxu0 %v8835_v62  ;;  %v8867_v62 = vld [vmem:[#allocation8 + $0xa38] sm:$0xff]  }
 0x27a   : > { %8120 = vmatpush3.bf16.msra.mxu1 %v8836_v63  ;;  %8127 = vmatprep.subr.bf16.mxu0 %v8837_v2  ;;  %v2414_v2 = vcombine.high %v996_v58, %v996_v58 }
 0x27b   : > { %8149 = vmatprep.subr.bf16.mxu1 %v8838_v4  ;;  %v8869_v4 = vld [vmem:[#allocation8 + $0xb40] sm:$0xff]  }
 0x27c   : > { %6388 = vmatmul.mubr.bf16.vlgmr.msra.gmra.mrb[36].mxu0 %v9821_v12  ;;  %v8847_v12 = vld [vmem:[#allocation8 + $0xa10] sm:$0xff]  }
 0x27d   : > { %6428 = vmatmul.mubr.bf16.vlgmr.msra.gmra.mrb[36].mxu1 %v9824_v0  ;;  %8128 = vmatpush3.bf16.msra.mxu0 %v8839_v6  ;;  %v8849_v0 = vld [vmem:[#allocation8 + $0xa58] sm:$0xff]   ;;  %v8870_v6 = vld [vmem:[#allocation8 + $0xbc0] sm:$0xff]  }
 0x27e   : > { %6467 = vmatprep.mubr.bf16.mxu0 %v2412_v13  ;;  %8150 = vmatpush3.bf16.msra.mxu1 %v8840_v10  ;;  %v8871_v10 = vld [vmem:[#allocation8 + $0xb00] sm:$0xff]   ;;  %v8873_v13 = vld [vmem:[#allocation8 + $0xb48] sm:$0xff]  }
 0x27f   : > { %6507 = vmatprep.mubr.bf16.mxu1 %v2413_v46  ;;  %8129 = vmatprep.subr.bf16.mxu0 %v8841_v11  ;;  %v9855_v11 = vrot.slane %v996_v58, %v9655_v23  ;;  %v8902_v58 = vld [vmem:[#allocation8 + $0xcc0] sm:$0xff]  }
 0x280   : > { %8151 = vmatprep.subr.bf16.mxu1 %v8842_v37  ;;  %v8872_v37 = vld [vmem:[#allocation8 + $0xb80] sm:$0xff]  }
 0x281   : > { %8130 = vmatpush3.bf16.msra.mxu0 %v8843_v14  ;;  %v8874_v14 = vld [vmem:[#allocation8 + $0xbc8] sm:$0xff]   ;;  %v2429_v46 = vcombine.high %v9855_v11, %v9855_v11 }
 0x282   : > { %8152 = vmatpush3.bf16.msra.mxu1 %v8844_v15  ;;  %8131 = vmatprep.subr.bf16.mxu0 %v8845_v21  ;;  %v8875_v15 = vld [vmem:[#allocation8 + $0xb08] sm:$0xff]   ;;  %v8877_v21 = vld [vmem:[#allocation8 + $0xb50] sm:$0xff]  }
 0x283   : > { %8153 = vmatprep.subr.bf16.mxu1 %v8846_v22  ;;  %v8878_v22 = vld [vmem:[#allocation8 + $0xbd0] sm:$0xff]  }
 0x285   : > { %8132 = vmatpush3.bf16.msra.mxu0 %v8847_v12  ;;  %v8879_v12 = vld [vmem:[#allocation8 + $0xb10] sm:$0xff]  }
 0x286   : > { %8154 = vmatpush3.bf16.msra.mxu1 %v8848_v17  ;;  %8133 = vmatprep.subr.bf16.mxu0 %v8849_v0  ;;  %v8881_v17 = vld [vmem:[#allocation8 + $0xb58] sm:$0xff]  }
 0x287   : > { %8155 = vmatprep.subr.bf16.mxu1 %v8850_v24  ;;  %v8883_v0 = vld [vmem:[#allocation8 + $0xb18] sm:$0xff]   ;;  %v8885_v24 = vld [vmem:[#allocation8 + $0xb60] sm:$0xff]  }
 0x289   : > { %8134 = vmatpush3.bf16.msra.mxu0 %v8851_v9  ;;  %v8886_v9 = vld [vmem:[#allocation8 + $0xbe0] sm:$0xff]  }
 0x28a   : > { %8156 = vmatpush3.bf16.msra.mxu1 %v8852_v26  ;;  %8135 = vmatprep.subr.bf16.mxu0 %v8853_v20  ;;  %v8887_v26 = vld [vmem:[#allocation8 + $0xb20] sm:$0xff]  }
 0x28b   : > { %8157 = vmatprep.subr.bf16.mxu1 %v8854_v28  ;;  %v8888_v20 = vld [vmem:[#allocation8 + $0xba0] sm:$0xff]   ;;  %v8890_v28 = vld [vmem:[#allocation8 + $0xbe8] sm:$0xff]  }
 0x28d   : > { %8136 = vmatpush3.bf16.msra.mxu0 %v8855_v25  ;;  %v8892_v25 = vld [vmem:[#allocation8 + $0xba8] sm:$0xff]  }
 0x28e   : > { %8158 = vmatpush3.bf16.msra.mxu1 %v8856_v30  ;;  %8137 = vmatprep.subr.bf16.mxu0 %v8857_v31  ;;  %v8893_v30 = vld [vmem:[#allocation8 + $0xb70] sm:$0xff]  }
 0x28f   : > { %v7835_v42 = vpop.f32.mrb[12].mxu0  ;;  %8159 = vmatprep.subr.bf16.mxu1 %v8858_v34  ;;  %v8895_v34 = vld [vmem:[#allocation8 + $0xb30] sm:$0xff]  }
 0x290   : > { %v7857_v44 = vpop.f32.mrb[12].mxu1  ;;  %v7836_v45 = vpop.f32.mrb[13].mxu0 }
 0x291   : > { %v7837_v49 = vadd.f32 %v7836_v45, %v7835_v42  ;;  %v7858_v50 = vpop.f32.mrb[13].mxu1  ;;  %v7838_v52 = vpop.f32.mrb[14].mxu0  ;;  %8138 = vmatpush3.bf16.msra.mxu0 %v8859_v35  ;;  %v7144_v35 = vld.sshfl [vmem:[#allocation2 + $0x10] sm:$0xf0 pattern:$0x76325410] }
 0x292   : > { %v7859_v53 = vadd.f32 %v7858_v50, %v7857_v44  ;;  %v7860_v54 = vpop.f32.mrb[14].mxu1  ;;  %8160 = vmatpush3.bf16.msra.mxu1 %v8860_v36  ;;  %v7839_v55 = vpop.f32.mrb[15].mxu0  ;;  %8139 = vmatprep.subr.bf16.mxu0 %v8861_v38  ;;  %v8896_v42 = vld [vmem:[#allocation8 + $0xbb0] sm:$0xff]   ;;  %v8898_v50 = vld [vmem:[#allocation8 + $0xbf8] sm:$0xff]  }
 0x293   : > { %v5910_v59 = vadd.f32 %v7837_v49, %v9835_v61  ;;  %v7861_v60 = vpop.f32.mrb[15].mxu1  ;;  %8161 = vmatprep.subr.bf16.mxu1 %v8862_v40  ;;  %v9858_v61 = vrot.slane %v2414_v2, %v9655_v23  ;;  %v8899_v52 = vld [vmem:[#allocation8 + $0xb38] sm:$0xff]   ;;  %v8906_v2 = vld [vmem:[#allocation8 + $0xcc8] sm:$0xff]  }
 0x294   : > { %v8900_v55 = vld [vmem:[#allocation8 + $0xbb8] sm:$0xff]  }
 0x295   : > { %v9852_v63 = vadd.f32 %v7859_v53, %v5910_v59  ;;  %8140 = vmatpush3.bf16.msra.mxu0 %v8863_v43  ;;  %v2430_v16 = vcombine.high %v9858_v61, %v9858_v61  ;;  %v8897_v43 = vld [vmem:[#allocation8 + $0xb78] sm:$0xff]   ;;  %v1017_v53 = vcombine.high %v7144_v35, %v7145_v33  ;;  %v8903_v59 = vld [vmem:[#allocation8 + $0xc00] sm:$0xff]  }
 0x296   : > { %8162 = vmatpush3.bf16.msra.mxu1 %v8864_v47  ;;  %8141 = vmatprep.subr.bf16.mxu0 %v8865_v56  ;;  %v7686_v56 = vcombine.high %v7145_v33, %v7145_v33  ;;  %v8926_v33 = vld [vmem:[#allocation8 + $0xcf0] sm:$0xff]  }
 0x297   : > { %8163 = vmatprep.subr.bf16.mxu1 %v8866_v57  ;;  %v8901_v57 = vld [vmem:[#allocation8 + $0xc40] sm:$0xff]   ;;  %v9870_v60 = vrot.slane %v1017_v53, %v9655_v23 }
 0x299   : > { %8142 = vmatpush3.bf16.msra.mxu0 %v8867_v62  ;;  %v8904_v62 = vld [vmem:[#allocation8 + $0xc80] sm:$0xff]  }
 0x29a   : > { %8164 = vmatpush3.bf16.msra.mxu1 %v8868_v1  ;;  %8171 = vmatprep.subr.bf16.mxu0 %v8869_v4  ;;  %v8905_v1 = vld [vmem:[#allocation8 + $0xc48] sm:$0xff]   ;;  %v2446_v4 = vcombine.high %v9870_v60, %v9870_v60 }
 0x29b   : > { %8193 = vmatprep.subr.bf16.mxu1 %v8870_v6  ;;  %v8907_v6 = vld [vmem:[#allocation8 + $0xc08] sm:$0xff]  }
 0x29c   : > { %6468 = vmatmul.mubr.bf16.vlgmr.msra.gmra.mrb[40].mxu0 %v9838_v8  ;;  %v8880_v8 = vld [vmem:[#allocation8 + $0xb90] sm:$0xff]  }
 0x29d   : > { %6508 = vmatmul.mubr.bf16.vlgmr.msra.gmra.mrb[40].mxu1 %v9841_v3  ;;  %8172 = vmatpush3.bf16.msra.mxu0 %v8871_v10  ;;  %v8882_v3 = vld [vmem:[#allocation8 + $0xbd8] sm:$0xff]  }
 0x29e   : > { %6547 = vmatprep.mubr.bf16.mxu0 %v2429_v46  ;;  %8194 = vmatpush3.bf16.msra.mxu1 %v8872_v37  ;;  %v8908_v37 = vld [vmem:[#allocation8 + $0xc88] sm:$0xff]   ;;  %v8911_v46 = vld [vmem:[#allocation8 + $0xc10] sm:$0xff]  }
 0x29f   : > { %6587 = vmatprep.mubr.bf16.mxu1 %v2430_v16  ;;  %8173 = vmatprep.subr.bf16.mxu0 %v8873_v13  ;;  %v8909_v13 = vld [vmem:[#allocation8 + $0xc50] sm:$0xff]   ;;  %v8913_v16 = vld [vmem:[#allocation8 + $0xc58] sm:$0xff]  }
 0x2a0   : > { %8195 = vmatprep.subr.bf16.mxu1 %v8874_v14  ;;  %v8910_v14 = vld [vmem:[#allocation8 + $0xcd0] sm:$0xff]  }
 0x2a1   : > { %8174 = vmatpush3.bf16.msra.mxu0 %v8875_v15  ;;  %v1059_v15 = vshrl.u32 %v1017_v53, 16 }
 0x2a2   : > { %8196 = vmatpush3.bf16.msra.mxu1 %v8876_v18  ;;  %8175 = vmatprep.subr.bf16.mxu0 %v8877_v21  ;;  %v8914_v18 = vld [vmem:[#allocation8 + $0xcd8] sm:$0xff]   ;;  %v7148_v21 = vld.sshfl [vmem:[#allocation2 + $0x20] sm:$0x5 pattern:$0x76325410] }
 0x2a3   : > { %8197 = vmatprep.subr.bf16.mxu1 %v8878_v22  ;;  %v7149_v22 = vld.sshfl [vmem:[#allocation2 + $0x28] sm:$0x5 pattern:$0x76325410] }
 0x2a5   : > { %8176 = vmatpush3.bf16.msra.mxu0 %v8879_v12  ;;  %v8915_v12 = vld [vmem:[#allocation8 + $0xc18] sm:$0xff]  }
 0x2a6   : > { %8198 = vmatpush3.bf16.msra.mxu1 %v8880_v8  ;;  %8177 = vmatprep.subr.bf16.mxu0 %v8881_v17  ;;  %v8916_v8 = vld [vmem:[#allocation8 + $0xc98] sm:$0xff]   ;;  %v1061_v17 = vrot.slane %v1059_v15, 6  ;;  %v8943_v15 = vld [vmem:[#allocation8 + $0xd10] sm:$0xff]  }
 0x2a7   : > { %8199 = vmatprep.subr.bf16.mxu1 %v8882_v3  ;;  %v8917_v3 = vld [vmem:[#allocation8 + $0xc60] sm:$0xff]  }
 0x2a9   : > { %8178 = vmatpush3.bf16.msra.mxu0 %v8883_v0 }
 0x2aa   : > { %8200 = vmatpush3.bf16.msra.mxu1 %v8884_v7  ;;  %8179 = vmatprep.subr.bf16.mxu0 %v8885_v24  ;;  %v8918_v7 = vld [vmem:[#allocation8 + $0xce0] sm:$0xff]  }
 0x2ab   : > { %8201 = vmatprep.subr.bf16.mxu1 %v8886_v9  ;;  %v8919_v24 = vld [vmem:[#allocation8 + $0xc20] sm:$0xff]   ;;  %v9881_v9 = vcombine.low %v7148_v21, %v7149_v22 }
 0x2ac   : > { %v7150_v21 = vld.sshfl [vmem:[#allocation2 + $0x10] sm:$0xa0 pattern:$0x76325410] }
 0x2ad   : > { %8180 = vmatpush3.bf16.msra.mxu0 %v8887_v26  ;;  %v8920_v26 = vld [vmem:[#allocation8 + $0xca0] sm:$0xff]  }
 0x2ae   : > { %8202 = vmatpush3.bf16.msra.mxu1 %v8888_v20  ;;  %8181 = vmatprep.subr.bf16.mxu0 %v8889_v27  ;;  %v8921_v20 = vld [vmem:[#allocation8 + $0xc68] sm:$0xff]  }
 0x2af   : > { %v7879_v31 = vpop.f32.mrb[16].mxu0  ;;  %8203 = vmatprep.subr.bf16.mxu1 %v8890_v28  ;;  %v1068_v28 = vshll.u32 %v9881_v9, 16  ;;  %v7151_v22 = vld.sshfl [vmem:[#allocation2 + $0x18] sm:$0xa0 pattern:$0x76325410] }
 0x2b0   : > { %v7901_v39 = vpop.f32.mrb[16].mxu1  ;;  %v7880_v36 = vpop.f32.mrb[17].mxu0 }
 0x2b1   : > { %v7881_v38 = vadd.f32 %v7880_v36, %v7879_v31  ;;  %v7902_v40 = vpop.f32.mrb[17].mxu1  ;;  %v7882_v41 = vpop.f32.mrb[18].mxu0  ;;  %8182 = vmatpush3.bf16.msra.mxu0 %v8891_v29  ;;  %v8922_v29 = vld [vmem:[#allocation8 + $0xce8] sm:$0xff]   ;;  %v8925_v31 = vld [vmem:[#allocation8 + $0xc70] sm:$0xff]  }
 0x2b2   : > { %v7903_v44 = vadd.f32 %v7902_v40, %v7901_v39  ;;  %v7904_v45 = vpop.f32.mrb[18].mxu1  ;;  %8204 = vmatpush3.bf16.msra.mxu1 %v8892_v25  ;;  %v7883_v47 = vpop.f32.mrb[19].mxu0  ;;  %8183 = vmatprep.subr.bf16.mxu0 %v8893_v30  ;;  %v8923_v25 = vld [vmem:[#allocation8 + $0xc28] sm:$0xff]  }
 0x2b3   : > { %v5990_v48 = vadd.f32 %v7881_v38, %v9852_v63  ;;  %v7905_v49 = vpop.f32.mrb[19].mxu1  ;;  %8205 = vmatprep.subr.bf16.mxu1 %v8894_v32  ;;  %v9873_v63 = vrot.slane %v7686_v56, %v9655_v23  ;;  %v8924_v30 = vld [vmem:[#allocation8 + $0xca8] sm:$0xff]   ;;  %v8927_v38 = vld [vmem:[#allocation8 + $0xc30] sm:$0xff]  }
 0x2b5   : > { %v9867_v54 = vadd.f32 %v7903_v44, %v5990_v48  ;;  %8184 = vmatpush3.bf16.msra.mxu0 %v8895_v34  ;;  %v2447_v10 = vcombine.high %v9873_v63, %v9873_v63  ;;  %v1070_v34 = vrot.slane %v1068_v28, 7  ;;  %v8929_v44 = vld [vmem:[#allocation8 + $0xc78] sm:$0xff]  }
 0x2b6   : > { %8206 = vmatpush3.bf16.msra.mxu1 %v8896_v42  ;;  %8185 = vmatprep.subr.bf16.mxu0 %v8897_v43  ;;  %v8928_v43 = vld [vmem:[#allocation8 + $0xcb0] sm:$0xff]  }
 0x2b7   : > { %8207 = vmatprep.subr.bf16.mxu1 %v8898_v50 }
 0x2b9   : > { %8186 = vmatpush3.bf16.msra.mxu0 %v8899_v52 }
 0x2ba   : > { %8208 = vmatpush3.bf16.msra.mxu1 %v8900_v55  ;;  %8215 = vmatprep.subr.bf16.mxu0 %v8901_v57  ;;  %v8931_v55 = vld [vmem:[#allocation8 + $0xc38] sm:$0xff]  }
 0x2bb   : > { %8237 = vmatprep.subr.bf16.mxu1 %v8902_v58  ;;  %v8932_v57 = vld [vmem:[#allocation8 + $0xcb8] sm:$0xff]  }
 0x2bc   : > { %6548 = vmatmul.mubr.bf16.vlgmr.msra.gmra.mrb[44].mxu0 %v9855_v11  ;;  %v8912_v11 = vld [vmem:[#allocation8 + $0xc90] sm:$0xff]  }
 0x2bd   : > { %6588 = vmatmul.mubr.bf16.vlgmr.msra.gmra.mrb[44].mxu1 %v9858_v61  ;;  %8216 = vmatpush3.bf16.msra.mxu0 %v8903_v59  ;;  %v1062_v61 = vshll.u32 %v1017_v53, 16  ;;  %v8930_v53 = vld [vmem:[#allocation8 + $0xcf8] sm:$0xff]   ;;  %v8933_v59 = vld [vmem:[#allocation8 + $0xd40] sm:$0xff]  }
 0x2be   : > { %6627 = vmatprep.mubr.bf16.mxu0 %v2446_v4  ;;  %8238 = vmatpush3.bf16.msra.mxu1 %v8904_v62  ;;  %v8934_v62 = vld [vmem:[#allocation8 + $0xdc0] sm:$0xff]   ;;  %v8937_v4 = vld [vmem:[#allocation8 + $0xd48] sm:$0xff]  }
 0x2bf   : > { %6667 = vmatprep.mubr.bf16.mxu1 %v2447_v10  ;;  %8217 = vmatprep.subr.bf16.mxu0 %v8905_v1  ;;  %v1064_v0 = vrot.slane %v1062_v61, 7  ;;  %v8935_v1 = vld [vmem:[#allocation8 + $0xd00] sm:$0xff]   ;;  %v8947_v61 = vld [vmem:[#allocation8 + $0xd18] sm:$0xff]  }
 0x2c0   : > { %8239 = vmatprep.subr.bf16.mxu1 %v8906_v2 }
 0x2c1   : > { %8218 = vmatpush3.bf16.msra.mxu0 %v8907_v6  ;;  %v1065_v27 = vor.u32 %v1064_v0, %v1061_v17  ;;  %v8938_v6 = vld [vmem:[#allocation8 + $0xdc8] sm:$0xff]   ;;  %v8951_v17 = vld [vmem:[#allocation8 + $0xd20] sm:$0xff]  }
 0x2c2   : > { %8240 = vmatpush3.bf16.msra.mxu1 %v8908_v37  ;;  %8219 = vmatprep.subr.bf16.mxu0 %v8909_v13  ;;  %v8939_v37 = vld [vmem:[#allocation8 + $0xd08] sm:$0xff]  }
 0x2c3   : > { %8241 = vmatprep.subr.bf16.mxu1 %v8910_v14  ;;  %v1066_v32 = vrot.slane %v1065_v27, 2  ;;  %v8940_v14 = vld [vmem:[#allocation8 + $0xd88] sm:$0xff]   ;;  %v8957_v27 = vld [vmem:[#allocation8 + $0xd70] sm:$0xff]  }
 0x2c4   : > { %v8953_v0 = vld [vmem:[#allocation8 + $0xd68] sm:$0xff]  }
 0x2c5   : > { %8220 = vmatpush3.bf16.msra.mxu0 %v8911_v46  ;;  %v1071_v49 = vsel %vm9667_vm10, %v1066_v32, %v1070_v34  ;;  %v8941_v46 = vld [vmem:[#allocation8 + $0xd50] sm:$0xff]  }
 0x2c6   : > { %8242 = vmatpush3.bf16.msra.mxu1 %v8912_v11  ;;  %8221 = vmatprep.subr.bf16.mxu0 %v8913_v16  ;;  %v2448_v58 = vcombine.high %v1071_v49, %v1071_v49  ;;  %v9890_v51 = vrot.slane %v1071_v49, %v9655_v23  ;;  %v8942_v11 = vld [vmem:[#allocation8 + $0xdd0] sm:$0xff]   ;;  %v8945_v16 = vld [vmem:[#allocation8 + $0xd58] sm:$0xff]  }
 0x2c7   : > { %8243 = vmatprep.subr.bf16.mxu1 %v8914_v18  ;;  %v8948_v18 = vld [vmem:[#allocation8 + $0xd98] sm:$0xff]  }
 0x2c8   : > { %v9893_v2 = vrot.slane %v2448_v58, %v9655_v23  ;;  %v2463_v10 = vcombine.high %v9890_v51, %v9890_v51  ;;  %v8969_v58 = vld [vmem:[#allocation8 + $0xe48] sm:$0xff]  }
 0x2c9   : > { %8222 = vmatpush3.bf16.msra.mxu0 %v8915_v12  ;;  %v8949_v12 = vld [vmem:[#allocation8 + $0xd60] sm:$0xff]  }
 0x2ca   : > { %8244 = vmatpush3.bf16.msra.mxu1 %v8916_v8  ;;  %8223 = vmatprep.subr.bf16.mxu0 %v8917_v3  ;;  %v2464_v13 = vcombine.high %v9893_v2, %v9893_v2  ;;  %v8950_v8 = vld [vmem:[#allocation8 + $0xde0] sm:$0xff]  }
 0x2cb   : > { %8245 = vmatprep.subr.bf16.mxu1 %v8918_v7  ;;  %v8952_v3 = vld [vmem:[#allocation8 + $0xda0] sm:$0xff]   ;;  %v9901_v7 = vcombine.high %v7150_v21, %v7151_v22  ;;  %v8985_v22 = vld [vmem:[#allocation8 + $0xe68] sm:$0xff]  }
 0x2cc   : > { %v8984_v21 = vld [vmem:[#allocation8 + $0xea0] sm:$0xff]  }
 0x2cd   : > { %8224 = vmatpush3.bf16.msra.mxu0 %v8919_v24  ;;  %v8954_v24 = vld [vmem:[#allocation8 + $0xde8] sm:$0xff]   ;;  %v7154_v28 = vrot.slane %v9901_v7, 9 }
 0x2ce   : > { %8246 = vmatpush3.bf16.msra.mxu1 %v8920_v26  ;;  %8225 = vmatprep.subr.bf16.mxu0 %v8921_v20  ;;  %v8955_v26 = vld [vmem:[#allocation8 + $0xd28] sm:$0xff]  }
 0x2cf   : > { %v7923_v35 = vpop.f32.mrb[20].mxu0  ;;  %8247 = vmatprep.subr.bf16.mxu1 %v8922_v29  ;;  %v8956_v20 = vld [vmem:[#allocation8 + $0xda8] sm:$0xff]   ;;  %v1114_v29 = vrot.slane %v9881_v9, 7 }
 0x2d0   : > { %v7945_v39 = vpop.f32.mrb[20].mxu1  ;;  %v7924_v36 = vpop.f32.mrb[21].mxu0 }
 0x2d1   : > { %v7925_v40 = vadd.f32 %v7924_v36, %v7923_v35  ;;  %v7946_v41 = vpop.f32.mrb[21].mxu1  ;;  %v7926_v42 = vpop.f32.mrb[22].mxu0  ;;  %8226 = vmatpush3.bf16.msra.mxu0 %v8923_v25  ;;  %v1115_v9 = vsel %vm9689_vm15, %v7154_v28, %v1114_v29  ;;  %v8990_v29 = vld [vmem:[#allocation8 + $0xef0] sm:$0xff]  }
 0x2d2   : > { %v7947_v45 = vadd.f32 %v7946_v41, %v7945_v39  ;;  %v7948_v47 = vpop.f32.mrb[22].mxu1  ;;  %8248 = vmatpush3.bf16.msra.mxu1 %v8924_v30  ;;  %v7927_v48 = vpop.f32.mrb[23].mxu0  ;;  %8227 = vmatprep.subr.bf16.mxu0 %v8925_v31  ;;  %v8958_v30 = vld [vmem:[#allocation8 + $0xdf0] sm:$0xff]   ;;  %v8961_v42 = vld [vmem:[#allocation8 + $0xd78] sm:$0xff]   ;;  %v2465_v49 = vcombine.high %v1115_v9, %v1115_v9 }
 0x2d3   : > { %v6070_v50 = vadd.f32 %v7925_v40, %v9867_v54  ;;  %v7949_v52 = vpop.f32.mrb[23].mxu1  ;;  %8249 = vmatprep.subr.bf16.mxu1 %v8926_v33  ;;  %v8936_v54 = vld [vmem:[#allocation8 + $0xd80] sm:$0xff]   ;;  %v8959_v39 = vld [vmem:[#allocation8 + $0xd30] sm:$0xff]   ;;  %v8963_v48 = vld [vmem:[#allocation8 + $0xd38] sm:$0xff]  }
 0x2d4   : > { %v8960_v41 = vld [vmem:[#allocation8 + $0xdb0] sm:$0xff]   ;;  %v8965_v52 = vld [vmem:[#allocation8 + $0xe40] sm:$0xff]  }
 0x2d5   : > { %v9887_v56 = vadd.f32 %v7947_v45, %v6070_v50  ;;  %8228 = vmatpush3.bf16.msra.mxu0 %v8927_v38  ;;  %v8962_v45 = vld [vmem:[#allocation8 + $0xdf8] sm:$0xff]  }
 0x2d6   : > { %8250 = vmatpush3.bf16.msra.mxu1 %v8928_v43  ;;  %8229 = vmatprep.subr.bf16.mxu0 %v8929_v44  ;;  %v8964_v50 = vld [vmem:[#allocation8 + $0xdb8] sm:$0xff]  }
 0x2d7   : > { %8251 = vmatprep.subr.bf16.mxu1 %v8930_v53  ;;  %v8966_v53 = vld [vmem:[#allocation8 + $0xec0] sm:$0xff]  }
 0x2d9   : > { %8230 = vmatpush3.bf16.msra.mxu0 %v8931_v55  ;;  %v9911_v55 = vrot.slane %v1115_v9, %v9655_v23  ;;  %v8994_v9 = vld [vmem:[#allocation8 + $0xef8] sm:$0xff]  }
 0x2da   : > { %8252 = vmatpush3.bf16.msra.mxu1 %v8932_v57  ;;  %8259 = vmatprep.subr.bf16.mxu0 %v8933_v59  ;;  %v8968_v57 = vld [vmem:[#allocation8 + $0xe80] sm:$0xff]  }
 0x2db   : > { %8281 = vmatprep.subr.bf16.mxu1 %v8934_v62  ;;  %v2480_v59 = vcombine.high %v9911_v55, %v9911_v55  ;;  %v8970_v62 = vld [vmem:[#allocation8 + $0xec8] sm:$0xff]  }
 0x2dc   : > { %6628 = vmatmul.mubr.bf16.vlgmr.msra.gmra.mrb[48].mxu0 %v9870_v60  ;;  %v8944_v60 = vld [vmem:[#allocation8 + $0xd90] sm:$0xff]  }
 0x2dd   : > { %6668 = vmatmul.mubr.bf16.vlgmr.msra.gmra.mrb[48].mxu1 %v9873_v63  ;;  %8260 = vmatpush3.bf16.msra.mxu0 %v8935_v1  ;;  %v8946_v63 = vld [vmem:[#allocation8 + $0xdd8] sm:$0xff]  }
 0x2de   : > { %6707 = vmatprep.mubr.bf16.mxu0 %v2463_v10  ;;  %8282 = vmatpush3.bf16.msra.mxu1 %v8936_v54  ;;  %v8971_v54 = vld [vmem:[#allocation8 + $0xe08] sm:$0xff]  }
 0x2df   : > { %6747 = vmatprep.mubr.bf16.mxu1 %v2464_v13  ;;  %8261 = vmatprep.subr.bf16.mxu0 %v8937_v4  ;;  %v8972_v4 = vld [vmem:[#allocation8 + $0xe88] sm:$0xff]   ;;  %v8975_v13 = vld [vmem:[#allocation8 + $0xe10] sm:$0xff]  }
 0x2e0   : > { %8283 = vmatprep.subr.bf16.mxu1 %v8938_v6  ;;  %v8973_v6 = vld [vmem:[#allocation8 + $0xe50] sm:$0xff]  }
 0x2e1   : > { %8262 = vmatpush3.bf16.msra.mxu0 %v8939_v37  ;;  %v7157_v10 = vld.sshfl [vmem:[#allocation2 + $0x20] sm:$0xf pattern:$0x76325410] }
 0x2e2   : > { %8284 = vmatpush3.bf16.msra.mxu1 %v8940_v14  ;;  %8263 = vmatprep.subr.bf16.mxu0 %v8941_v46  ;;  %v8974_v37 = vld [vmem:[#allocation8 + $0xed0] sm:$0xff]   ;;  %v8977_v14 = vld [vmem:[#allocation8 + $0xe58] sm:$0xff]  }
 0x2e3   : > { %8285 = vmatprep.subr.bf16.mxu1 %v8942_v11  ;;  %v8978_v11 = vld [vmem:[#allocation8 + $0xed8] sm:$0xff]  }
 0x2e5   : > { %8264 = vmatpush3.bf16.msra.mxu0 %v8943_v15  ;;  %v8979_v15 = vld [vmem:[#allocation8 + $0xe18] sm:$0xff]  }
 0x2e6   : > { %8286 = vmatpush3.bf16.msra.mxu1 %v8944_v60  ;;  %8265 = vmatprep.subr.bf16.mxu0 %v8945_v16  ;;  %v8980_v60 = vld [vmem:[#allocation8 + $0xe98] sm:$0xff]   ;;  %v8981_v16 = vld [vmem:[#allocation8 + $0xe60] sm:$0xff]  }
 0x2e7   : > { %8287 = vmatprep.subr.bf16.mxu1 %v8946_v63 }
 0x2e9   : > { %8266 = vmatpush3.bf16.msra.mxu0 %v8947_v61  ;;  %v8982_v61 = vld [vmem:[#allocation8 + $0xee0] sm:$0xff]  }
 0x2ea   : > { %8288 = vmatpush3.bf16.msra.mxu1 %v8948_v18  ;;  %8267 = vmatprep.subr.bf16.mxu0 %v8949_v12  ;;  %v8983_v18 = vld [vmem:[#allocation8 + $0xe20] sm:$0xff]   ;;  %v1157_v12 = vshrl.u32 %v9901_v7, 16 }
 0x2eb   : > { %8289 = vmatprep.subr.bf16.mxu1 %v8950_v8 }
 0x2ed   : > { %8268 = vmatpush3.bf16.msra.mxu0 %v8951_v17 }
 0x2ee   : > { %8290 = vmatpush3.bf16.msra.mxu1 %v8952_v3  ;;  %8269 = vmatprep.subr.bf16.mxu0 %v8953_v0  ;;  %v8986_v3 = vld [vmem:[#allocation8 + $0xee8] sm:$0xff]  }
 0x2ef   : > { %v7967_v25 = vpop.f32.mrb[24].mxu0  ;;  %8291 = vmatprep.subr.bf16.mxu1 %v8954_v24  ;;  %v8987_v0 = vld [vmem:[#allocation8 + $0xe28] sm:$0xff]  }
 0x2f0   : > { %v7989_v31 = vpop.f32.mrb[24].mxu1  ;;  %v7968_v32 = vpop.f32.mrb[25].mxu0  ;;  %v8988_v24 = vld [vmem:[#allocation8 + $0xea8] sm:$0xff]  }
 0x2f1   : > { %v7969_v34 = vadd.f32 %v7968_v32, %v7967_v25  ;;  %v7990_v35 = vpop.f32.mrb[25].mxu1  ;;  %v7970_v33 = vpop.f32.mrb[26].mxu0  ;;  %8270 = vmatpush3.bf16.msra.mxu0 %v8955_v26  ;;  %v8989_v26 = vld [vmem:[#allocation8 + $0xe70] sm:$0xff]  }
 0x2f2   : > { %v7991_v36 = vadd.f32 %v7990_v35, %v7989_v31  ;;  %v7992_v38 = vpop.f32.mrb[26].mxu1  ;;  %8292 = vmatpush3.bf16.msra.mxu1 %v8956_v20  ;;  %v7971_v40 = vpop.f32.mrb[27].mxu0  ;;  %8271 = vmatprep.subr.bf16.mxu0 %v8957_v27  ;;  %v7159_v20 = vrot.slane %v1157_v12, 9 }
 0x2f3   : > { %v6150_v43 = vadd.f32 %v7969_v34, %v9887_v56  ;;  %v7993_v44 = vpop.f32.mrb[27].mxu1  ;;  %8293 = vmatprep.subr.bf16.mxu1 %v8958_v30  ;;  %v9914_v56 = vrot.slane %v2465_v49, %v9655_v23  ;;  %v8991_v34 = vld [vmem:[#allocation8 + $0xe30] sm:$0xff]   ;;  %v8993_v38 = vld [vmem:[#allocation8 + $0xe78] sm:$0xff]   ;;  %v8997_v49 = vld [vmem:[#allocation8 + $0xf40] sm:$0xff]  }
 0x2f4   : > { %v8995_v44 = vld [vmem:[#allocation8 + $0xe38] sm:$0xff]  }
 0x2f5   : > { %v9908_v47 = vadd.f32 %v7991_v36, %v6150_v43  ;;  %8272 = vmatpush3.bf16.msra.mxu0 %v8959_v39  ;;  %v2481_v1 = vcombine.high %v9914_v56, %v9914_v56  ;;  %v8992_v36 = vld [vmem:[#allocation8 + $0xeb0] sm:$0xff]  }
 0x2f6   : > { %8294 = vmatpush3.bf16.msra.mxu1 %v8960_v41  ;;  %8273 = vmatprep.subr.bf16.mxu0 %v8961_v42 }
 0x2f7   : > { %8295 = vmatprep.subr.bf16.mxu1 %v8962_v45 }
 0x2f9   : > { %8274 = vmatpush3.bf16.msra.mxu0 %v8963_v48  ;;  %v8996_v48 = vld [vmem:[#allocation8 + $0xeb8] sm:$0xff]  }
 0x2fa   : > { %8296 = vmatpush3.bf16.msra.mxu1 %v8964_v50  ;;  %8303 = vmatprep.subr.bf16.mxu0 %v8965_v52  ;;  %v8998_v50 = vld [vmem:[#allocation8 + $0xfc0] sm:$0xff]  }
 0x2fb   : > { %8325 = vmatprep.subr.bf16.mxu1 %v8966_v53  ;;  %v9000_v53 = vld [vmem:[#allocation8 + $0xf80] sm:$0xff]  }
 0x2fc   : > { %6708 = vmatmul.mubr.bf16.vlgmr.msra.gmra.mrb[52].mxu0 %v9890_v51  ;;  %v7158_v51 = vld.sshfl [vmem:[#allocation2 + $0x28] sm:$0xf pattern:$0x76325410] }
 0x2fd   : > { %6748 = vmatmul.mubr.bf16.vlgmr.msra.gmra.mrb[52].mxu1 %v9893_v2  ;;  %8304 = vmatpush3.bf16.msra.mxu0 %v8967_v19  ;;  %v8976_v2 = vld [vmem:[#allocation8 + $0xe90] sm:$0xff]   ;;  %v1155_v46 = vcombine.low %v7157_v10, %v7158_v51  ;;  %v9001_v19 = vld [vmem:[#allocation8 + $0xf48] sm:$0xff]   ;;  %v9011_v10 = vld [vmem:[#allocation8 + $0xf18] sm:$0xff]  }
 0x2fe   : > { %6787 = vmatprep.mubr.bf16.mxu0 %v2480_v59  ;;  %8326 = vmatpush3.bf16.msra.mxu1 %v8968_v57  ;;  %v9013_v51 = vld [vmem:[#allocation8 + $0xf60] sm:$0xff]  }
 0x2ff   : > { %6827 = vmatprep.mubr.bf16.mxu1 %v2481_v1  ;;  %8305 = vmatprep.subr.bf16.mxu0 %v8969_v58  ;;  %v1162_v63 = vshrl.u32 %v1155_v46, 16  ;;  %v1165_v17 = vshll.u32 %v1155_v46, 16  ;;  %v9002_v58 = vld [vmem:[#allocation8 + $0xfc8] sm:$0xff]   ;;  %v9005_v1 = vld [vmem:[#allocation8 + $0xf50] sm:$0xff]  }
 0x300   : > { %8327 = vmatprep.subr.bf16.mxu1 %v8970_v62  ;;  %v9003_v62 = vld [vmem:[#allocation8 + $0xf08] sm:$0xff]  }
 0x301   : > { %8306 = vmatpush3.bf16.msra.mxu0 %v8971_v54  ;;  %v1164_v8 = vrot.slane %v1162_v63, 7  ;;  %v9006_v54 = vld [vmem:[#allocation8 + $0xfd0] sm:$0xff]   ;;  %v9017_v46 = vld [vmem:[#allocation8 + $0xf68] sm:$0xff]  }
 0x302   : > { %8328 = vmatpush3.bf16.msra.mxu1 %v8972_v4  ;;  %8307 = vmatprep.subr.bf16.mxu0 %v8973_v6  ;;  %v9008_v4 = vld [vmem:[#allocation8 + $0xf90] sm:$0xff]   ;;  %v9009_v6 = vld [vmem:[#allocation8 + $0xf58] sm:$0xff]  }
 0x303   : > { %8329 = vmatprep.subr.bf16.mxu1 %v8974_v37  ;;  %v1167_v27 = vor.u32 %v1165_v17, %v1164_v8  ;;  %v9012_v37 = vld [vmem:[#allocation8 + $0xf98] sm:$0xff]   ;;  %v9023_v17 = vld [vmem:[#allocation8 + $0xf30] sm:$0xff]  }
 0x305   : > { %8308 = vmatpush3.bf16.msra.mxu0 %v8975_v13  ;;  %v1168_v40 = vsel %vm9711_vm7, %v7159_v20, %v1167_v27  ;;  %v9014_v13 = vld [vmem:[#allocation8 + $0xfe0] sm:$0xff]   ;;  %v9025_v20 = vld [vmem:[#allocation8 + $0xf78] sm:$0xff]  }
 0x306   : > { %8330 = vmatpush3.bf16.msra.mxu1 %v8976_v2  ;;  %8309 = vmatprep.subr.bf16.mxu0 %v8977_v14  ;;  %v2482_v45 = vcombine.high %v1168_v40, %v1168_v40  ;;  %v9929_v52 = vrot.slane %v1168_v40, %v9655_v23  ;;  %v9015_v2 = vld [vmem:[#allocation8 + $0xf20] sm:$0xff]  }
 0x307   : > { %8331 = vmatprep.subr.bf16.mxu1 %v8978_v11  ;;  %v9016_v14 = vld [vmem:[#allocation8 + $0xfa0] sm:$0xff]   ;;  %v9018_v11 = vld [vmem:[#allocation8 + $0xfe8] sm:$0xff]  }
 0x308   : > { %v2497_v57 = vcombine.high %v9929_v52, %v9929_v52 }
 0x309   : > { %8310 = vmatpush3.bf16.msra.mxu0 %v8979_v15  ;;  %v9019_v15 = vld [vmem:[#allocation8 + $0xf28] sm:$0xff]  }
 0x30a   : > { %8332 = vmatpush3.bf16.msra.mxu1 %v8980_v60  ;;  %8311 = vmatprep.subr.bf16.mxu0 %v8981_v16  ;;  %v9020_v60 = vld [vmem:[#allocation8 + $0xfa8] sm:$0xff]   ;;  %v9021_v16 = vld [vmem:[#allocation8 + $0xf70] sm:$0xff]  }
 0x30b   : > { %8333 = vmatprep.subr.bf16.mxu1 %v8982_v61  ;;  %v9022_v61 = vld [vmem:[#allocation8 + $0xff0] sm:$0xff]  }
 0x30d   : > { %8312 = vmatpush3.bf16.msra.mxu0 %v8983_v18 }
 0x30e   : > { %8334 = vmatpush3.bf16.msra.mxu1 %v8984_v21  ;;  %8313 = vmatprep.subr.bf16.mxu0 %v8985_v22 }
 0x30f   : > { %v8011_v28 = vpop.f32.mrb[28].mxu0  ;;  %8335 = vmatprep.subr.bf16.mxu1 %v8986_v3 }
 0x310   : > { %v8033_v25 = vpop.f32.mrb[28].mxu1  ;;  %v8012_v30 = vpop.f32.mrb[29].mxu0 }
 0x311   : > { %v8013_v31 = vadd.f32 %v8012_v30, %v8011_v28  ;;  %v8034_v32 = vpop.f32.mrb[29].mxu1  ;;  %v8014_v7 = vpop.f32.mrb[30].mxu0  ;;  %8314 = vmatpush3.bf16.msra.mxu0 %v8987_v0  ;;  %v9027_v30 = vld [vmem:[#allocation8 + $0xf38] sm:$0xff]  }
 0x312   : > { %v8035_v35 = vadd.f32 %v8034_v32, %v8033_v25  ;;  %v8036_v33 = vpop.f32.mrb[30].mxu1  ;;  %8336 = vmatpush3.bf16.msra.mxu1 %v8988_v24  ;;  %v8015_v39 = vpop.f32.mrb[31].mxu0  ;;  %8315 = vmatprep.subr.bf16.mxu0 %v8989_v26  ;;  %v9024_v26 = vld [vmem:[#allocation8 + $0xfb0] sm:$0xff]  }
 0x313   : > { %v6230_v41 = vadd.f32 %v8013_v31, %v9908_v47  ;;  %v8037_v42 = vpop.f32.mrb[31].mxu1  ;;  %8337 = vmatprep.subr.bf16.mxu1 %v8990_v29  ;;  %v9932_v47 = vrot.slane %v2482_v45, %v9655_v23  ;;  %v9004_v23 = vld [vmem:[#allocation8 + $0xf88] sm:$0xff]   ;;  %v9026_v29 = vld [vmem:[#allocation8 + $0xff8] sm:$0xff]  }
 0x314   : > { %v9028_v31 = vld [vmem:[#allocation8 + $0xfb8] sm:$0xff]  }
 0x315   : > { %v9926_v43 = vadd.f32 %v8035_v35, %v6230_v41  ;;  %8316 = vmatpush3.bf16.msra.mxu0 %v8991_v34  ;;  %v2498_v59 = vcombine.high %v9932_v47, %v9932_v47 }
 0x316   : > { %8338 = vmatpush3.bf16.msra.mxu1 %v8992_v36  ;;  %8317 = vmatprep.subr.bf16.mxu0 %v8993_v38 }
 0x317   : > { %8339 = vmatprep.subr.bf16.mxu1 %v8994_v9 }
 0x319   : > { %8318 = vmatpush3.bf16.msra.mxu0 %v8995_v44 }
 0x31a   : > { %8340 = vmatpush3.bf16.msra.mxu1 %v8996_v48  ;;  %8347 = vmatprep.subr.bf16.mxu0 %v8997_v49 }
 0x31b   : > { %8369 = vmatprep.subr.bf16.mxu1 %v8998_v50 }
 0x31c   : > { %6788 = vmatmul.mubr.bf16.vlgmr.msra.gmra.mrb[56].mxu0 %v9911_v55  ;;  %v9007_v55 = vld [vmem:[#allocation8 + $0xf10] sm:$0xff]  }
 0x31d   : > { %6828 = vmatmul.mubr.bf16.vlgmr.msra.gmra.mrb[56].mxu1 %v9914_v56  ;;  %8348 = vmatpush3.bf16.msra.mxu0 %v8999_v5  ;;  %v9010_v56 = vld [vmem:[#allocation8 + $0xfd8] sm:$0xff]  }
 0x31e   : > { %6867 = vmatprep.mubr.bf16.mxu0 %v2497_v57  ;;  %8370 = vmatpush3.bf16.msra.mxu1 %v9000_v53 }
 0x31f   : > { %6907 = vmatprep.mubr.bf16.mxu1 %v2498_v59  ;;  %8349 = vmatprep.subr.bf16.mxu0 %v9001_v19 }
 0x320   : > { %8371 = vmatprep.subr.bf16.mxu1 %v9002_v58 }
 0x321   : > { %8350 = vmatpush3.bf16.msra.mxu0 %v9003_v62 }
 0x322   : > { %8372 = vmatpush3.bf16.msra.mxu1 %v9004_v23  ;;  %8351 = vmatprep.subr.bf16.mxu0 %v9005_v1 }
 0x323   : > { %8373 = vmatprep.subr.bf16.mxu1 %v9006_v54 }
 0x325   : > { %8352 = vmatpush3.bf16.msra.mxu0 %v9007_v55 }
 0x326   : > { %8374 = vmatpush3.bf16.msra.mxu1 %v9008_v4  ;;  %8353 = vmatprep.subr.bf16.mxu0 %v9009_v6 }
 0x327   : > { %8375 = vmatprep.subr.bf16.mxu1 %v9010_v56 }
 0x329   : > { %8354 = vmatpush3.bf16.msra.mxu0 %v9011_v10 }
 0x32a   : > { %8376 = vmatpush3.bf16.msra.mxu1 %v9012_v37  ;;  %8355 = vmatprep.subr.bf16.mxu0 %v9013_v51 }
 0x32b   : > { %8377 = vmatprep.subr.bf16.mxu1 %v9014_v13 }
 0x32d   : > { %8356 = vmatpush3.bf16.msra.mxu0 %v9015_v2 }
 0x32e   : > { %8378 = vmatpush3.bf16.msra.mxu1 %v9016_v14  ;;  %8357 = vmatprep.subr.bf16.mxu0 %v9017_v46 }
 0x32f   : > { %v8055_v63 = vpop.f32.mrb[32].mxu0  ;;  %8379 = vmatprep.subr.bf16.mxu1 %v9018_v11 }
 0x330   : > { %v8077_v18 = vpop.f32.mrb[32].mxu1  ;;  %v8056_v21 = vpop.f32.mrb[33].mxu0 }
 0x331   : > { %v8057_v22 = vadd.f32 %v8056_v21, %v8055_v63  ;;  %v8078_v12 = vpop.f32.mrb[33].mxu1  ;;  %v8058_v8 = vpop.f32.mrb[34].mxu0  ;;  %8358 = vmatpush3.bf16.msra.mxu0 %v9019_v15 }
 0x332   : > { %v8079_v3 = vadd.f32 %v8078_v12, %v8077_v18  ;;  %v8080_v0 = vpop.f32.mrb[34].mxu1  ;;  %8380 = vmatpush3.bf16.msra.mxu1 %v9020_v60  ;;  %v8059_v24 = vpop.f32.mrb[35].mxu0  ;;  %8359 = vmatprep.subr.bf16.mxu0 %v9021_v16 }
 0x333   : > { %v6310_v27 = vadd.f32 %v8057_v22, %v9926_v43  ;;  %v8081_v28 = vpop.f32.mrb[35].mxu1  ;;  %8381 = vmatprep.subr.bf16.mxu1 %v9022_v61 }
 0x335   : > { %v6350_v25 = vadd.f32 %v8079_v3, %v6310_v27  ;;  %8360 = vmatpush3.bf16.msra.mxu0 %v9023_v17 }
 0x336   : > { %8382 = vmatpush3.bf16.msra.mxu1 %v9024_v26  ;;  %8361 = vmatprep.subr.bf16.mxu0 %v9025_v20 }
 0x337   : > { %8383 = vmatprep.subr.bf16.mxu1 %v9026_v29 }
 0x339   : > { %8362 = vmatpush3.bf16.msra.mxu0 %v9027_v30 }
 0x33a   : > { %8384 = vmatpush3.bf16.msra.mxu1 %v9028_v31 }
 0x33c   : > { %6868 = vmatmul.mubr.bf16.vlgmr.msra.gmra.mrb[60].mxu0 %v9929_v52 }
 0x33d   : > { %6908 = vmatmul.mubr.bf16.vlgmr.msra.gmra.mrb[60].mxu1 %v9932_v47 }
 0x34f   : > { %v8099_v32 = vpop.f32.mrb[36].mxu0 }
 0x350   : > { %v8121_v7 = vpop.f32.mrb[36].mxu1  ;;  %v8100_v34 = vpop.f32.mrb[37].mxu0 }
 0x351   : > { %v8101_v35 = vadd.f32 %v8100_v34, %v8099_v32  ;;  %v8122_v33 = vpop.f32.mrb[37].mxu1  ;;  %v8102_v39 = vpop.f32.mrb[38].mxu0 }
 0x352   : > { %v8123_v36 = vadd.f32 %v8122_v33, %v8121_v7  ;;  %v8124_v38 = vpop.f32.mrb[38].mxu1  ;;  %v8103_v40 = vpop.f32.mrb[39].mxu0 }
 0x353   : > { %v6390_v41 = vadd.f32 %v8101_v35, %v6350_v25  ;;  %v8125_v42 = vpop.f32.mrb[39].mxu1 }
 0x355   : > { %v6430_v9 = vadd.f32 %v8123_v36, %v6390_v41 }
 0x36f   : > { %v8143_v43 = vpop.f32.mrb[40].mxu0 }
 0x370   : > { %v8165_v44 = vpop.f32.mrb[40].mxu1  ;;  %v8144_v45 = vpop.f32.mrb[41].mxu0 }
 0x371   : > { %v8145_v48 = vadd.f32 %v8144_v45, %v8143_v43  ;;  %v8166_v49 = vpop.f32.mrb[41].mxu1  ;;  %v8146_v50 = vpop.f32.mrb[42].mxu0 }
 0x372   : > { %v8167_v52 = vadd.f32 %v8166_v49, %v8165_v44  ;;  %v8168_v5 = vpop.f32.mrb[42].mxu1  ;;  %v8147_v47 = vpop.f32.mrb[43].mxu0 }
 0x373   : > { %v6470_v53 = vadd.f32 %v8145_v48, %v6430_v9  ;;  %v8169_v19 = vpop.f32.mrb[43].mxu1  ;;  %v7672_v5 = vld [vmem:[#allocation10] ss:$0 sm:$0xff] }
 0x375   : > { %v6510_v57 = vadd.f32 %v8167_v52, %v6470_v53 }
 0x38f   : > { %v8187_v58 = vpop.f32.mrb[44].mxu0 }
 0x390   : > { %v8209_v59 = vpop.f32.mrb[44].mxu1  ;;  %v8188_v62 = vpop.f32.mrb[45].mxu0 }
 0x391   : > { %v8189_v23 = vadd.f32 %v8188_v62, %v8187_v58  ;;  %v8210_v1 = vpop.f32.mrb[45].mxu1  ;;  %v8190_v54 = vpop.f32.mrb[46].mxu0 }
 0x392   : > { %v8211_v55 = vadd.f32 %v8210_v1, %v8209_v59  ;;  %v8212_v4 = vpop.f32.mrb[46].mxu1  ;;  %v8191_v6 = vpop.f32.mrb[47].mxu0 }
 0x393   : > { %v6550_v56 = vadd.f32 %v8189_v23, %v6510_v57  ;;  %v8213_v10 = vpop.f32.mrb[47].mxu1 }
 0x395   : > { %v6590_v37 = vadd.f32 %v8211_v55, %v6550_v56 }
 0x3af   : > { %v8231_v51 = vpop.f32.mrb[48].mxu0 }
 0x3b0   : > { %v8253_v13 = vpop.f32.mrb[48].mxu1  ;;  %v8232_v2 = vpop.f32.mrb[49].mxu0 }
 0x3b1   : > { %v8233_v14 = vadd.f32 %v8232_v2, %v8231_v51  ;;  %v8254_v46 = vpop.f32.mrb[49].mxu1  ;;  %v8234_v11 = vpop.f32.mrb[50].mxu0 }
 0x3b2   : > { %v8255_v15 = vadd.f32 %v8254_v46, %v8253_v13  ;;  %v8256_v60 = vpop.f32.mrb[50].mxu1  ;;  %v8235_v16 = vpop.f32.mrb[51].mxu0 }
 0x3b3   : > { %v6630_v63 = vadd.f32 %v8233_v14, %v6590_v37  ;;  %v8257_v61 = vpop.f32.mrb[51].mxu1 }
 0x3b5   : > { %v6670_v18 = vadd.f32 %v8255_v15, %v6630_v63 }
 0x3cf   : > { %v8275_v21 = vpop.f32.mrb[52].mxu0 }
 0x3d0   : > { %v8297_v22 = vpop.f32.mrb[52].mxu1  ;;  %v8276_v12 = vpop.f32.mrb[53].mxu0 }
 0x3d1   : > { %v8277_v8 = vadd.f32 %v8276_v12, %v8275_v21  ;;  %v8298_v17 = vpop.f32.mrb[53].mxu1  ;;  %v8278_v3 = vpop.f32.mrb[54].mxu0 }
 0x3d2   : > { %v8299_v0 = vadd.f32 %v8298_v17, %v8297_v22  ;;  %v8300_v24 = vpop.f32.mrb[54].mxu1  ;;  %v8279_v26 = vpop.f32.mrb[55].mxu0 }
 0x3d3   : > { %v6710_v20 = vadd.f32 %v8277_v8, %v6670_v18  ;;  %v8301_v27 = vpop.f32.mrb[55].mxu1 }
 0x3d5   : > { %v6750_v28 = vadd.f32 %v8299_v0, %v6710_v20 }
 0x3ef   : > { %v8319_v29 = vpop.f32.mrb[56].mxu0 }
 0x3f0   : > { %v8341_v25 = vpop.f32.mrb[56].mxu1  ;;  %v8320_v30 = vpop.f32.mrb[57].mxu0 }
 0x3f1   : > { %v8321_v31 = vadd.f32 %v8320_v30, %v8319_v29  ;;  %v8342_v32 = vpop.f32.mrb[57].mxu1  ;;  %v8322_v7 = vpop.f32.mrb[58].mxu0 }
 0x3f2   : > { %v8343_v34 = vadd.f32 %v8342_v32, %v8341_v25  ;;  %v8344_v35 = vpop.f32.mrb[58].mxu1  ;;  %v8323_v33 = vpop.f32.mrb[59].mxu0 }
 0x3f3   : > { %v6790_v39 = vadd.f32 %v8321_v31, %v6750_v28  ;;  %v8345_v36 = vpop.f32.mrb[59].mxu1 }
 0x3f5   : > { %v6830_v38 = vadd.f32 %v8343_v34, %v6790_v39 }
 0x40f   : > { %v8363_v40 = vpop.f32.mrb[60].mxu0 }
 0x410   : > { %v8385_v41 = vpop.f32.mrb[60].mxu1  ;;  %v8364_v42 = vpop.f32.mrb[61].mxu0 }
 0x411   : > { %v8365_v9 = vadd.f32 %v8364_v42, %v8363_v40  ;;  %v8386_v43 = vpop.f32.mrb[61].mxu1  ;;  %v8366_v44 = vpop.f32.mrb[62].mxu0 }
 0x412   : > { %v8387_v45 = vadd.f32 %v8386_v43, %v8385_v41  ;;  %v8388_v48 = vpop.f32.mrb[62].mxu1  ;;  %v8367_v49 = vpop.f32.mrb[63].mxu0 }
 0x413   : > { %v6870_v50 = vadd.f32 %v8365_v9, %v6830_v38  ;;  %v8389_v52 = vpop.f32.mrb[63].mxu1 }
 0x415   : > { %v6910_v47 = vadd.f32 %v8387_v45, %v6870_v50 }
 0x417   : > { %v6926_v53 = vadd.f32 %v7672_v5, %v6910_v47 }
 0x419   : > { %6927 = vst [vmem:[#allocation4] sm:$0xf] %v6926_v53 }
 0x420   : > { %v6938_v19 = vld [vmem:[#allocation4] sm:$0xf] }
 0x421   : > { %6939 = vst [vmem:[%s360_s13] sm:$0xf] %v6938_v19 }
 0x422   : > { %9212 = shalt.err (!%p9209_p8)
}
 0x423   : > { %s9213_s14 = scalar_lea.hbm %s9948_s8, 64  ;;  %s9217_s12 = scalar_lea.hbm %s10003_s6, 128 }
 0x424   : > { %p9214_p3 = scmp.ne.s32.totalorder %s9948_s8, %s9213_s14  ;;  %p9218_p0 = scmp.lt.u32.totalorder %s9948_s8, %s10003_s6 }
 0x425   : > { %p9219_p1 = scmp.lt.u32.totalorder %s9217_s12, %s9213_s14  ;;  %p9221_p6 = scmp.lt.u32.totalorder %s9213_s14, %s9948_s8 }
 0x426   : > { %p9215_p12 = pnand %p9214_p3, %p10041_p5 }
 0x427   : > { %p9220_p7 = por %p9219_p1, %p9218_p0 }
 0x428   : > { %p9216_p13 = pneg %p9215_p12 }
 0x429   : > { %p9222_p10 = por %p9221_p6, %p9220_p7 }
 0x42b   : > { %p9223_p11 = pnand %p9222_p10, %p9216_p13 }
 0x42d   : > { %9226 = shalt.err (!%p9223_p11)
}
 0x42e   : > { %8416 = dma.vmem_to_hbm [thread:$0]  (%p10041_p5), %s9950_s18, 64, %s9948_s8, %s6941_s20  }
 0x42f PF: > { %s6966_s29 = sand.u32 1, %s9273_s21   ;;  %p10042_p2 = scmp.ne.s32.totalorder %s10022_s17, 0 }
 0x430   : > { %p10043_p4 = scmp.ge.s32.totalorder %s9293_s26, 2  ;;  %s6967_s13 = scalar_lea.sflag [#allocation7], %s6966_s29 }
 0x432   : > { %p8439_p9 = pnand %p10043_p4, %p10042_p2 }
 0x434   : > { %9268 = dma.done.wait (!%p8439_p9), %s6967_s13, 64  }
 0x435   : > { %9270 = vsyncadd (!%p8439_p9), %s6967_s13, 4294967232  ;;  %s25_s26 = sadd.s32 1, %s9293_s26   ;;  %s10044_s21 = smov %s9277_s22 }
 0x436   : > { %p22_p8 = scmp.ge.s32.totalorder %s25_s26, 4   ;;  %s10045_s22 = smov %s9281_s23 }
 0x437   : > { %s10046_s23 = smov %s9540_s16  ;;  %s10047_s24 = smov %s9289_s25 }
 0x438   : > { %s10048_s25 = smov %s10050_s7  ;;  %24 = sbr.rel (!%p22_p8) target bundleno = 12 (0xc), region = 122 }
 0x43f   :  { %6972 = vsyncpa [#allocation6], 1 }
 0x440   :  { %6974 = vsyncpa [#allocation6 + $0x1], 1 }
 0x441   :  { %6975 = vsyncpa [#allocation9], 1 }
 0x442   :  { %6976 = vsyncpa [#allocation12], 1 }
 0x443   :  { %6977 = vsyncpa [#allocation15], 1 }
 0x444   :  { %6978 = vsyncpa [#allocation7], 1 }
 0x445   :  { %6980 = vsyncpa [#allocation7 + $0x1], 1 }

</bundles_post_ra>
